<compile_context>
chip_gen: v7x
topology: tpu7x:2x2x1
jax: 0.10.0
libtpu: 0.0.40
codegen_flags: <defaults>
</compile_context>

<pallas_src>
import functools

import jax
import jax.numpy as jnp
from jax.experimental import pallas as pl
from jax.experimental.pallas import tpu as pltpu

LANE = 128            # lane width: intermediate/output channels padded to this
MLP_TILE_ROWS = 2048  # row tile for the pointwise-MLP kernel


def _round_up(x, m):
    return (x + m - 1) // m * m


# ---------------------------------------------------------------------------
# Kernel 1: fft_conv1  (1x1 conv -> ReLU -> 1x1 conv) as a row-tiled MLP
# ---------------------------------------------------------------------------
def _fft_mlp_kernel(x_ref, w1_ref, b1_ref, w2_ref, b2_ref, o_ref):
    x = x_ref[...]                                                    # (tile, 2C)
    h = jnp.dot(x, w1_ref[...], preferred_element_type=jnp.float32) + b1_ref[...]
    h = jnp.maximum(h, 0.0)                                           # ReLU
    o_ref[...] = jnp.dot(h, w2_ref[...], preferred_element_type=jnp.float32) + b2_ref[...]


def fft_pointwise_mlp(x, w1t, b1, w2t, b2, tile_rows=MLP_TILE_ROWS):
    N, F = x.shape
    tile = min(tile_rows, _round_up(N, 8))
    Np = _round_up(N, tile)
    if Np != N:
        x = jnp.pad(x, ((0, Np - N), (0, 0)))
    out = pl.pallas_call(
        _fft_mlp_kernel,
        out_shape=jax.ShapeDtypeStruct((Np, F), jnp.float32),
        grid=(Np // tile,),
        in_specs=[
            pl.BlockSpec((tile, F), lambda i: (i, 0)),   # rows stream through VMEM
            pl.BlockSpec((F, F), lambda i: (0, 0)),      # weights stay resident
            pl.BlockSpec((1, F), lambda i: (0, 0)),
            pl.BlockSpec((F, F), lambda i: (0, 0)),
            pl.BlockSpec((1, F), lambda i: (0, 0)),
        ],
        out_specs=pl.BlockSpec((tile, F), lambda i: (i, 0)),
        compiler_params=pltpu.CompilerParams(
            dimension_semantics=("parallel",)),
    )(x, w1t, b1, w2t, b2)
    return out if Np == N else out[:N]


# ---------------------------------------------------------------------------
# Kernel 2: fused merging UNetConvBlock (conv_1 -> HIN -> LReLU -> conv_2
#           -> LReLU -> + identity), one image per grid step
# ---------------------------------------------------------------------------
def _merging_kernel(x_ref, ml_ref, mr_ref, w1_ref, b1_ref, g_ref, bt_ref,
                    w2_ref, b2_ref, wi_ref, bi_ref, o_ref, hbuf_ref,
                    *, HW, W, pad_rows, Cpad, half, slope, eps):
    ml = ml_ref[...]            # (HW, 1): 1.0 where the kw=0 tap is in-bounds
    mr = mr_ref[...]            # (HW, 1): 1.0 where the kw=2 tap is in-bounds

    def conv3x3(read_rows, w_taps_ref):
        # 3x3 conv as 9 row-shifted matmuls on the flattened (row-padded) slab.
        acc = jnp.zeros((HW, Cpad), jnp.float32)
        for t in range(9):
            kh, kw = t // 3, t % 3
            start = pad_rows + (kh - 1) * W + (kw - 1)    # static row shift
            xs = read_rows(start)                         # (HW, Cin_src)
            if kw == 0:
                xs = xs * ml
            elif kw == 2:
                xs = xs * mr
            acc = acc + jnp.dot(xs, w_taps_ref[t],
                                preferred_element_type=jnp.float32)
        return acc

    # ---- conv_1 : 3x3, in=2C, out=C (zero-padded to Cpad lanes) ----
    acc = conv3x3(lambda s: x_ref[0, s:s + HW, :], w1_ref) + b1_ref[...]

    # ---- Half-Instance-Norm on the first `half` channels, then LeakyReLU ----
    mean = jnp.mean(acc, axis=0, keepdims=True)
    var = jnp.mean(jnp.square(acc - mean), axis=0, keepdims=True)   # biased, torch-style
    normed = (acc - mean) * jax.lax.rsqrt(var + eps) * g_ref[...] + bt_ref[...]
    ch = jax.lax.broadcasted_iota(jnp.int32, acc.shape, 1)
    h = jnp.where(ch < half, normed, acc)                 # cat([IN(x1), x2])
    h = jnp.where(h >= 0.0, h, slope * h)                 # LeakyReLU(0.2)

    # stage h into a zero-padded VMEM scratch so conv_2 taps see a zero halo
    hbuf_ref[...] = jnp.zeros_like(hbuf_ref)
    hbuf_ref[pad_rows:pad_rows + HW, :] = h

    # ---- conv_2 : 3x3, Cpad -> Cpad, + LeakyReLU ----
    acc2 = conv3x3(lambda s: hbuf_ref[s:s + HW, :], w2_ref) + b2_ref[...]
    acc2 = jnp.where(acc2 >= 0.0, acc2, slope * acc2)

    # ---- identity 1x1 conv on the original (un-shifted) input rows ----
    xin = x_ref[0, pad_rows:pad_rows + HW, :]
    idn = jnp.dot(xin, wi_ref[...], preferred_element_type=jnp.float32) + bi_ref[...]

    o_ref[0] = acc2 + idn


def merging_block(xin_nhwc, params, *, channels, slope=0.2, eps=1e-5):
    B, H, W, Cin = xin_nhwc.shape                 # Cin = 2C
    HW = H * W
    Cpad = params["b1"].shape[-1]
    half = channels // 2
    pad_rows = _round_up(W + 1, 8)                # zero rows above/below the image
    Lp = HW + 2 * pad_rows

    x_rows = xin_nhwc.reshape(B, HW, Cin)
    x_rows = jnp.pad(x_rows, ((0, 0), (pad_rows, pad_rows), (0, 0)))

    # Column-edge validity masks (shared by conv_1 and conv_2).
    j = jnp.arange(HW, dtype=jnp.int32) % W
    mask_l = (j >= 1).astype(jnp.float32).reshape(HW, 1)
    mask_r = (j <= W - 2).astype(jnp.float32).reshape(HW, 1)

    kern = functools.partial(_merging_kernel, HW=HW, W=W, pad_rows=pad_rows,
                             Cpad=Cpad, half=half, slope=slope, eps=eps)
    return pl.pallas_call(
        kern,
        out_shape=jax.ShapeDtypeStruct((B, HW, Cpad), jnp.float32),
        grid=(B,),
        in_specs=[
            pl.BlockSpec((1, Lp, Cin), lambda b: (b, 0, 0)),      # one image per step
            pl.BlockSpec((HW, 1), lambda b: (0, 0)),
            pl.BlockSpec((HW, 1), lambda b: (0, 0)),
            pl.BlockSpec((9, Cin, Cpad), lambda b: (0, 0, 0)),    # weights VMEM-resident
            pl.BlockSpec((1, Cpad), lambda b: (0, 0)),
            pl.BlockSpec((1, Cpad), lambda b: (0, 0)),
            pl.BlockSpec((1, Cpad), lambda b: (0, 0)),
            pl.BlockSpec((9, Cpad, Cpad), lambda b: (0, 0, 0)),
            pl.BlockSpec((1, Cpad), lambda b: (0, 0)),
            pl.BlockSpec((Cin, Cpad), lambda b: (0, 0)),
            pl.BlockSpec((1, Cpad), lambda b: (0, 0)),
        ],
        out_specs=pl.BlockSpec((1, HW, Cpad), lambda b: (b, 0, 0)),  # lane-dense stores
        scratch_shapes=[pltpu.VMEM((Lp, Cpad), jnp.float32)],
        compiler_params=pltpu.CompilerParams(
            dimension_semantics=("parallel",),          # batch sharded across TCs (v7x)
            vmem_limit_bytes=48 * 1024 * 1024,          # fits v7x's 64 MiB VMEM
        ),
    )(x_rows, mask_l, mask_r, params["w1_taps"], params["b1"],
      params["gamma_full"], params["beta_full"], params["w2_taps"],
      params["b2"], params["wi_t"], params["bi"])


# ---------------------------------------------------------------------------
# Forward pass (NHWC end-to-end; FFTs stay in XLA)
# ---------------------------------------------------------------------------
def res_block_do_fft_bench2(x, params):
    B, C, H, W = x.shape
    x_nhwc = jnp.transpose(x.astype(jnp.float32), (0, 2, 3, 1))       # NCHW -> NHWC once

    # ---- FFT branch ----
    # TODO(synk): rfft2 / irfft2 have no Pallas TPU primitive; computed in XLA.
    y = jnp.fft.rfft2(x_nhwc, axes=(1, 2), norm="backward")           # (B, H, Wf, C) complex
    Wf = y.shape[2]
    y_f = jnp.concatenate([jnp.real(y), jnp.imag(y)], axis=-1)        # (B, H, Wf, 2C)
    rows = y_f.reshape(B * H * Wf, 2 * C)
    z = fft_pointwise_mlp(rows, params["wf1_t"], params["bf1"],
                          params["wf2_t"], params["bf2"])
    z = z.reshape(B, H, Wf, 2 * C)
    y_complex = jax.lax.complex(z[..., :C], z[..., C:])
    y_spatial = jnp.fft.irfft2(y_complex, s=(H, W), axes=(1, 2), norm="backward")

    # ---- merging: UNetConvBlock(2C -> C, use_HIN=True, slope=0.2), fully fused ----
    xin = jnp.concatenate([x_nhwc, y_spatial], axis=-1)               # (B, H, W, 2C)
    out_rows = merging_block(xin, params, channels=C)                 # (B, H*W, Cpad)
    out = out_rows[..., :C].reshape(B, H, W, C)
    return jnp.transpose(out, (0, 3, 1, 2))                           # back to NCHW


# ---------------------------------------------------------------------------
# Deterministic parameter init (synthetic — shapes follow the module __init__)
# ---------------------------------------------------------------------------
def init_params(key, channels):
    C = channels
    Cpad = max(LANE, _round_up(C, LANE))
    keys = jax.random.split(key, 12)

    def rnd(k, shape, scale=0.1):
        return scale * jax.random.normal(k, shape, dtype=jnp.float32)

    wf1 = rnd(keys[0], (2 * C, 2 * C))        # fft_conv1[0]: Conv2d(2C, 2C, 1)
    bf1 = rnd(keys[1], (2 * C,))
    wf2 = rnd(keys[2], (2 * C, 2 * C))        # fft_conv1[2]
    bf2 = rnd(keys[3], (2 * C,))
    w1 = rnd(keys[4], (C, 2 * C, 3, 3))       # merging.conv_1
    b1 = rnd(keys[5], (C,))
    w2 = rnd(keys[6], (C, C, 3, 3))           # merging.conv_2
    b2 = rnd(keys[7], (C,))
    wi = rnd(keys[8], (C, 2 * C))             # merging.identity (1x1)
    bi = rnd(keys[9], (C,))
    gamma = 1.0 + rnd(keys[10], (C // 2,))    # InstanceNorm2d(C//2, affine=True)
    beta = rnd(keys[11], (C // 2,))

    def pad_last(a, n):
        return jnp.pad(a, [(0, 0)] * (a.ndim - 1) + [(0, n - a.shape[-1])])

    w1_taps = jnp.transpose(w1, (2, 3, 1, 0)).reshape(9, 2 * C, C)    # (tap, in, out)
    w1_taps = pad_last(w1_taps, Cpad)
    w2_taps = jnp.transpose(w2, (2, 3, 1, 0)).reshape(9, C, C)
    w2_taps = jnp.pad(w2_taps, ((0, 0), (0, Cpad - C), (0, Cpad - C)))
    wi_t = pad_last(wi.T, Cpad)                                       # (2C, Cpad)

    gamma_full = jnp.concatenate([gamma, jnp.ones((Cpad - C // 2,), jnp.float32)])
    beta_full = jnp.concatenate([beta, jnp.zeros((Cpad - C // 2,), jnp.float32)])

    return dict(
        wf1_t=wf1.T, bf1=bf1.reshape(1, -1),
        wf2_t=wf2.T, bf2=bf2.reshape(1, -1),
        w1_taps=w1_taps, b1=pad_last(b1.reshape(1, -1), Cpad),
        w2_taps=w2_taps, b2=pad_last(b2.reshape(1, -1), Cpad),
        wi_t=wi_t, bi=pad_last(bi.reshape(1, -1), Cpad),
        gamma_full=gamma_full.reshape(1, -1),
        beta_full=beta_full.reshape(1, -1),
    )


if __name__ == "__main__":
    key = jax.random.PRNGKey(0)
    kx, kp = jax.random.split(key)

    channels = 4
    B, H, W = 2, 16, 16
    x = jax.random.normal(kx, (B, channels, H, W), dtype=jnp.float32)
    params = init_params(kp, channels)

    out = jax.jit(res_block_do_fft_bench2)(x, params)
    out = jax.block_until_ready(out)
    assert out.shape == (B, channels, H, W)
    assert out.dtype == jnp.float32
    print("KERNEL_OK")
</pallas_src>

<mosaic_0001>
module attributes {stable_mosaic.version = 11 : i64} {
  func.func @_fft_mlp_kernel(%arg0: i32, %arg1: memref<288x8xf32, #tpu.memory_space<vmem>>, %arg2: memref<8x8xf32, #tpu.memory_space<vmem>>, %arg3: memref<1x8xf32, #tpu.memory_space<vmem>>, %arg4: memref<8x8xf32, #tpu.memory_space<vmem>>, %arg5: memref<1x8xf32, #tpu.memory_space<vmem>>, %arg6: memref<288x8xf32, #tpu.memory_space<vmem>>) attributes {dimension_semantics = [#tpu.dimension_semantics<parallel>], iteration_bounds = array<i64: 1>, scalar_prefetch = 0 : i64, scratch_operands = 0 : i64, tpu.core_type = #tpu.core_type<tc>, window_params = [{transform_indices = @transform_0, window_bounds = array<i64: 288, 8>}, {pipeline_mode = #tpu.pipeline_mode<synchronous>, transform_indices = @transform_1, window_bounds = array<i64: 8, 8>}, {pipeline_mode = #tpu.pipeline_mode<synchronous>, transform_indices = @transform_2, window_bounds = array<i64: 1, 8>}, {pipeline_mode = #tpu.pipeline_mode<synchronous>, transform_indices = @transform_3, window_bounds = array<i64: 8, 8>}, {pipeline_mode = #tpu.pipeline_mode<synchronous>, transform_indices = @transform_4, window_bounds = array<i64: 1, 8>}, {transform_indices = @transform_5, window_bounds = array<i64: 288, 8>}]} {
    %c0 = arith.constant 0 : index
    %c0_0 = arith.constant 0 : index
    %0 = vector.load %arg1[%c0, %c0_0] : memref<288x8xf32, #tpu.memory_space<vmem>>, vector<288x8xf32>
    %c0_1 = arith.constant 0 : index
    %c0_2 = arith.constant 0 : index
    %1 = vector.load %arg2[%c0_1, %c0_2] : memref<8x8xf32, #tpu.memory_space<vmem>>, vector<8x8xf32>
    %cst = arith.constant dense<0.000000e+00> : vector<288x8xf32>
    %2 = tpu.matmul %0, %1, %cst {dimension_numbers = #tpu.dot_dimension_numbers<[1], [0], [0], [1], [0, 0, 1, 1], [], []>} : vector<288x8xf32>, vector<8x8xf32>, vector<288x8xf32> -> vector<288x8xf32>
    %c0_3 = arith.constant 0 : index
    %c0_4 = arith.constant 0 : index
    %3 = vector.load %arg3[%c0_3, %c0_4] : memref<1x8xf32, #tpu.memory_space<vmem>>, vector<1x8xf32>
    %4 = vector.broadcast %3 : vector<1x8xf32> to vector<288x8xf32>
    %5 = arith.addf %2, %4 : vector<288x8xf32>
    %cst_5 = arith.constant 0.000000e+00 : f32
    %6 = vector.broadcast %cst_5 : f32 to vector<288x8xf32>
    %7 = arith.maximumf %5, %6 : vector<288x8xf32>
    %c0_6 = arith.constant 0 : index
    %c0_7 = arith.constant 0 : index
    %8 = vector.load %arg4[%c0_6, %c0_7] : memref<8x8xf32, #tpu.memory_space<vmem>>, vector<8x8xf32>
    %cst_8 = arith.constant dense<0.000000e+00> : vector<288x8xf32>
    %9 = tpu.matmul %7, %8, %cst_8 {dimension_numbers = #tpu.dot_dimension_numbers<[1], [0], [0], [1], [0, 0, 1, 1], [], []>} : vector<288x8xf32>, vector<8x8xf32>, vector<288x8xf32> -> vector<288x8xf32>
    %c0_9 = arith.constant 0 : index
    %c0_10 = arith.constant 0 : index
    %10 = vector.load %arg5[%c0_9, %c0_10] : memref<1x8xf32, #tpu.memory_space<vmem>>, vector<1x8xf32>
    %11 = vector.broadcast %10 : vector<1x8xf32> to vector<288x8xf32>
    %12 = arith.addf %9, %11 : vector<288x8xf32>
    %c0_11 = arith.constant 0 : index
    %c0_12 = arith.constant 0 : index
    %13 = vector.load %arg6[%c0_11, %c0_12] : memref<288x8xf32, #tpu.memory_space<vmem>>, vector<288x8xf32>
    tpu.vector_store %arg6[%c0_11, %c0_12], %12 {strides = array<i32>} : memref<288x8xf32, #tpu.memory_space<vmem>>, vector<288x8xf32>,
    return
  }
  func.func @transform_0(%arg0: i32) -> (i32, i32) {
    %c0_i32 = arith.constant 0 : i32
    %c0_i32_0 = arith.constant 0 : i32
    return %arg0, %c0_i32 : i32, i32
  }
  func.func @transform_1(%arg0: i32) -> (i32, i32) {
    %c0_i32 = arith.constant 0 : i32
    %c0_i32_0 = arith.constant 0 : i32
    %c0_i32_1 = arith.constant 0 : i32
    return %c0_i32, %c0_i32_0 : i32, i32
  }
  func.func @transform_2(%arg0: i32) -> (i32, i32) {
    %c0_i32 = arith.constant 0 : i32
    %c0_i32_0 = arith.constant 0 : i32
    %c0_i32_1 = arith.constant 0 : i32
    return %c0_i32, %c0_i32_0 : i32, i32
  }
  func.func @transform_3(%arg0: i32) -> (i32, i32) {
    %c0_i32 = arith.constant 0 : i32
    %c0_i32_0 = arith.constant 0 : i32
    %c0_i32_1 = arith.constant 0 : i32
    return %c0_i32, %c0_i32_0 : i32, i32
  }
  func.func @transform_4(%arg0: i32) -> (i32, i32) {
    %c0_i32 = arith.constant 0 : i32
    %c0_i32_0 = arith.constant 0 : i32
    %c0_i32_1 = arith.constant 0 : i32
    return %c0_i32, %c0_i32_0 : i32, i32
  }
  func.func @transform_5(%arg0: i32) -> (i32, i32) {
    %c0_i32 = arith.constant 0 : i32
    %c0_i32_0 = arith.constant 0 : i32
    return %arg0, %c0_i32 : i32, i32
  }
}

module attributes {stable_mosaic.version = 11 : i64} {
  func.func @_merging_kernel(%arg0: i32, %arg1: memref<1x304x8xf32, #tpu.memory_space<vmem>>, %arg2: memref<256x1xf32, #tpu.memory_space<vmem>>, %arg3: memref<256x1xf32, #tpu.memory_space<vmem>>, %arg4: memref<9x8x128xf32, #tpu.memory_space<vmem>>, %arg5: memref<1x128xf32, #tpu.memory_space<vmem>>, %arg6: memref<1x128xf32, #tpu.memory_space<vmem>>, %arg7: memref<1x128xf32, #tpu.memory_space<vmem>>, %arg8: memref<9x128x128xf32, #tpu.memory_space<vmem>>, %arg9: memref<1x128xf32, #tpu.memory_space<vmem>>, %arg10: memref<8x128xf32, #tpu.memory_space<vmem>>, %arg11: memref<1x128xf32, #tpu.memory_space<vmem>>, %arg12: memref<1x256x128xf32, #tpu.memory_space<vmem>>, %arg13: memref<304x128xf32, #tpu.memory_space<vmem>>) attributes {dimension_semantics = [#tpu.dimension_semantics<parallel>], iteration_bounds = array<i64: 2>, scalar_prefetch = 0 : i64, scratch_operands = 1 : i64, tpu.core_type = #tpu.core_type<tc>, window_params = [{transform_indices = @transform_0, window_bounds = array<i64: 1, 304, 8>}, {pipeline_mode = #tpu.pipeline_mode<synchronous>, transform_indices = @transform_1, window_bounds = array<i64: 256, 1>}, {pipeline_mode = #tpu.pipeline_mode<synchronous>, transform_indices = @transform_2, window_bounds = array<i64: 256, 1>}, {pipeline_mode = #tpu.pipeline_mode<synchronous>, transform_indices = @transform_3, window_bounds = array<i64: 9, 8, 128>}, {pipeline_mode = #tpu.pipeline_mode<synchronous>, transform_indices = @transform_4, window_bounds = array<i64: 1, 128>}, {pipeline_mode = #tpu.pipeline_mode<synchronous>, transform_indices = @transform_5, window_bounds = array<i64: 1, 128>}, {pipeline_mode = #tpu.pipeline_mode<synchronous>, transform_indices = @transform_6, window_bounds = array<i64: 1, 128>}, {pipeline_mode = #tpu.pipeline_mode<synchronous>, transform_indices = @transform_7, window_bounds = array<i64: 9, 128, 128>}, {pipeline_mode = #tpu.pipeline_mode<synchronous>, transform_indices = @transform_8, window_bounds = array<i64: 1, 128>}, {pipeline_mode = #tpu.pipeline_mode<synchronous>, transform_indices = @transform_9, window_bounds = array<i64: 8, 128>}, {pipeline_mode = #tpu.pipeline_mode<synchronous>, transform_indices = @transform_10, window_bounds = array<i64: 1, 128>}, {transform_indices = @transform_11, window_bounds = array<i64: 1, 256, 128>}]} {
    %c0 = arith.constant 0 : index
    %c0_0 = arith.constant 0 : index
    %0 = vector.load %arg2[%c0, %c0_0] : memref<256x1xf32, #tpu.memory_space<vmem>>, vector<256x1xf32>
    %c0_1 = arith.constant 0 : index
    %c0_2 = arith.constant 0 : index
    %1 = vector.load %arg3[%c0_1, %c0_2] : memref<256x1xf32, #tpu.memory_space<vmem>>, vector<256x1xf32>
    %cst = arith.constant 0.000000e+00 : f32
    %2 = vector.broadcast %cst : f32 to vector<256x128xf32>
    %c0_3 = arith.constant 0 : index
    %c7 = arith.constant 7 : index
    %c0_4 = arith.constant 0 : index
    %3 = vector.load %arg1[%c0_3, %c7, %c0_4] : memref<1x304x8xf32, #tpu.memory_space<vmem>>, vector<1x256x8xf32>
    %4 = vector.shape_cast %3 : vector<1x256x8xf32> to vector<256x8xf32>
    %5 = vector.broadcast %0 : vector<256x1xf32> to vector<256x8xf32>
    %6 = arith.mulf %4, %5 : vector<256x8xf32>
    %c0_5 = arith.constant 0 : index
    %c0_6 = arith.constant 0 : index
    %c0_7 = arith.constant 0 : index
    %7 = vector.load %arg4[%c0_5, %c0_6, %c0_7] : memref<9x8x128xf32, #tpu.memory_space<vmem>>, vector<1x8x128xf32>
    %8 = vector.shape_cast %7 : vector<1x8x128xf32> to vector<8x128xf32>
    %cst_8 = arith.constant dense<0.000000e+00> : vector<256x128xf32>
    %9 = tpu.matmul %6, %8, %cst_8 {dimension_numbers = #tpu.dot_dimension_numbers<[1], [0], [0], [1], [0, 0, 1, 1], [], []>} : vector<256x8xf32>, vector<8x128xf32>, vector<256x128xf32> -> vector<256x128xf32>
    %10 = arith.addf %2, %9 : vector<256x128xf32>
    %c0_9 = arith.constant 0 : index
    %c8 = arith.constant 8 : index
    %c0_10 = arith.constant 0 : index
    %11 = vector.load %arg1[%c0_9, %c8, %c0_10] : memref<1x304x8xf32, #tpu.memory_space<vmem>>, vector<1x256x8xf32>
    %12 = vector.shape_cast %11 : vector<1x256x8xf32> to vector<256x8xf32>
    %c1 = arith.constant 1 : index
    %c0_11 = arith.constant 0 : index
    %c0_12 = arith.constant 0 : index
    %13 = vector.load %arg4[%c1, %c0_11, %c0_12] : memref<9x8x128xf32, #tpu.memory_space<vmem>>, vector<1x8x128xf32>
    %14 = vector.shape_cast %13 : vector<1x8x128xf32> to vector<8x128xf32>
    %cst_13 = arith.constant dense<0.000000e+00> : vector<256x128xf32>
    %15 = tpu.matmul %12, %14, %cst_13 {dimension_numbers = #tpu.dot_dimension_numbers<[1], [0], [0], [1], [0, 0, 1, 1], [], []>} : vector<256x8xf32>, vector<8x128xf32>, vector<256x128xf32> -> vector<256x128xf32>
    %16 = arith.addf %10, %15 : vector<256x128xf32>
    %c0_14 = arith.constant 0 : index
    %c9 = arith.constant 9 : index
    %c0_15 = arith.constant 0 : index
    %17 = vector.load %arg1[%c0_14, %c9, %c0_15] : memref<1x304x8xf32, #tpu.memory_space<vmem>>, vector<1x256x8xf32>
    %18 = vector.shape_cast %17 : vector<1x256x8xf32> to vector<256x8xf32>
    %19 = vector.broadcast %1 : vector<256x1xf32> to vector<256x8xf32>
    %20 = arith.mulf %18, %19 : vector<256x8xf32>
    %c2 = arith.constant 2 : index
    %c0_16 = arith.constant 0 : index
    %c0_17 = arith.constant 0 : index
    %21 = vector.load %arg4[%c2, %c0_16, %c0_17] : memref<9x8x128xf32, #tpu.memory_space<vmem>>, vector<1x8x128xf32>
    %22 = vector.shape_cast %21 : vector<1x8x128xf32> to vector<8x128xf32>
    %cst_18 = arith.constant dense<0.000000e+00> : vector<256x128xf32>
    %23 = tpu.matmul %20, %22, %cst_18 {dimension_numbers = #tpu.dot_dimension_numbers<[1], [0], [0], [1], [0, 0, 1, 1], [], []>} : vector<256x8xf32>, vector<8x128xf32>, vector<256x128xf32> -> vector<256x128xf32>
    %24 = arith.addf %16, %23 : vector<256x128xf32>
    %c0_19 = arith.constant 0 : index
    %c23 = arith.constant 23 : index
    %c0_20 = arith.constant 0 : index
    %25 = vector.load %arg1[%c0_19, %c23, %c0_20] : memref<1x304x8xf32, #tpu.memory_space<vmem>>, vector<1x256x8xf32>
    %26 = vector.shape_cast %25 : vector<1x256x8xf32> to vector<256x8xf32>
    %27 = vector.broadcast %0 : vector<256x1xf32> to vector<256x8xf32>
    %28 = arith.mulf %26, %27 : vector<256x8xf32>
    %c3 = arith.constant 3 : index
    %c0_21 = arith.constant 0 : index
    %c0_22 = arith.constant 0 : index
    %29 = vector.load %arg4[%c3, %c0_21, %c0_22] : memref<9x8x128xf32, #tpu.memory_space<vmem>>, vector<1x8x128xf32>
    %30 = vector.shape_cast %29 : vector<1x8x128xf32> to vector<8x128xf32>
    %cst_23 = arith.constant dense<0.000000e+00> : vector<256x128xf32>
    %31 = tpu.matmul %28, %30, %cst_23 {dimension_numbers = #tpu.dot_dimension_numbers<[1], [0], [0], [1], [0, 0, 1, 1], [], []>} : vector<256x8xf32>, vector<8x128xf32>, vector<256x128xf32> -> vector<256x128xf32>
    %32 = arith.addf %24, %31 : vector<256x128xf32>
    %c0_24 = arith.constant 0 : index
    %c24 = arith.constant 24 : index
    %c0_25 = arith.constant 0 : index
    %33 = vector.load %arg1[%c0_24, %c24, %c0_25] : memref<1x304x8xf32, #tpu.memory_space<vmem>>, vector<1x256x8xf32>
    %34 = vector.shape_cast %33 : vector<1x256x8xf32> to vector<256x8xf32>
    %c4 = arith.constant 4 : index
    %c0_26 = arith.constant 0 : index
    %c0_27 = arith.constant 0 : index
    %35 = vector.load %arg4[%c4, %c0_26, %c0_27] : memref<9x8x128xf32, #tpu.memory_space<vmem>>, vector<1x8x128xf32>
    %36 = vector.shape_cast %35 : vector<1x8x128xf32> to vector<8x128xf32>
    %cst_28 = arith.constant dense<0.000000e+00> : vector<256x128xf32>
    %37 = tpu.matmul %34, %36, %cst_28 {dimension_numbers = #tpu.dot_dimension_numbers<[1], [0], [0], [1], [0, 0, 1, 1], [], []>} : vector<256x8xf32>, vector<8x128xf32>, vector<256x128xf32> -> vector<256x128xf32>
    %38 = arith.addf %32, %37 : vector<256x128xf32>
    %c0_29 = arith.constant 0 : index
    %c25 = arith.constant 25 : index
    %c0_30 = arith.constant 0 : index
    %39 = vector.load %arg1[%c0_29, %c25, %c0_30] : memref<1x304x8xf32, #tpu.memory_space<vmem>>, vector<1x256x8xf32>
    %40 = vector.shape_cast %39 : vector<1x256x8xf32> to vector<256x8xf32>
    %41 = vector.broadcast %1 : vector<256x1xf32> to vector<256x8xf32>
    %42 = arith.mulf %40, %41 : vector<256x8xf32>
    %c5 = arith.constant 5 : index
    %c0_31 = arith.constant 0 : index
    %c0_32 = arith.constant 0 : index
    %43 = vector.load %arg4[%c5, %c0_31, %c0_32] : memref<9x8x128xf32, #tpu.memory_space<vmem>>, vector<1x8x128xf32>
    %44 = vector.shape_cast %43 : vector<1x8x128xf32> to vector<8x128xf32>
    %cst_33 = arith.constant dense<0.000000e+00> : vector<256x128xf32>
    %45 = tpu.matmul %42, %44, %cst_33 {dimension_numbers = #tpu.dot_dimension_numbers<[1], [0], [0], [1], [0, 0, 1, 1], [], []>} : vector<256x8xf32>, vector<8x128xf32>, vector<256x128xf32> -> vector<256x128xf32>
    %46 = arith.addf %38, %45 : vector<256x128xf32>
    %c0_34 = arith.constant 0 : index
    %c39 = arith.constant 39 : index
    %c0_35 = arith.constant 0 : index
    %47 = vector.load %arg1[%c0_34, %c39, %c0_35] : memref<1x304x8xf32, #tpu.memory_space<vmem>>, vector<1x256x8xf32>
    %48 = vector.shape_cast %47 : vector<1x256x8xf32> to vector<256x8xf32>
    %49 = vector.broadcast %0 : vector<256x1xf32> to vector<256x8xf32>
    %50 = arith.mulf %48, %49 : vector<256x8xf32>
    %c6 = arith.constant 6 : index
    %c0_36 = arith.constant 0 : index
    %c0_37 = arith.constant 0 : index
    %51 = vector.load %arg4[%c6, %c0_36, %c0_37] : memref<9x8x128xf32, #tpu.memory_space<vmem>>, vector<1x8x128xf32>
    %52 = vector.shape_cast %51 : vector<1x8x128xf32> to vector<8x128xf32>
    %cst_38 = arith.constant dense<0.000000e+00> : vector<256x128xf32>
    %53 = tpu.matmul %50, %52, %cst_38 {dimension_numbers = #tpu.dot_dimension_numbers<[1], [0], [0], [1], [0, 0, 1, 1], [], []>} : vector<256x8xf32>, vector<8x128xf32>, vector<256x128xf32> -> vector<256x128xf32>
    %54 = arith.addf %46, %53 : vector<256x128xf32>
    %c0_39 = arith.constant 0 : index
    %c40 = arith.constant 40 : index
    %c0_40 = arith.constant 0 : index
    %55 = vector.load %arg1[%c0_39, %c40, %c0_40] : memref<1x304x8xf32, #tpu.memory_space<vmem>>, vector<1x256x8xf32>
    %56 = vector.shape_cast %55 : vector<1x256x8xf32> to vector<256x8xf32>
    %c7_41 = arith.constant 7 : index
    %c0_42 = arith.constant 0 : index
    %c0_43 = arith.constant 0 : index
    %57 = vector.load %arg4[%c7_41, %c0_42, %c0_43] : memref<9x8x128xf32, #tpu.memory_space<vmem>>, vector<1x8x128xf32>
    %58 = vector.shape_cast %57 : vector<1x8x128xf32> to vector<8x128xf32>
    %cst_44 = arith.constant dense<0.000000e+00> : vector<256x128xf32>
    %59 = tpu.matmul %56, %58, %cst_44 {dimension_numbers = #tpu.dot_dimension_numbers<[1], [0], [0], [1], [0, 0, 1, 1], [], []>} : vector<256x8xf32>, vector<8x128xf32>, vector<256x128xf32> -> vector<256x128xf32>
    %60 = arith.addf %54, %59 : vector<256x128xf32>
    %c0_45 = arith.constant 0 : index
    %c41 = arith.constant 41 : index
    %c0_46 = arith.constant 0 : index
    %61 = vector.load %arg1[%c0_45, %c41, %c0_46] : memref<1x304x8xf32, #tpu.memory_space<vmem>>, vector<1x256x8xf32>
    %62 = vector.shape_cast %61 : vector<1x256x8xf32> to vector<256x8xf32>
    %63 = vector.broadcast %1 : vector<256x1xf32> to vector<256x8xf32>
    %64 = arith.mulf %62, %63 : vector<256x8xf32>
    %c8_47 = arith.constant 8 : index
    %c0_48 = arith.constant 0 : index
    %c0_49 = arith.constant 0 : index
    %65 = vector.load %arg4[%c8_47, %c0_48, %c0_49] : memref<9x8x128xf32, #tpu.memory_space<vmem>>, vector<1x8x128xf32>
    %66 = vector.shape_cast %65 : vector<1x8x128xf32> to vector<8x128xf32>
    %cst_50 = arith.constant dense<0.000000e+00> : vector<256x128xf32>
    %67 = tpu.matmul %64, %66, %cst_50 {dimension_numbers = #tpu.dot_dimension_numbers<[1], [0], [0], [1], [0, 0, 1, 1], [], []>} : vector<256x8xf32>, vector<8x128xf32>, vector<256x128xf32> -> vector<256x128xf32>
    %68 = arith.addf %60, %67 : vector<256x128xf32>
    %c0_51 = arith.constant 0 : index
    %c0_52 = arith.constant 0 : index
    %69 = vector.load %arg5[%c0_51, %c0_52] : memref<1x128xf32, #tpu.memory_space<vmem>>, vector<1x128xf32>
    %70 = vector.broadcast %69 : vector<1x128xf32> to vector<256x128xf32>
    %71 = arith.addf %68, %70 : vector<256x128xf32>
    %cst_53 = arith.constant dense<0.000000e+00> : vector<128xf32>
    %72 = vector.multi_reduction <add>, %71, %cst_53 [0] : vector<256x128xf32> to vector<128xf32>
    %73 = vector.shape_cast %72 : vector<128xf32> to vector<1x128xf32>
    %cst_54 = arith.constant 2.560000e+02 : f32
    %74 = vector.broadcast %cst_54 : f32 to vector<1x128xf32>
    %75 = arith.divf %73, %74 : vector<1x128xf32>
    %76 = vector.broadcast %75 : vector<1x128xf32> to vector<256x128xf32>
    %77 = arith.subf %71, %76 : vector<256x128xf32>
    %78 = arith.mulf %77, %77 : vector<256x128xf32>
    %cst_55 = arith.constant dense<0.000000e+00> : vector<128xf32>
    %79 = vector.multi_reduction <add>, %78, %cst_55 [0] : vector<256x128xf32> to vector<128xf32>
    %80 = vector.shape_cast %79 : vector<128xf32> to vector<1x128xf32>
    %cst_56 = arith.constant 2.560000e+02 : f32
    %81 = vector.broadcast %cst_56 : f32 to vector<1x128xf32>
    %82 = arith.divf %80, %81 : vector<1x128xf32>
    %83 = vector.broadcast %75 : vector<1x128xf32> to vector<256x128xf32>
    %84 = arith.subf %71, %83 : vector<256x128xf32>
    %cst_57 = arith.constant 9.99999974E-6 : f32
    %85 = vector.broadcast %cst_57 : f32 to vector<1x128xf32>
    %86 = arith.addf %82, %85 : vector<1x128xf32>
    %87 = math.rsqrt %86 : vector<1x128xf32>
    %88 = vector.broadcast %87 : vector<1x128xf32> to vector<256x128xf32>
    %89 = arith.mulf %84, %88 : vector<256x128xf32>
    %c0_58 = arith.constant 0 : index
    %c0_59 = arith.constant 0 : index
    %90 = vector.load %arg6[%c0_58, %c0_59] : memref<1x128xf32, #tpu.memory_space<vmem>>, vector<1x128xf32>
    %91 = vector.broadcast %90 : vector<1x128xf32> to vector<256x128xf32>
    %92 = arith.mulf %89, %91 : vector<256x128xf32>
    %c0_60 = arith.constant 0 : index
    %c0_61 = arith.constant 0 : index
    %93 = vector.load %arg7[%c0_60, %c0_61] : memref<1x128xf32, #tpu.memory_space<vmem>>, vector<1x128xf32>
    %94 = vector.broadcast %93 : vector<1x128xf32> to vector<256x128xf32>
    %95 = arith.addf %92, %94 : vector<256x128xf32>
    %96 = tpu.iota {dimensions = array<i32: 1>} : vector<256x128xi32>
    %c2_i32 = arith.constant 2 : i32
    %97 = vector.broadcast %c2_i32 : i32 to vector<256x128xi32>
    %98 = arith.cmpi slt, %96, %97 : vector<256x128xi32>
    %99 = arith.select %98, %95, %71 : vector<256x128xi1>, vector<256x128xf32>
    %cst_62 = arith.constant 0.000000e+00 : f32
    %100 = vector.broadcast %cst_62 : f32 to vector<256x128xf32>
    %101 = arith.cmpf oge, %99, %100 : vector<256x128xf32>
    %cst_63 = arith.constant 2.000000e-01 : f32
    %102 = vector.broadcast %cst_63 : f32 to vector<256x128xf32>
    %103 = arith.mulf %102, %99 : vector<256x128xf32>
    %104 = arith.select %101, %99, %103 : vector<256x128xi1>, vector<256x128xf32>
    %cst_64 = arith.constant 0.000000e+00 : f32
    %105 = vector.broadcast %cst_64 : f32 to vector<304x128xf32>
    %c0_65 = arith.constant 0 : index
    %c0_66 = arith.constant 0 : index
    %106 = vector.load %arg13[%c0_65, %c0_66] : memref<304x128xf32, #tpu.memory_space<vmem>>, vector<304x128xf32>
    tpu.vector_store %arg13[%c0_65, %c0_66], %105 {strides = array<i32>} : memref<304x128xf32, #tpu.memory_space<vmem>>, vector<304x128xf32>,
    %c24_67 = arith.constant 24 : index
    %c0_68 = arith.constant 0 : index
    %107 = vector.load %arg13[%c24_67, %c0_68] : memref<304x128xf32, #tpu.memory_space<vmem>>, vector<256x128xf32>
    tpu.vector_store %arg13[%c24_67, %c0_68], %104 {strides = array<i32>} : memref<304x128xf32, #tpu.memory_space<vmem>>, vector<256x128xf32>,
    %cst_69 = arith.constant 0.000000e+00 : f32
    %108 = vector.broadcast %cst_69 : f32 to vector<256x128xf32>
    %c7_70 = arith.constant 7 : index
    %c0_71 = arith.constant 0 : index
    %109 = vector.load %arg13[%c7_70, %c0_71] : memref<304x128xf32, #tpu.memory_space<vmem>>, vector<256x128xf32>
    %110 = vector.broadcast %0 : vector<256x1xf32> to vector<256x128xf32>
    %111 = arith.mulf %109, %110 : vector<256x128xf32>
    %c0_72 = arith.constant 0 : index
    %c0_73 = arith.constant 0 : index
    %c0_74 = arith.constant 0 : index
    %112 = vector.load %arg8[%c0_72, %c0_73, %c0_74] : memref<9x128x128xf32, #tpu.memory_space<vmem>>, vector<1x128x128xf32>
    %113 = vector.shape_cast %112 : vector<1x128x128xf32> to vector<128x128xf32>
    %cst_75 = arith.constant dense<0.000000e+00> : vector<256x128xf32>
    %114 = tpu.matmul %111, %113, %cst_75 {dimension_numbers = #tpu.dot_dimension_numbers<[1], [0], [0], [1], [0, 0, 1, 1], [], []>} : vector<256x128xf32>, vector<128x128xf32>, vector<256x128xf32> -> vector<256x128xf32>
    %115 = arith.addf %108, %114 : vector<256x128xf32>
    %c8_76 = arith.constant 8 : index
    %c0_77 = arith.constant 0 : index
    %116 = vector.load %arg13[%c8_76, %c0_77] : memref<304x128xf32, #tpu.memory_space<vmem>>, vector<256x128xf32>
    %c1_78 = arith.constant 1 : index
    %c0_79 = arith.constant 0 : index
    %c0_80 = arith.constant 0 : index
    %117 = vector.load %arg8[%c1_78, %c0_79, %c0_80] : memref<9x128x128xf32, #tpu.memory_space<vmem>>, vector<1x128x128xf32>
    %118 = vector.shape_cast %117 : vector<1x128x128xf32> to vector<128x128xf32>
    %cst_81 = arith.constant dense<0.000000e+00> : vector<256x128xf32>
    %119 = tpu.matmul %116, %118, %cst_81 {dimension_numbers = #tpu.dot_dimension_numbers<[1], [0], [0], [1], [0, 0, 1, 1], [], []>} : vector<256x128xf32>, vector<128x128xf32>, vector<256x128xf32> -> vector<256x128xf32>
    %120 = arith.addf %115, %119 : vector<256x128xf32>
    %c9_82 = arith.constant 9 : index
    %c0_83 = arith.constant 0 : index
    %121 = vector.load %arg13[%c9_82, %c0_83] : memref<304x128xf32, #tpu.memory_space<vmem>>, vector<256x128xf32>
    %122 = vector.broadcast %1 : vector<256x1xf32> to vector<256x128xf32>
    %123 = arith.mulf %121, %122 : vector<256x128xf32>
    %c2_84 = arith.constant 2 : index
    %c0_85 = arith.constant 0 : index
    %c0_86 = arith.constant 0 : index
    %124 = vector.load %arg8[%c2_84, %c0_85, %c0_86] : memref<9x128x128xf32, #tpu.memory_space<vmem>>, vector<1x128x128xf32>
    %125 = vector.shape_cast %124 : vector<1x128x128xf32> to vector<128x128xf32>
    %cst_87 = arith.constant dense<0.000000e+00> : vector<256x128xf32>
    %126 = tpu.matmul %123, %125, %cst_87 {dimension_numbers = #tpu.dot_dimension_numbers<[1], [0], [0], [1], [0, 0, 1, 1], [], []>} : vector<256x128xf32>, vector<128x128xf32>, vector<256x128xf32> -> vector<256x128xf32>
    %127 = arith.addf %120, %126 : vector<256x128xf32>
    %c23_88 = arith.constant 23 : index
    %c0_89 = arith.constant 0 : index
    %128 = vector.load %arg13[%c23_88, %c0_89] : memref<304x128xf32, #tpu.memory_space<vmem>>, vector<256x128xf32>
    %129 = vector.broadcast %0 : vector<256x1xf32> to vector<256x128xf32>
    %130 = arith.mulf %128, %129 : vector<256x128xf32>
    %c3_90 = arith.constant 3 : index
    %c0_91 = arith.constant 0 : index
    %c0_92 = arith.constant 0 : index
    %131 = vector.load %arg8[%c3_90, %c0_91, %c0_92] : memref<9x128x128xf32, #tpu.memory_space<vmem>>, vector<1x128x128xf32>
    %132 = vector.shape_cast %131 : vector<1x128x128xf32> to vector<128x128xf32>
    %cst_93 = arith.constant dense<0.000000e+00> : vector<256x128xf32>
    %133 = tpu.matmul %130, %132, %cst_93 {dimension_numbers = #tpu.dot_dimension_numbers<[1], [0], [0], [1], [0, 0, 1, 1], [], []>} : vector<256x128xf32>, vector<128x128xf32>, vector<256x128xf32> -> vector<256x128xf32>
    %134 = arith.addf %127, %133 : vector<256x128xf32>
    %c24_94 = arith.constant 24 : index
    %c0_95 = arith.constant 0 : index
    %135 = vector.load %arg13[%c24_94, %c0_95] : memref<304x128xf32, #tpu.memory_space<vmem>>, vector<256x128xf32>
    %c4_96 = arith.constant 4 : index
    %c0_97 = arith.constant 0 : index
    %c0_98 = arith.constant 0 : index
    %136 = vector.load %arg8[%c4_96, %c0_97, %c0_98] : memref<9x128x128xf32, #tpu.memory_space<vmem>>, vector<1x128x128xf32>
    %137 = vector.shape_cast %136 : vector<1x128x128xf32> to vector<128x128xf32>
    %cst_99 = arith.constant dense<0.000000e+00> : vector<256x128xf32>
    %138 = tpu.matmul %135, %137, %cst_99 {dimension_numbers = #tpu.dot_dimension_numbers<[1], [0], [0], [1], [0, 0, 1, 1], [], []>} : vector<256x128xf32>, vector<128x128xf32>, vector<256x128xf32> -> vector<256x128xf32>
    %139 = arith.addf %134, %138 : vector<256x128xf32>
    %c25_100 = arith.constant 25 : index
    %c0_101 = arith.constant 0 : index
    %140 = vector.load %arg13[%c25_100, %c0_101] : memref<304x128xf32, #tpu.memory_space<vmem>>, vector<256x128xf32>
    %141 = vector.broadcast %1 : vector<256x1xf32> to vector<256x128xf32>
    %142 = arith.mulf %140, %141 : vector<256x128xf32>
    %c5_102 = arith.constant 5 : index
    %c0_103 = arith.constant 0 : index
    %c0_104 = arith.constant 0 : index
    %143 = vector.load %arg8[%c5_102, %c0_103, %c0_104] : memref<9x128x128xf32, #tpu.memory_space<vmem>>, vector<1x128x128xf32>
    %144 = vector.shape_cast %143 : vector<1x128x128xf32> to vector<128x128xf32>
    %cst_105 = arith.constant dense<0.000000e+00> : vector<256x128xf32>
    %145 = tpu.matmul %142, %144, %cst_105 {dimension_numbers = #tpu.dot_dimension_numbers<[1], [0], [0], [1], [0, 0, 1, 1], [], []>} : vector<256x128xf32>, vector<128x128xf32>, vector<256x128xf32> -> vector<256x128xf32>
    %146 = arith.addf %139, %145 : vector<256x128xf32>
    %c39_106 = arith.constant 39 : index
    %c0_107 = arith.constant 0 : index
    %147 = vector.load %arg13[%c39_106, %c0_107] : memref<304x128xf32, #tpu.memory_space<vmem>>, vector<256x128xf32>
    %148 = vector.broadcast %0 : vector<256x1xf32> to vector<256x128xf32>
    %149 = arith.mulf %147, %148 : vector<256x128xf32>
    %c6_108 = arith.constant 6 : index
    %c0_109 = arith.constant 0 : index
    %c0_110 = arith.constant 0 : index
    %150 = vector.load %arg8[%c6_108, %c0_109, %c0_110] : memref<9x128x128xf32, #tpu.memory_space<vmem>>, vector<1x128x128xf32>
    %151 = vector.shape_cast %150 : vector<1x128x128xf32> to vector<128x128xf32>
    %cst_111 = arith.constant dense<0.000000e+00> : vector<256x128xf32>
    %152 = tpu.matmul %149, %151, %cst_111 {dimension_numbers = #tpu.dot_dimension_numbers<[1], [0], [0], [1], [0, 0, 1, 1], [], []>} : vector<256x128xf32>, vector<128x128xf32>, vector<256x128xf32> -> vector<256x128xf32>
    %153 = arith.addf %146, %152 : vector<256x128xf32>
    %c40_112 = arith.constant 40 : index
    %c0_113 = arith.constant 0 : index
    %154 = vector.load %arg13[%c40_112, %c0_113] : memref<304x128xf32, #tpu.memory_space<vmem>>, vector<256x128xf32>
    %c7_114 = arith.constant 7 : index
    %c0_115 = arith.constant 0 : index
    %c0_116 = arith.constant 0 : index
    %155 = vector.load %arg8[%c7_114, %c0_115, %c0_116] : memref<9x128x128xf32, #tpu.memory_space<vmem>>, vector<1x128x128xf32>
    %156 = vector.shape_cast %155 : vector<1x128x128xf32> to vector<128x128xf32>
    %cst_117 = arith.constant dense<0.000000e+00> : vector<256x128xf32>
    %157 = tpu.matmul %154, %156, %cst_117 {dimension_numbers = #tpu.dot_dimension_numbers<[1], [0], [0], [1], [0, 0, 1, 1], [], []>} : vector<256x128xf32>, vector<128x128xf32>, vector<256x128xf32> -> vector<256x128xf32>
    %158 = arith.addf %153, %157 : vector<256x128xf32>
    %c41_118 = arith.constant 41 : index
    %c0_119 = arith.constant 0 : index
    %159 = vector.load %arg13[%c41_118, %c0_119] : memref<304x128xf32, #tpu.memory_space<vmem>>, vector<256x128xf32>
    %160 = vector.broadcast %1 : vector<256x1xf32> to vector<256x128xf32>
    %161 = arith.mulf %159, %160 : vector<256x128xf32>
    %c8_120 = arith.constant 8 : index
    %c0_121 = arith.constant 0 : index
    %c0_122 = arith.constant 0 : index
    %162 = vector.load %arg8[%c8_120, %c0_121, %c0_122] : memref<9x128x128xf32, #tpu.memory_space<vmem>>, vector<1x128x128xf32>
    %163 = vector.shape_cast %162 : vector<1x128x128xf32> to vector<128x128xf32>
    %cst_123 = arith.constant dense<0.000000e+00> : vector<256x128xf32>
    %164 = tpu.matmul %161, %163, %cst_123 {dimension_numbers = #tpu.dot_dimension_numbers<[1], [0], [0], [1], [0, 0, 1, 1], [], []>} : vector<256x128xf32>, vector<128x128xf32>, vector<256x128xf32> -> vector<256x128xf32>
    %165 = arith.addf %158, %164 : vector<256x128xf32>
    %c0_124 = arith.constant 0 : index
    %c0_125 = arith.constant 0 : index
    %166 = vector.load %arg9[%c0_124, %c0_125] : memref<1x128xf32, #tpu.memory_space<vmem>>, vector<1x128xf32>
    %167 = vector.broadcast %166 : vector<1x128xf32> to vector<256x128xf32>
    %168 = arith.addf %165, %167 : vector<256x128xf32>
    %cst_126 = arith.constant 0.000000e+00 : f32
    %169 = vector.broadcast %cst_126 : f32 to vector<256x128xf32>
    %170 = arith.cmpf oge, %168, %169 : vector<256x128xf32>
    %cst_127 = arith.constant 2.000000e-01 : f32
    %171 = vector.broadcast %cst_127 : f32 to vector<256x128xf32>
    %172 = arith.mulf %171, %168 : vector<256x128xf32>
    %173 = arith.select %170, %168, %172 : vector<256x128xi1>, vector<256x128xf32>
    %c0_128 = arith.constant 0 : index
    %c24_129 = arith.constant 24 : index
    %c0_130 = arith.constant 0 : index
    %174 = vector.load %arg1[%c0_128, %c24_129, %c0_130] : memref<1x304x8xf32, #tpu.memory_space<vmem>>, vector<1x256x8xf32>
    %175 = vector.shape_cast %174 : vector<1x256x8xf32> to vector<256x8xf32>
    %c0_131 = arith.constant 0 : index
    %c0_132 = arith.constant 0 : index
    %176 = vector.load %arg10[%c0_131, %c0_132] : memref<8x128xf32, #tpu.memory_space<vmem>>, vector<8x128xf32>
    %cst_133 = arith.constant dense<0.000000e+00> : vector<256x128xf32>
    %177 = tpu.matmul %175, %176, %cst_133 {dimension_numbers = #tpu.dot_dimension_numbers<[1], [0], [0], [1], [0, 0, 1, 1], [], []>} : vector<256x8xf32>, vector<8x128xf32>, vector<256x128xf32> -> vector<256x128xf32>
    %c0_134 = arith.constant 0 : index
    %c0_135 = arith.constant 0 : index
    %178 = vector.load %arg11[%c0_134, %c0_135] : memref<1x128xf32, #tpu.memory_space<vmem>>, vector<1x128xf32>
    %179 = vector.broadcast %178 : vector<1x128xf32> to vector<256x128xf32>
    %180 = arith.addf %177, %179 : vector<256x128xf32>
    %181 = arith.addf %173, %180 : vector<256x128xf32>
    %c0_136 = arith.constant 0 : index
    %c0_137 = arith.constant 0 : index
    %c0_138 = arith.constant 0 : index
    %182 = vector.load %arg12[%c0_136, %c0_137, %c0_138] : memref<1x256x128xf32, #tpu.memory_space<vmem>>, vector<1x256x128xf32>
    %183 = vector.shape_cast %182 : vector<1x256x128xf32> to vector<256x128xf32>
    %184 = vector.shape_cast %181 : vector<256x128xf32> to vector<1x256x128xf32>
    tpu.vector_store %arg12[%c0_136, %c0_137, %c0_138], %184 {strides = array<i32>} : memref<1x256x128xf32, #tpu.memory_space<vmem>>, vector<1x256x128xf32>,
    return
  }
  func.func @transform_0(%arg0: i32) -> (i32, i32, i32) {
    %c0_i32 = arith.constant 0 : i32
    %c0_i32_0 = arith.constant 0 : i32
    %c0_i32_1 = arith.constant 0 : i32
    return %arg0, %c0_i32, %c0_i32_0 : i32, i32, i32
  }
  func.func @transform_1(%arg0: i32) -> (i32, i32) {
    %c0_i32 = arith.constant 0 : i32
    %c0_i32_0 = arith.constant 0 : i32
    %c0_i32_1 = arith.constant 0 : i32
    return %c0_i32, %c0_i32_0 : i32, i32
  }
  func.func @transform_2(%arg0: i32) -> (i32, i32) {
    %c0_i32 = arith.constant 0 : i32
    %c0_i32_0 = arith.constant 0 : i32
    %c0_i32_1 = arith.constant 0 : i32
    return %c0_i32, %c0_i32_0 : i32, i32
  }
  func.func @transform_3(%arg0: i32) -> (i32, i32, i32) {
    %c0_i32 = arith.constant 0 : i32
    %c0_i32_0 = arith.constant 0 : i32
    %c0_i32_1 = arith.constant 0 : i32
    %c0_i32_2 = arith.constant 0 : i32
    return %c0_i32, %c0_i32_0, %c0_i32_1 : i32, i32, i32
  }
  func.func @transform_4(%arg0: i32) -> (i32, i32) {
    %c0_i32 = arith.constant 0 : i32
    %c0_i32_0 = arith.constant 0 : i32
    %c0_i32_1 = arith.constant 0 : i32
    return %c0_i32, %c0_i32_0 : i32, i32
  }
  func.func @transform_5(%arg0: i32) -> (i32, i32) {
    %c0_i32 = arith.constant 0 : i32
    %c0_i32_0 = arith.constant 0 : i32
    %c0_i32_1 = arith.constant 0 : i32
    return %c0_i32, %c0_i32_0 : i32, i32
  }
  func.func @transform_6(%arg0: i32) -> (i32, i32) {
    %c0_i32 = arith.constant 0 : i32
    %c0_i32_0 = arith.constant 0 : i32
    %c0_i32_1 = arith.constant 0 : i32
    return %c0_i32, %c0_i32_0 : i32, i32
  }
  func.func @transform_7(%arg0: i32) -> (i32, i32, i32) {
    %c0_i32 = arith.constant 0 : i32
    %c0_i32_0 = arith.constant 0 : i32
    %c0_i32_1 = arith.constant 0 : i32
    %c0_i32_2 = arith.constant 0 : i32
    return %c0_i32, %c0_i32_0, %c0_i32_1 : i32, i32, i32
  }
  func.func @transform_8(%arg0: i32) -> (i32, i32) {
    %c0_i32 = arith.constant 0 : i32
    %c0_i32_0 = arith.constant 0 : i32
    %c0_i32_1 = arith.constant 0 : i32
    return %c0_i32, %c0_i32_0 : i32, i32
  }
  func.func @transform_9(%arg0: i32) -> (i32, i32) {
    %c0_i32 = arith.constant 0 : i32
    %c0_i32_0 = arith.constant 0 : i32
    %c0_i32_1 = arith.constant 0 : i32
    return %c0_i32, %c0_i32_0 : i32, i32
  }
  func.func @transform_10(%arg0: i32) -> (i32, i32) {
    %c0_i32 = arith.constant 0 : i32
    %c0_i32_0 = arith.constant 0 : i32
    %c0_i32_1 = arith.constant 0 : i32
    return %c0_i32, %c0_i32_0 : i32, i32
  }
  func.func @transform_11(%arg0: i32) -> (i32, i32, i32) {
    %c0_i32 = arith.constant 0 : i32
    %c0_i32_0 = arith.constant 0 : i32
    %c0_i32_1 = arith.constant 0 : i32
    return %arg0, %c0_i32, %c0_i32_0 : i32, i32, i32
  }
}

</mosaic_0001>

<bundles_post_ra>
// kernel: reverse.1
= control target key start
LH: loop header
LB: loop body
LE: loop exit
PB: predicated region body
PF: predicated region fallthrough
CT: control target
= control target key end

     0   :  { %v71_v3 = vlaneseq  ;;  %v64_v9 = vld [vmem:[#allocation0 + $0x7] ss:$-1 sm:$0xff]  ;;  %v78_v12 = vld [vmem:[#allocation0 + $0x17] ss:$-1 sm:$0xff]  ;;  %s329_s0 = inlined_call_operand.vmem [shape: f32[2,4,16,7], index: 0, kind: input, shape index: {}]   ;;  %s330_s1 = inlined_call_operand.vmem [shape: f32[2,4,16,7], index: 1, kind: output, shape index: {}]  }
   0x1   :  { %v44_v0 = vld [vmem:[%s329_s0] sm:$0xff]  ;;  %v46_v1 = vld [vmem:[%s329_s0 + $0x8] sm:$0xff]  ;;  %v48_v2 = vld [vmem:[%s329_s0 + $0x10] sm:$0xff]  ;;  %v65_v10 = vrot.slane %v64_v9, 1  ;;  %v79_v14 = vrot.slane %v78_v12, 1 }
   0x2   :  { %45 = vst [vmem:[#allocation0 + $0x8] sm:$0xff] %v44_v0  ;;  %47 = vst [vmem:[#allocation0 + $0x18] sm:$0xff] %v46_v1  ;;  %v50_v4 = vld [vmem:[%s329_s0 + $0x18] sm:$0xff]  ;;  %v52_v5 = vld [vmem:[%s329_s0 + $0x20] sm:$0xff]  ;;  %v72_v11 = vshrl.u32 %v71_v3, 7 }
   0x3   :  { %49 = vst [vmem:[#allocation0 + $0x28] sm:$0xff] %v48_v2  ;;  %v54_v6 = vld [vmem:[%s329_s0 + $0x28] sm:$0xff]  ;;  %51 = vst [vmem:[#allocation0 + $0x38] sm:$0xff] %v50_v4  ;;  %v56_v7 = vld [vmem:[%s329_s0 + $0x30] sm:$0xff] }
   0x4   :  { %53 = vst [vmem:[#allocation0 + $0x48] sm:$0xff] %v52_v5  ;;  %55 = vst [vmem:[#allocation0 + $0x58] sm:$0xff] %v54_v6  ;;  %v58_v8 = vld [vmem:[%s329_s0 + $0x38] sm:$0xff]  ;;  %v92_v13 = vld [vmem:[#allocation0 + $0x27] ss:$-1 sm:$0xff]  ;;  %vm73_vm0 = vcmp.lt.s32.totalorder %v72_v11, 7 }
   0x5   :  { %57 = vst [vmem:[#allocation0 + $0x68] sm:$0xff] %v56_v7  ;;  %59 = vst [vmem:[#allocation0 + $0x78] sm:$0xff] %v58_v8  ;;  %v93_v15 = vrot.slane %v92_v13, 1  ;;  %v106_v16 = vld [vmem:[#allocation0 + $0x37] ss:$-1 sm:$0xff] }
   0x6   :  { %66 = vst [vmem:[#allocation1] sm:$0xff] %v65_v10  ;;  %v107_v17 = vrot.slane %v106_v16, 1  ;;  %v120_v18 = vld [vmem:[#allocation0 + $0x47] ss:$-1 sm:$0xff]  ;;  %v134_v19 = vld [vmem:[#allocation0 + $0x57] ss:$-1 sm:$0xff] }
   0x7   :  { %80 = vst [vmem:[#allocation1 + $0x8] sm:$0xff] %v79_v14  ;;  %94 = vst [vmem:[#allocation1 + $0x10] sm:$0xff] %v93_v15  ;;  %v121_v20 = vrot.slane %v120_v18, 1  ;;  %v135_v21 = vrot.slane %v134_v19, 1  ;;  %v148_v22 = vld [vmem:[#allocation0 + $0x67] ss:$-1 sm:$0xff] }
   0x8   :  { %v162_v23 = vld [vmem:[#allocation0 + $0x77] ss:$-1 sm:$0xff]  ;;  %108 = vst [vmem:[#allocation1 + $0x18] sm:$0xff] %v107_v17  ;;  %v149_v24 = vrot.slane %v148_v22, 1 }
   0x9   :  { %v163_v25 = vrot.slane %v162_v23, 1  ;;  %v69_v26 = vld [vmem:[#allocation0 + $0xf] ss:$-1 sm:$0xff]  ;;  %v83_v27 = vld [vmem:[#allocation0 + $0x1f] ss:$-1 sm:$0xff]  ;;  %122 = vst [vmem:[#allocation1 + $0x20] sm:$0xff] %v121_v20 }
   0xa   :  { %v97_v28 = vld [vmem:[#allocation0 + $0x2f] ss:$-1 sm:$0xff]  ;;  %136 = vst [vmem:[#allocation1 + $0x28] sm:$0xff] %v135_v21  ;;  %v70_v29 = vrot.slane %v69_v26, 1  ;;  %v84_v30 = vrot.slane %v83_v27, 1  ;;  %150 = vst [vmem:[#allocation1 + $0x30] sm:$0xff] %v149_v24 }
   0xb   :  { %v98_v31 = vrot.slane %v97_v28, 1  ;;  %v111_v32 = vld [vmem:[#allocation0 + $0x3f] ss:$-1 sm:$0xff]  ;;  %164 = vst [vmem:[#allocation1 + $0x38] sm:$0xff] %v163_v25  ;;  %v125_v34 = vld [vmem:[#allocation0 + $0x4f] ss:$-1 sm:$0xff] }
   0xc   :  { %v112_v33 = vrot.slane %v111_v32, 1  ;;  %v139_v35 = vld [vmem:[#allocation0 + $0x5f] ss:$-1 sm:$0xff]  ;;  %74 = vst.msk [vmem:[#allocation1] sm:$0xff] %vm73_vm0, %v70_v29  ;;  %88 = vst.msk [vmem:[#allocation1 + $0x8] sm:$0xff] %vm73_vm0, %v84_v30  ;;  %v126_v36 = vrot.slane %v125_v34, 1 }
   0xd   :  { %102 = vst.msk [vmem:[#allocation1 + $0x10] sm:$0xff] %vm73_vm0, %v98_v31  ;;  %v140_v37 = vrot.slane %v139_v35, 1  ;;  %v153_v38 = vld [vmem:[#allocation0 + $0x6f] ss:$-1 sm:$0xff]  ;;  %v167_v39 = vld [vmem:[#allocation0 + $0x7f] ss:$-1 sm:$0xff] }
   0xe   :  { %116 = vst.msk [vmem:[#allocation1 + $0x18] sm:$0xff] %vm73_vm0, %v112_v33  ;;  %v154_v40 = vrot.slane %v153_v38, 1  ;;  %v168_v41 = vrot.slane %v167_v39, 1  ;;  %130 = vst.msk [vmem:[#allocation1 + $0x20] sm:$0xff] %vm73_vm0, %v126_v36 }
   0xf   :  { %144 = vst.msk [vmem:[#allocation1 + $0x28] sm:$0xff] %vm73_vm0, %v140_v37 }
  0x10   :  { %158 = vst.msk [vmem:[#allocation1 + $0x30] sm:$0xff] %vm73_vm0, %v154_v40  ;;  %172 = vst.msk [vmem:[#allocation1 + $0x38] sm:$0xff] %vm73_vm0, %v168_v41 }
  0x13   :  { %v214_v42 = vld [vmem:[#allocation1] sm:$0xff]  ;;  %v216_v43 = vld [vmem:[#allocation1 + $0x8] sm:$0xff] }
  0x14   :  { %v218_v44 = vld [vmem:[#allocation1 + $0x10] sm:$0xff]  ;;  %215 = vst [vmem:[%s330_s1] sm:$0xff] %v214_v42  ;;  %217 = vst [vmem:[%s330_s1 + $0x8] sm:$0xff] %v216_v43 }
  0x15   :  { %219 = vst [vmem:[%s330_s1 + $0x10] sm:$0xff] %v218_v44  ;;  %v220_v45 = vld [vmem:[#allocation1 + $0x18] sm:$0xff]  ;;  %v222_v46 = vld [vmem:[#allocation1 + $0x20] sm:$0xff] }
  0x16   :  { %221 = vst [vmem:[%s330_s1 + $0x18] sm:$0xff] %v220_v45  ;;  %v224_v47 = vld [vmem:[#allocation1 + $0x28] sm:$0xff]  ;;  %223 = vst [vmem:[%s330_s1 + $0x20] sm:$0xff] %v222_v46 }
  0x17   :  { %225 = vst [vmem:[%s330_s1 + $0x28] sm:$0xff] %v224_v47  ;;  %v226_v48 = vld [vmem:[#allocation1 + $0x30] sm:$0xff]  ;;  %v228_v49 = vld [vmem:[#allocation1 + $0x38] sm:$0xff] }
  0x18   :  { %227 = vst [vmem:[%s330_s1 + $0x30] sm:$0xff] %v226_v48  ;;  %229 = vst [vmem:[%s330_s1 + $0x38] sm:$0xff] %v228_v49 }

// kernel: res_block_do_fft_bench2.2
= control target key start
LH: loop header
LB: loop body
LE: loop exit
PB: predicated region body
PF: predicated region fallthrough
CT: control target
= control target key end

     0   :  { %vm64_vm0 = vcmask 64512   ;;  %s1557_s1 = inlined_call_operand.vmem [shape: f32[8,8], index: 1, kind: input, shape index: {}]   ;;  %s1558_s0 = inlined_call_operand.vmem [shape: f32[288,8], index: 0, kind: input, shape index: {}]   ;;  %s1559_s3 = inlined_call_operand.vmem [shape: f32[8,8], index: 3, kind: input, shape index: {}]   ;;  %s1560_s2 = inlined_call_operand.vmem [shape: f32[1,8], index: 2, kind: input, shape index: {}]   ;;  %s1561_s4 = inlined_call_operand.vmem [shape: f32[1,8], index: 4, kind: input, shape index: {}]   ;;  %s1562_s5 = inlined_call_operand.vmem [shape: f32[288,8], index: 5, kind: output, shape index: {}]  }
   0x1   :  { %v56_v0 = vld [vmem:[%s1557_s1] sm:$0xff]  ;;  %v21_v2 = vld [vmem:[%s1558_s0 + $0x8] sm:$0xff]  ;;  %v22_v3 = vld [vmem:[%s1558_s0 + $0x10] sm:$0xff] }
   0x2   :  { %v20_v1 = vld [vmem:[%s1558_s0] sm:$0xff]  ;;  %1003 = vmatprep.subr.mxu0 %v56_v0  ;;  %v23_v4 = vld [vmem:[%s1558_s0 + $0x18] sm:$0xff]  ;;  %v25_v6 = vld [vmem:[%s1558_s0 + $0x28] sm:$0xff] }
   0x3   :  { %1005 = vmatprep.mubr.msk.f32.mxu0 %vm64_vm0, %v20_v1  ;;  %1004 = vmatpush3.msra.mxu0 %v56_v0  ;;  %v24_v5 = vld [vmem:[%s1558_s0 + $0x20] sm:$0xff]  ;;  %v26_v7 = vld [vmem:[%s1558_s0 + $0x30] sm:$0xff]  ;;  %v27_v8 = vld [vmem:[%s1558_s0 + $0x38] sm:$0xff] }
   0x4   :  { %1006 = vmatmul.mubr.msk.f32.vlgmr.msra.gmra.mrb[0].mxu0 %vm64_vm0, %v21_v2  ;;  %v28_v9 = vld [vmem:[%s1558_s0 + $0x40] sm:$0xff]  ;;  %v29_v10 = vld [vmem:[%s1558_s0 + $0x48] sm:$0xff]  ;;  %v30_v11 = vld [vmem:[%s1558_s0 + $0x50] sm:$0xff] }
   0x5   :  { %1008 = vmatprep.mubr.msk.f32.mxu0 %vm64_vm0, %v22_v3  ;;  %v31_v12 = vld [vmem:[%s1558_s0 + $0x58] sm:$0xff]  ;;  %v32_v13 = vld [vmem:[%s1558_s0 + $0x60] sm:$0xff]  ;;  %v33_v14 = vld [vmem:[%s1558_s0 + $0x68] sm:$0xff] }
   0x6   :  { %v34_v15 = vld [vmem:[%s1558_s0 + $0x70] sm:$0xff]  ;;  %v35_v16 = vld [vmem:[%s1558_s0 + $0x78] sm:$0xff]  ;;  %v36_v17 = vld [vmem:[%s1558_s0 + $0x80] sm:$0xff] }
   0x7   :  { %v37_v18 = vld [vmem:[%s1558_s0 + $0x88] sm:$0xff]  ;;  %v38_v19 = vld [vmem:[%s1558_s0 + $0x90] sm:$0xff]  ;;  %v39_v20 = vld [vmem:[%s1558_s0 + $0x98] sm:$0xff] }
   0x8   :  { %1009 = vmatmul.mubr.msk.f32.gmra.mrb[2].mxu0 %vm64_vm0, %v23_v4  ;;  %v40_v21 = vld [vmem:[%s1558_s0 + $0xa0] sm:$0xff]  ;;  %v41_v22 = vld [vmem:[%s1558_s0 + $0xa8] sm:$0xff]  ;;  %v42_v23 = vld [vmem:[%s1558_s0 + $0xb0] sm:$0xff] }
   0x9   :  { %1011 = vmatprep.mubr.msk.f32.mxu0 %vm64_vm0, %v24_v5  ;;  %v43_v24 = vld [vmem:[%s1558_s0 + $0xb8] sm:$0xff]  ;;  %v44_v25 = vld [vmem:[%s1558_s0 + $0xc0] sm:$0xff]  ;;  %v45_v26 = vld [vmem:[%s1558_s0 + $0xc8] sm:$0xff] }
   0xa   :  { %v46_v27 = vld [vmem:[%s1558_s0 + $0xd0] sm:$0xff]  ;;  %v47_v28 = vld [vmem:[%s1558_s0 + $0xd8] sm:$0xff]  ;;  %v48_v29 = vld [vmem:[%s1558_s0 + $0xe0] sm:$0xff] }
   0xb   :  { %v49_v30 = vld [vmem:[%s1558_s0 + $0xe8] sm:$0xff]  ;;  %v50_v31 = vld [vmem:[%s1558_s0 + $0xf0] sm:$0xff]  ;;  %v51_v32 = vld [vmem:[%s1558_s0 + $0xf8] sm:$0xff] }
   0xc   :  { %1012 = vmatmul.mubr.msk.f32.gmra.mrb[4].mxu0 %vm64_vm0, %v25_v6  ;;  %v52_v33 = vld [vmem:[%s1558_s0 + $0x100] sm:$0xff]  ;;  %v53_v34 = vld [vmem:[%s1558_s0 + $0x108] sm:$0xff]  ;;  %v54_v35 = vld [vmem:[%s1558_s0 + $0x110] sm:$0xff] }
   0xd   :  { %1014 = vmatprep.mubr.msk.f32.mxu0 %vm64_vm0, %v26_v7  ;;  %v55_v36 = vld [vmem:[%s1558_s0 + $0x118] sm:$0xff]  ;;  %v454_v37 = vld [vmem:[%s1559_s3] sm:$0xff] }
   0xe   :  { %1059 = vmatprep.subr.mxu1 %v454_v37  ;;  %v1298_v38 = vld [vmem:[%s1560_s2] ss:$0 sm:$0xff] }
   0xf   :  { %1060 = vmatpush3.msra.mxu1 %v454_v37 }
  0x10   :  { %1015 = vmatmul.mubr.msk.f32.gmra.mrb[6].mxu0 %vm64_vm0, %v27_v8 }
  0x11   :  { %1017 = vmatprep.mubr.msk.f32.mxu0 %vm64_vm0, %v28_v9 }
  0x14   :  { %1018 = vmatmul.mubr.msk.f32.gmra.mrb[8].mxu0 %vm64_vm0, %v29_v10 }
  0x15   :  { %1020 = vmatprep.mubr.msk.f32.mxu0 %vm64_vm0, %v30_v11 }
  0x18   :  { %1021 = vmatmul.mubr.msk.f32.gmra.mrb[10].mxu0 %vm64_vm0, %v31_v12 }
  0x19   :  { %1023 = vmatprep.mubr.msk.f32.mxu0 %vm64_vm0, %v32_v13 }
  0x1c   :  { %1024 = vmatmul.mubr.msk.f32.gmra.mrb[12].mxu0 %vm64_vm0, %v33_v14 }
  0x1d   :  { %1026 = vmatprep.mubr.msk.f32.mxu0 %vm64_vm0, %v34_v15 }
  0x20   :  { %1027 = vmatmul.mubr.msk.f32.gmra.mrb[14].mxu0 %vm64_vm0, %v35_v16 }
  0x21   :  { %1029 = vmatprep.mubr.msk.f32.mxu0 %vm64_vm0, %v36_v17 }
  0x24   :  { %1030 = vmatmul.mubr.msk.f32.gmra.mrb[16].mxu0 %vm64_vm0, %v37_v18 }
  0x25   :  { %1032 = vmatprep.mubr.msk.f32.mxu0 %vm64_vm0, %v38_v19 }
  0x28   :  { %1033 = vmatmul.mubr.msk.f32.gmra.mrb[18].mxu0 %vm64_vm0, %v39_v20 }
  0x29   :  { %1035 = vmatprep.mubr.msk.f32.mxu0 %vm64_vm0, %v40_v21 }
  0x2c   :  { %1036 = vmatmul.mubr.msk.f32.gmra.mrb[20].mxu0 %vm64_vm0, %v41_v22 }
  0x2d   :  { %1038 = vmatprep.mubr.msk.f32.mxu0 %vm64_vm0, %v42_v23 }
  0x30   :  { %1039 = vmatmul.mubr.msk.f32.gmra.mrb[22].mxu0 %vm64_vm0, %v43_v24 }
  0x31   :  { %1041 = vmatprep.mubr.msk.f32.mxu0 %vm64_vm0, %v44_v25 }
  0x34   :  { %1042 = vmatmul.mubr.msk.f32.gmra.mrb[24].mxu0 %vm64_vm0, %v45_v26 }
  0x35   :  { %1044 = vmatprep.mubr.msk.f32.mxu0 %vm64_vm0, %v46_v27 }
  0x38   :  { %1045 = vmatmul.mubr.msk.f32.gmra.mrb[26].mxu0 %vm64_vm0, %v47_v28 }
  0x39   :  { %1047 = vmatprep.mubr.msk.f32.mxu0 %vm64_vm0, %v48_v29 }
  0x3c   :  { %1048 = vmatmul.mubr.msk.f32.gmra.mrb[28].mxu0 %vm64_vm0, %v49_v30 }
  0x3d   :  { %1050 = vmatprep.mubr.msk.f32.mxu0 %vm64_vm0, %v50_v31 }
  0x40   :  { %1051 = vmatmul.mubr.msk.f32.gmra.mrb[30].mxu0 %vm64_vm0, %v51_v32 }
  0x41   :  { %1053 = vmatprep.mubr.msk.f32.mxu0 %vm64_vm0, %v52_v33 }
  0x44   :  { %1054 = vmatmul.mubr.msk.f32.gmra.mrb[32].mxu0 %vm64_vm0, %v53_v34 }
  0x45   :  { %1056 = vmatprep.mubr.msk.f32.mxu0 %vm64_vm0, %v54_v35 }
  0x48   :  { %1057 = vmatmul.mubr.msk.f32.gmra.mrb[34].mxu0 %vm64_vm0, %v55_v36 }
  0xd7   :  { %v1007_v39 = vpop.f32.mrb[0].mxu0 }
  0xd8   :  { %v245_v40 = vadd.f32 %v1007_v39, %v1298_v38  ;;  %v239_v41 = vpop.f32.mrb[1].mxu0 }
  0xd9   :  { %v240_v42 = vadd.f32 %v1298_v38, %v239_v41 }
  0xda   :  { %v419_v45 = vmax.f32 %v245_v40, 0.0 }
  0xdb   :  { %v418_v43 = vmax.f32 %v240_v42, 0.0  ;;  %v1010_v44 = vpop.f32.mrb[2].mxu0 }
  0xdc   :  { %v255_v46 = vadd.f32 %v1010_v44, %v1298_v38  ;;  %v249_v47 = vpop.f32.mrb[3].mxu0 }
  0xdd   :  { %v250_v48 = vadd.f32 %v1298_v38, %v249_v47  ;;  %1061 = vmatprep.mubr.msk.f32.mxu1 %vm64_vm0, %v418_v43 }
  0xde   :  { %1062 = vmatmul.mubr.msk.f32.vlgmr.msra.gmra.mrb[0].mxu1 %vm64_vm0, %v419_v45  ;;  %v421_v51 = vmax.f32 %v255_v46, 0.0 }
  0xdf   :  { %v420_v49 = vmax.f32 %v250_v48, 0.0  ;;  %v1013_v50 = vpop.f32.mrb[4].mxu0 }
  0xe0   :  { %v265_v52 = vadd.f32 %v1013_v50, %v1298_v38  ;;  %v259_v53 = vpop.f32.mrb[5].mxu0 }
  0xe1   :  { %v260_v54 = vadd.f32 %v1298_v38, %v259_v53  ;;  %1064 = vmatprep.mubr.msk.f32.mxu1 %vm64_vm0, %v420_v49 }
  0xe2   :  { %1065 = vmatmul.mubr.msk.f32.gmra.mrb[2].mxu1 %vm64_vm0, %v421_v51  ;;  %v423_v57 = vmax.f32 %v265_v52, 0.0 }
  0xe3   :  { %v422_v55 = vmax.f32 %v260_v54, 0.0  ;;  %v1016_v56 = vpop.f32.mrb[6].mxu0 }
  0xe4   :  { %v275_v58 = vadd.f32 %v1016_v56, %v1298_v38  ;;  %v269_v59 = vpop.f32.mrb[7].mxu0 }
  0xe5   :  { %v270_v60 = vadd.f32 %v1298_v38, %v269_v59  ;;  %1067 = vmatprep.mubr.msk.f32.mxu1 %vm64_vm0, %v422_v55 }
  0xe6   :  { %1068 = vmatmul.mubr.msk.f32.gmra.mrb[4].mxu1 %vm64_vm0, %v423_v57  ;;  %v425_v63 = vmax.f32 %v275_v58, 0.0 }
  0xe7   :  { %v424_v61 = vmax.f32 %v270_v60, 0.0  ;;  %v1019_v62 = vpop.f32.mrb[8].mxu0 }
  0xe8   :  { %v285_v0 = vadd.f32 %v1019_v62, %v1298_v38  ;;  %v279_v1 = vpop.f32.mrb[9].mxu0 }
  0xe9   :  { %v280_v2 = vadd.f32 %v1298_v38, %v279_v1  ;;  %1070 = vmatprep.mubr.msk.f32.mxu1 %vm64_vm0, %v424_v61 }
  0xea   :  { %1071 = vmatmul.mubr.msk.f32.gmra.mrb[6].mxu1 %vm64_vm0, %v425_v63  ;;  %v427_v5 = vmax.f32 %v285_v0, 0.0 }
  0xeb   :  { %v426_v3 = vmax.f32 %v280_v2, 0.0  ;;  %v1022_v4 = vpop.f32.mrb[10].mxu0 }
  0xec   :  { %v295_v6 = vadd.f32 %v1022_v4, %v1298_v38  ;;  %v289_v7 = vpop.f32.mrb[11].mxu0 }
  0xed   :  { %v290_v8 = vadd.f32 %v1298_v38, %v289_v7  ;;  %1073 = vmatprep.mubr.msk.f32.mxu1 %vm64_vm0, %v426_v3 }
  0xee   :  { %1074 = vmatmul.mubr.msk.f32.gmra.mrb[8].mxu1 %vm64_vm0, %v427_v5  ;;  %v429_v11 = vmax.f32 %v295_v6, 0.0 }
  0xef   :  { %v428_v9 = vmax.f32 %v290_v8, 0.0  ;;  %v1025_v10 = vpop.f32.mrb[12].mxu0 }
  0xf0   :  { %v305_v12 = vadd.f32 %v1025_v10, %v1298_v38  ;;  %v299_v13 = vpop.f32.mrb[13].mxu0 }
  0xf1   :  { %v300_v14 = vadd.f32 %v1298_v38, %v299_v13  ;;  %1076 = vmatprep.mubr.msk.f32.mxu1 %vm64_vm0, %v428_v9 }
  0xf2   :  { %1077 = vmatmul.mubr.msk.f32.gmra.mrb[10].mxu1 %vm64_vm0, %v429_v11  ;;  %v431_v17 = vmax.f32 %v305_v12, 0.0 }
  0xf3   :  { %v430_v15 = vmax.f32 %v300_v14, 0.0  ;;  %v1028_v16 = vpop.f32.mrb[14].mxu0 }
  0xf4   :  { %v315_v18 = vadd.f32 %v1028_v16, %v1298_v38  ;;  %v309_v19 = vpop.f32.mrb[15].mxu0 }
  0xf5   :  { %v310_v20 = vadd.f32 %v1298_v38, %v309_v19  ;;  %1079 = vmatprep.mubr.msk.f32.mxu1 %vm64_vm0, %v430_v15 }
  0xf6   :  { %1080 = vmatmul.mubr.msk.f32.gmra.mrb[12].mxu1 %vm64_vm0, %v431_v17  ;;  %v433_v23 = vmax.f32 %v315_v18, 0.0 }
  0xf7   :  { %v432_v21 = vmax.f32 %v310_v20, 0.0  ;;  %v1031_v22 = vpop.f32.mrb[16].mxu0  ;;  %v1375_v20 = vld [vmem:[%s1561_s4] ss:$0 sm:$0xff] }
  0xf8   :  { %v325_v24 = vadd.f32 %v1031_v22, %v1298_v38  ;;  %v319_v25 = vpop.f32.mrb[17].mxu0 }
  0xf9   :  { %v320_v26 = vadd.f32 %v1298_v38, %v319_v25  ;;  %1082 = vmatprep.mubr.msk.f32.mxu1 %vm64_vm0, %v432_v21 }
  0xfa   :  { %1083 = vmatmul.mubr.msk.f32.gmra.mrb[14].mxu1 %vm64_vm0, %v433_v23  ;;  %v435_v29 = vmax.f32 %v325_v24, 0.0 }
  0xfb   :  { %v434_v27 = vmax.f32 %v320_v26, 0.0  ;;  %v1034_v28 = vpop.f32.mrb[18].mxu0 }
  0xfc   :  { %v335_v30 = vadd.f32 %v1034_v28, %v1298_v38  ;;  %v329_v31 = vpop.f32.mrb[19].mxu0 }
  0xfd   :  { %v330_v32 = vadd.f32 %v1298_v38, %v329_v31  ;;  %1085 = vmatprep.mubr.msk.f32.mxu1 %vm64_vm0, %v434_v27 }
  0xfe   :  { %1086 = vmatmul.mubr.msk.f32.gmra.mrb[16].mxu1 %vm64_vm0, %v435_v29  ;;  %v437_v35 = vmax.f32 %v335_v30, 0.0 }
  0xff   :  { %v436_v33 = vmax.f32 %v330_v32, 0.0  ;;  %v1037_v34 = vpop.f32.mrb[20].mxu0 }
 0x100   :  { %v345_v36 = vadd.f32 %v1037_v34, %v1298_v38  ;;  %v339_v37 = vpop.f32.mrb[21].mxu0 }
 0x101   :  { %v340_v39 = vadd.f32 %v1298_v38, %v339_v37  ;;  %1088 = vmatprep.mubr.msk.f32.mxu1 %vm64_vm0, %v436_v33 }
 0x102   :  { %1089 = vmatmul.mubr.msk.f32.gmra.mrb[18].mxu1 %vm64_vm0, %v437_v35  ;;  %v439_v42 = vmax.f32 %v345_v36, 0.0 }
 0x103   :  { %v438_v40 = vmax.f32 %v340_v39, 0.0  ;;  %v1040_v41 = vpop.f32.mrb[22].mxu0 }
 0x104   :  { %v355_v43 = vadd.f32 %v1040_v41, %v1298_v38  ;;  %v349_v44 = vpop.f32.mrb[23].mxu0 }
 0x105   :  { %v350_v45 = vadd.f32 %v1298_v38, %v349_v44  ;;  %1091 = vmatprep.mubr.msk.f32.mxu1 %vm64_vm0, %v438_v40 }
 0x106   :  { %1092 = vmatmul.mubr.msk.f32.gmra.mrb[20].mxu1 %vm64_vm0, %v439_v42  ;;  %v441_v48 = vmax.f32 %v355_v43, 0.0 }
 0x107   :  { %v440_v46 = vmax.f32 %v350_v45, 0.0  ;;  %v1043_v47 = vpop.f32.mrb[24].mxu0 }
 0x108   :  { %v365_v49 = vadd.f32 %v1043_v47, %v1298_v38  ;;  %v359_v50 = vpop.f32.mrb[25].mxu0 }
 0x109   :  { %v360_v51 = vadd.f32 %v1298_v38, %v359_v50  ;;  %1094 = vmatprep.mubr.msk.f32.mxu1 %vm64_vm0, %v440_v46 }
 0x10a   :  { %1095 = vmatmul.mubr.msk.f32.gmra.mrb[22].mxu1 %vm64_vm0, %v441_v48  ;;  %v443_v54 = vmax.f32 %v365_v49, 0.0 }
 0x10b   :  { %v442_v52 = vmax.f32 %v360_v51, 0.0  ;;  %v1046_v53 = vpop.f32.mrb[26].mxu0 }
 0x10c   :  { %v375_v55 = vadd.f32 %v1046_v53, %v1298_v38  ;;  %v369_v56 = vpop.f32.mrb[27].mxu0 }
 0x10d   :  { %v370_v57 = vadd.f32 %v1298_v38, %v369_v56  ;;  %1097 = vmatprep.mubr.msk.f32.mxu1 %vm64_vm0, %v442_v52 }
 0x10e   :  { %1098 = vmatmul.mubr.msk.f32.gmra.mrb[24].mxu1 %vm64_vm0, %v443_v54  ;;  %v445_v60 = vmax.f32 %v375_v55, 0.0 }
 0x10f   :  { %v444_v58 = vmax.f32 %v370_v57, 0.0  ;;  %v1049_v59 = vpop.f32.mrb[28].mxu0 }
 0x110   :  { %v385_v61 = vadd.f32 %v1049_v59, %v1298_v38  ;;  %v379_v62 = vpop.f32.mrb[29].mxu0 }
 0x111   :  { %v380_v63 = vadd.f32 %v1298_v38, %v379_v62  ;;  %1100 = vmatprep.mubr.msk.f32.mxu1 %vm64_vm0, %v444_v58 }
 0x112   :  { %1101 = vmatmul.mubr.msk.f32.gmra.mrb[26].mxu1 %vm64_vm0, %v445_v60  ;;  %v447_v2 = vmax.f32 %v385_v61, 0.0 }
 0x113   :  { %v446_v0 = vmax.f32 %v380_v63, 0.0  ;;  %v1052_v1 = vpop.f32.mrb[30].mxu0 }
 0x114   :  { %v395_v3 = vadd.f32 %v1052_v1, %v1298_v38  ;;  %v389_v4 = vpop.f32.mrb[31].mxu0 }
 0x115   :  { %v390_v5 = vadd.f32 %v1298_v38, %v389_v4  ;;  %1103 = vmatprep.mubr.msk.f32.mxu1 %vm64_vm0, %v446_v0 }
 0x116   :  { %1104 = vmatmul.mubr.msk.f32.gmra.mrb[28].mxu1 %vm64_vm0, %v447_v2  ;;  %v449_v8 = vmax.f32 %v395_v3, 0.0 }
 0x117   :  { %v448_v6 = vmax.f32 %v390_v5, 0.0  ;;  %v1055_v7 = vpop.f32.mrb[32].mxu0 }
 0x118   :  { %v405_v9 = vadd.f32 %v1055_v7, %v1298_v38  ;;  %v399_v10 = vpop.f32.mrb[33].mxu0 }
 0x119   :  { %v400_v11 = vadd.f32 %v1298_v38, %v399_v10  ;;  %1106 = vmatprep.mubr.msk.f32.mxu1 %vm64_vm0, %v448_v6 }
 0x11a   :  { %1107 = vmatmul.mubr.msk.f32.gmra.mrb[30].mxu1 %vm64_vm0, %v449_v8  ;;  %v451_v14 = vmax.f32 %v405_v9, 0.0 }
 0x11b   :  { %v450_v12 = vmax.f32 %v400_v11, 0.0  ;;  %v1058_v13 = vpop.f32.mrb[34].mxu0 }
 0x11c   :  { %v415_v15 = vadd.f32 %v1058_v13, %v1298_v38  ;;  %v409_v16 = vpop.f32.mrb[35].mxu0 }
 0x11d   :  { %v410_v17 = vadd.f32 %v1298_v38, %v409_v16  ;;  %1109 = vmatprep.mubr.msk.f32.mxu1 %vm64_vm0, %v450_v12 }
 0x11e   :  { %1110 = vmatmul.mubr.msk.f32.gmra.mrb[32].mxu1 %vm64_vm0, %v451_v14  ;;  %v453_v19 = vmax.f32 %v415_v15, 0.0 }
 0x11f   :  { %v452_v18 = vmax.f32 %v410_v17, 0.0 }
 0x121   :  { %1112 = vmatprep.mubr.msk.f32.mxu1 %vm64_vm0, %v452_v18 }
 0x122   :  { %1113 = vmatmul.mubr.msk.f32.gmra.mrb[34].mxu1 %vm64_vm0, %v453_v19 }
 0x1b1   :  { %v1063_v21 = vpop.f32.mrb[0].mxu1 }
 0x1b2   :  { %v642_v22 = vadd.f32 %v1063_v21, %v1375_v20  ;;  %v636_v23 = vpop.f32.mrb[1].mxu1 }
 0x1b3   :  { %v637_v38 = vadd.f32 %v1375_v20, %v636_v23 }
 0x1b4   :  { %816 = vst.msk [vmem:[%s1562_s5 + $0x8] sm:$0xff] %vm64_vm0, %v642_v22 }
 0x1b5   :  { %815 = vst.msk [vmem:[%s1562_s5] sm:$0xff] %vm64_vm0, %v637_v38  ;;  %v1066_v24 = vpop.f32.mrb[2].mxu1 }
 0x1b6   :  { %v652_v25 = vadd.f32 %v1066_v24, %v1375_v20  ;;  %v646_v26 = vpop.f32.mrb[3].mxu1 }
 0x1b7   :  { %v647_v27 = vadd.f32 %v1375_v20, %v646_v26 }
 0x1b8   :  { %818 = vst.msk [vmem:[%s1562_s5 + $0x18] sm:$0xff] %vm64_vm0, %v652_v25 }
 0x1b9   :  { %817 = vst.msk [vmem:[%s1562_s5 + $0x10] sm:$0xff] %vm64_vm0, %v647_v27  ;;  %v1069_v28 = vpop.f32.mrb[4].mxu1 }
 0x1ba   :  { %v662_v29 = vadd.f32 %v1069_v28, %v1375_v20  ;;  %v656_v30 = vpop.f32.mrb[5].mxu1 }
 0x1bb   :  { %v657_v31 = vadd.f32 %v1375_v20, %v656_v30 }
 0x1bc   :  { %820 = vst.msk [vmem:[%s1562_s5 + $0x28] sm:$0xff] %vm64_vm0, %v662_v29 }
 0x1bd   :  { %819 = vst.msk [vmem:[%s1562_s5 + $0x20] sm:$0xff] %vm64_vm0, %v657_v31  ;;  %v1072_v32 = vpop.f32.mrb[6].mxu1 }
 0x1be   :  { %v672_v33 = vadd.f32 %v1072_v32, %v1375_v20  ;;  %v666_v34 = vpop.f32.mrb[7].mxu1 }
 0x1bf   :  { %v667_v35 = vadd.f32 %v1375_v20, %v666_v34 }
 0x1c0   :  { %822 = vst.msk [vmem:[%s1562_s5 + $0x38] sm:$0xff] %vm64_vm0, %v672_v33 }
 0x1c1   :  { %821 = vst.msk [vmem:[%s1562_s5 + $0x30] sm:$0xff] %vm64_vm0, %v667_v35  ;;  %v1075_v36 = vpop.f32.mrb[8].mxu1 }
 0x1c2   :  { %v682_v37 = vadd.f32 %v1075_v36, %v1375_v20  ;;  %v676_v39 = vpop.f32.mrb[9].mxu1 }
 0x1c3   :  { %v677_v40 = vadd.f32 %v1375_v20, %v676_v39 }
 0x1c4   :  { %824 = vst.msk [vmem:[%s1562_s5 + $0x48] sm:$0xff] %vm64_vm0, %v682_v37 }
 0x1c5   :  { %823 = vst.msk [vmem:[%s1562_s5 + $0x40] sm:$0xff] %vm64_vm0, %v677_v40  ;;  %v1078_v41 = vpop.f32.mrb[10].mxu1 }
 0x1c6   :  { %v692_v42 = vadd.f32 %v1078_v41, %v1375_v20  ;;  %v686_v43 = vpop.f32.mrb[11].mxu1 }
 0x1c7   :  { %v687_v44 = vadd.f32 %v1375_v20, %v686_v43 }
 0x1c8   :  { %826 = vst.msk [vmem:[%s1562_s5 + $0x58] sm:$0xff] %vm64_vm0, %v692_v42 }
 0x1c9   :  { %825 = vst.msk [vmem:[%s1562_s5 + $0x50] sm:$0xff] %vm64_vm0, %v687_v44  ;;  %v1081_v45 = vpop.f32.mrb[12].mxu1 }
 0x1ca   :  { %v702_v46 = vadd.f32 %v1081_v45, %v1375_v20  ;;  %v696_v47 = vpop.f32.mrb[13].mxu1 }
 0x1cb   :  { %v697_v48 = vadd.f32 %v1375_v20, %v696_v47 }
 0x1cc   :  { %828 = vst.msk [vmem:[%s1562_s5 + $0x68] sm:$0xff] %vm64_vm0, %v702_v46 }
 0x1cd   :  { %827 = vst.msk [vmem:[%s1562_s5 + $0x60] sm:$0xff] %vm64_vm0, %v697_v48  ;;  %v1084_v49 = vpop.f32.mrb[14].mxu1 }
 0x1ce   :  { %v712_v50 = vadd.f32 %v1084_v49, %v1375_v20  ;;  %v706_v51 = vpop.f32.mrb[15].mxu1 }
 0x1cf   :  { %v707_v52 = vadd.f32 %v1375_v20, %v706_v51 }
 0x1d0   :  { %830 = vst.msk [vmem:[%s1562_s5 + $0x78] sm:$0xff] %vm64_vm0, %v712_v50 }
 0x1d1   :  { %829 = vst.msk [vmem:[%s1562_s5 + $0x70] sm:$0xff] %vm64_vm0, %v707_v52  ;;  %v1087_v53 = vpop.f32.mrb[16].mxu1 }
 0x1d2   :  { %v722_v54 = vadd.f32 %v1087_v53, %v1375_v20  ;;  %v716_v55 = vpop.f32.mrb[17].mxu1 }
 0x1d3   :  { %v717_v56 = vadd.f32 %v1375_v20, %v716_v55 }
 0x1d4   :  { %832 = vst.msk [vmem:[%s1562_s5 + $0x88] sm:$0xff] %vm64_vm0, %v722_v54 }
 0x1d5   :  { %831 = vst.msk [vmem:[%s1562_s5 + $0x80] sm:$0xff] %vm64_vm0, %v717_v56  ;;  %v1090_v57 = vpop.f32.mrb[18].mxu1 }
 0x1d6   :  { %v732_v58 = vadd.f32 %v1090_v57, %v1375_v20  ;;  %v726_v59 = vpop.f32.mrb[19].mxu1 }
 0x1d7   :  { %v727_v60 = vadd.f32 %v1375_v20, %v726_v59 }
 0x1d8   :  { %834 = vst.msk [vmem:[%s1562_s5 + $0x98] sm:$0xff] %vm64_vm0, %v732_v58 }
 0x1d9   :  { %833 = vst.msk [vmem:[%s1562_s5 + $0x90] sm:$0xff] %vm64_vm0, %v727_v60  ;;  %v1093_v61 = vpop.f32.mrb[20].mxu1 }
 0x1da   :  { %v742_v62 = vadd.f32 %v1093_v61, %v1375_v20  ;;  %v736_v63 = vpop.f32.mrb[21].mxu1 }
 0x1db   :  { %v737_v0 = vadd.f32 %v1375_v20, %v736_v63 }
 0x1dc   :  { %836 = vst.msk [vmem:[%s1562_s5 + $0xa8] sm:$0xff] %vm64_vm0, %v742_v62 }
 0x1dd   :  { %835 = vst.msk [vmem:[%s1562_s5 + $0xa0] sm:$0xff] %vm64_vm0, %v737_v0  ;;  %v1096_v1 = vpop.f32.mrb[22].mxu1 }
 0x1de   :  { %v752_v2 = vadd.f32 %v1096_v1, %v1375_v20  ;;  %v746_v3 = vpop.f32.mrb[23].mxu1 }
 0x1df   :  { %v747_v4 = vadd.f32 %v1375_v20, %v746_v3 }
 0x1e0   :  { %838 = vst.msk [vmem:[%s1562_s5 + $0xb8] sm:$0xff] %vm64_vm0, %v752_v2 }
 0x1e1   :  { %837 = vst.msk [vmem:[%s1562_s5 + $0xb0] sm:$0xff] %vm64_vm0, %v747_v4  ;;  %v1099_v5 = vpop.f32.mrb[24].mxu1 }
 0x1e2   :  { %v762_v6 = vadd.f32 %v1099_v5, %v1375_v20  ;;  %v756_v7 = vpop.f32.mrb[25].mxu1 }
 0x1e3   :  { %v757_v8 = vadd.f32 %v1375_v20, %v756_v7 }
 0x1e4   :  { %840 = vst.msk [vmem:[%s1562_s5 + $0xc8] sm:$0xff] %vm64_vm0, %v762_v6 }
 0x1e5   :  { %839 = vst.msk [vmem:[%s1562_s5 + $0xc0] sm:$0xff] %vm64_vm0, %v757_v8  ;;  %v1102_v9 = vpop.f32.mrb[26].mxu1 }
 0x1e6   :  { %v772_v10 = vadd.f32 %v1102_v9, %v1375_v20  ;;  %v766_v11 = vpop.f32.mrb[27].mxu1 }
 0x1e7   :  { %v767_v12 = vadd.f32 %v1375_v20, %v766_v11 }
 0x1e8   :  { %842 = vst.msk [vmem:[%s1562_s5 + $0xd8] sm:$0xff] %vm64_vm0, %v772_v10 }
 0x1e9   :  { %841 = vst.msk [vmem:[%s1562_s5 + $0xd0] sm:$0xff] %vm64_vm0, %v767_v12  ;;  %v1105_v13 = vpop.f32.mrb[28].mxu1 }
 0x1ea   :  { %v782_v14 = vadd.f32 %v1105_v13, %v1375_v20  ;;  %v776_v15 = vpop.f32.mrb[29].mxu1 }
 0x1eb   :  { %v777_v16 = vadd.f32 %v1375_v20, %v776_v15 }
 0x1ec   :  { %844 = vst.msk [vmem:[%s1562_s5 + $0xe8] sm:$0xff] %vm64_vm0, %v782_v14 }
 0x1ed   :  { %843 = vst.msk [vmem:[%s1562_s5 + $0xe0] sm:$0xff] %vm64_vm0, %v777_v16  ;;  %v1108_v17 = vpop.f32.mrb[30].mxu1 }
 0x1ee   :  { %v792_v18 = vadd.f32 %v1108_v17, %v1375_v20  ;;  %v786_v19 = vpop.f32.mrb[31].mxu1 }
 0x1ef   :  { %v787_v21 = vadd.f32 %v1375_v20, %v786_v19 }
 0x1f0   :  { %846 = vst.msk [vmem:[%s1562_s5 + $0xf8] sm:$0xff] %vm64_vm0, %v792_v18 }
 0x1f1   :  { %845 = vst.msk [vmem:[%s1562_s5 + $0xf0] sm:$0xff] %vm64_vm0, %v787_v21  ;;  %v1111_v22 = vpop.f32.mrb[32].mxu1 }
 0x1f2   :  { %v802_v23 = vadd.f32 %v1111_v22, %v1375_v20  ;;  %v796_v38 = vpop.f32.mrb[33].mxu1 }
 0x1f3   :  { %v797_v24 = vadd.f32 %v1375_v20, %v796_v38 }
 0x1f4   :  { %848 = vst.msk [vmem:[%s1562_s5 + $0x108] sm:$0xff] %vm64_vm0, %v802_v23 }
 0x1f5   :  { %847 = vst.msk [vmem:[%s1562_s5 + $0x100] sm:$0xff] %vm64_vm0, %v797_v24  ;;  %v1114_v25 = vpop.f32.mrb[34].mxu1 }
 0x1f6   :  { %v812_v26 = vadd.f32 %v1114_v25, %v1375_v20  ;;  %v806_v27 = vpop.f32.mrb[35].mxu1 }
 0x1f7   :  { %v807_v28 = vadd.f32 %v1375_v20, %v806_v27 }
 0x1f8   :  { %850 = vst.msk [vmem:[%s1562_s5 + $0x118] sm:$0xff] %vm64_vm0, %v812_v26 }
 0x1f9   :  { %849 = vst.msk [vmem:[%s1562_s5 + $0x110] sm:$0xff] %vm64_vm0, %v807_v28 }

// kernel: res_block_do_fft_bench2.3
= control target key start
LH: loop header
LB: loop body
LE: loop exit
PB: predicated region body
PF: predicated region fallthrough
CT: control target
= control target key end

     0   :  { %s11714_s17 = smov 0   ;;  %s15228_s0 = inlined_call_operand.vmem [shape: f32[2,304,8], index: 0, kind: input, shape index: {}]   ;;  %s15229_s1 = inlined_call_operand.vmem [shape: f32[256,1], index: 1, kind: input, shape index: {}]   ;;  %s15230_s2 = inlined_call_operand.vmem [shape: f32[256,1], index: 2, kind: input, shape index: {}]   ;;  %s15231_s3 = inlined_call_operand.vmem [shape: f32[9,8,128], index: 3, kind: input, shape index: {}]   ;;  %s15232_s4 = inlined_call_operand.vmem [shape: f32[1,128], index: 4, kind: input, shape index: {}]   ;;  %s15233_s5 = inlined_call_operand.vmem [shape: f32[1,128], index: 5, kind: input, shape index: {}]   ;;  %s15234_s6 = inlined_call_operand.vmem [shape: f32[1,128], index: 6, kind: input, shape index: {}]   ;;  %s15235_s7 = inlined_call_operand.vmem [shape: f32[9,128,128], index: 7, kind: input, shape index: {}]   ;;  %s15236_s8 = inlined_call_operand.vmem [shape: f32[1,128], index: 8, kind: input, shape index: {}]   ;;  %s15237_s9 = inlined_call_operand.vmem [shape: f32[8,128], index: 9, kind: input, shape index: {}]   ;;  %s15238_s10 = inlined_call_operand.vmem [shape: f32[1,128], index: 10, kind: input, shape index: {}]   ;;  %s15239_s11 = inlined_call_operand.vmem [shape: f32[2,256,128], index: 11, kind: output, shape index: {}]  }
   0x1 LB: > { %s8371_s18 = sadd.s32 4294967295, %s11650_s17   ;;  %p8375_p0 = scmp.ge.s32.totalorder %s11650_s17, 1  ;;  %s11650_s17 = sphi %s11714_s17, %s21_s17  }
   0x2   : > { %p337_p1 = scmp.lt.s32.totalorder %s11650_s17, 3 }
   0x4   : > { %p338_p2 = pnand %p8375_p0, %p337_p1 }
   0x6   : > { %341 = sbr.rel (%p338_p2) target bundleno = 1814 (0x716), region = 64 }
   0xd   : > { %v389_v0 = vld [vmem:[%s15229_s1 + $0x10] sm:$0xff]  ;;  %v387_v1 = vld [vmem:[%s15229_s1] sm:$0xff]  ;;  %v11652_v2 = vmov 0   ;;  %p377_p3 = scmp.lt.s32.totalorder %s8371_s18, 1  ;;  %v15240_v3 = vmov 0.0   ;;  %v390_v4 = vld [vmem:[%s15229_s1 + $0x18] sm:$0xff] }
   0xe   : > { %11639 = vset.pattern.permute.xlu1 %v11652_v2  ;;  %11638 = vset.pattern.permute.xlu0 %v11652_v2  ;;  %4806 = vst [vmem:[#allocation2 + $0x8] sm:$0xff] %v15240_v3  ;;  %4807 = vst [vmem:[#allocation2 + $0x10] sm:$0xff] %v15240_v3  ;;  %v388_v5 = vld [vmem:[%s15229_s1 + $0x8] sm:$0xff]  ;;  %v391_v7 = vld [vmem:[%s15229_s1 + $0x20] sm:$0xff]  ;;  %vm15480_vm0 = vcmask 64512  }
   0xf   : > { %495 = vperm.xlu1 %11639, %v389_v0   ;;  %485 = vperm.xlu0 %11638, %v387_v1   ;;  %4805 = vst [vmem:[#allocation2] sm:$0xff] %v15240_v3  ;;  %4840 = vst [vmem:[#allocation2 + $0x118] sm:$0xff] %v15240_v3  ;;  %s16140_s18 = smov (!%p377_p3, %s8371_s18), 1  ;;  %v392_v6 = vld [vmem:[%s15229_s1 + $0x28] sm:$0xff]  ;;  %v394_v8 = vld [vmem:[%s15229_s1 + $0x38] sm:$0xff] }
  0x10   : > { %4841 = vst [vmem:[#allocation2 + $0x120] sm:$0xff] %v15240_v3  ;;  %4842 = vst [vmem:[#allocation2 + $0x128] sm:$0xff] %v15240_v3  ;;  %s11627_s12 = smul.u32 304, %s16140_s18  ;;  %v393_v9 = vld [vmem:[%s15229_s1 + $0x30] sm:$0xff]  ;;  %v396_v10 = vld [vmem:[%s15229_s1 + $0x48] sm:$0xff]  ;;  %s8842_s15 = sshll.u32 %s16140_s18, 8 }
  0x11   : > { %v395_v11 = vld [vmem:[%s15229_s1 + $0x40] sm:$0xff]  ;;  %v8379_v12 = vld [vmem:[%s15231_s3 + $0x8] sm:$0xff]  ;;  %v398_v16 = vld [vmem:[%s15229_s1 + $0x58] sm:$0xff]  ;;  %s15103_s20 = scalar_lea.vmem %s15239_s11, %s8842_s15 }
  0x12   : > { %s11758_s21 = scalar_lea.vmem %s15228_s0, %s11627_s12  ;;  %9605 = vmatprep.subr.mxu0 %v8379_v12  ;;  %11113 = vmatprep.subr.mxu1 %v8379_v12  ;;  %v675_v15 = vld [vmem:[%s15231_s3] sm:$0xff]  ;;  %v397_v17 = vld [vmem:[%s15229_s1 + $0x50] sm:$0xff]  ;;  %v400_v21 = vld [vmem:[%s15229_s1 + $0x68] sm:$0xff] }
  0x13   : > { %500 = vperm.xlu1 %11639, %v390_v4   ;;  %490 = vperm.xlu0 %11638, %v388_v5   ;;  %v676_v13 = vld [vmem:[%s11758_s21 + $0x8] sm:$0xff]  ;;  %v677_v14 = vld [vmem:[%s11758_s21 + $0x10] sm:$0xff]  ;;  %v11782_v18 = vld [vmem:[%s11758_s21 + $0x18] sm:$0xff] }
  0x14   : > { %9606 = vmatpush3.msra.mxu0 %v8379_v12  ;;  %9607 = vmatprep.mubr.msk.f32.mxu0 %vm15480_vm0, %v676_v13  ;;  %15539 = vst [vmem:[#allocation3_spill] sm:$0xff] %v11782_v18  ;;  %v11788_v19 = vld [vmem:[%s11758_s21 + $0x20] sm:$0xff]  ;;  %v11791_v20 = vld [vmem:[%s11758_s21 + $0x28] sm:$0xff]  ;;  %v11804_v23 = vld [vmem:[%s11758_s21 + $0x30] sm:$0xff] }
  0x15   : > { %9608 = vmatmul.mubr.msk.f32.vlgmr.msra.gmra.mrb[0].mxu0 %vm15480_vm0, %v677_v14  ;;  %9655 = vmatprep.subr.mxu0 %v675_v15  ;;  %15540 = vst [vmem:[#allocation4_spill] sm:$0xff] %v11788_v19  ;;  %15541 = vst [vmem:[#allocation5_spill] sm:$0xff] %v11791_v20  ;;  %v399_v22 = vld [vmem:[%s15229_s1 + $0x60] sm:$0xff]  ;;  %v11807_v24 = vld [vmem:[%s11758_s21 + $0x38] sm:$0xff] }
  0x16   : > { %9656 = vmatpush3.msra.mxu0 %v675_v15  ;;  %9610 = vmatprep.mubr.msk.f32.mxu0 %vm15480_vm0, %v11782_v18  ;;  %15542 = vst [vmem:[#allocation6_spill] sm:$0xff] %v11804_v23  ;;  %15543 = vst [vmem:[#allocation7_spill] sm:$0xff] %v11807_v24  ;;  %v402_v25 = vld [vmem:[%s15229_s1 + $0x78] sm:$0xff]  ;;  %v401_v26 = vld [vmem:[%s15229_s1 + $0x70] sm:$0xff] }
  0x17   : > { %510 = vperm.xlu1 %11639, %v392_v6   ;;  %505 = vperm.xlu0 %11638, %v391_v7   ;;  %v11820_v27 = vld [vmem:[%s11758_s21 + $0x40] sm:$0xff]  ;;  %v11825_v28 = vld [vmem:[%s15231_s3 + $0x10] sm:$0xff]  ;;  %v11828_v29 = vld [vmem:[%s11758_s21 + $0x48] sm:$0xff] }
  0x18   : > { %11114 = vmatpush3.msra.mxu1 %v8379_v12  ;;  %15544 = vst [vmem:[#allocation8_spill] sm:$0xff] %v11820_v27  ;;  %15545 = vst [vmem:[#allocation9_spill] sm:$0xff] %v11828_v29  ;;  %v404_v30 = vld [vmem:[%s15229_s1 + $0x88] sm:$0xff]  ;;  %v403_v31 = vld [vmem:[%s15229_s1 + $0x80] sm:$0xff]  ;;  %9705 = vmatprep.subr.mxu0 %v11825_v28 }
  0x19   : > { %9611 = vmatmul.mubr.msk.f32.gmra.mrb[2].mxu0 %vm15480_vm0, %v11788_v19  ;;  %v11842_v32 = vld [vmem:[%s11758_s21 + $0x50] sm:$0xff]  ;;  %v11845_v33 = vld [vmem:[%s11758_s21 + $0x58] sm:$0xff]  ;;  %v11858_v36 = vld [vmem:[%s11758_s21 + $0x60] sm:$0xff] }
  0x1a   : > { %9613 = vmatprep.mubr.msk.f32.mxu0 %vm15480_vm0, %v11791_v20  ;;  %15546 = vst [vmem:[#allocation10_spill] sm:$0xff] %v11842_v32  ;;  %15547 = vst [vmem:[#allocation11_spill] sm:$0xff] %v11845_v33  ;;  %v406_v34 = vld [vmem:[%s15229_s1 + $0x98] sm:$0xff]  ;;  %v405_v35 = vld [vmem:[%s15229_s1 + $0x90] sm:$0xff] }
  0x1b   : > { %520 = vperm.xlu1 %11639, %v394_v8   ;;  %515 = vperm.xlu0 %11638, %v393_v9   ;;  %15548 = vst [vmem:[#allocation12_spill] sm:$0xff] %v11858_v36  ;;  %v11861_v37 = vld [vmem:[%s11758_s21 + $0x68] sm:$0xff]  ;;  %v407_v39 = vld [vmem:[%s15229_s1 + $0xa0] sm:$0xff]  ;;  %v11874_v40 = vld [vmem:[%s11758_s21 + $0x70] sm:$0xff] }
  0x1c   : > { %15549 = vst [vmem:[#allocation13_spill] sm:$0xff] %v11861_v37  ;;  %v408_v38 = vld [vmem:[%s15229_s1 + $0xa8] sm:$0xff]  ;;  %15550 = vst [vmem:[#allocation14_spill] sm:$0xff] %v11874_v40  ;;  %v11877_v41 = vld [vmem:[%s11758_s21 + $0x78] sm:$0xff] }
  0x1d   : > { %9614 = vmatmul.mubr.msk.f32.gmra.mrb[4].mxu0 %vm15480_vm0, %v11804_v23  ;;  %15551 = vst [vmem:[#allocation15_spill] sm:$0xff] %v11877_v41  ;;  %v410_v42 = vld [vmem:[%s15229_s1 + $0xb8] sm:$0xff]  ;;  %v409_v43 = vld [vmem:[%s15229_s1 + $0xb0] sm:$0xff]  ;;  %v11890_v44 = vld [vmem:[%s11758_s21 + $0x80] sm:$0xff] }
  0x1e   : > { %9616 = vmatprep.mubr.msk.f32.mxu0 %vm15480_vm0, %v11807_v24  ;;  %15552 = vst [vmem:[#allocation16_spill] sm:$0xff] %v11890_v44  ;;  %v412_v45 = vld [vmem:[%s15229_s1 + $0xc8] sm:$0xff]  ;;  %v411_v46 = vld [vmem:[%s15229_s1 + $0xc0] sm:$0xff]  ;;  %v414_v47 = vld [vmem:[%s15229_s1 + $0xd8] sm:$0xff] }
  0x1f   : > { %530 = vperm.xlu1 %11639, %v396_v10   ;;  %525 = vperm.xlu0 %11638, %v395_v11   ;;  %v413_v48 = vld [vmem:[%s15229_s1 + $0xd0] sm:$0xff]  ;;  %v416_v49 = vld [vmem:[%s15229_s1 + $0xe8] sm:$0xff]  ;;  %v415_v50 = vld [vmem:[%s15229_s1 + $0xe0] sm:$0xff] }
  0x20   : > { %v418_v51 = vld [vmem:[%s15229_s1 + $0xf8] sm:$0xff]  ;;  %v417_v52 = vld [vmem:[%s15229_s1 + $0xf0] sm:$0xff]  ;;  %v420_v53 = vld [vmem:[%s15230_s2 + $0x8] sm:$0xff] }
  0x21   : > { %9617 = vmatmul.mubr.msk.f32.gmra.mrb[6].mxu0 %vm15480_vm0, %v11820_v27  ;;  %v419_v54 = vld [vmem:[%s15230_s2] sm:$0xff]  ;;  %v422_v55 = vld [vmem:[%s15230_s2 + $0x18] sm:$0xff]  ;;  %v421_v56 = vld [vmem:[%s15230_s2 + $0x10] sm:$0xff] }
  0x22   : > { %9619 = vmatprep.mubr.msk.f32.mxu0 %vm15480_vm0, %v11828_v29  ;;  %v424_v57 = vld [vmem:[%s15230_s2 + $0x28] sm:$0xff]  ;;  %v423_v58 = vld [vmem:[%s15230_s2 + $0x20] sm:$0xff]  ;;  %v426_v59 = vld [vmem:[%s15230_s2 + $0x38] sm:$0xff] }
  0x23   : > { %540 = vperm.xlu1 %11639, %v398_v16   ;;  %535 = vperm.xlu0 %11638, %v397_v17   ;;  %v425_v60 = vld [vmem:[%s15230_s2 + $0x30] sm:$0xff]  ;;  %v428_v61 = vld [vmem:[%s15230_s2 + $0x48] sm:$0xff]  ;;  %v427_v62 = vld [vmem:[%s15230_s2 + $0x40] sm:$0xff] }
  0x24   : > { %v430_v63 = vld [vmem:[%s15230_s2 + $0x58] sm:$0xff]  ;;  %v429_v0 = vld [vmem:[%s15230_s2 + $0x50] sm:$0xff]  ;;  %v432_v1 = vld [vmem:[%s15230_s2 + $0x68] sm:$0xff] }
  0x25   : > { %9620 = vmatmul.mubr.msk.f32.gmra.mrb[8].mxu0 %vm15480_vm0, %v11842_v32  ;;  %v431_v2 = vld [vmem:[%s15230_s2 + $0x60] sm:$0xff]  ;;  %v434_v4 = vld [vmem:[%s15230_s2 + $0x78] sm:$0xff]  ;;  %v433_v5 = vld [vmem:[%s15230_s2 + $0x70] sm:$0xff] }
  0x26   : > { %9622 = vmatprep.mubr.msk.f32.mxu0 %vm15480_vm0, %v11845_v33  ;;  %v436_v6 = vld [vmem:[%s15230_s2 + $0x88] sm:$0xff]  ;;  %v435_v7 = vld [vmem:[%s15230_s2 + $0x80] sm:$0xff]  ;;  %v438_v8 = vld [vmem:[%s15230_s2 + $0x98] sm:$0xff] }
  0x27   : > { %550 = vperm.xlu1 %11639, %v400_v21   ;;  %545 = vperm.xlu0 %11638, %v399_v22   ;;  %v437_v9 = vld [vmem:[%s15230_s2 + $0x90] sm:$0xff]  ;;  %v440_v10 = vld [vmem:[%s15230_s2 + $0xa8] sm:$0xff]  ;;  %v439_v11 = vld [vmem:[%s15230_s2 + $0xa0] sm:$0xff] }
  0x28   : > { %v442_v12 = vld [vmem:[%s15230_s2 + $0xb8] sm:$0xff]  ;;  %v441_v13 = vld [vmem:[%s15230_s2 + $0xb0] sm:$0xff]  ;;  %v444_v14 = vld [vmem:[%s15230_s2 + $0xc8] sm:$0xff] }
  0x29   : > { %9623 = vmatmul.mubr.msk.f32.gmra.mrb[10].mxu0 %vm15480_vm0, %v11858_v36  ;;  %v443_v15 = vld [vmem:[%s15230_s2 + $0xc0] sm:$0xff]  ;;  %v446_v16 = vld [vmem:[%s15230_s2 + $0xd8] sm:$0xff]  ;;  %v445_v17 = vld [vmem:[%s15230_s2 + $0xd0] sm:$0xff] }
  0x2a   : > { %9625 = vmatprep.mubr.msk.f32.mxu0 %vm15480_vm0, %v11861_v37  ;;  %v448_v21 = vld [vmem:[%s15230_s2 + $0xe8] sm:$0xff]  ;;  %v447_v22 = vld [vmem:[%s15230_s2 + $0xe0] sm:$0xff]  ;;  %v12225_v33 = vld [vmem:[%s11758_s21 + $0xd7] sm:$0xff] }
  0x2b   : > { %560 = vperm.xlu1 %11639, %v402_v25   ;;  %555 = vperm.xlu0 %11638, %v401_v26   ;;  %v450_v25 = vld [vmem:[%s15230_s2 + $0xf8] sm:$0xff]  ;;  %v449_v26 = vld [vmem:[%s15230_s2 + $0xf0] sm:$0xff]  ;;  %15581 = vst [vmem:[#allocation45_spill] sm:$0xff] %v12225_v33  ;;  %v12241_v24 = vld [vmem:[%s11758_s21 + $0xe7] sm:$0xff] }
  0x2c   : > { %15585 = vst [vmem:[#allocation49_spill] sm:$0xff] %v12241_v24  ;;  %v12257_v18 = vld [vmem:[%s11758_s21 + $0xf7] sm:$0xff] }
  0x2d   : > { %9626 = vmatmul.mubr.msk.f32.gmra.mrb[12].mxu0 %vm15480_vm0, %v11874_v40  ;;  %15589 = vst [vmem:[#allocation53_spill] sm:$0xff] %v12257_v18 }
  0x2e   : > { %9628 = vmatprep.mubr.msk.f32.mxu0 %vm15480_vm0, %v11877_v41  ;;  %v12209_v41 = vld [vmem:[%s11758_s21 + $0xc7] sm:$0xff] }
  0x2f   : > { %570 = vperm.xlu1 %11639, %v404_v30   ;;  %565 = vperm.xlu0 %11638, %v403_v31   ;;  %v451_v30 = vld [vmem:[%s11758_s21 + $0x7] sm:$0xff] }
  0x31   : > { %9629 = vmatmul.mubr.msk.f32.gmra.mrb[14].mxu0 %vm15480_vm0, %v11890_v44 }
  0x33   : > { %580 = vperm.xlu1 %11639, %v406_v34   ;;  %575 = vperm.xlu0 %11638, %v405_v35  }
  0x37   : > { %590 = vperm.xlu1 %11639, %v408_v38   ;;  %585 = vperm.xlu0 %11638, %v407_v39   ;;  %v452_v38 = vld [vmem:[%s11758_s21 + $0xf] sm:$0xff]  ;;  %v12023_v39 = vld [vmem:[%s11758_s21 + $0x17] sm:$0xff] }
  0x3b   : > { %600 = vperm.xlu1 %11639, %v410_v42   ;;  %595 = vperm.xlu0 %11638, %v409_v43  }
  0x3f   : > { %610 = vperm.xlu1 %11639, %v412_v45   ;;  %605 = vperm.xlu0 %11638, %v411_v46  }
  0x43   : > { %620 = vperm.xlu1 %11639, %v414_v47   ;;  %615 = vperm.xlu0 %11638, %v413_v48   ;;  %v12033_v47 = vld [vmem:[%s11758_s21 + $0x1f] sm:$0xff] }
  0x44   : > { %v12038_v48 = vld [vmem:[%s15231_s3 + $0x18] sm:$0xff] }
  0x47   : > { %630 = vperm.xlu1 %11639, %v416_v49   ;;  %625 = vperm.xlu0 %11638, %v415_v50  }
  0x4b   : > { %640 = vperm.xlu1 %11639, %v418_v51   ;;  %635 = vperm.xlu0 %11638, %v417_v52   ;;  %v12048_v51 = vld [vmem:[%s11758_s21 + $0x27] sm:$0xff] }
  0x4f   : > { %1392 = vperm.xlu1 %11639, %v420_v53   ;;  %1387 = vperm.xlu0 %11638, %v419_v54  }
  0x53   : > { %1402 = vperm.xlu1 %11639, %v422_v55   ;;  %1397 = vperm.xlu0 %11638, %v421_v56   ;;  %v12065_v56 = vld [vmem:[%s11758_s21 + $0x37] sm:$0xff] }
  0x57   : > { %1412 = vperm.xlu1 %11639, %v424_v57   ;;  %1407 = vperm.xlu0 %11638, %v423_v58  }
  0x5b   : > { %1422 = vperm.xlu1 %11639, %v426_v59   ;;  %1417 = vperm.xlu0 %11638, %v425_v60  }
  0x5f   : > { %1432 = vperm.xlu1 %11639, %v428_v61   ;;  %1427 = vperm.xlu0 %11638, %v427_v62   ;;  %v12078_v61 = vld [vmem:[%s11758_s21 + $0x3f] sm:$0xff]  ;;  %v12081_v62 = vld [vmem:[%s11758_s21 + $0x47] sm:$0xff] }
  0x63   : > { %1442 = vperm.xlu1 %11639, %v430_v63   ;;  %1437 = vperm.xlu0 %11638, %v429_v0  }
  0x67   : > { %1452 = vperm.xlu1 %11639, %v432_v1   ;;  %1447 = vperm.xlu0 %11638, %v431_v2  }
  0x6b   : > { %1462 = vperm.xlu1 %11639, %v434_v4   ;;  %1457 = vperm.xlu0 %11638, %v433_v5   ;;  %v12094_v4 = vld [vmem:[%s11758_s21 + $0x4f] sm:$0xff]  ;;  %v12097_v5 = vld [vmem:[%s11758_s21 + $0x57] sm:$0xff] }
  0x6f   : > { %1472 = vperm.xlu1 %11639, %v436_v6   ;;  %1467 = vperm.xlu0 %11638, %v435_v7  }
  0x73   : > { %1482 = vperm.xlu1 %11639, %v438_v8   ;;  %1477 = vperm.xlu0 %11638, %v437_v9  }
  0x77   : > { %1492 = vperm.xlu1 %11639, %v440_v10   ;;  %1487 = vperm.xlu0 %11638, %v439_v11   ;;  %v12110_v10 = vld [vmem:[%s11758_s21 + $0x5f] sm:$0xff]  ;;  %v12113_v11 = vld [vmem:[%s11758_s21 + $0x67] sm:$0xff] }
  0x7b   : > { %1502 = vperm.xlu1 %11639, %v442_v12   ;;  %1497 = vperm.xlu0 %11638, %v441_v13  }
  0x7f   : > { %1512 = vperm.xlu1 %11639, %v444_v14   ;;  %1507 = vperm.xlu0 %11638, %v443_v15  }
  0x83   : > { %1522 = vperm.xlu1 %11639, %v446_v16   ;;  %1517 = vperm.xlu0 %11638, %v445_v17   ;;  %v12126_v16 = vld [vmem:[%s11758_s21 + $0x6f] sm:$0xff]  ;;  %v12129_v17 = vld [vmem:[%s11758_s21 + $0x77] sm:$0xff] }
  0x87   : > { %1532 = vperm.xlu1 %11639, %v448_v21   ;;  %1527 = vperm.xlu0 %11638, %v447_v22  }
  0x8b   : > { %1542 = vperm.xlu1 %11639, %v450_v25   ;;  %1537 = vperm.xlu0 %11638, %v449_v26  }
  0x8e   : > { %v12015_v31 = vpop.permute.xlu1 %495  ;;  %v12017_v34 = vpop.permute.xlu0 %485 }
  0x8f   : > { %15553 = vst [vmem:[#allocation17_spill] sm:$0xff] %v12015_v31  ;;  %15554 = vst [vmem:[#allocation18_spill] sm:$0xff] %v12017_v34  ;;  %v643_v35 = vmul.f32 %v12017_v34, %v451_v30  ;;  %v645_v45 = vmul.f32 %v12015_v31, %v12023_v39  ;;  %v12142_v30 = vld [vmem:[%s11758_s21 + $0x7f] sm:$0xff] }
  0x91   : > { %9657 = vmatprep.mubr.msk.f32.mxu0 %vm15480_vm0, %v643_v35  ;;  %v12145_v35 = vld [vmem:[%s11758_s21 + $0x87] sm:$0xff] }
  0x92   : > { %v12025_v42 = vpop.permute.xlu1 %500  ;;  %v12027_v43 = vpop.permute.xlu0 %490 }
  0x93   : > { %15555 = vst [vmem:[#allocation19_spill] sm:$0xff] %v12025_v42  ;;  %15556 = vst [vmem:[#allocation20_spill] sm:$0xff] %v12027_v43  ;;  %v644_v46 = vmul.f32 %v12027_v43, %v452_v38  ;;  %v646_v52 = vmul.f32 %v12033_v47, %v12025_v42 }
  0x95   : > { %9658 = vmatmul.mubr.msk.f32.vlgmr.msra.gmra.mrb[0].mxu0 %vm15480_vm0, %v644_v46 }
  0x96   : > { %9706 = vmatpush3.msra.mxu0 %v11825_v28  ;;  %v12042_v49 = vpop.permute.xlu1 %510  ;;  %v12044_v50 = vpop.permute.xlu0 %505  ;;  %9660 = vmatprep.mubr.msk.f32.mxu0 %vm15480_vm0, %v645_v45  ;;  %v12057_v28 = vld [vmem:[%s11758_s21 + $0x2f] sm:$0xff] }
  0x97   : > { %15557 = vst [vmem:[#allocation21_spill] sm:$0xff] %v12042_v49  ;;  %15558 = vst [vmem:[#allocation22_spill] sm:$0xff] %v12044_v50  ;;  %v647_v53 = vmul.f32 %v12044_v50, %v12048_v51  ;;  %9755 = vmatprep.subr.mxu0 %v12038_v48  ;;  %v648_v57 = vmul.f32 %v12057_v28, %v12042_v49 }
  0x99   : > { %9661 = vmatmul.mubr.msk.f32.gmra.mrb[2].mxu0 %vm15480_vm0, %v646_v52 }
  0x9a   : > { %v12059_v54 = vpop.permute.xlu1 %520  ;;  %v12061_v55 = vpop.permute.xlu0 %515  ;;  %9663 = vmatprep.mubr.msk.f32.mxu0 %vm15480_vm0, %v647_v53  ;;  %v12158_v53 = vld [vmem:[%s11758_s21 + $0x8f] sm:$0xff] }
  0x9b   : > { %15559 = vst [vmem:[#allocation23_spill] sm:$0xff] %v12059_v54  ;;  %15560 = vst [vmem:[#allocation24_spill] sm:$0xff] %v12061_v55  ;;  %v649_v58 = vmul.f32 %v12061_v55, %v12065_v56  ;;  %v650_v63 = vmul.f32 %v12059_v54, %v12078_v61 }
  0x9d   : > { %9664 = vmatmul.mubr.msk.f32.gmra.mrb[4].mxu0 %vm15480_vm0, %v648_v57  ;;  %v12161_v57 = vld [vmem:[%s11758_s21 + $0x97] sm:$0xff] }
  0x9e   : > { %v12072_v59 = vpop.permute.xlu1 %530  ;;  %v12074_v60 = vpop.permute.xlu0 %525  ;;  %9666 = vmatprep.mubr.msk.f32.mxu0 %vm15480_vm0, %v649_v58 }
  0x9f   : > { %15561 = vst [vmem:[#allocation25_spill] sm:$0xff] %v12072_v59  ;;  %15562 = vst [vmem:[#allocation26_spill] sm:$0xff] %v12074_v60  ;;  %v651_v0 = vmul.f32 %v12074_v60, %v12081_v62  ;;  %v652_v6 = vmul.f32 %v12072_v59, %v12094_v4 }
  0xa1   : > { %9667 = vmatmul.mubr.msk.f32.gmra.mrb[6].mxu0 %vm15480_vm0, %v650_v63 }
  0xa2   : > { %v12088_v1 = vpop.permute.xlu1 %540  ;;  %v12090_v2 = vpop.permute.xlu0 %535  ;;  %9669 = vmatprep.mubr.msk.f32.mxu0 %vm15480_vm0, %v651_v0 }
  0xa3   : > { %15563 = vst [vmem:[#allocation27_spill] sm:$0xff] %v12088_v1  ;;  %15564 = vst [vmem:[#allocation28_spill] sm:$0xff] %v12090_v2  ;;  %v653_v7 = vmul.f32 %v12090_v2, %v12097_v5  ;;  %v654_v12 = vmul.f32 %v12088_v1, %v12110_v10 }
  0xa5   : > { %9670 = vmatmul.mubr.msk.f32.gmra.mrb[8].mxu0 %vm15480_vm0, %v652_v6 }
  0xa6   : > { %v12104_v8 = vpop.permute.xlu1 %550  ;;  %v12106_v9 = vpop.permute.xlu0 %545  ;;  %9672 = vmatprep.mubr.msk.f32.mxu0 %vm15480_vm0, %v653_v7  ;;  %v12174_v7 = vld [vmem:[%s11758_s21 + $0x9f] sm:$0xff] }
  0xa7   : > { %15565 = vst [vmem:[#allocation29_spill] sm:$0xff] %v12104_v8  ;;  %15566 = vst [vmem:[#allocation30_spill] sm:$0xff] %v12106_v9  ;;  %v655_v13 = vmul.f32 %v12106_v9, %v12113_v11  ;;  %v656_v21 = vmul.f32 %v12104_v8, %v12126_v16 }
  0xa9   : > { %9673 = vmatmul.mubr.msk.f32.gmra.mrb[10].mxu0 %vm15480_vm0, %v654_v12  ;;  %v12177_v12 = vld [vmem:[%s11758_s21 + $0xa7] sm:$0xff] }
  0xaa   : > { %v12120_v14 = vpop.permute.xlu1 %560  ;;  %v12122_v15 = vpop.permute.xlu0 %555  ;;  %9675 = vmatprep.mubr.msk.f32.mxu0 %vm15480_vm0, %v655_v13 }
  0xab   : > { %15567 = vst [vmem:[#allocation31_spill] sm:$0xff] %v12120_v14  ;;  %15568 = vst [vmem:[#allocation32_spill] sm:$0xff] %v12122_v15  ;;  %v657_v22 = vmul.f32 %v12122_v15, %v12129_v17  ;;  %v658_v38 = vmul.f32 %v12120_v14, %v12142_v30 }
  0xad   : > { %9676 = vmatmul.mubr.msk.f32.gmra.mrb[12].mxu0 %vm15480_vm0, %v656_v21 }
  0xae   : > { %v12136_v25 = vpop.permute.xlu1 %570  ;;  %v12138_v26 = vpop.permute.xlu0 %565  ;;  %9678 = vmatprep.mubr.msk.f32.mxu0 %vm15480_vm0, %v657_v22 }
  0xaf   : > { %15569 = vst [vmem:[#allocation33_spill] sm:$0xff] %v12136_v25  ;;  %15570 = vst [vmem:[#allocation34_spill] sm:$0xff] %v12138_v26  ;;  %v659_v45 = vmul.f32 %v12138_v26, %v12145_v35  ;;  %v660_v58 = vmul.f32 %v12136_v25, %v12158_v53 }
  0xb1   : > { %9679 = vmatmul.mubr.msk.f32.gmra.mrb[14].mxu0 %vm15480_vm0, %v658_v38 }
  0xb2   : > { %v12152_v46 = vpop.permute.xlu1 %580  ;;  %v12154_v52 = vpop.permute.xlu0 %575  ;;  %9681 = vmatprep.mubr.msk.f32.mxu0 %vm15480_vm0, %v659_v45  ;;  %v12190_v45 = vld [vmem:[%s11758_s21 + $0xaf] sm:$0xff] }
  0xb3   : > { %15571 = vst [vmem:[#allocation35_spill] sm:$0xff] %v12152_v46  ;;  %15572 = vst [vmem:[#allocation36_spill] sm:$0xff] %v12154_v52  ;;  %v661_v63 = vmul.f32 %v12154_v52, %v12161_v57  ;;  %v662_v13 = vmul.f32 %v12152_v46, %v12174_v7 }
  0xb5   : > { %9682 = vmatmul.mubr.msk.f32.gmra.mrb[16].mxu0 %vm15480_vm0, %v660_v58  ;;  %v12193_v58 = vld [vmem:[%s11758_s21 + $0xb7] sm:$0xff] }
  0xb6   : > { %v12168_v0 = vpop.permute.xlu1 %590  ;;  %v12170_v6 = vpop.permute.xlu0 %585  ;;  %9684 = vmatprep.mubr.msk.f32.mxu0 %vm15480_vm0, %v661_v63 }
  0xb7   : > { %15573 = vst [vmem:[#allocation37_spill] sm:$0xff] %v12168_v0  ;;  %15574 = vst [vmem:[#allocation38_spill] sm:$0xff] %v12170_v6  ;;  %v663_v21 = vmul.f32 %v12170_v6, %v12177_v12  ;;  %v664_v63 = vmul.f32 %v12168_v0, %v12190_v45 }
  0xb9   : > { %9685 = vmatmul.mubr.msk.f32.gmra.mrb[18].mxu0 %vm15480_vm0, %v662_v13 }
  0xba   : > { %v12184_v22 = vpop.permute.xlu1 %600  ;;  %v12186_v38 = vpop.permute.xlu0 %595  ;;  %9687 = vmatprep.mubr.msk.f32.mxu0 %vm15480_vm0, %v663_v21  ;;  %v12206_v21 = vld [vmem:[%s11758_s21 + $0xbf] sm:$0xff] }
  0xbb   : > { %15575 = vst [vmem:[#allocation39_spill] sm:$0xff] %v12184_v22  ;;  %15576 = vst [vmem:[#allocation40_spill] sm:$0xff] %v12186_v38  ;;  %v665_v3 = vmul.f32 %v12186_v38, %v12193_v58  ;;  %v666_v40 = vmul.f32 %v12184_v22, %v12206_v21 }
  0xbd   : > { %9688 = vmatmul.mubr.msk.f32.gmra.mrb[20].mxu0 %vm15480_vm0, %v664_v63 }
  0xbe   : > { %v12200_v13 = vpop.permute.xlu1 %610  ;;  %v12202_v44 = vpop.permute.xlu0 %605  ;;  %9690 = vmatprep.mubr.msk.f32.mxu0 %vm15480_vm0, %v665_v3  ;;  %v12222_v3 = vld [vmem:[%s11758_s21 + $0xcf] sm:$0xff] }
  0xbf   : > { %15577 = vst [vmem:[#allocation41_spill] sm:$0xff] %v12200_v13  ;;  %15578 = vst [vmem:[#allocation42_spill] sm:$0xff] %v12202_v44  ;;  %v667_v37 = vmul.f32 %v12202_v44, %v12209_v41  ;;  %v668_v32 = vmul.f32 %v12200_v13, %v12222_v3 }
  0xc1   : > { %9691 = vmatmul.mubr.msk.f32.gmra.mrb[22].mxu0 %vm15480_vm0, %v666_v40 }
  0xc2   : > { %v12216_v63 = vpop.permute.xlu1 %620  ;;  %v12218_v36 = vpop.permute.xlu0 %615  ;;  %9693 = vmatprep.mubr.msk.f32.mxu0 %vm15480_vm0, %v667_v37  ;;  %v12238_v37 = vld [vmem:[%s11758_s21 + $0xdf] sm:$0xff] }
  0xc3   : > { %15579 = vst [vmem:[#allocation43_spill] sm:$0xff] %v12216_v63  ;;  %15580 = vst [vmem:[#allocation44_spill] sm:$0xff] %v12218_v36  ;;  %v669_v29 = vmul.f32 %v12218_v36, %v12225_v33  ;;  %v670_v23 = vmul.f32 %v12216_v63, %v12238_v37  ;;  %v1353_v36 = vld [vmem:[%s11758_s21 + $0x9] sm:$0xff] }
  0xc4   : > { %15584 = vst [vmem:[#allocation48_spill] sm:$0xff] %v12238_v37 }
  0xc5   : > { %9694 = vmatmul.mubr.msk.f32.gmra.mrb[24].mxu0 %vm15480_vm0, %v668_v32 }
  0xc6   : > { %v12232_v40 = vpop.permute.xlu1 %630  ;;  %v12234_v27 = vpop.permute.xlu0 %625  ;;  %9696 = vmatprep.mubr.msk.f32.mxu0 %vm15480_vm0, %v669_v29  ;;  %v12254_v29 = vld [vmem:[%s11758_s21 + $0xef] sm:$0xff] }
  0xc7   : > { %15582 = vst [vmem:[#allocation46_spill] sm:$0xff] %v12232_v40  ;;  %15583 = vst [vmem:[#allocation47_spill] sm:$0xff] %v12234_v27  ;;  %v671_v20 = vmul.f32 %v12234_v27, %v12241_v24  ;;  %v672_v63 = vmul.f32 %v12232_v40, %v12254_v29 }
  0xc8   : > { %15588 = vst [vmem:[#allocation52_spill] sm:$0xff] %v12254_v29  ;;  %v1354_v29 = vld [vmem:[%s11758_s21 + $0x11] sm:$0xff] }
  0xc9   : > { %9697 = vmatmul.mubr.msk.f32.gmra.mrb[26].mxu0 %vm15480_vm0, %v670_v23 }
  0xca   : > { %v12248_v32 = vpop.permute.xlu1 %640  ;;  %v12250_v19 = vpop.permute.xlu0 %635  ;;  %9699 = vmatprep.mubr.msk.f32.mxu0 %vm15480_vm0, %v671_v20  ;;  %v12271_v20 = vld [vmem:[%s11758_s21 + $0xff] sm:$0xff] }
  0xcb   : > { %15586 = vst [vmem:[#allocation50_spill] sm:$0xff] %v12248_v32  ;;  %15587 = vst [vmem:[#allocation51_spill] sm:$0xff] %v12250_v19  ;;  %v673_v27 = vmul.f32 %v12250_v19, %v12257_v18  ;;  %v674_v13 = vmul.f32 %v12248_v32, %v12271_v20  ;;  %v12284_v18 = vld [vmem:[%s11758_s21 + $0x19] sm:$0xff] }
  0xcc   : > { %15592 = vst [vmem:[#allocation56_spill] sm:$0xff] %v12271_v20  ;;  %15595 = vst [vmem:[#allocation59_spill] sm:$0xff] %v12284_v18  ;;  %v12405_v20 = vld [vmem:[%s11758_s21 + $0x89] sm:$0xff] }
  0xcd   : > { %9700 = vmatmul.mubr.msk.f32.gmra.mrb[28].mxu0 %vm15480_vm0, %v672_v63  ;;  %15624 = vst [vmem:[#allocation88_spill] sm:$0xff] %v12405_v20 }
  0xce   : > { %v12265_v23 = vpop.permute.xlu1 %1392  ;;  %v12267_v24 = vpop.permute.xlu0 %1387  ;;  %9702 = vmatprep.mubr.msk.f32.mxu0 %vm15480_vm0, %v673_v27 }
  0xcf   : > { %15590 = vst [vmem:[#allocation54_spill] sm:$0xff] %v12265_v23  ;;  %15591 = vst [vmem:[#allocation55_spill] sm:$0xff] %v12267_v24  ;;  %v1545_v40 = vmul.f32 %v12267_v24, %v1353_v36  ;;  %v1546_v27 = vmul.f32 %v12265_v23, %v1354_v29  ;;  %v12292_v36 = vld [vmem:[%s15231_s3 + $0x20] sm:$0xff]  ;;  %v12305_v29 = vld [vmem:[%s11758_s21 + $0x29] sm:$0xff] }
  0xd0   : > { %15599 = vst [vmem:[#allocation63_spill] sm:$0xff] %v12305_v29 }
  0xd1   : > { %9703 = vmatmul.mubr.msk.f32.gmra.mrb[30].mxu0 %vm15480_vm0, %v674_v13  ;;  %v12296_v13 = vld [vmem:[%s11758_s21 + $0x21] sm:$0xff] }
  0xd2   : > { %v12278_v19 = vpop.permute.xlu1 %1402  ;;  %v12280_v63 = vpop.permute.xlu0 %1397  ;;  %9707 = vmatprep.mubr.msk.f32.mxu0 %vm15480_vm0, %v1545_v40  ;;  %15596 = vst [vmem:[#allocation60_spill] sm:$0xff] %v12296_v13 }
  0xd3   : > { %15593 = vst [vmem:[#allocation57_spill] sm:$0xff] %v12278_v19  ;;  %15594 = vst [vmem:[#allocation58_spill] sm:$0xff] %v12280_v63  ;;  %v1547_v32 = vmul.f32 %v12280_v63, %v12284_v18  ;;  %v1548_v63 = vmul.f32 %v12296_v13, %v12278_v19  ;;  %v12335_v13 = vld [vmem:[%s11758_s21 + $0x41] sm:$0xff] }
  0xd4   : > { %15606 = vst [vmem:[#allocation70_spill] sm:$0xff] %v12335_v13 }
  0xd5   : > { %9708 = vmatmul.mubr.msk.f32.vlgmr.msra.gmra.mrb[0].mxu0 %vm15480_vm0, %v1546_v27 }
  0xd6   : > { %9756 = vmatpush3.msra.mxu0 %v12038_v48  ;;  %v12299_v40 = vpop.permute.xlu1 %1412  ;;  %v12301_v24 = vpop.permute.xlu0 %1407  ;;  %9710 = vmatprep.mubr.msk.f32.mxu0 %vm15480_vm0, %v1547_v32  ;;  %v12314_v48 = vld [vmem:[%s11758_s21 + $0x31] sm:$0xff]  ;;  %v12322_v32 = vld [vmem:[%s11758_s21 + $0x39] sm:$0xff] }
  0xd7   : > { %15597 = vst [vmem:[#allocation61_spill] sm:$0xff] %v12299_v40  ;;  %15598 = vst [vmem:[#allocation62_spill] sm:$0xff] %v12301_v24  ;;  %v1549_v27 = vmul.f32 %v12301_v24, %v12305_v29  ;;  %9805 = vmatprep.subr.mxu0 %v12292_v36  ;;  %v1550_v19 = vmul.f32 %v12314_v48, %v12299_v40 }
  0xd8   : > { %15600 = vst [vmem:[#allocation64_spill] sm:$0xff] %v12314_v48  ;;  %15603 = vst [vmem:[#allocation67_spill] sm:$0xff] %v12322_v32  ;;  %v12354_v48 = vld [vmem:[%s11758_s21 + $0x59] sm:$0xff] }
  0xd9   : > { %9711 = vmatmul.mubr.msk.f32.gmra.mrb[2].mxu0 %vm15480_vm0, %v1548_v63  ;;  %15611 = vst [vmem:[#allocation75_spill] sm:$0xff] %v12354_v48 }
  0xda   : > { %v12316_v23 = vpop.permute.xlu1 %1422  ;;  %v12318_v18 = vpop.permute.xlu0 %1417  ;;  %9713 = vmatprep.mubr.msk.f32.mxu0 %vm15480_vm0, %v1549_v27  ;;  %v12338_v27 = vld [vmem:[%s11758_s21 + $0x49] sm:$0xff] }
  0xdb   : > { %15601 = vst [vmem:[#allocation65_spill] sm:$0xff] %v12316_v23  ;;  %15602 = vst [vmem:[#allocation66_spill] sm:$0xff] %v12318_v18  ;;  %v1551_v24 = vmul.f32 %v12318_v18, %v12322_v32  ;;  %v1552_v40 = vmul.f32 %v12316_v23, %v12335_v13  ;;  %v12370_v13 = vld [vmem:[%s11758_s21 + $0x69] sm:$0xff] }
  0xdc   : > { %15607 = vst [vmem:[#allocation71_spill] sm:$0xff] %v12338_v27  ;;  %15615 = vst [vmem:[#allocation79_spill] sm:$0xff] %v12370_v13 }
  0xdd   : > { %9714 = vmatmul.mubr.msk.f32.gmra.mrb[4].mxu0 %vm15480_vm0, %v1550_v19 }
  0xde   : > { %v12329_v63 = vpop.permute.xlu1 %1432  ;;  %v12331_v29 = vpop.permute.xlu0 %1427  ;;  %9716 = vmatprep.mubr.msk.f32.mxu0 %vm15480_vm0, %v1551_v24  ;;  %v12351_v24 = vld [vmem:[%s11758_s21 + $0x51] sm:$0xff] }
  0xdf   : > { %15604 = vst [vmem:[#allocation68_spill] sm:$0xff] %v12329_v63  ;;  %15605 = vst [vmem:[#allocation69_spill] sm:$0xff] %v12331_v29  ;;  %v1553_v18 = vmul.f32 %v12331_v29, %v12338_v27  ;;  %v1554_v23 = vmul.f32 %v12329_v63, %v12351_v24 }
  0xe0   : > { %15610 = vst [vmem:[#allocation74_spill] sm:$0xff] %v12351_v24  ;;  %v12386_v24 = vld [vmem:[%s11758_s21 + $0x79] sm:$0xff] }
  0xe1   : > { %9717 = vmatmul.mubr.msk.f32.gmra.mrb[6].mxu0 %vm15480_vm0, %v1552_v40  ;;  %15619 = vst [vmem:[#allocation83_spill] sm:$0xff] %v12386_v24 }
  0xe2   : > { %v12345_v19 = vpop.permute.xlu1 %1442  ;;  %v12347_v32 = vpop.permute.xlu0 %1437  ;;  %9719 = vmatprep.mubr.msk.f32.mxu0 %vm15480_vm0, %v1553_v18  ;;  %v12367_v18 = vld [vmem:[%s11758_s21 + $0x61] sm:$0xff] }
  0xe3   : > { %15608 = vst [vmem:[#allocation72_spill] sm:$0xff] %v12345_v19  ;;  %15609 = vst [vmem:[#allocation73_spill] sm:$0xff] %v12347_v32  ;;  %v1555_v29 = vmul.f32 %v12347_v32, %v12354_v48  ;;  %v1556_v63 = vmul.f32 %v12345_v19, %v12367_v18 }
  0xe4   : > { %15614 = vst [vmem:[#allocation78_spill] sm:$0xff] %v12367_v18  ;;  %v12402_v18 = vld [vmem:[%s11758_s21 + $0x81] sm:$0xff] }
  0xe5   : > { %9720 = vmatmul.mubr.msk.f32.gmra.mrb[8].mxu0 %vm15480_vm0, %v1554_v23  ;;  %15623 = vst [vmem:[#allocation87_spill] sm:$0xff] %v12402_v18 }
  0xe6   : > { %v12361_v40 = vpop.permute.xlu1 %1452  ;;  %v12363_v27 = vpop.permute.xlu0 %1447  ;;  %9722 = vmatprep.mubr.msk.f32.mxu0 %vm15480_vm0, %v1555_v29  ;;  %v12383_v29 = vld [vmem:[%s11758_s21 + $0x71] sm:$0xff] }
  0xe7   : > { %15612 = vst [vmem:[#allocation76_spill] sm:$0xff] %v12361_v40  ;;  %15613 = vst [vmem:[#allocation77_spill] sm:$0xff] %v12363_v27  ;;  %v1557_v32 = vmul.f32 %v12363_v27, %v12370_v13  ;;  %v1558_v19 = vmul.f32 %v12361_v40, %v12383_v29  ;;  %v12408_v40 = vld [vmem:[%s11758_s21 + $0x90] sm:$0xff] }
  0xe8   : > { %15618 = vst [vmem:[#allocation82_spill] sm:$0xff] %v12383_v29  ;;  %15625 = vst [vmem:[#allocation89_spill] sm:$0xff] %v12408_v40 }
  0xe9   : > { %9723 = vmatmul.mubr.msk.f32.gmra.mrb[10].mxu0 %vm15480_vm0, %v1556_v63  ;;  %v12394_v63 = vld [vmem:[%s11758_s21 + $0x88] sm:$0xff] }
  0xea   : > { %v12377_v23 = vpop.permute.xlu1 %1462  ;;  %v12379_v48 = vpop.permute.xlu0 %1457  ;;  %9725 = vmatprep.mubr.msk.f32.mxu0 %vm15480_vm0, %v1557_v32  ;;  %15620 = vst [vmem:[#allocation84_spill] sm:$0xff] %v12394_v63  ;;  %9631 = vmatprep.mubr.msk.f32.mxu1 %vm15480_vm0, %v12394_v63 }
  0xeb   : > { %15616 = vst [vmem:[#allocation80_spill] sm:$0xff] %v12377_v23  ;;  %15617 = vst [vmem:[#allocation81_spill] sm:$0xff] %v12379_v48  ;;  %v1559_v27 = vmul.f32 %v12379_v48, %v12386_v24  ;;  %9632 = vmatmul.mubr.msk.f32.vlgmr.msra.gmra.mrb[0].mxu1 %vm15480_vm0, %v12408_v40 }
  0xed   : > { %9726 = vmatmul.mubr.msk.f32.gmra.mrb[12].mxu0 %vm15480_vm0, %v1558_v19  ;;  %v1560_v19 = vmul.f32 %v12377_v23, %v12402_v18  ;;  %v12428_v23 = vld [vmem:[%s11758_s21 + $0x91] sm:$0xff]  ;;  %v12431_v18 = vld [vmem:[%s11758_s21 + $0x99] sm:$0xff] }
  0xee   : > { %v12396_v13 = vpop.permute.xlu1 %1472  ;;  %v12398_v32 = vpop.permute.xlu0 %1467  ;;  %9728 = vmatprep.mubr.msk.f32.mxu0 %vm15480_vm0, %v1559_v27  ;;  %v12420_v27 = vld [vmem:[%s11758_s21 + $0x98] sm:$0xff]  ;;  %15629 = vst [vmem:[#allocation93_spill] sm:$0xff] %v12428_v23  ;;  %15630 = vst [vmem:[#allocation94_spill] sm:$0xff] %v12431_v18 }
  0xef   : > { %15621 = vst [vmem:[#allocation85_spill] sm:$0xff] %v12396_v13  ;;  %15622 = vst [vmem:[#allocation86_spill] sm:$0xff] %v12398_v32  ;;  %v1561_v48 = vmul.f32 %v12398_v32, %v12405_v20  ;;  %v12434_v32 = vld [vmem:[%s11758_s21 + $0xa0] sm:$0xff]  ;;  %9634 = vmatprep.mubr.msk.f32.mxu1 %vm15480_vm0, %v12420_v27 }
  0xf0   : > { %15626 = vst [vmem:[#allocation90_spill] sm:$0xff] %v12420_v27  ;;  %15631 = vst [vmem:[#allocation95_spill] sm:$0xff] %v12434_v32  ;;  %9635 = vmatmul.mubr.msk.f32.gmra.mrb[2].mxu1 %vm15480_vm0, %v12434_v32 }
  0xf1   : > { %9729 = vmatmul.mubr.msk.f32.gmra.mrb[14].mxu0 %vm15480_vm0, %v1560_v19  ;;  %v1562_v19 = vmul.f32 %v12396_v13, %v12428_v23  ;;  %v12454_v13 = vld [vmem:[%s11758_s21 + $0xa1] sm:$0xff]  ;;  %v12457_v23 = vld [vmem:[%s11758_s21 + $0xa9] sm:$0xff] }
  0xf2   : > { %v12422_v24 = vpop.permute.xlu1 %1482  ;;  %v12424_v29 = vpop.permute.xlu0 %1477  ;;  %9731 = vmatprep.mubr.msk.f32.mxu0 %vm15480_vm0, %v1561_v48  ;;  %v12446_v48 = vld [vmem:[%s11758_s21 + $0xa8] sm:$0xff]  ;;  %15635 = vst [vmem:[#allocation99_spill] sm:$0xff] %v12454_v13  ;;  %15636 = vst [vmem:[#allocation100_spill] sm:$0xff] %v12457_v23 }
  0xf3   : > { %15627 = vst [vmem:[#allocation91_spill] sm:$0xff] %v12422_v24  ;;  %15628 = vst [vmem:[#allocation92_spill] sm:$0xff] %v12424_v29  ;;  %v1563_v20 = vmul.f32 %v12424_v29, %v12431_v18  ;;  %v12460_v29 = vld [vmem:[%s11758_s21 + $0xb0] sm:$0xff]  ;;  %9637 = vmatprep.mubr.msk.f32.mxu1 %vm15480_vm0, %v12446_v48 }
  0xf4   : > { %15632 = vst [vmem:[#allocation96_spill] sm:$0xff] %v12446_v48  ;;  %15637 = vst [vmem:[#allocation101_spill] sm:$0xff] %v12460_v29  ;;  %9638 = vmatmul.mubr.msk.f32.gmra.mrb[4].mxu1 %vm15480_vm0, %v12460_v29 }
  0xf5   : > { %9732 = vmatmul.mubr.msk.f32.gmra.mrb[16].mxu0 %vm15480_vm0, %v1562_v19  ;;  %v1564_v19 = vmul.f32 %v12422_v24, %v12454_v13  ;;  %v12480_v24 = vld [vmem:[%s11758_s21 + $0xb1] sm:$0xff]  ;;  %v12483_v13 = vld [vmem:[%s11758_s21 + $0xb9] sm:$0xff] }
  0xf6   : > { %v12448_v40 = vpop.permute.xlu1 %1492  ;;  %v12450_v63 = vpop.permute.xlu0 %1487  ;;  %9734 = vmatprep.mubr.msk.f32.mxu0 %vm15480_vm0, %v1563_v20  ;;  %v12472_v20 = vld [vmem:[%s11758_s21 + $0xb8] sm:$0xff]  ;;  %15641 = vst [vmem:[#allocation105_spill] sm:$0xff] %v12480_v24  ;;  %15642 = vst [vmem:[#allocation106_spill] sm:$0xff] %v12483_v13 }
  0xf7   : > { %15633 = vst [vmem:[#allocation97_spill] sm:$0xff] %v12448_v40  ;;  %15634 = vst [vmem:[#allocation98_spill] sm:$0xff] %v12450_v63  ;;  %v1565_v18 = vmul.f32 %v12450_v63, %v12457_v23  ;;  %v12486_v63 = vld [vmem:[%s11758_s21 + $0xc0] sm:$0xff]  ;;  %9640 = vmatprep.mubr.msk.f32.mxu1 %vm15480_vm0, %v12472_v20 }
  0xf8   : > { %15638 = vst [vmem:[#allocation102_spill] sm:$0xff] %v12472_v20  ;;  %15643 = vst [vmem:[#allocation107_spill] sm:$0xff] %v12486_v63  ;;  %9641 = vmatmul.mubr.msk.f32.gmra.mrb[6].mxu1 %vm15480_vm0, %v12486_v63 }
  0xf9   : > { %9735 = vmatmul.mubr.msk.f32.gmra.mrb[18].mxu0 %vm15480_vm0, %v1564_v19  ;;  %v1566_v19 = vmul.f32 %v12448_v40, %v12480_v24  ;;  %v12506_v40 = vld [vmem:[%s11758_s21 + $0xc1] sm:$0xff]  ;;  %v12509_v24 = vld [vmem:[%s11758_s21 + $0xc9] sm:$0xff] }
  0xfa   : > { %v12474_v32 = vpop.permute.xlu1 %1502  ;;  %v12476_v27 = vpop.permute.xlu0 %1497  ;;  %9737 = vmatprep.mubr.msk.f32.mxu0 %vm15480_vm0, %v1565_v18  ;;  %v12498_v18 = vld [vmem:[%s11758_s21 + $0xc8] sm:$0xff]  ;;  %15647 = vst [vmem:[#allocation111_spill] sm:$0xff] %v12506_v40  ;;  %15648 = vst [vmem:[#allocation112_spill] sm:$0xff] %v12509_v24 }
  0xfb   : > { %15639 = vst [vmem:[#allocation103_spill] sm:$0xff] %v12474_v32  ;;  %15640 = vst [vmem:[#allocation104_spill] sm:$0xff] %v12476_v27  ;;  %v1567_v23 = vmul.f32 %v12476_v27, %v12483_v13  ;;  %v12512_v27 = vld [vmem:[%s11758_s21 + $0xd0] sm:$0xff]  ;;  %9643 = vmatprep.mubr.msk.f32.mxu1 %vm15480_vm0, %v12498_v18 }
  0xfc   : > { %15644 = vst [vmem:[#allocation108_spill] sm:$0xff] %v12498_v18  ;;  %15649 = vst [vmem:[#allocation113_spill] sm:$0xff] %v12512_v27  ;;  %9644 = vmatmul.mubr.msk.f32.gmra.mrb[8].mxu1 %vm15480_vm0, %v12512_v27  ;;  %v12582_v18 = vld [vmem:[%s11758_s21 + $0xf1] sm:$0xff] }
  0xfd   : > { %9738 = vmatmul.mubr.msk.f32.gmra.mrb[20].mxu0 %vm15480_vm0, %v1566_v19  ;;  %v1568_v19 = vmul.f32 %v12474_v32, %v12506_v40  ;;  %v12532_v32 = vld [vmem:[%s11758_s21 + $0xd1] sm:$0xff]  ;;  %v12535_v40 = vld [vmem:[%s11758_s21 + $0xd9] sm:$0xff] }
  0xfe   : > { %v12500_v29 = vpop.permute.xlu1 %1512  ;;  %v12502_v48 = vpop.permute.xlu0 %1507  ;;  %9740 = vmatprep.mubr.msk.f32.mxu0 %vm15480_vm0, %v1567_v23  ;;  %v12524_v23 = vld [vmem:[%s11758_s21 + $0xd8] sm:$0xff]  ;;  %15653 = vst [vmem:[#allocation117_spill] sm:$0xff] %v12532_v32  ;;  %15654 = vst [vmem:[#allocation118_spill] sm:$0xff] %v12535_v40 }
  0xff   : > { %15645 = vst [vmem:[#allocation109_spill] sm:$0xff] %v12500_v29  ;;  %15646 = vst [vmem:[#allocation110_spill] sm:$0xff] %v12502_v48  ;;  %v1569_v13 = vmul.f32 %v12502_v48, %v12509_v24  ;;  %v12538_v48 = vld [vmem:[%s11758_s21 + $0xe0] sm:$0xff]  ;;  %9646 = vmatprep.mubr.msk.f32.mxu1 %vm15480_vm0, %v12524_v23 }
 0x100   : > { %15650 = vst [vmem:[#allocation114_spill] sm:$0xff] %v12524_v23  ;;  %15655 = vst [vmem:[#allocation119_spill] sm:$0xff] %v12538_v48  ;;  %9647 = vmatmul.mubr.msk.f32.gmra.mrb[10].mxu1 %vm15480_vm0, %v12538_v48 }
 0x101   : > { %9741 = vmatmul.mubr.msk.f32.gmra.mrb[22].mxu0 %vm15480_vm0, %v1568_v19  ;;  %v1570_v19 = vmul.f32 %v12500_v29, %v12532_v32  ;;  %v12558_v29 = vld [vmem:[%s11758_s21 + $0xe1] sm:$0xff]  ;;  %v12561_v32 = vld [vmem:[%s11758_s21 + $0xe9] sm:$0xff] }
 0x102   : > { %v12526_v63 = vpop.permute.xlu1 %1522  ;;  %v12528_v20 = vpop.permute.xlu0 %1517  ;;  %9743 = vmatprep.mubr.msk.f32.mxu0 %vm15480_vm0, %v1569_v13  ;;  %v12550_v13 = vld [vmem:[%s11758_s21 + $0xe8] sm:$0xff]  ;;  %15659 = vst [vmem:[#allocation123_spill] sm:$0xff] %v12558_v29  ;;  %15660 = vst [vmem:[#allocation124_spill] sm:$0xff] %v12561_v32 }
 0x103   : > { %15651 = vst [vmem:[#allocation115_spill] sm:$0xff] %v12526_v63  ;;  %15652 = vst [vmem:[#allocation116_spill] sm:$0xff] %v12528_v20  ;;  %v1571_v24 = vmul.f32 %v12528_v20, %v12535_v40  ;;  %v12564_v20 = vld [vmem:[%s11758_s21 + $0xf0] sm:$0xff]  ;;  %9649 = vmatprep.mubr.msk.f32.mxu1 %vm15480_vm0, %v12550_v13 }
 0x104   : > { %15656 = vst [vmem:[#allocation120_spill] sm:$0xff] %v12550_v13  ;;  %15661 = vst [vmem:[#allocation125_spill] sm:$0xff] %v12564_v20  ;;  %9650 = vmatmul.mubr.msk.f32.gmra.mrb[12].mxu1 %vm15480_vm0, %v12564_v20  ;;  %v12585_v13 = vld [vmem:[%s11758_s21 + $0xf9] sm:$0xff] }
 0x105   : > { %9744 = vmatmul.mubr.msk.f32.gmra.mrb[24].mxu0 %vm15480_vm0, %v1570_v19  ;;  %v1572_v19 = vmul.f32 %v12526_v63, %v12558_v29  ;;  %v12588_v63 = vld [vmem:[%s11758_s21 + $0x100] sm:$0xff] }
 0x106   : > { %v12552_v27 = vpop.permute.xlu1 %1532  ;;  %v12554_v23 = vpop.permute.xlu0 %1527  ;;  %9746 = vmatprep.mubr.msk.f32.mxu0 %vm15480_vm0, %v1571_v24  ;;  %v12576_v24 = vld [vmem:[%s11758_s21 + $0xf8] sm:$0xff]  ;;  %15664 = vst [vmem:[#allocation128_spill] sm:$0xff] %v12588_v63  ;;  %v12604_v29 = vld [vmem:[%s11758_s21 + $0x101] sm:$0xff] }
 0x107   : > { %15657 = vst [vmem:[#allocation121_spill] sm:$0xff] %v12552_v27  ;;  %15658 = vst [vmem:[#allocation122_spill] sm:$0xff] %v12554_v23  ;;  %v1573_v40 = vmul.f32 %v12554_v23, %v12561_v32  ;;  %9652 = vmatprep.mubr.msk.f32.mxu1 %vm15480_vm0, %v12576_v24  ;;  %v1574_v23 = vmul.f32 %v12552_v27, %v12582_v18  ;;  %v1964_v27 = vmul.f32 %v12017_v34, %v12023_v39 }
 0x108   : > { %15662 = vst [vmem:[#allocation126_spill] sm:$0xff] %v12576_v24  ;;  %9653 = vmatmul.mubr.msk.f32.gmra.mrb[14].mxu1 %vm15480_vm0, %v12588_v63  ;;  %v1967_v39 = vmul.f32 %v12057_v28, %v12025_v42 }
 0x109   : > { %9747 = vmatmul.mubr.msk.f32.gmra.mrb[26].mxu0 %vm15480_vm0, %v1572_v19 }
 0x10a   : > { %v12578_v48 = vpop.permute.xlu0 %1537  ;;  %9749 = vmatprep.mubr.msk.f32.mxu0 %vm15480_vm0, %v1573_v40  ;;  %v12598_v32 = vpop.permute.xlu1 %1542  ;;  %v15666_v40 = vmov 0.0  }
 0x10b   : > { %15663 = vst [vmem:[#allocation127_spill] sm:$0xff] %v12578_v48  ;;  %v1575_v19 = vmul.f32 %v12578_v48, %v12585_v13  ;;  %15665 = vst [vmem:[#allocation129_spill] sm:$0xff] %v12598_v32  ;;  %10087 = vmatprep.mubr.f32.mxu1 %v15666_v40  ;;  %v1576_v24 = vmul.f32 %v12598_v32, %v12604_v29  ;;  %v1965_v48 = vmul.f32 %v12033_v47, %v12027_v43 }
 0x10c   : > { %v1968_v47 = vmul.f32 %v12044_v50, %v12065_v56  ;;  %v1973_v40 = vmul.f32 %v12072_v59, %v12110_v10 }
 0x10d   : > { %9750 = vmatmul.mubr.msk.f32.gmra.mrb[28].mxu0 %vm15480_vm0, %v1574_v23  ;;  %v1966_v23 = vmul.f32 %v12015_v31, %v12048_v51 }
 0x10e   : > { %9752 = vmatprep.mubr.msk.f32.mxu0 %vm15480_vm0, %v1575_v19  ;;  %v12619_v19 = vld [vmem:[%s15231_s3 + $0x28] sm:$0xff] }
 0x111   : > { %9753 = vmatmul.mubr.msk.f32.gmra.mrb[30].mxu0 %vm15480_vm0, %v1576_v24  ;;  %v1972_v24 = vmul.f32 %v12074_v60, %v12097_v5 }
 0x112   : > { %9757 = vmatprep.mubr.msk.f32.mxu0 %vm15480_vm0, %v1964_v27  ;;  %v1969_v27 = vmul.f32 %v12042_v49, %v12078_v61 }
 0x115   : > { %9758 = vmatmul.mubr.msk.f32.vlgmr.msra.gmra.mrb[0].mxu0 %vm15480_vm0, %v1965_v48  ;;  %v1971_v48 = vmul.f32 %v12059_v54, %v12094_v4 }
 0x116   : > { %9806 = vmatpush3.msra.mxu0 %v12292_v36  ;;  %9760 = vmatprep.mubr.msk.f32.mxu0 %vm15480_vm0, %v1966_v23  ;;  %v1970_v36 = vmul.f32 %v12061_v55, %v12081_v62  ;;  %v1974_v23 = vmul.f32 %v12090_v2, %v12113_v11 }
 0x117   : > { %9855 = vmatprep.subr.mxu0 %v12619_v19 }
 0x119   : > { %9761 = vmatmul.mubr.msk.f32.gmra.mrb[2].mxu0 %vm15480_vm0, %v1967_v39  ;;  %v1975_v39 = vmul.f32 %v12088_v1, %v12126_v16 }
 0x11a   : > { %9763 = vmatprep.mubr.msk.f32.mxu0 %vm15480_vm0, %v1968_v47  ;;  %v1976_v47 = vmul.f32 %v12106_v9, %v12129_v17 }
 0x11d   : > { %9764 = vmatmul.mubr.msk.f32.gmra.mrb[4].mxu0 %vm15480_vm0, %v1969_v27  ;;  %v1977_v27 = vmul.f32 %v12104_v8, %v12142_v30 }
 0x11e   : > { %9766 = vmatprep.mubr.msk.f32.mxu0 %vm15480_vm0, %v1970_v36  ;;  %v1978_v36 = vmul.f32 %v12122_v15, %v12145_v35 }
 0x121   : > { %9767 = vmatmul.mubr.msk.f32.gmra.mrb[6].mxu0 %vm15480_vm0, %v1971_v48  ;;  %v1979_v48 = vmul.f32 %v12120_v14, %v12158_v53 }
 0x122   : > { %9769 = vmatprep.mubr.msk.f32.mxu0 %vm15480_vm0, %v1972_v24  ;;  %v1980_v24 = vmul.f32 %v12138_v26, %v12161_v57 }
 0x125   : > { %9770 = vmatmul.mubr.msk.f32.gmra.mrb[8].mxu0 %vm15480_vm0, %v1973_v40  ;;  %v1981_v40 = vmul.f32 %v12136_v25, %v12174_v7 }
 0x126   : > { %9772 = vmatprep.mubr.msk.f32.mxu0 %vm15480_vm0, %v1974_v23  ;;  %v1982_v23 = vmul.f32 %v12154_v52, %v12177_v12 }
 0x129   : > { %9773 = vmatmul.mubr.msk.f32.gmra.mrb[10].mxu0 %vm15480_vm0, %v1975_v39  ;;  %v1983_v39 = vmul.f32 %v12152_v46, %v12190_v45 }
 0x12a   : > { %9775 = vmatprep.mubr.msk.f32.mxu0 %vm15480_vm0, %v1976_v47  ;;  %v1984_v47 = vmul.f32 %v12170_v6, %v12193_v58 }
 0x12d   : > { %9776 = vmatmul.mubr.msk.f32.gmra.mrb[12].mxu0 %vm15480_vm0, %v1977_v27  ;;  %v1985_v27 = vmul.f32 %v12168_v0, %v12206_v21  ;;  %v15672_v0 = vld [vmem:[#allocation53_spill] sm:$0xff] }
 0x12e   : > { %9778 = vmatprep.mubr.msk.f32.mxu0 %vm15480_vm0, %v1978_v36  ;;  %v1986_v36 = vmul.f32 %v12186_v38, %v12209_v41 }
 0x131   : > { %9779 = vmatmul.mubr.msk.f32.gmra.mrb[14].mxu0 %vm15480_vm0, %v1979_v48  ;;  %v1987_v48 = vmul.f32 %v12184_v22, %v12222_v3 }
 0x132   : > { %9781 = vmatprep.mubr.msk.f32.mxu0 %vm15480_vm0, %v1980_v24  ;;  %v1988_v24 = vmul.f32 %v12202_v44, %v12225_v33  ;;  %v15673_v44 = vld [vmem:[#allocation47_spill] sm:$0xff] }
 0x133   : > { %v1992_v33 = vmul.f32 %v15673_v44, %v15672_v0  ;;  %v15726_v0 = vld [vmem:[#allocation75_spill] sm:$0xff] }
 0x135   : > { %9782 = vmatmul.mubr.msk.f32.gmra.mrb[16].mxu0 %vm15480_vm0, %v1981_v40  ;;  %v15667_v40 = vld [vmem:[#allocation41_spill] sm:$0xff] }
 0x136   : > { %9784 = vmatprep.mubr.msk.f32.mxu0 %vm15480_vm0, %v1982_v23  ;;  %v1989_v23 = vmul.f32 %v15667_v40, %v12238_v37  ;;  %v12706_v37 = vld [vmem:[%s11758_s21 + $0x107] sm:$0xff] }
 0x139   : > { %9785 = vmatmul.mubr.msk.f32.gmra.mrb[18].mxu0 %vm15480_vm0, %v1983_v39  ;;  %v15668_v39 = vld [vmem:[#allocation49_spill] sm:$0xff] }
 0x13a   : > { %9787 = vmatprep.mubr.msk.f32.mxu0 %vm15480_vm0, %v1984_v47  ;;  %v15669_v47 = vld [vmem:[#allocation44_spill] sm:$0xff]  ;;  %15676 = vst [vmem:[#allocation49_spill] sm:$0xff] %v12706_v37 }
 0x13b   : > { %v1990_v38 = vmul.f32 %v15669_v47, %v15668_v39  ;;  %v15677_v47 = vld [vmem:[#allocation51_spill] sm:$0xff] }
 0x13d   : > { %9788 = vmatmul.mubr.msk.f32.gmra.mrb[20].mxu0 %vm15480_vm0, %v1985_v27  ;;  %v15670_v27 = vld [vmem:[#allocation52_spill] sm:$0xff] }
 0x13e   : > { %9790 = vmatprep.mubr.msk.f32.mxu0 %vm15480_vm0, %v1986_v36  ;;  %v15671_v36 = vld [vmem:[#allocation43_spill] sm:$0xff] }
 0x13f   : > { %v1991_v22 = vmul.f32 %v15671_v36, %v15670_v27  ;;  %v15679_v36 = vld [vmem:[#allocation50_spill] sm:$0xff]  ;;  %v15727_v27 = vld [vmem:[#allocation69_spill] sm:$0xff] }
 0x141   : > { %9791 = vmatmul.mubr.msk.f32.gmra.mrb[22].mxu0 %vm15480_vm0, %v1987_v48  ;;  %v15674_v48 = vld [vmem:[#allocation56_spill] sm:$0xff] }
 0x142   : > { %9793 = vmatprep.mubr.msk.f32.mxu0 %vm15480_vm0, %v1988_v24  ;;  %v15675_v24 = vld [vmem:[#allocation46_spill] sm:$0xff] }
 0x143   : > { %v1993_v40 = vmul.f32 %v15675_v24, %v15674_v48  ;;  %v15681_v24 = vld [vmem:[#allocation4_spill] sm:$0xff]  ;;  %v15722_v48 = vld [vmem:[#allocation71_spill] sm:$0xff] }
 0x145   : > { %9794 = vmatmul.mubr.msk.f32.gmra.mrb[24].mxu0 %vm15480_vm0, %v1989_v23  ;;  %v1994_v23 = vmul.f32 %v12706_v37, %v15677_v47  ;;  %v15687_v47 = vld [vmem:[#allocation10_spill] sm:$0xff] }
 0x146   : > { %9796 = vmatprep.mubr.msk.f32.mxu0 %vm15480_vm0, %v1990_v38  ;;  %v12713_v38 = vld [vmem:[%s11758_s21 + $0x10f] sm:$0xff] }
 0x147   : > { %15678 = vst [vmem:[#allocation130_spill] sm:$0xff] %v12713_v38  ;;  %v1995_v44 = vmul.f32 %v12713_v38, %v15679_v36  ;;  %v15686_v36 = vld [vmem:[#allocation9_spill] sm:$0xff]  ;;  %v15715_v38 = vld [vmem:[#allocation58_spill] sm:$0xff] }
 0x149   : > { %9797 = vmatmul.mubr.msk.f32.gmra.mrb[26].mxu0 %vm15480_vm0, %v1991_v22  ;;  %v8576_v22 = vld [vmem:[%s15231_s3 + $0x30] sm:$0xff] }
 0x14a   : > { %9799 = vmatprep.mubr.msk.f32.mxu0 %vm15480_vm0, %v1992_v33  ;;  %v15680_v33 = vld [vmem:[#allocation3_spill] sm:$0xff] }
 0x14d   : > { %9800 = vmatmul.mubr.msk.f32.gmra.mrb[28].mxu0 %vm15480_vm0, %v1993_v40  ;;  %v15682_v40 = vld [vmem:[#allocation5_spill] sm:$0xff] }
 0x14e   : > { %9802 = vmatprep.mubr.msk.f32.mxu0 %vm15480_vm0, %v1994_v23  ;;  %v15683_v23 = vld [vmem:[#allocation6_spill] sm:$0xff] }
 0x151   : > { %9803 = vmatmul.mubr.msk.f32.gmra.mrb[30].mxu0 %vm15480_vm0, %v1995_v44  ;;  %v15684_v44 = vld [vmem:[#allocation7_spill] sm:$0xff] }
 0x152   : > { %9807 = vmatprep.mubr.msk.f32.mxu0 %vm15480_vm0, %v15680_v33  ;;  %v15685_v33 = vld [vmem:[#allocation8_spill] sm:$0xff] }
 0x155   : > { %9808 = vmatmul.mubr.msk.f32.vlgmr.msra.gmra.mrb[0].mxu0 %vm15480_vm0, %v15681_v24  ;;  %v15689_v24 = vld [vmem:[#allocation12_spill] sm:$0xff] }
 0x156   : > { %9856 = vmatpush3.msra.mxu0 %v12619_v19  ;;  %9810 = vmatprep.mubr.msk.f32.mxu0 %vm15480_vm0, %v15682_v40  ;;  %v15688_v19 = vld [vmem:[#allocation11_spill] sm:$0xff]  ;;  %v15690_v40 = vld [vmem:[#allocation13_spill] sm:$0xff] }
 0x157   : > { %9905 = vmatprep.subr.mxu0 %v8576_v22 }
 0x159   : > { %9811 = vmatmul.mubr.msk.f32.gmra.mrb[2].mxu0 %vm15480_vm0, %v15683_v23  ;;  %v15691_v23 = vld [vmem:[#allocation14_spill] sm:$0xff] }
 0x15a   : > { %9813 = vmatprep.mubr.msk.f32.mxu0 %vm15480_vm0, %v15684_v44  ;;  %v15692_v44 = vld [vmem:[#allocation15_spill] sm:$0xff] }
 0x15d   : > { %9814 = vmatmul.mubr.msk.f32.gmra.mrb[4].mxu0 %vm15480_vm0, %v15685_v33  ;;  %v15693_v33 = vld [vmem:[#allocation16_spill] sm:$0xff] }
 0x15e   : > { %9816 = vmatprep.mubr.msk.f32.mxu0 %vm15480_vm0, %v15686_v36  ;;  %v15694_v36 = vld [vmem:[#allocation84_spill] sm:$0xff] }
 0x161   : > { %9817 = vmatmul.mubr.msk.f32.gmra.mrb[6].mxu0 %vm15480_vm0, %v15687_v47  ;;  %v15695_v47 = vld [vmem:[#allocation89_spill] sm:$0xff] }
 0x162   : > { %9819 = vmatprep.mubr.msk.f32.mxu0 %vm15480_vm0, %v15688_v19  ;;  %v15696_v19 = vld [vmem:[#allocation90_spill] sm:$0xff] }
 0x165   : > { %9820 = vmatmul.mubr.msk.f32.gmra.mrb[8].mxu0 %vm15480_vm0, %v15689_v24  ;;  %v15697_v24 = vld [vmem:[#allocation95_spill] sm:$0xff] }
 0x166   : > { %9822 = vmatprep.mubr.msk.f32.mxu0 %vm15480_vm0, %v15690_v40  ;;  %v15698_v40 = vld [vmem:[#allocation96_spill] sm:$0xff] }
 0x169   : > { %9823 = vmatmul.mubr.msk.f32.gmra.mrb[10].mxu0 %vm15480_vm0, %v15691_v23  ;;  %v15699_v23 = vld [vmem:[#allocation101_spill] sm:$0xff] }
 0x16a   : > { %9825 = vmatprep.mubr.msk.f32.mxu0 %vm15480_vm0, %v15692_v44  ;;  %v15700_v44 = vld [vmem:[#allocation102_spill] sm:$0xff] }
 0x16d   : > { %9826 = vmatmul.mubr.msk.f32.gmra.mrb[12].mxu0 %vm15480_vm0, %v15693_v33  ;;  %v15701_v33 = vld [vmem:[#allocation107_spill] sm:$0xff] }
 0x16e   : > { %9828 = vmatprep.mubr.msk.f32.mxu0 %vm15480_vm0, %v15694_v36  ;;  %v15704_v36 = vld [vmem:[#allocation114_spill] sm:$0xff] }
 0x171   : > { %9829 = vmatmul.mubr.msk.f32.gmra.mrb[14].mxu0 %vm15480_vm0, %v15695_v47  ;;  %v15702_v47 = vld [vmem:[#allocation108_spill] sm:$0xff] }
 0x172   : > { %9831 = vmatprep.mubr.msk.f32.mxu0 %vm15480_vm0, %v15696_v19  ;;  %v15703_v19 = vld [vmem:[#allocation113_spill] sm:$0xff] }
 0x175   : > { %9832 = vmatmul.mubr.msk.f32.gmra.mrb[16].mxu0 %vm15480_vm0, %v15697_v24  ;;  %v15705_v24 = vld [vmem:[#allocation119_spill] sm:$0xff] }
 0x176   : > { %9834 = vmatprep.mubr.msk.f32.mxu0 %vm15480_vm0, %v15698_v40  ;;  %v15706_v40 = vld [vmem:[#allocation120_spill] sm:$0xff] }
 0x179   : > { %9835 = vmatmul.mubr.msk.f32.gmra.mrb[18].mxu0 %vm15480_vm0, %v15699_v23  ;;  %v15714_v23 = vld [vmem:[#allocation63_spill] sm:$0xff] }
 0x17a   : > { %9837 = vmatprep.mubr.msk.f32.mxu0 %vm15480_vm0, %v15700_v44  ;;  %v15707_v44 = vld [vmem:[#allocation126_spill] sm:$0xff]  ;;  %v2772_v37 = vmul.f32 %v15715_v38, %v15714_v23  ;;  %v15721_v38 = vld [vmem:[#allocation61_spill] sm:$0xff] }
 0x17b   : > { %v15720_v23 = vld [vmem:[#allocation70_spill] sm:$0xff] }
 0x17d   : > { %9838 = vmatmul.mubr.msk.f32.gmra.mrb[20].mxu0 %vm15480_vm0, %v15701_v33  ;;  %v12781_v33 = vld [vmem:[%s11758_s21 + $0x108] sm:$0xff] }
 0x17e   : > { %9840 = vmatprep.mubr.msk.f32.mxu0 %vm15480_vm0, %v15702_v47  ;;  %15708 = vst [vmem:[#allocation3_spill] sm:$0xff] %v12781_v33 }
 0x181   : > { %9841 = vmatmul.mubr.msk.f32.gmra.mrb[22].mxu0 %vm15480_vm0, %v15703_v19  ;;  %v15711_v19 = vld [vmem:[#allocation55_spill] sm:$0xff] }
 0x182   : > { %9843 = vmatprep.mubr.msk.f32.mxu0 %vm15480_vm0, %v15704_v36  ;;  %v12788_v36 = vld [vmem:[%s11758_s21 + $0x110] sm:$0xff] }
 0x183   : > { %15709 = vst [vmem:[#allocation4_spill] sm:$0xff] %v12788_v36 }
 0x185   : > { %9844 = vmatmul.mubr.msk.f32.gmra.mrb[24].mxu0 %vm15480_vm0, %v15705_v24  ;;  %v15710_v24 = vld [vmem:[#allocation59_spill] sm:$0xff] }
 0x186   : > { %9846 = vmatprep.mubr.msk.f32.mxu0 %vm15480_vm0, %v15706_v40  ;;  %v2770_v47 = vmul.f32 %v15711_v19, %v15710_v24  ;;  %v15716_v24 = vld [vmem:[#allocation57_spill] sm:$0xff]  ;;  %v15717_v19 = vld [vmem:[#allocation64_spill] sm:$0xff] }
 0x189   : > { %9847 = vmatmul.mubr.msk.f32.gmra.mrb[26].mxu0 %vm15480_vm0, %v12564_v20  ;;  %v15712_v20 = vld [vmem:[#allocation54_spill] sm:$0xff] }
 0x18a   : > { %9849 = vmatprep.mubr.msk.f32.mxu0 %vm15480_vm0, %v15707_v44  ;;  %v15713_v44 = vld [vmem:[#allocation60_spill] sm:$0xff] }
 0x18b   : > { %v2771_v40 = vmul.f32 %v15713_v44, %v15712_v20  ;;  %v15719_v44 = vld [vmem:[#allocation62_spill] sm:$0xff] }
 0x18d   : > { %9850 = vmatmul.mubr.msk.f32.gmra.mrb[28].mxu0 %vm15480_vm0, %v12588_v63  ;;  %v2775_v63 = vmul.f32 %v15721_v38, %v15720_v23  ;;  %v15730_v38 = vld [vmem:[#allocation79_spill] sm:$0xff] }
 0x18e   : > { %9852 = vmatprep.mubr.msk.f32.mxu0 %vm15480_vm0, %v12781_v33  ;;  %v12802_v33 = vld [vmem:[%s15231_s3 + $0x38] sm:$0xff] }
 0x191   : > { %9853 = vmatmul.mubr.msk.f32.gmra.mrb[30].mxu0 %vm15480_vm0, %v12788_v36  ;;  %v2773_v36 = vmul.f32 %v15717_v19, %v15716_v24  ;;  %v15725_v24 = vld [vmem:[#allocation65_spill] sm:$0xff] }
 0x192   : > { %9857 = vmatprep.mubr.msk.f32.mxu0 %vm15480_vm0, %v2770_v47  ;;  %v15718_v47 = vld [vmem:[#allocation67_spill] sm:$0xff] }
 0x193   : > { %v2774_v20 = vmul.f32 %v15719_v44, %v15718_v47  ;;  %v2778_v47 = vmul.f32 %v15727_v27, %v15726_v0  ;;  %v15731_v44 = vld [vmem:[#allocation73_spill] sm:$0xff] }
 0x194   : > { %v15739_v27 = vld [vmem:[#allocation81_spill] sm:$0xff] }
 0x195   : > { %9858 = vmatmul.mubr.msk.f32.vlgmr.msra.gmra.mrb[0].mxu0 %vm15480_vm0, %v2771_v40  ;;  %v15723_v40 = vld [vmem:[#allocation66_spill] sm:$0xff] }
 0x196   : > { %9906 = vmatpush3.msra.mxu0 %v8576_v22  ;;  %9860 = vmatprep.mubr.msk.f32.mxu0 %vm15480_vm0, %v2772_v37  ;;  %v2776_v22 = vmul.f32 %v15723_v40, %v15722_v48  ;;  %v15724_v37 = vld [vmem:[#allocation74_spill] sm:$0xff]  ;;  %v2780_v48 = vmul.f32 %v15731_v44, %v15730_v38  ;;  %v15735_v40 = vld [vmem:[#allocation77_spill] sm:$0xff] }
 0x197   : > { %9955 = vmatprep.subr.mxu0 %v12802_v33  ;;  %v2777_v19 = vmul.f32 %v15725_v24, %v15724_v37  ;;  %v15734_v24 = vld [vmem:[#allocation83_spill] sm:$0xff]  ;;  %v15743_v44 = vld [vmem:[#allocation86_spill] sm:$0xff] }
 0x198   : > { %v2782_v0 = vmul.f32 %v15735_v40, %v15734_v24  ;;  %v15747_v40 = vld [vmem:[#allocation92_spill] sm:$0xff] }
 0x199   : > { %9861 = vmatmul.mubr.msk.f32.gmra.mrb[2].mxu0 %vm15480_vm0, %v2773_v36  ;;  %v15729_v36 = vld [vmem:[#allocation68_spill] sm:$0xff] }
 0x19a   : > { %9863 = vmatprep.mubr.msk.f32.mxu0 %vm15480_vm0, %v2774_v20  ;;  %v15728_v20 = vld [vmem:[#allocation78_spill] sm:$0xff] }
 0x19b   : > { %v2779_v23 = vmul.f32 %v15729_v36, %v15728_v20  ;;  %v15738_v36 = vld [vmem:[#allocation88_spill] sm:$0xff] }
 0x19c   : > { %v2784_v38 = vmul.f32 %v15739_v27, %v15738_v36  ;;  %v15751_v27 = vld [vmem:[#allocation98_spill] sm:$0xff] }
 0x19d   : > { %9864 = vmatmul.mubr.msk.f32.gmra.mrb[4].mxu0 %vm15480_vm0, %v2775_v63  ;;  %v15732_v63 = vld [vmem:[#allocation82_spill] sm:$0xff] }
 0x19e   : > { %9866 = vmatprep.mubr.msk.f32.mxu0 %vm15480_vm0, %v2776_v22  ;;  %v15733_v22 = vld [vmem:[#allocation72_spill] sm:$0xff] }
 0x19f   : > { %v2781_v37 = vmul.f32 %v15733_v22, %v15732_v63  ;;  %v15742_v22 = vld [vmem:[#allocation94_spill] sm:$0xff] }
 0x1a0   : > { %v2786_v24 = vmul.f32 %v15743_v44, %v15742_v22  ;;  %v15755_v44 = vld [vmem:[#allocation104_spill] sm:$0xff] }
 0x1a1   : > { %9867 = vmatmul.mubr.msk.f32.gmra.mrb[6].mxu0 %vm15480_vm0, %v2777_v19  ;;  %v15736_v19 = vld [vmem:[#allocation87_spill] sm:$0xff] }
 0x1a2   : > { %9869 = vmatprep.mubr.msk.f32.mxu0 %vm15480_vm0, %v2778_v47  ;;  %v15737_v47 = vld [vmem:[#allocation76_spill] sm:$0xff] }
 0x1a3   : > { %v2783_v20 = vmul.f32 %v15737_v47, %v15736_v19  ;;  %v15746_v47 = vld [vmem:[#allocation100_spill] sm:$0xff] }
 0x1a4   : > { %v2788_v36 = vmul.f32 %v15747_v40, %v15746_v47 }
 0x1a5   : > { %9870 = vmatmul.mubr.msk.f32.gmra.mrb[8].mxu0 %vm15480_vm0, %v2779_v23  ;;  %v15740_v23 = vld [vmem:[#allocation93_spill] sm:$0xff] }
 0x1a6   : > { %9872 = vmatprep.mubr.msk.f32.mxu0 %vm15480_vm0, %v2780_v48  ;;  %v15741_v48 = vld [vmem:[#allocation80_spill] sm:$0xff] }
 0x1a7   : > { %v2785_v63 = vmul.f32 %v15741_v48, %v15740_v23  ;;  %v15750_v48 = vld [vmem:[#allocation106_spill] sm:$0xff] }
 0x1a8   : > { %v2790_v22 = vmul.f32 %v15751_v27, %v15750_v48  ;;  %v15759_v48 = vld [vmem:[#allocation110_spill] sm:$0xff] }
 0x1a9   : > { %9873 = vmatmul.mubr.msk.f32.gmra.mrb[10].mxu0 %vm15480_vm0, %v2781_v37  ;;  %v15744_v37 = vld [vmem:[#allocation99_spill] sm:$0xff] }
 0x1aa   : > { %9875 = vmatprep.mubr.msk.f32.mxu0 %vm15480_vm0, %v2782_v0  ;;  %v15745_v0 = vld [vmem:[#allocation85_spill] sm:$0xff] }
 0x1ab   : > { %v2787_v19 = vmul.f32 %v15745_v0, %v15744_v37  ;;  %v15754_v0 = vld [vmem:[#allocation112_spill] sm:$0xff] }
 0x1ac   : > { %v2792_v47 = vmul.f32 %v15755_v44, %v15754_v0  ;;  %v15762_v0 = vld [vmem:[#allocation124_spill] sm:$0xff] }
 0x1ad   : > { %9876 = vmatmul.mubr.msk.f32.gmra.mrb[12].mxu0 %vm15480_vm0, %v2783_v20  ;;  %v15748_v20 = vld [vmem:[#allocation105_spill] sm:$0xff]  ;;  %v15763_v44 = vld [vmem:[#allocation116_spill] sm:$0xff] }
 0x1ae   : > { %9878 = vmatprep.mubr.msk.f32.mxu0 %vm15480_vm0, %v2784_v38  ;;  %v15749_v38 = vld [vmem:[#allocation91_spill] sm:$0xff] }
 0x1af   : > { %v2789_v23 = vmul.f32 %v15749_v38, %v15748_v20  ;;  %v15758_v38 = vld [vmem:[#allocation118_spill] sm:$0xff] }
 0x1b0   : > { %v2794_v27 = vmul.f32 %v15759_v48, %v15758_v38  ;;  %v15765_v38 = vld [vmem:[#allocation122_spill] sm:$0xff] }
 0x1b1   : > { %9879 = vmatmul.mubr.msk.f32.gmra.mrb[14].mxu0 %vm15480_vm0, %v2785_v63  ;;  %v15752_v63 = vld [vmem:[#allocation111_spill] sm:$0xff] }
 0x1b2   : > { %9881 = vmatprep.mubr.msk.f32.mxu0 %vm15480_vm0, %v2786_v24  ;;  %v15753_v24 = vld [vmem:[#allocation97_spill] sm:$0xff] }
 0x1b3   : > { %v2791_v37 = vmul.f32 %v15753_v24, %v15752_v63  ;;  %v2796_v24 = vmul.f32 %v15763_v44, %v15762_v0  ;;  %v15767_v0 = vld [vmem:[#allocation127_spill] sm:$0xff] }
 0x1b5   : > { %9882 = vmatmul.mubr.msk.f32.gmra.mrb[16].mxu0 %vm15480_vm0, %v2787_v19  ;;  %v15756_v19 = vld [vmem:[#allocation117_spill] sm:$0xff] }
 0x1b6   : > { %9884 = vmatprep.mubr.msk.f32.mxu0 %vm15480_vm0, %v2788_v36  ;;  %v15757_v36 = vld [vmem:[#allocation103_spill] sm:$0xff] }
 0x1b7   : > { %v2793_v20 = vmul.f32 %v15757_v36, %v15756_v19  ;;  %v2798_v19 = vmul.f32 %v15765_v38, %v12585_v13 }
 0x1b9   : > { %9885 = vmatmul.mubr.msk.f32.gmra.mrb[18].mxu0 %vm15480_vm0, %v2789_v23  ;;  %v15760_v23 = vld [vmem:[#allocation123_spill] sm:$0xff] }
 0x1ba   : > { %9887 = vmatprep.mubr.msk.f32.mxu0 %vm15480_vm0, %v2790_v22  ;;  %v15761_v22 = vld [vmem:[#allocation109_spill] sm:$0xff] }
 0x1bb   : > { %v2795_v63 = vmul.f32 %v15761_v22, %v15760_v23  ;;  %v12888_v23 = vld [vmem:[%s11758_s21 + $0x109] sm:$0xff] }
 0x1bd   : > { %9888 = vmatmul.mubr.msk.f32.gmra.mrb[20].mxu0 %vm15480_vm0, %v2791_v37  ;;  %v15764_v37 = vld [vmem:[#allocation115_spill] sm:$0xff] }
 0x1be   : > { %9890 = vmatprep.mubr.msk.f32.mxu0 %vm15480_vm0, %v2792_v47  ;;  %v2797_v47 = vmul.f32 %v15764_v37, %v12582_v18  ;;  %v12895_v18 = vld [vmem:[%s11758_s21 + $0x111] sm:$0xff] }
 0x1bf   : > { %v2801_v13 = vmul.f32 %v12895_v18, %v12598_v32 }
 0x1c1   : > { %9891 = vmatmul.mubr.msk.f32.gmra.mrb[22].mxu0 %vm15480_vm0, %v2793_v20 }
 0x1c2   : > { %9893 = vmatprep.mubr.msk.f32.mxu0 %vm15480_vm0, %v2794_v27  ;;  %v15766_v27 = vld [vmem:[#allocation121_spill] sm:$0xff] }
 0x1c3   : > { %v2799_v20 = vmul.f32 %v15766_v27, %v12604_v29  ;;  %v3190_v29 = vmul.f32 %v12057_v28, %v12027_v43  ;;  %v3193_v28 = vmul.f32 %v12044_v50, %v12081_v62  ;;  %v3197_v62 = vmul.f32 %v12074_v60, %v12113_v11  ;;  %v8690_v60 = vld [vmem:[%s15235_s7 + $0xe0] sm:$0xff]  ;;  %v4942_v43 = vld [vmem:[%s15235_s7 + $0x18] sm:$0xff] }
 0x1c4   : > { %v3201_v11 = vmul.f32 %v12106_v9, %v12145_v35  ;;  %v3205_v35 = vmul.f32 %v12138_v26, %v12177_v12  ;;  %v3209_v12 = vmul.f32 %v12170_v6, %v12209_v41  ;;  %v15773_v41 = vld [vmem:[#allocation42_spill] sm:$0xff]  ;;  %v4939_v50 = vld [vmem:[%s15235_s7] sm:$0xff] }
 0x1c5   : > { %9894 = vmatmul.mubr.msk.f32.gmra.mrb[24].mxu0 %vm15480_vm0, %v2795_v63  ;;  %v2800_v63 = vmul.f32 %v12888_v23, %v15767_v0 }
 0x1c6   : > { %9896 = vmatprep.mubr.msk.f32.mxu0 %vm15480_vm0, %v2796_v24  ;;  %v3189_v24 = vmul.f32 %v12017_v34, %v12048_v51  ;;  %v3192_v51 = vmul.f32 %v12025_v42, %v12078_v61  ;;  %v3196_v61 = vmul.f32 %v12059_v54, %v12110_v10  ;;  %v3200_v10 = vmul.f32 %v12088_v1, %v12142_v30  ;;  %v8691_v54 = vld [vmem:[%s15235_s7 + $0xe8] sm:$0xff]  ;;  %v4943_v34 = vld [vmem:[%s15235_s7 + $0x20] sm:$0xff] }
 0x1c7   : > { %v3204_v30 = vmul.f32 %v12120_v14, %v12174_v7  ;;  %v3208_v7 = vmul.f32 %v12152_v46, %v12206_v21  ;;  %v15772_v21 = vld [vmem:[#allocation39_spill] sm:$0xff]  ;;  %v4940_v42 = vld [vmem:[%s15235_s7 + $0x8] sm:$0xff] }
 0x1c8   : > { %v8684_v14 = vld [vmem:[%s15235_s7 + $0xb0] sm:$0xff] }
 0x1c9   : > { %9897 = vmatmul.mubr.msk.f32.gmra.mrb[26].mxu0 %vm15480_vm0, %v2797_v47  ;;  %v3191_v47 = vmul.f32 %v12015_v31, %v12065_v56  ;;  %v3194_v56 = vmul.f32 %v12042_v49, %v12094_v4  ;;  %v3198_v4 = vmul.f32 %v12072_v59, %v12126_v16  ;;  %v3202_v16 = vmul.f32 %v12104_v8, %v12158_v53  ;;  %v8689_v59 = vld [vmem:[%s15235_s7 + $0xd8] sm:$0xff]  ;;  %v4941_v31 = vld [vmem:[%s15235_s7 + $0x10] sm:$0xff] }
 0x1ca   : > { %9899 = vmatprep.mubr.msk.f32.mxu0 %vm15480_vm0, %v2798_v19  ;;  %v12910_v19 = vld [vmem:[%s15231_s3 + $0x40] sm:$0xff]  ;;  %v3206_v53 = vmul.f32 %v12136_v25, %v12190_v45  ;;  %v8693_v49 = vld [vmem:[%s15235_s7 + $0xf8] sm:$0xff] }
 0x1cd   : > { %9900 = vmatmul.mubr.msk.f32.gmra.mrb[28].mxu0 %vm15480_vm0, %v2799_v20  ;;  %v15768_v20 = vld [vmem:[#allocation37_spill] sm:$0xff] }
 0x1ce   : > { %9902 = vmatprep.mubr.msk.f32.mxu0 %vm15480_vm0, %v2800_v63  ;;  %v3210_v45 = vmul.f32 %v15768_v20, %v12222_v3  ;;  %v15769_v63 = vld [vmem:[#allocation45_spill] sm:$0xff] }
 0x1cf   : > { %v15775_v3 = vld [vmem:[#allocation41_spill] sm:$0xff] }
 0x1d1   : > { %9903 = vmatmul.mubr.msk.f32.gmra.mrb[30].mxu0 %vm15480_vm0, %v2801_v13 }
 0x1d2   : > { %9907 = vmatprep.mubr.msk.f32.mxu0 %vm15480_vm0, %v3189_v24  ;;  %v15771_v24 = vld [vmem:[#allocation48_spill] sm:$0xff] }
 0x1d5   : > { %9908 = vmatmul.mubr.msk.f32.vlgmr.msra.gmra.mrb[0].mxu0 %vm15480_vm0, %v3190_v29  ;;  %v3212_v29 = vmul.f32 %v15772_v21, %v15771_v24  ;;  %v3578_v24 = vld [vmem:[%s11758_s21 + $0x38] sm:$0xff] }
 0x1d6   : > { %9956 = vmatpush3.msra.mxu0 %v12802_v33  ;;  %9910 = vmatprep.mubr.msk.f32.mxu0 %vm15480_vm0, %v3191_v47  ;;  %v3195_v33 = vmul.f32 %v12061_v55, %v12097_v5  ;;  %v3199_v5 = vmul.f32 %v12090_v2, %v12129_v17  ;;  %v3203_v17 = vmul.f32 %v12122_v15, %v12161_v57  ;;  %v8685_v15 = vld [vmem:[%s15235_s7 + $0xb8] sm:$0xff]  ;;  %v8688_v2 = vld [vmem:[%s15235_s7 + $0xd0] sm:$0xff] }
 0x1d7   : > { %10005 = vmatprep.subr.mxu0 %v12910_v19  ;;  %v3207_v57 = vmul.f32 %v12154_v52, %v12193_v58  ;;  %v15770_v58 = vld [vmem:[#allocation40_spill] sm:$0xff]  ;;  %v3213_v47 = vmul.f32 %v15773_v41, %v15668_v39  ;;  %v8692_v55 = vld [vmem:[%s15235_s7 + $0xf0] sm:$0xff] }
 0x1d8   : > { %v3211_v13 = vmul.f32 %v15770_v58, %v15769_v63  ;;  %v3576_v63 = vld [vmem:[%s11758_s21 + $0x28] sm:$0xff] }
 0x1d9   : > { %9911 = vmatmul.mubr.msk.f32.gmra.mrb[2].mxu0 %vm15480_vm0, %v3192_v51  ;;  %v15774_v51 = vld [vmem:[#allocation52_spill] sm:$0xff] }
 0x1da   : > { %9913 = vmatprep.mubr.msk.f32.mxu0 %vm15480_vm0, %v3193_v28  ;;  %v3214_v28 = vmul.f32 %v15775_v3, %v15774_v51  ;;  %v3581_v51 = vld [vmem:[%s11758_s21 + $0x50] sm:$0xff] }
 0x1dd   : > { %9914 = vmatmul.mubr.msk.f32.gmra.mrb[4].mxu0 %vm15480_vm0, %v3194_v56  ;;  %v15776_v56 = vld [vmem:[#allocation53_spill] sm:$0xff] }
 0x1de   : > { %9916 = vmatprep.mubr.msk.f32.mxu0 %vm15480_vm0, %v3195_v33  ;;  %v15777_v33 = vld [vmem:[#allocation44_spill] sm:$0xff] }
 0x1e1   : > { %9917 = vmatmul.mubr.msk.f32.gmra.mrb[6].mxu0 %vm15480_vm0, %v3196_v61  ;;  %v3215_v61 = vmul.f32 %v15777_v33, %v15776_v56  ;;  %v3583_v56 = vld [vmem:[%s11758_s21 + $0x60] sm:$0xff] }
 0x1e2   : > { %9919 = vmatprep.mubr.msk.f32.mxu0 %vm15480_vm0, %v3197_v62  ;;  %v15778_v62 = vld [vmem:[#allocation56_spill] sm:$0xff] }
 0x1e5   : > { %9920 = vmatmul.mubr.msk.f32.gmra.mrb[8].mxu0 %vm15480_vm0, %v3198_v4  ;;  %v15779_v4 = vld [vmem:[#allocation43_spill] sm:$0xff] }
 0x1e6   : > { %9922 = vmatprep.mubr.msk.f32.mxu0 %vm15480_vm0, %v3199_v5  ;;  %v3216_v39 = vmul.f32 %v15779_v4, %v15778_v62  ;;  %v15780_v5 = vld [vmem:[#allocation47_spill] sm:$0xff]  ;;  %v3586_v62 = vld [vmem:[%s11758_s21 + $0x78] sm:$0xff] }
 0x1e9   : > { %9923 = vmatmul.mubr.msk.f32.gmra.mrb[10].mxu0 %vm15480_vm0, %v3200_v10  ;;  %v15781_v10 = vld [vmem:[#allocation49_spill] sm:$0xff] }
 0x1ea   : > { %9925 = vmatprep.mubr.msk.f32.mxu0 %vm15480_vm0, %v3201_v11  ;;  %v3217_v11 = vmul.f32 %v15781_v10, %v15780_v5  ;;  %v15786_v10 = vld [vmem:[#allocation84_spill] sm:$0xff] }
 0x1ed   : > { %9926 = vmatmul.mubr.msk.f32.gmra.mrb[12].mxu0 %vm15480_vm0, %v3202_v16  ;;  %v3187_v16 = vld [vmem:[%s11758_s21 + $0x117] sm:$0xff] }
 0x1ee   : > { %9928 = vmatprep.mubr.msk.f32.mxu0 %vm15480_vm0, %v3203_v17  ;;  %v15782_v17 = vld [vmem:[#allocation46_spill] sm:$0xff] }
 0x1f1   : > { %9929 = vmatmul.mubr.msk.f32.gmra.mrb[14].mxu0 %vm15480_vm0, %v3204_v30  ;;  %v15783_v30 = vld [vmem:[#allocation130_spill] sm:$0xff] }
 0x1f2   : > { %9931 = vmatprep.mubr.msk.f32.mxu0 %vm15480_vm0, %v3205_v35  ;;  %v3218_v35 = vmul.f32 %v15783_v30, %v15782_v17  ;;  %v15789_v30 = vld [vmem:[#allocation95_spill] sm:$0xff] }
 0x1f5   : > { %9932 = vmatmul.mubr.msk.f32.gmra.mrb[16].mxu0 %vm15480_vm0, %v3206_v53  ;;  %v15784_v53 = vld [vmem:[#allocation51_spill] sm:$0xff] }
 0x1f6   : > { %9934 = vmatprep.mubr.msk.f32.mxu0 %vm15480_vm0, %v3207_v57  ;;  %v3219_v57 = vmul.f32 %v3187_v16, %v15784_v53  ;;  %v15788_v16 = vld [vmem:[#allocation90_spill] sm:$0xff] }
 0x1f9   : > { %9935 = vmatmul.mubr.msk.f32.gmra.mrb[18].mxu0 %vm15480_vm0, %v3208_v7  ;;  %v3188_v7 = vld [vmem:[%s11758_s21 + $0x11f] sm:$0xff] }
 0x1fa   : > { %9937 = vmatprep.mubr.msk.f32.mxu0 %vm15480_vm0, %v3209_v12  ;;  %v15785_v12 = vld [vmem:[#allocation50_spill] sm:$0xff] }
 0x1fd   : > { %9938 = vmatmul.mubr.msk.f32.gmra.mrb[20].mxu0 %vm15480_vm0, %v3210_v45  ;;  %v3220_v45 = vmul.f32 %v3188_v7, %v15785_v12  ;;  %v15792_v7 = vld [vmem:[#allocation102_spill] sm:$0xff] }
 0x1fe   : > { %9940 = vmatprep.mubr.msk.f32.mxu0 %vm15480_vm0, %v3211_v13  ;;  %v3577_v13 = vld [vmem:[%s11758_s21 + $0x30] sm:$0xff] }
 0x201   : > { %9941 = vmatmul.mubr.msk.f32.gmra.mrb[22].mxu0 %vm15480_vm0, %v3212_v29  ;;  %v3579_v29 = vld [vmem:[%s11758_s21 + $0x40] sm:$0xff] }
 0x202   : > { %9943 = vmatprep.mubr.msk.f32.mxu0 %vm15480_vm0, %v3213_v47  ;;  %v3580_v47 = vld [vmem:[%s11758_s21 + $0x48] sm:$0xff] }
 0x205   : > { %9944 = vmatmul.mubr.msk.f32.gmra.mrb[24].mxu0 %vm15480_vm0, %v3214_v28  ;;  %v3582_v28 = vld [vmem:[%s11758_s21 + $0x58] sm:$0xff] }
 0x206   : > { %9946 = vmatprep.mubr.msk.f32.mxu0 %vm15480_vm0, %v3215_v61  ;;  %v3584_v61 = vld [vmem:[%s11758_s21 + $0x68] sm:$0xff] }
 0x209   : > { %9947 = vmatmul.mubr.msk.f32.gmra.mrb[26].mxu0 %vm15480_vm0, %v3216_v39  ;;  %v3587_v39 = vld [vmem:[%s11758_s21 + $0x80] sm:$0xff] }
 0x20a   : > { %9949 = vmatprep.mubr.msk.f32.mxu0 %vm15480_vm0, %v3217_v11  ;;  %v15787_v11 = vld [vmem:[#allocation89_spill] sm:$0xff] }
 0x20d   : > { %9950 = vmatmul.mubr.msk.f32.gmra.mrb[28].mxu0 %vm15480_vm0, %v3218_v35  ;;  %v15790_v35 = vld [vmem:[#allocation96_spill] sm:$0xff] }
 0x20e   : > { %9952 = vmatprep.mubr.msk.f32.mxu0 %vm15480_vm0, %v3219_v57  ;;  %v15791_v57 = vld [vmem:[#allocation101_spill] sm:$0xff] }
 0x211   : > { %9953 = vmatmul.mubr.msk.f32.gmra.mrb[30].mxu0 %vm15480_vm0, %v3220_v45  ;;  %v15793_v45 = vld [vmem:[#allocation107_spill] sm:$0xff] }
 0x212   : > { %9957 = vmatprep.mubr.msk.f32.mxu0 %vm15480_vm0, %v3576_v63  ;;  %v15794_v63 = vld [vmem:[#allocation108_spill] sm:$0xff] }
 0x215   : > { %9958 = vmatmul.mubr.msk.f32.vlgmr.msra.gmra.mrb[0].mxu0 %vm15480_vm0, %v3577_v13  ;;  %v15795_v13 = vld [vmem:[#allocation113_spill] sm:$0xff] }
 0x216   : > { %10006 = vmatpush3.msra.mxu0 %v12910_v19  ;;  %9960 = vmatprep.mubr.msk.f32.mxu0 %vm15480_vm0, %v3578_v24  ;;  %v3585_v19 = vld [vmem:[%s11758_s21 + $0x70] sm:$0xff]  ;;  %v15796_v24 = vld [vmem:[#allocation114_spill] sm:$0xff] }
 0x219   : > { %9961 = vmatmul.mubr.msk.f32.gmra.mrb[2].mxu0 %vm15480_vm0, %v3579_v29  ;;  %v15797_v29 = vld [vmem:[#allocation119_spill] sm:$0xff] }
 0x21a   : > { %9963 = vmatprep.mubr.msk.f32.mxu0 %vm15480_vm0, %v3580_v47  ;;  %v15798_v47 = vld [vmem:[#allocation120_spill] sm:$0xff] }
 0x21d   : > { %9964 = vmatmul.mubr.msk.f32.gmra.mrb[4].mxu0 %vm15480_vm0, %v3581_v51  ;;  %v15799_v51 = vld [vmem:[#allocation125_spill] sm:$0xff] }
 0x21e   : > { %9966 = vmatprep.mubr.msk.f32.mxu0 %vm15480_vm0, %v3582_v28  ;;  %v15800_v28 = vld [vmem:[#allocation126_spill] sm:$0xff] }
 0x221   : > { %9967 = vmatmul.mubr.msk.f32.gmra.mrb[6].mxu0 %vm15480_vm0, %v3583_v56  ;;  %v15801_v56 = vld [vmem:[#allocation128_spill] sm:$0xff] }
 0x222   : > { %9969 = vmatprep.mubr.msk.f32.mxu0 %vm15480_vm0, %v3584_v61  ;;  %v15802_v61 = vld [vmem:[#allocation3_spill] sm:$0xff] }
 0x225   : > { %9970 = vmatmul.mubr.msk.f32.gmra.mrb[8].mxu0 %vm15480_vm0, %v3585_v19  ;;  %v3606_v19 = vld [vmem:[%s11758_s21 + $0x118] sm:$0xff] }
 0x226   : > { %9972 = vmatprep.mubr.msk.f32.mxu0 %vm15480_vm0, %v3586_v62  ;;  %v15803_v62 = vld [vmem:[#allocation4_spill] sm:$0xff] }
 0x229   : > { %9973 = vmatmul.mubr.msk.f32.gmra.mrb[10].mxu0 %vm15480_vm0, %v3587_v39  ;;  %v3963_v39 = vld [vmem:[%s11758_s21 + $0x29] sm:$0xff] }
 0x22a   : > { %9975 = vmatprep.mubr.msk.f32.mxu0 %vm15480_vm0, %v15786_v10  ;;  %v3607_v10 = vld [vmem:[%s11758_s21 + $0x120] sm:$0xff] }
 0x22d   : > { %9976 = vmatmul.mubr.msk.f32.gmra.mrb[12].mxu0 %vm15480_vm0, %v15787_v11  ;;  %v15804_v11 = vld [vmem:[#allocation55_spill] sm:$0xff] }
 0x22e   : > { %9978 = vmatprep.mubr.msk.f32.mxu0 %vm15480_vm0, %v15788_v16  ;;  %v3995_v16 = vmul.f32 %v3963_v39, %v15804_v11  ;;  %v15811_v39 = vld [vmem:[#allocation66_spill] sm:$0xff] }
 0x231   : > { %9979 = vmatmul.mubr.msk.f32.gmra.mrb[14].mxu0 %vm15480_vm0, %v15789_v30  ;;  %v3965_v30 = vld [vmem:[%s11758_s21 + $0x39] sm:$0xff] }
 0x232   : > { %9981 = vmatprep.mubr.msk.f32.mxu0 %vm15480_vm0, %v15790_v35  ;;  %v15805_v35 = vld [vmem:[#allocation54_spill] sm:$0xff] }
 0x235   : > { %9982 = vmatmul.mubr.msk.f32.gmra.mrb[16].mxu0 %vm15480_vm0, %v15791_v57  ;;  %v15806_v57 = vld [vmem:[#allocation64_spill] sm:$0xff] }
 0x236   : > { %9984 = vmatprep.mubr.msk.f32.mxu0 %vm15480_vm0, %v15792_v7  ;;  %v3996_v7 = vmul.f32 %v15806_v57, %v15805_v35  ;;  %v15812_v57 = vld [vmem:[#allocation65_spill] sm:$0xff] }
 0x239   : > { %9985 = vmatmul.mubr.msk.f32.gmra.mrb[18].mxu0 %vm15480_vm0, %v15793_v45  ;;  %v15807_v45 = vld [vmem:[#allocation58_spill] sm:$0xff] }
 0x23a   : > { %9987 = vmatprep.mubr.msk.f32.mxu0 %vm15480_vm0, %v15794_v63  ;;  %v3997_v63 = vmul.f32 %v3965_v30, %v15807_v45  ;;  %v3971_v30 = vld [vmem:[%s11758_s21 + $0x69] sm:$0xff] }
 0x23d   : > { %9988 = vmatmul.mubr.msk.f32.gmra.mrb[20].mxu0 %vm15480_vm0, %v15795_v13  ;;  %v3966_v13 = vld [vmem:[%s11758_s21 + $0x41] sm:$0xff] }
 0x23e   : > { %9990 = vmatprep.mubr.msk.f32.mxu0 %vm15480_vm0, %v15796_v24  ;;  %v3967_v24 = vld [vmem:[%s11758_s21 + $0x49] sm:$0xff] }
 0x241   : > { %9991 = vmatmul.mubr.msk.f32.gmra.mrb[22].mxu0 %vm15480_vm0, %v15797_v29  ;;  %v15808_v29 = vld [vmem:[#allocation57_spill] sm:$0xff] }
 0x242   : > { %9993 = vmatprep.mubr.msk.f32.mxu0 %vm15480_vm0, %v15798_v47  ;;  %v3998_v47 = vmul.f32 %v3966_v13, %v15808_v29 }
 0x245   : > { %9994 = vmatmul.mubr.msk.f32.gmra.mrb[24].mxu0 %vm15480_vm0, %v15799_v51  ;;  %v15809_v51 = vld [vmem:[#allocation62_spill] sm:$0xff] }
 0x246   : > { %9996 = vmatprep.mubr.msk.f32.mxu0 %vm15480_vm0, %v15800_v28  ;;  %v3999_v28 = vmul.f32 %v3967_v24, %v15809_v51  ;;  %v3972_v24 = vld [vmem:[%s11758_s21 + $0x71] sm:$0xff] }
 0x249   : > { %9997 = vmatmul.mubr.msk.f32.gmra.mrb[26].mxu0 %vm15480_vm0, %v15801_v56  ;;  %v3968_v56 = vld [vmem:[%s11758_s21 + $0x51] sm:$0xff] }
 0x24a   : > { %9999 = vmatprep.mubr.msk.f32.mxu0 %vm15480_vm0, %v15802_v61  ;;  %v3969_v61 = vld [vmem:[%s11758_s21 + $0x59] sm:$0xff] }
 0x24d   : > { %10000 = vmatmul.mubr.msk.f32.gmra.mrb[28].mxu0 %vm15480_vm0, %v15803_v62 }
 0x24e   : > { %10002 = vmatprep.mubr.msk.f32.mxu0 %vm15480_vm0, %v3606_v19  ;;  %v15810_v19 = vld [vmem:[#allocation61_spill] sm:$0xff] }
 0x24f   : > { %v4000_v62 = vmul.f32 %v3968_v56, %v15810_v19 }
 0x251   : > { %10003 = vmatmul.mubr.msk.f32.gmra.mrb[30].mxu0 %vm15480_vm0, %v3607_v10  ;;  %v4001_v10 = vmul.f32 %v3969_v61, %v15811_v39  ;;  %v15815_v61 = vld [vmem:[#allocation73_spill] sm:$0xff] }
 0x252   : > { %10007 = vmatprep.mubr.msk.f32.mxu0 %vm15480_vm0, %v3995_v16  ;;  %v3970_v16 = vld [vmem:[%s11758_s21 + $0x61] sm:$0xff] }
 0x253   : > { %v3974_v39 = vld [vmem:[%s11758_s21 + $0x81] sm:$0xff] }
 0x255   : > { %10008 = vmatmul.mubr.msk.f32.vlgmr.msra.gmra.mrb[0].mxu0 %vm15480_vm0, %v3996_v7  ;;  %v4002_v7 = vmul.f32 %v3970_v16, %v15812_v57  ;;  %v15816_v16 = vld [vmem:[#allocation72_spill] sm:$0xff] }
 0x256   : > { %10010 = vmatprep.mubr.msk.f32.mxu0 %vm15480_vm0, %v3997_v63  ;;  %v15813_v63 = vld [vmem:[#allocation69_spill] sm:$0xff]  ;;  %v3976_v57 = vld [vmem:[%s11758_s21 + $0x91] sm:$0xff] }
 0x257   : > { %v4003_v13 = vmul.f32 %v3971_v30, %v15813_v63  ;;  %v4006_v30 = vmul.f32 %v3974_v39, %v15816_v16  ;;  %v15817_v63 = vld [vmem:[#allocation77_spill] sm:$0xff]  ;;  %v15820_v39 = vld [vmem:[#allocation80_spill] sm:$0xff] }
 0x258   : > { %v3980_v16 = vld [vmem:[%s11758_s21 + $0xb1] sm:$0xff] }
 0x259   : > { %10011 = vmatmul.mubr.msk.f32.gmra.mrb[2].mxu0 %vm15480_vm0, %v3998_v47  ;;  %v3973_v47 = vld [vmem:[%s11758_s21 + $0x79] sm:$0xff] }
 0x25a   : > { %10013 = vmatprep.mubr.msk.f32.mxu0 %vm15480_vm0, %v3999_v28  ;;  %v15814_v28 = vld [vmem:[#allocation68_spill] sm:$0xff] }
 0x25b   : > { %v4004_v56 = vmul.f32 %v3972_v24, %v15814_v28  ;;  %v15818_v24 = vld [vmem:[#allocation76_spill] sm:$0xff]  ;;  %v3978_v28 = vld [vmem:[%s11758_s21 + $0xa1] sm:$0xff] }
 0x25d   : > { %10014 = vmatmul.mubr.msk.f32.gmra.mrb[4].mxu0 %vm15480_vm0, %v4000_v62  ;;  %v4005_v62 = vmul.f32 %v3973_v47, %v15815_v61  ;;  %v4008_v47 = vmul.f32 %v3976_v57, %v15818_v24  ;;  %v15819_v61 = vld [vmem:[#allocation81_spill] sm:$0xff] }
 0x25e   : > { %10016 = vmatprep.mubr.msk.f32.mxu0 %vm15480_vm0, %v4001_v10  ;;  %v3975_v10 = vld [vmem:[%s11758_s21 + $0x89] sm:$0xff]  ;;  %v15822_v57 = vld [vmem:[#allocation85_spill] sm:$0xff] }
 0x261   : > { %10017 = vmatmul.mubr.msk.f32.gmra.mrb[6].mxu0 %vm15480_vm0, %v4002_v7  ;;  %v4007_v7 = vmul.f32 %v3975_v10, %v15817_v63  ;;  %v4010_v10 = vmul.f32 %v3978_v28, %v15820_v39  ;;  %v15821_v63 = vld [vmem:[#allocation86_spill] sm:$0xff]  ;;  %v15823_v28 = vld [vmem:[#allocation91_spill] sm:$0xff] }
 0x262   : > { %10019 = vmatprep.mubr.msk.f32.mxu0 %vm15480_vm0, %v4003_v13  ;;  %v3977_v13 = vld [vmem:[%s11758_s21 + $0x99] sm:$0xff]  ;;  %v3984_v39 = vld [vmem:[%s11758_s21 + $0xd1] sm:$0xff] }
 0x265   : > { %10020 = vmatmul.mubr.msk.f32.gmra.mrb[8].mxu0 %vm15480_vm0, %v4004_v56  ;;  %v4009_v56 = vmul.f32 %v3977_v13, %v15819_v61  ;;  %v4012_v13 = vmul.f32 %v3980_v16, %v15822_v57  ;;  %v3982_v61 = vld [vmem:[%s11758_s21 + $0xc1] sm:$0xff] }
 0x266   : > { %10022 = vmatprep.mubr.msk.f32.mxu0 %vm15480_vm0, %v4005_v62  ;;  %v3979_v62 = vld [vmem:[%s11758_s21 + $0xa9] sm:$0xff]  ;;  %v15825_v16 = vld [vmem:[#allocation97_spill] sm:$0xff] }
 0x267   : > { %v3986_v57 = vld [vmem:[%s11758_s21 + $0xe1] sm:$0xff] }
 0x269   : > { %10023 = vmatmul.mubr.msk.f32.gmra.mrb[10].mxu0 %vm15480_vm0, %v4006_v30  ;;  %v4011_v30 = vmul.f32 %v3979_v62, %v15821_v63  ;;  %v4014_v62 = vmul.f32 %v3982_v61, %v15823_v28  ;;  %v15824_v63 = vld [vmem:[#allocation98_spill] sm:$0xff]  ;;  %v4018_v61 = vmul.f32 %v3986_v57, %v15757_v36 }
 0x26a   : > { %10025 = vmatprep.mubr.msk.f32.mxu0 %vm15480_vm0, %v4007_v7  ;;  %v3981_v7 = vld [vmem:[%s11758_s21 + $0xb9] sm:$0xff] }
 0x26d   : > { %10026 = vmatmul.mubr.msk.f32.gmra.mrb[12].mxu0 %vm15480_vm0, %v4008_v47  ;;  %v4013_v47 = vmul.f32 %v3981_v7, %v15747_v40  ;;  %v4016_v7 = vmul.f32 %v3984_v39, %v15825_v16  ;;  %v15826_v40 = vld [vmem:[#allocation104_spill] sm:$0xff] }
 0x26e   : > { %10028 = vmatprep.mubr.msk.f32.mxu0 %vm15480_vm0, %v4009_v56  ;;  %v3983_v56 = vld [vmem:[%s11758_s21 + $0xc9] sm:$0xff] }
 0x271   : > { %10029 = vmatmul.mubr.msk.f32.gmra.mrb[14].mxu0 %vm15480_vm0, %v4010_v10  ;;  %v4015_v10 = vmul.f32 %v3983_v56, %v15824_v63 }
 0x272   : > { %10031 = vmatprep.mubr.msk.f32.mxu0 %vm15480_vm0, %v4011_v30  ;;  %v3985_v30 = vld [vmem:[%s11758_s21 + $0xd9] sm:$0xff] }
 0x275   : > { %10032 = vmatmul.mubr.msk.f32.gmra.mrb[16].mxu0 %vm15480_vm0, %v4012_v13  ;;  %v4017_v13 = vmul.f32 %v3985_v30, %v15826_v40 }
 0x276   : > { %10034 = vmatprep.mubr.msk.f32.mxu0 %vm15480_vm0, %v4013_v47  ;;  %v3987_v47 = vld [vmem:[%s11758_s21 + $0xe9] sm:$0xff] }
 0x277   : > { %v4019_v56 = vmul.f32 %v3987_v47, %v15759_v48  ;;  %v3993_v47 = vld [vmem:[%s11758_s21 + $0x119] sm:$0xff] }
 0x279   : > { %10035 = vmatmul.mubr.msk.f32.gmra.mrb[18].mxu0 %vm15480_vm0, %v4014_v62  ;;  %v3988_v62 = vld [vmem:[%s11758_s21 + $0xf1] sm:$0xff] }
 0x27a   : > { %10037 = vmatprep.mubr.msk.f32.mxu0 %vm15480_vm0, %v4015_v10  ;;  %v3989_v10 = vld [vmem:[%s11758_s21 + $0xf9] sm:$0xff]  ;;  %v4020_v39 = vmul.f32 %v3988_v62, %v15761_v22  ;;  %v3994_v62 = vld [vmem:[%s11758_s21 + $0x121] sm:$0xff] }
 0x27b   : > { %v4021_v30 = vmul.f32 %v3989_v10, %v15763_v44  ;;  %v4026_v10 = vmul.f32 %v3994_v62, %v12598_v32 }
 0x27d   : > { %10038 = vmatmul.mubr.msk.f32.gmra.mrb[20].mxu0 %vm15480_vm0, %v4016_v7  ;;  %v3990_v7 = vld [vmem:[%s11758_s21 + $0x101] sm:$0xff] }
 0x27e   : > { %10040 = vmatprep.mubr.msk.f32.mxu0 %vm15480_vm0, %v4017_v13  ;;  %v4022_v57 = vmul.f32 %v3990_v7, %v15764_v37  ;;  %v4023_v13 = vmul.f32 %v12888_v23, %v15765_v38  ;;  %v13164_v23 = vpop.f32.mrb[0].mxu1  ;;  %v13199_v37 = vld [vmem:[%s15232_s4] ss:$0 sm:$0xff] }
 0x281   : > { %10041 = vmatmul.mubr.msk.f32.gmra.mrb[22].mxu0 %vm15480_vm0, %v4018_v61  ;;  %v4024_v61 = vmul.f32 %v12895_v18, %v15766_v27 }
 0x282   : > { %10043 = vmatprep.mubr.msk.f32.mxu0 %vm15480_vm0, %v4019_v56  ;;  %v4025_v56 = vmul.f32 %v3993_v47, %v15767_v0 }
 0x285   : > { %10044 = vmatmul.mubr.msk.f32.gmra.mrb[24].mxu0 %vm15480_vm0, %v4020_v39  ;;  %v13166_v39 = vpop.f32.mrb[1].mxu1 }
 0x286   : > { %10046 = vmatprep.mubr.msk.f32.mxu0 %vm15480_vm0, %v4021_v30  ;;  %v13168_v30 = vpop.f32.mrb[2].mxu1 }
 0x287   : > { %v13170_v7 = vpop.f32.mrb[3].mxu1 }
 0x288   : > { %v13172_v18 = vpop.f32.mrb[4].mxu1 }
 0x289   : > { %10047 = vmatmul.mubr.msk.f32.gmra.mrb[26].mxu0 %vm15480_vm0, %v4022_v57  ;;  %v13174_v57 = vpop.f32.mrb[5].mxu1 }
 0x28a   : > { %10049 = vmatprep.mubr.msk.f32.mxu0 %vm15480_vm0, %v4023_v13  ;;  %v13176_v13 = vpop.f32.mrb[6].mxu1 }
 0x28b   : > { %v13178_v47 = vpop.f32.mrb[7].mxu1 }
 0x28d   : > { %10050 = vmatmul.mubr.msk.f32.gmra.mrb[28].mxu0 %vm15480_vm0, %v4024_v61  ;;  %v13180_v61 = vpop.f32.mrb[8].mxu1 }
 0x28e   : > { %10052 = vmatprep.mubr.msk.f32.mxu0 %vm15480_vm0, %v4025_v56  ;;  %v13182_v56 = vpop.f32.mrb[9].mxu1 }
 0x28f   : > { %v13184_v62 = vpop.f32.mrb[10].mxu1 }
 0x291   : > { %10053 = vmatmul.mubr.msk.f32.gmra.mrb[30].mxu0 %vm15480_vm0, %v4026_v10  ;;  %v13186_v10 = vpop.f32.mrb[11].mxu1 }
 0x292   : > { %v13188_v32 = vpop.f32.mrb[12].mxu1 }
 0x293   : > { %v13190_v0 = vpop.f32.mrb[13].mxu1 }
 0x294   : > { %v13192_v27 = vpop.f32.mrb[14].mxu1 }
 0x295   : > { %v13194_v38 = vpop.f32.mrb[15].mxu1 }
 0x328   : > { %v10009_v44 = vpop.f32.mrb[0].mxu0 }
 0x329   : > { %v4191_v22 = vpop.f32.mrb[1].mxu0  ;;  %v13202_v48 = vadd.f32 %v10009_v44, %v13199_v37 }
 0x32a   : > { %v13205_v36 = vadd.f32 %v13199_v37, %v4191_v22 }
 0x32c   : > { %v10012_v40 = vpop.f32.mrb[2].mxu0  ;;  %v4421_v63 = vadd.f32 %v13202_v48, %v13205_v36 }
 0x32d   : > { %v4201_v16 = vpop.f32.mrb[3].mxu0  ;;  %v13213_v24 = vadd.f32 %v10012_v40, %v13199_v37 }
 0x32e   : > { %v13210_v28 = vadd.f32 %v13199_v37, %v4201_v16 }
 0x330   : > { %v4422_v19 = vadd.f32 %v4421_v63, %v13210_v28  ;;  %v10015_v51 = vpop.f32.mrb[4].mxu0 }
 0x331   : > { %v4211_v29 = vpop.f32.mrb[5].mxu0  ;;  %v13221_v45 = vadd.f32 %v10015_v51, %v13199_v37 }
 0x332   : > { %v13217_v44 = vadd.f32 %v13199_v37, %v4211_v29  ;;  %v4423_v22 = vadd.f32 %v4422_v19, %v13213_v24 }
 0x334   : > { %v4424_v35 = vadd.f32 %v4423_v22, %v13217_v44  ;;  %v10018_v11 = vpop.f32.mrb[6].mxu0 }
 0x335   : > { %v4221_v16 = vpop.f32.mrb[7].mxu0  ;;  %v13229_v63 = vadd.f32 %v10018_v11, %v13199_v37 }
 0x336   : > { %v13225_v12 = vadd.f32 %v13199_v37, %v4221_v16  ;;  %v4425_v40 = vadd.f32 %v4424_v35, %v13221_v45 }
 0x338   : > { %v4426_v29 = vadd.f32 %v4425_v40, %v13225_v12  ;;  %v10021_v53 = vpop.f32.mrb[8].mxu0 }
 0x339   : > { %v4231_v17 = vpop.f32.mrb[9].mxu0  ;;  %v13237_v22 = vadd.f32 %v10021_v53, %v13199_v37 }
 0x33a   : > { %v13233_v19 = vadd.f32 %v13199_v37, %v4231_v17  ;;  %v4427_v51 = vadd.f32 %v4426_v29, %v13229_v63 }
 0x33c   : > { %v4428_v16 = vadd.f32 %v4427_v51, %v13233_v19  ;;  %v10024_v5 = vpop.f32.mrb[10].mxu0 }
 0x33d   : > { %v4241_v4 = vpop.f32.mrb[11].mxu0  ;;  %v13245_v40 = vadd.f32 %v10024_v5, %v13199_v37 }
 0x33e   : > { %v13241_v35 = vadd.f32 %v13199_v37, %v4241_v4  ;;  %v4429_v11 = vadd.f32 %v4428_v16, %v13237_v22 }
 0x340   : > { %v4430_v17 = vadd.f32 %v4429_v11, %v13241_v35  ;;  %v10027_v33 = vpop.f32.mrb[12].mxu0 }
 0x341   : > { %v4251_v3 = vpop.f32.mrb[13].mxu0  ;;  %v13253_v51 = vadd.f32 %v10027_v33, %v13199_v37 }
 0x342   : > { %v13249_v29 = vadd.f32 %v13199_v37, %v4251_v3  ;;  %v4431_v53 = vadd.f32 %v4430_v17, %v13245_v40 }
 0x344   : > { %v4432_v4 = vadd.f32 %v4431_v53, %v13249_v29  ;;  %v10030_v41 = vpop.f32.mrb[14].mxu0 }
 0x345   : > { %v4261_v21 = vpop.f32.mrb[15].mxu0  ;;  %v13263_v17 = vadd.f32 %v10030_v41, %v13199_v37 }
 0x346   : > { %v13257_v16 = vadd.f32 %v13199_v37, %v4261_v21  ;;  %v4433_v5 = vadd.f32 %v4432_v4, %v13253_v51 }
 0x347   : > { %15827 = vst [vmem:[#allocation5_spill] sm:$0xff] %v13263_v17 }
 0x348   : > { %v4434_v11 = vadd.f32 %v4433_v5, %v13257_v16  ;;  %v10033_v58 = vpop.f32.mrb[16].mxu0 }
 0x349   : > { %v11115_v3 = vadd.f32 %v10033_v58, %v13164_v23  ;;  %v4271_v20 = vpop.f32.mrb[17].mxu0 }
 0x34a   : > { %v11116_v33 = vadd.f32 %v4271_v20, %v13166_v39  ;;  %v4435_v53 = vadd.f32 %v4434_v11, %v13263_v17 }
 0x34b   : > { %v13272_v5 = vadd.f32 %v11115_v3, %v13199_v37 }
 0x34c   : > { %v13268_v6 = vadd.f32 %v11116_v33, %v13199_v37  ;;  %v10036_v21 = vpop.f32.mrb[18].mxu0 }
 0x34d   : > { %v11117_v46 = vadd.f32 %v10036_v21, %v13168_v30  ;;  %v4281_v4 = vpop.f32.mrb[19].mxu0  ;;  %15829 = vst [vmem:[#allocation7_spill] sm:$0xff] %v13272_v5 }
 0x34e   : > { %15828 = vst [vmem:[#allocation6_spill] sm:$0xff] %v13268_v6  ;;  %v4436_v58 = vadd.f32 %v4435_v53, %v13268_v6  ;;  %v11118_v23 = vadd.f32 %v4281_v4, %v13170_v7 }
 0x34f   : > { %v13282_v52 = vadd.f32 %v11117_v46, %v13199_v37 }
 0x350   : > { %v13277_v41 = vadd.f32 %v11118_v23, %v13199_v37  ;;  %v4437_v20 = vadd.f32 %v4436_v58, %v13272_v5  ;;  %v10039_v39 = vpop.f32.mrb[20].mxu0 }
 0x351   : > { %v11119_v11 = vadd.f32 %v10039_v39, %v13172_v18  ;;  %v4291_v33 = vpop.f32.mrb[21].mxu0  ;;  %15831 = vst [vmem:[#allocation9_spill] sm:$0xff] %v13282_v52 }
 0x352   : > { %15830 = vst [vmem:[#allocation8_spill] sm:$0xff] %v13277_v41  ;;  %v4438_v30 = vadd.f32 %v4437_v20, %v13277_v41  ;;  %v11120_v3 = vadd.f32 %v4291_v33, %v13174_v57 }
 0x353   : > { %v13292_v23 = vadd.f32 %v11119_v11, %v13199_v37 }
 0x354   : > { %v13287_v53 = vadd.f32 %v11120_v3, %v13199_v37  ;;  %v4439_v7 = vadd.f32 %v4438_v30, %v13282_v52  ;;  %v10042_v21 = vpop.f32.mrb[22].mxu0 }
 0x355   : > { %v11121_v4 = vadd.f32 %v10042_v21, %v13176_v13  ;;  %v4301_v58 = vpop.f32.mrb[23].mxu0  ;;  %15833 = vst [vmem:[#allocation11_spill] sm:$0xff] %v13292_v23 }
 0x356   : > { %15832 = vst [vmem:[#allocation10_spill] sm:$0xff] %v13287_v53  ;;  %v4440_v18 = vadd.f32 %v4439_v7, %v13287_v53  ;;  %v11122_v46 = vadd.f32 %v4301_v58, %v13178_v47 }
 0x357   : > { %v13302_v3 = vadd.f32 %v11121_v4, %v13199_v37 }
 0x358   : > { %v13297_v20 = vadd.f32 %v11122_v46, %v13199_v37  ;;  %v4441_v57 = vadd.f32 %v4440_v18, %v13292_v23  ;;  %v10045_v39 = vpop.f32.mrb[24].mxu0 }
 0x359   : > { %v11123_v33 = vadd.f32 %v10045_v39, %v13180_v61  ;;  %v4311_v30 = vpop.f32.mrb[25].mxu0  ;;  %15835 = vst [vmem:[#allocation13_spill] sm:$0xff] %v13302_v3 }
 0x35a   : > { %15834 = vst [vmem:[#allocation12_spill] sm:$0xff] %v13297_v20  ;;  %v4442_v13 = vadd.f32 %v4441_v57, %v13297_v20  ;;  %v11124_v11 = vadd.f32 %v4311_v30, %v13182_v56 }
 0x35b   : > { %v13312_v46 = vadd.f32 %v11123_v33, %v13199_v37 }
 0x35c   : > { %v13307_v7 = vadd.f32 %v11124_v11, %v13199_v37  ;;  %v4443_v47 = vadd.f32 %v4442_v13, %v13302_v3  ;;  %v10048_v21 = vpop.f32.mrb[26].mxu0 }
 0x35d   : > { %v11125_v58 = vadd.f32 %v10048_v21, %v13184_v62  ;;  %v4321_v18 = vpop.f32.mrb[27].mxu0  ;;  %15837 = vst [vmem:[#allocation15_spill] sm:$0xff] %v13312_v46 }
 0x35e   : > { %15836 = vst [vmem:[#allocation14_spill] sm:$0xff] %v13307_v7  ;;  %v4444_v61 = vadd.f32 %v4443_v47, %v13307_v7  ;;  %v11126_v4 = vadd.f32 %v4321_v18, %v13186_v10 }
 0x35f   : > { %v13322_v11 = vadd.f32 %v11125_v58, %v13199_v37 }
 0x360   : > { %v13317_v57 = vadd.f32 %v11126_v4, %v13199_v37  ;;  %v4445_v56 = vadd.f32 %v4444_v61, %v13312_v46  ;;  %v10051_v39 = vpop.f32.mrb[28].mxu0 }
 0x361   : > { %v11127_v30 = vadd.f32 %v10051_v39, %v13188_v32  ;;  %v4331_v13 = vpop.f32.mrb[29].mxu0  ;;  %15839 = vst [vmem:[#allocation59_spill] sm:$0xff] %v13322_v11 }
 0x362   : > { %15838 = vst [vmem:[#allocation16_spill] sm:$0xff] %v13317_v57  ;;  %v4446_v62 = vadd.f32 %v4445_v56, %v13317_v57  ;;  %v11128_v33 = vadd.f32 %v4331_v13, %v13190_v0 }
 0x363   : > { %v13332_v4 = vadd.f32 %v11127_v30, %v13199_v37 }
 0x364   : > { %v13327_v47 = vadd.f32 %v11128_v33, %v13199_v37  ;;  %v4447_v10 = vadd.f32 %v4446_v62, %v13322_v11  ;;  %v10054_v21 = vpop.f32.mrb[30].mxu0 }
 0x365   : > { %v11129_v18 = vadd.f32 %v10054_v21, %v13192_v27  ;;  %v4341_v61 = vpop.f32.mrb[31].mxu0  ;;  %15841 = vst [vmem:[#allocation63_spill] sm:$0xff] %v13332_v4 }
 0x366   : > { %15840 = vst [vmem:[#allocation60_spill] sm:$0xff] %v13327_v47  ;;  %v4448_v32 = vadd.f32 %v4447_v10, %v13327_v47  ;;  %v11130_v58 = vadd.f32 %v4341_v61, %v13194_v38  ;;  %v8678_v38 = vld [vmem:[%s15235_s7 + $0x80] sm:$0xff]  ;;  %v8679_v10 = vld [vmem:[%s15235_s7 + $0x88] sm:$0xff] }
 0x367   : > { %v13341_v39 = vadd.f32 %v11129_v18, %v13199_v37  ;;  %v10825_v61 = vpack.c.bf16 %v8679_v10, %v8678_v38 }
 0x368   : > { %v13337_v56 = vadd.f32 %v11130_v58, %v13199_v37  ;;  %v4449_v0 = vadd.f32 %v4448_v32, %v13332_v4 }
 0x369   : > { %15842 = vst [vmem:[#allocation67_spill] sm:$0xff] %v13341_v39  ;;  %10826 = vmatprep.subr.bf16.mxu1 %v10825_v61 }
 0x36a   : > { %v4450_v13 = vadd.f32 %v4449_v0, %v13337_v56  ;;  %10828 = vmatpush3.bf16.msra.mxu1 %v10825_v61 }
 0x36c   : > { %v4451_v27 = vadd.f32 %v4450_v13, %v13341_v39 }
 0x36e   : > { %v4452_v62 = vrot.slane %v4451_v27, 4 }
 0x370   : > { %v4453_v33 = vadd.f32 %v4452_v62, %v4451_v27  ;;  %v8680_v27 = vld [vmem:[%s15235_s7 + $0x90] sm:$0xff]  ;;  %v8681_v62 = vld [vmem:[%s15235_s7 + $0x98] sm:$0xff] }
 0x372   : > { %v4454_v30 = vrot.slane %v4453_v33, 2 }
 0x374   : > { %v4455_v21 = vadd.f32 %v4454_v30, %v4453_v33  ;;  %v8682_v33 = vld [vmem:[%s15235_s7 + $0xa0] sm:$0xff]  ;;  %v8683_v30 = vld [vmem:[%s15235_s7 + $0xa8] sm:$0xff] }
 0x375   : > { %v10833_v26 = vpack.c.bf16 %v8683_v30, %v8682_v33  ;;  %v8686_v33 = vld [vmem:[%s15235_s7 + $0xc0] sm:$0xff]  ;;  %v8687_v30 = vld [vmem:[%s15235_s7 + $0xc8] sm:$0xff] }
 0x376   : > { %v4456_v25 = vrot.slane %v4455_v21, 1 }
 0x378   : > { %v4457_v37 = vadd.f32 %v4456_v25, %v4455_v21 }
 0x37a   : > { %v13351_v18 = vmul.f32 0.00390625, %v4457_v37  ;;  %v10829_v37 = vpack.c.bf16 %v8681_v62, %v8680_v27  ;;  %v10837_v62 = vpack.c.bf16 %v8685_v15, %v8684_v14  ;;  %v10841_v15 = vpack.c.bf16 %v8687_v30, %v8686_v33 }
 0x37c   : > { %v13355_v32 = vsub.f32 %v13205_v36, %v13351_v18  ;;  %v13359_v58 = vsub.f32 %v13202_v48, %v13351_v18  ;;  %v13363_v0 = vsub.f32 %v13210_v28, %v13351_v18  ;;  %v13383_v21 = vsub.f32 %v13213_v24, %v13351_v18  ;;  %10830 = vmatprep.subr.bf16.mxu1 %v10829_v37 }
 0x37d   : > { %v13387_v38 = vsub.f32 %v13217_v44, %v13351_v18  ;;  %v13399_v8 = vsub.f32 %v13221_v45, %v13351_v18  ;;  %10832 = vmatpush3.bf16.msra.mxu1 %v10829_v37  ;;  %v13441_v33 = vsub.f32 %v13241_v35, %v13351_v18 }
 0x37e   : > { %v4492_v13 = vmul.f32 %v13355_v32, %v13355_v32  ;;  %v4493_v25 = vmul.f32 %v13359_v58, %v13359_v58  ;;  %v4494_v10 = vmul.f32 %v13363_v0, %v13363_v0  ;;  %v4495_v9 = vmul.f32 %v13383_v21, %v13383_v21  ;;  %10834 = vmatprep.subr.bf16.mxu1 %v10833_v26 }
 0x380   : > { %v4524_v61 = vadd.f32 %v4493_v25, %v4492_v13  ;;  %v13405_v13 = vsub.f32 %v13225_v12, %v13351_v18  ;;  %v4496_v25 = vmul.f32 %v13387_v38, %v13387_v38 }
 0x381   : > { %10836 = vmatpush3.bf16.msra.mxu1 %v10833_v26  ;;  %v13435_v26 = vsub.f32 %v13237_v22, %v13351_v18 }
 0x382   : > { %v4525_v1 = vadd.f32 %v4524_v61, %v4494_v10  ;;  %v13417_v10 = vsub.f32 %v13229_v63, %v13351_v18  ;;  %v4497_v61 = vmul.f32 %v13399_v8, %v13399_v8  ;;  %10838 = vmatprep.subr.bf16.mxu1 %v10837_v62 }
 0x384   : > { %v4526_v27 = vadd.f32 %v4525_v1, %v4495_v9  ;;  %v13423_v1 = vsub.f32 %v13233_v19, %v13351_v18  ;;  %v4498_v9 = vmul.f32 %v13405_v13, %v13405_v13 }
 0x385   : > { %10840 = vmatpush3.bf16.msra.mxu1 %v10837_v62  ;;  %v13453_v62 = vsub.f32 %v13245_v40, %v13351_v18 }
 0x386   : > { %v4527_v37 = vadd.f32 %v4526_v27, %v4496_v25  ;;  %v4499_v25 = vmul.f32 %v13417_v10, %v13417_v10  ;;  %v4500_v30 = vmul.f32 %v13423_v1, %v13423_v1  ;;  %10842 = vmatprep.subr.bf16.mxu1 %v10841_v15 }
 0x388   : > { %v4528_v14 = vadd.f32 %v4527_v37, %v4497_v61  ;;  %v10845_v37 = vpack.c.bf16 %v8689_v59, %v8688_v2  ;;  %v13459_v59 = vsub.f32 %v13249_v29, %v13351_v18  ;;  %v4502_v2 = vmul.f32 %v13441_v33, %v13441_v33 }
 0x389   : > { %10844 = vmatpush3.bf16.msra.mxu1 %v10841_v15  ;;  %v13471_v15 = vsub.f32 %v13253_v51, %v13351_v18 }
 0x38a   : > { %v4529_v27 = vadd.f32 %v4528_v14, %v4498_v9  ;;  %v4501_v9 = vmul.f32 %v13435_v26, %v13435_v26  ;;  %10846 = vmatprep.subr.bf16.mxu1 %v10845_v37 }
 0x38c   : > { %v4530_v61 = vadd.f32 %v4529_v27, %v4499_v25  ;;  %v10849_v27 = vpack.c.bf16 %v8691_v54, %v8690_v60  ;;  %v13477_v54 = vsub.f32 %v13257_v16, %v13351_v18  ;;  %v4504_v60 = vmul.f32 %v13459_v59, %v13459_v59 }
 0x38d   : > { %10848 = vmatpush3.bf16.msra.mxu1 %v10845_v37  ;;  %v13489_v37 = vsub.f32 %v13263_v17, %v13351_v18 }
 0x38e   : > { %v4531_v14 = vadd.f32 %v4530_v61, %v4500_v30  ;;  %v4503_v30 = vmul.f32 %v13453_v62, %v13453_v62  ;;  %10850 = vmatprep.subr.bf16.mxu1 %v10849_v27 }
 0x390   : > { %v4532_v25 = vadd.f32 %v4531_v14, %v4501_v9  ;;  %v10853_v14 = vpack.c.bf16 %v8693_v49, %v8692_v55  ;;  %v13495_v49 = vsub.f32 %v13268_v6, %v13351_v18  ;;  %v4506_v55 = vmul.f32 %v13477_v54, %v13477_v54 }
 0x391   : > { %10852 = vmatpush3.bf16.msra.mxu1 %v10849_v27  ;;  %v13507_v27 = vsub.f32 %v13272_v5, %v13351_v18  ;;  %v4944_v5 = vld [vmem:[%s15235_s7 + $0x28] sm:$0xff] }
 0x392   : > { %v4533_v61 = vadd.f32 %v4532_v25, %v4502_v2  ;;  %v4505_v2 = vmul.f32 %v13471_v15, %v13471_v15  ;;  %10854 = vmatprep.subr.bf16.mxu1 %v10853_v14 }
 0x394   : > { %v4534_v9 = vadd.f32 %v4533_v61, %v4503_v30  ;;  %v10857_v61 = vpack.c.bf16 %v4940_v42, %v4939_v50  ;;  %v13513_v42 = vsub.f32 %v13277_v41, %v13351_v18  ;;  %v4508_v50 = vmul.f32 %v13495_v49, %v13495_v49  ;;  %v11642_v41 = vld [vmem:[#allocation2 + $0x8] sm:$0xff] }
 0x395   : > { %10856 = vmatpush3.bf16.msra.mxu1 %v10853_v14  ;;  %v13525_v14 = vsub.f32 %v13282_v52, %v13351_v18  ;;  %v4945_v52 = vld [vmem:[%s15235_s7 + $0x30] sm:$0xff] }
 0x396   : > { %v4535_v25 = vadd.f32 %v4534_v9, %v4504_v60  ;;  %v4507_v60 = vmul.f32 %v13489_v37, %v13489_v37  ;;  %10858 = vmatprep.subr.bf16.mxu1 %v10857_v61 }
 0x398   : > { %v4536_v30 = vadd.f32 %v4535_v25, %v4505_v2  ;;  %v10861_v25 = vpack.c.bf16 %v4942_v43, %v4941_v31  ;;  %10088 = vmatmul.mubr.f32.vlgmr.msra.gmra.mrb[16].mxu1 %v11642_v41  ;;  %v13531_v31 = vsub.f32 %v13287_v53, %v13351_v18  ;;  %v4510_v43 = vmul.f32 %v13513_v42, %v13513_v42  ;;  %v4948_v53 = vld [vmem:[%s15235_s7 + $0x48] sm:$0xff] }
 0x399   : > { %10860 = vmatpush3.bf16.msra.mxu1 %v10857_v61  ;;  %v13543_v41 = vsub.f32 %v13292_v23, %v13351_v18  ;;  %v4511_v61 = vmul.f32 %v13525_v14, %v13525_v14  ;;  %v4947_v23 = vld [vmem:[%s15235_s7 + $0x40] sm:$0xff] }
 0x39a   : > { %v4537_v9 = vadd.f32 %v4536_v30, %v4506_v55  ;;  %v4509_v55 = vmul.f32 %v13507_v27, %v13507_v27  ;;  %10862 = vmatprep.subr.bf16.mxu1 %v10861_v25 }
 0x39c   : > { %v4538_v2 = vadd.f32 %v4537_v9, %v4507_v60  ;;  %v10865_v9 = vpack.c.bf16 %v4944_v5, %v4943_v34  ;;  %v13549_v34 = vsub.f32 %v13297_v20, %v13351_v18  ;;  %v4512_v5 = vmul.f32 %v13531_v31, %v13531_v31  ;;  %v4950_v20 = vld [vmem:[%s15235_s7 + $0x58] sm:$0xff] }
 0x39d   : > { %10864 = vmatpush3.bf16.msra.mxu1 %v10861_v25  ;;  %v13561_v25 = vsub.f32 %v13302_v3, %v13351_v18  ;;  %v4949_v3 = vld [vmem:[%s15235_s7 + $0x50] sm:$0xff] }
 0x39e   : > { %v4539_v30 = vadd.f32 %v4538_v2, %v4508_v50  ;;  %v4946_v50 = vld [vmem:[%s15235_s7 + $0x38] sm:$0xff]  ;;  %10866 = vmatprep.subr.bf16.mxu1 %v10865_v9 }
 0x3a0   : > { %v4540_v60 = vadd.f32 %v4539_v30, %v4509_v55  ;;  %v10869_v30 = vpack.c.bf16 %v4946_v50, %v4945_v52  ;;  %v13567_v52 = vsub.f32 %v13307_v7, %v13351_v18  ;;  %v4514_v50 = vmul.f32 %v13549_v34, %v13549_v34 }
 0x3a1   : > { %10868 = vmatpush3.bf16.msra.mxu1 %v10865_v9  ;;  %v13579_v9 = vsub.f32 %v13312_v46, %v13351_v18  ;;  %v13591_v7 = vsub.f32 %v13322_v11, %v13351_v18 }
 0x3a2   : > { %v4541_v2 = vadd.f32 %v4540_v60, %v4510_v43  ;;  %v4513_v43 = vmul.f32 %v13543_v41, %v13543_v41  ;;  %10870 = vmatprep.subr.bf16.mxu1 %v10869_v30 }
 0x3a3   : > { %v4517_v46 = vmul.f32 %v13579_v9, %v13579_v9 }
 0x3a4   : > { %v4542_v55 = vadd.f32 %v4541_v2, %v4511_v61  ;;  %v10873_v2 = vpack.c.bf16 %v4948_v53, %v4947_v23  ;;  %v13585_v53 = vsub.f32 %v13317_v57, %v13351_v18  ;;  %v4516_v23 = vmul.f32 %v13567_v52, %v13567_v52  ;;  %v13643_v57 = vld [vmem:[%s15233_s5] ss:$0 sm:$0xff] }
 0x3a5   : > { %10872 = vmatpush3.bf16.msra.mxu1 %v10869_v30  ;;  %v4951_v30 = vld [vmem:[%s15235_s7 + $0x60] sm:$0xff] }
 0x3a6   : > { %v4543_v60 = vadd.f32 %v4542_v55, %v4512_v5  ;;  %v4515_v5 = vmul.f32 %v13561_v25, %v13561_v25  ;;  %10874 = vmatprep.subr.bf16.mxu1 %v10873_v2 }
 0x3a8   : > { %v4544_v61 = vadd.f32 %v4543_v60, %v4513_v43  ;;  %v10877_v60 = vpack.c.bf16 %v4950_v20, %v4949_v3  ;;  %v13603_v20 = vsub.f32 %v13327_v47, %v13351_v18  ;;  %v4518_v3 = vmul.f32 %v13585_v53, %v13585_v53 }
 0x3a9   : > { %10876 = vmatpush3.bf16.msra.mxu1 %v10873_v2  ;;  %v4490_v2 = vsub.f32 %v13337_v56, %v13351_v18 }
 0x3aa   : > { %v4545_v55 = vadd.f32 %v4544_v61, %v4514_v50  ;;  %v4952_v50 = vld [vmem:[%s15235_s7 + $0x68] sm:$0xff]  ;;  %10878 = vmatprep.subr.bf16.mxu1 %v10877_v60  ;;  %v4520_v47 = vmul.f32 %v13603_v20, %v13603_v20 }
 0x3ac   : > { %v4546_v43 = vadd.f32 %v4545_v55, %v4515_v5  ;;  %v10881_v5 = vpack.c.bf16 %v4952_v50, %v4951_v30  ;;  %v13609_v55 = vsub.f32 %v13332_v4, %v13351_v18  ;;  %v4954_v50 = vld [vmem:[%s15235_s7 + $0x78] sm:$0xff]  ;;  %v8695_v4 = vld [vmem:[%s15235_s7 + $0x108] sm:$0xff] }
 0x3ad   : > { %10880 = vmatpush3.bf16.msra.mxu1 %v10877_v60  ;;  %v4953_v60 = vld [vmem:[%s15235_s7 + $0x70] sm:$0xff] }
 0x3ae   : > { %v4547_v6 = vadd.f32 %v4546_v43, %v4516_v23  ;;  %v4519_v23 = vmul.f32 %v13591_v7, %v13591_v7  ;;  %10882 = vmatprep.subr.bf16.mxu1 %v10881_v5 }
 0x3b0   : > { %v4548_v61 = vadd.f32 %v4547_v6, %v4517_v46  ;;  %v13619_v6 = vsub.f32 %v13341_v39, %v13351_v18  ;;  %v4521_v46 = vmul.f32 %v13609_v55, %v13609_v55 }
 0x3b1   : > { %10884 = vmatpush3.bf16.msra.mxu1 %v10881_v5 }
 0x3b2   : > { %v4549_v43 = vadd.f32 %v4548_v61, %v4518_v3  ;;  %v10885_v3 = vpack.c.bf16 %v4954_v50, %v4953_v60  ;;  %v4522_v61 = vmul.f32 %v4490_v2, %v4490_v2  ;;  %v4523_v18 = vmul.f32 %v13619_v6, %v13619_v6 }
 0x3b4   : > { %v4550_v11 = vadd.f32 %v4549_v43, %v4519_v23  ;;  %10886 = vmatprep.subr.bf16.mxu1 %v10885_v3 }
 0x3b5   : > { %10888 = vmatpush3.bf16.msra.mxu1 %v10885_v3 }
 0x3b6   : > { %v4551_v30 = vadd.f32 %v4550_v11, %v4520_v47  ;;  %v8694_v47 = vld [vmem:[%s15235_s7 + $0x100] sm:$0xff] }
 0x3b7   : > { %v13637_v5 = vpack.c.bf16 %v8695_v4, %v8694_v47 }
 0x3b8   : > { %v4552_v23 = vadd.f32 %v4551_v30, %v4521_v46 }
 0x3b9   : > { %10890 = vmatprep.subr.bf16.mxu1 %v13637_v5 }
 0x3ba   : > { %v4553_v43 = vadd.f32 %v4552_v23, %v4522_v61 }
 0x3bc   : > { %v4554_v39 = vadd.f32 %v4553_v43, %v4523_v18  ;;  %v4674_v18 = vlaneseq }
 0x3be   : > { %v4555_v11 = vrot.slane %v4554_v39, 4  ;;  %v13645_v17 = vand.u32 127, %v4674_v18 }
 0x3c0   : > { %v4556_v60 = vadd.f32 %v4555_v11, %v4554_v39  ;;  %v13650_v39 = vld [vmem:[%s15234_s6] ss:$0 sm:$0xff]  ;;  %vm4676_vm1 = vcmp.lt.s32.totalorder %v13645_v17, 2 }
 0x3c2   : > { %v4557_v46 = vrot.slane %v4556_v60, 2 }
 0x3c4   : > { %v4558_v30 = vadd.f32 %v4557_v46, %v4556_v60 }
 0x3c6   : > { %v4559_v50 = vrot.slane %v4558_v30, 1 }
 0x3c8   : > { %v4560_v61 = vadd.f32 %v4559_v50, %v4558_v30 }
 0x3ca   : > { %v4561_v3 = vmul.f32 0.00390625, %v4560_v61 }
 0x3cc   : > { %v4562_v23 = vadd.f32 1e-05, %v4561_v3 }
 0x3ce   : > { %11640 = vrsqrt.f32 %v4562_v23 }
 0x3d8   : > { %v11641_v43 = vpop.eup %11640 }
 0x3d9   : > { %v4594_v4 = vmul.f32 %v11641_v43, %v4490_v2  ;;  %v4564_v60 = vmul.f32 %v11641_v43, %v13355_v32  ;;  %v4565_v30 = vmul.f32 %v11641_v43, %v13359_v58  ;;  %v4566_v2 = vmul.f32 %v11641_v43, %v13363_v0 }
 0x3da   : > { %v4567_v50 = vmul.f32 %v11641_v43, %v13383_v21  ;;  %v4568_v3 = vmul.f32 %v11641_v43, %v13387_v38  ;;  %v4569_v23 = vmul.f32 %v11641_v43, %v13399_v8  ;;  %v4570_v18 = vmul.f32 %v11641_v43, %v13405_v13 }
 0x3db   : > { %v4633_v11 = vmul.f32 %v13643_v57, %v4594_v4  ;;  %v4571_v32 = vmul.f32 %v11641_v43, %v13417_v10  ;;  %v4572_v4 = vmul.f32 %v11641_v43, %v13423_v1  ;;  %v4574_v58 = vmul.f32 %v11641_v43, %v13441_v33 }
 0x3dc   : > { %v4575_v0 = vmul.f32 %v11641_v43, %v13453_v62  ;;  %v4576_v21 = vmul.f32 %v11641_v43, %v13459_v59  ;;  %v4577_v38 = vmul.f32 %v11641_v43, %v13471_v15  ;;  %v4578_v8 = vmul.f32 %v11641_v43, %v13477_v54 }
 0x3dd   : > { %v4672_v47 = vadd.f32 %v13650_v39, %v4633_v11  ;;  %v4579_v13 = vmul.f32 %v11641_v43, %v13489_v37  ;;  %v4580_v10 = vmul.f32 %v11641_v43, %v13495_v49  ;;  %v4581_v1 = vmul.f32 %v11641_v43, %v13507_v27 }
 0x3de   : > { %v4584_v33 = vmul.f32 %v11641_v43, %v13531_v31  ;;  %v4585_v62 = vmul.f32 %v11641_v43, %v13543_v41  ;;  %v4586_v59 = vmul.f32 %v11641_v43, %v13549_v34  ;;  %v4587_v15 = vmul.f32 %v11641_v43, %v13561_v25 }
 0x3df   : > { %v4707_v46 = vsel %vm4676_vm1, %v4672_v47, %v13337_v56  ;;  %v4573_v56 = vmul.f32 %v11641_v43, %v13435_v26  ;;  %v4582_v26 = vmul.f32 %v11641_v43, %v13513_v42  ;;  %v4583_v47 = vmul.f32 %v11641_v43, %v13525_v14 }
 0x3e0   : > { %vm4739_vm2 = vcmp.ge.f32.partialorder %v4707_v46, 0.0  ;;  %v4771_v61 = vmul.f32 0.2, %v4707_v46  ;;  %v4588_v54 = vmul.f32 %v11641_v43, %v13567_v52  ;;  %v4589_v37 = vmul.f32 %v11641_v43, %v13579_v9 }
 0x3e1   : > { %v4590_v49 = vmul.f32 %v11641_v43, %v13585_v53  ;;  %v4591_v27 = vmul.f32 %v11641_v43, %v13591_v7  ;;  %v4592_v42 = vmul.f32 %v11641_v43, %v13603_v20  ;;  %v4593_v14 = vmul.f32 %v11641_v43, %v13609_v55 }
 0x3e2   : > { %v4803_v11 = vsel %vm4739_vm2, %v4707_v46, %v4771_v61  ;;  %v4595_v31 = vmul.f32 %v11641_v43, %v13619_v6  ;;  %v4603_v41 = vmul.f32 %v13643_v57, %v4564_v60  ;;  %v4604_v34 = vmul.f32 %v13643_v57, %v4565_v30 }
 0x3e3   : > { %4873 = vst [vmem:[#allocation2 + $0x108] sm:$0xff] %v4803_v11  ;;  %v4605_v25 = vmul.f32 %v13643_v57, %v4566_v2  ;;  %v4606_v52 = vmul.f32 %v13643_v57, %v4567_v50  ;;  %v4607_v9 = vmul.f32 %v13643_v57, %v4568_v3  ;;  %v4608_v53 = vmul.f32 %v13643_v57, %v4569_v23 }
 0x3e4   : > { %v4609_v7 = vmul.f32 %v13643_v57, %v4570_v18  ;;  %v4610_v20 = vmul.f32 %v13643_v57, %v4571_v32  ;;  %v4611_v55 = vmul.f32 %v13643_v57, %v4572_v4  ;;  %v4612_v6 = vmul.f32 %v13643_v57, %v4573_v56 }
 0x3e5   : > { %v4613_v43 = vmul.f32 %v13643_v57, %v4574_v58  ;;  %v4614_v60 = vmul.f32 %v13643_v57, %v4575_v0  ;;  %v4615_v46 = vmul.f32 %v13643_v57, %v4576_v21  ;;  %v4616_v30 = vmul.f32 %v13643_v57, %v4577_v38 }
 0x3e6   : > { %v4617_v2 = vmul.f32 %v13643_v57, %v4578_v8  ;;  %v4618_v50 = vmul.f32 %v13643_v57, %v4579_v13  ;;  %v4619_v61 = vmul.f32 %v13643_v57, %v4580_v10  ;;  %v4620_v3 = vmul.f32 %v13643_v57, %v4581_v1 }
 0x3e7   : > { %v4621_v23 = vmul.f32 %v13643_v57, %v4582_v26  ;;  %v4622_v18 = vmul.f32 %v13643_v57, %v4583_v47  ;;  %v4623_v32 = vmul.f32 %v13643_v57, %v4584_v33  ;;  %v4624_v4 = vmul.f32 %v13643_v57, %v4585_v62 }
 0x3e8   : > { %v4625_v56 = vmul.f32 %v13643_v57, %v4586_v59  ;;  %v4626_v11 = vmul.f32 %v13643_v57, %v4587_v15  ;;  %v4627_v58 = vmul.f32 %v13643_v57, %v4588_v54  ;;  %v4628_v0 = vmul.f32 %v13643_v57, %v4589_v37 }
 0x3e9   : > { %v4629_v21 = vmul.f32 %v13643_v57, %v4590_v49  ;;  %v4630_v38 = vmul.f32 %v13643_v57, %v4591_v27  ;;  %v4631_v8 = vmul.f32 %v13643_v57, %v4592_v42  ;;  %v4632_v13 = vmul.f32 %v13643_v57, %v4593_v14 }
 0x3ea   : > { %v4634_v10 = vmul.f32 %v13643_v57, %v4595_v31  ;;  %v4642_v1 = vadd.f32 %v13650_v39, %v4603_v41  ;;  %v4643_v26 = vadd.f32 %v13650_v39, %v4604_v34  ;;  %v4644_v47 = vadd.f32 %v13650_v39, %v4605_v25 }
 0x3eb   : > { %v4645_v33 = vadd.f32 %v13650_v39, %v4606_v52  ;;  %v4646_v62 = vadd.f32 %v13650_v39, %v4607_v9  ;;  %v4647_v59 = vadd.f32 %v13650_v39, %v4608_v53  ;;  %v4648_v15 = vadd.f32 %v13650_v39, %v4609_v7 }
 0x3ec   : > { %v4649_v54 = vadd.f32 %v13650_v39, %v4610_v20  ;;  %v4650_v37 = vadd.f32 %v13650_v39, %v4611_v55  ;;  %v4651_v57 = vadd.f32 %v13650_v39, %v4612_v6  ;;  %v4652_v49 = vadd.f32 %v13650_v39, %v4613_v43 }
 0x3ed   : > { %v4653_v27 = vadd.f32 %v13650_v39, %v4614_v60  ;;  %v4654_v42 = vadd.f32 %v13650_v39, %v4615_v46  ;;  %v4655_v14 = vadd.f32 %v13650_v39, %v4616_v30  ;;  %v4656_v31 = vadd.f32 %v13650_v39, %v4617_v2 }
 0x3ee   : > { %v4657_v41 = vadd.f32 %v13650_v39, %v4618_v50  ;;  %v4658_v34 = vadd.f32 %v13650_v39, %v4619_v61  ;;  %v4659_v25 = vadd.f32 %v13650_v39, %v4620_v3  ;;  %v4660_v52 = vadd.f32 %v13650_v39, %v4621_v23 }
 0x3ef   : > { %v4661_v9 = vadd.f32 %v13650_v39, %v4622_v18  ;;  %v4662_v53 = vadd.f32 %v13650_v39, %v4623_v32  ;;  %v4663_v7 = vadd.f32 %v13650_v39, %v4624_v4  ;;  %v4664_v20 = vadd.f32 %v13650_v39, %v4625_v56  ;;  %v15844_v32 = vld [vmem:[#allocation6_spill] sm:$0xff]  ;;  %v15845_v4 = vld [vmem:[#allocation7_spill] sm:$0xff]  ;;  %v15846_v56 = vld [vmem:[#allocation8_spill] sm:$0xff] }
 0x3f0   : > { %v4665_v55 = vadd.f32 %v13650_v39, %v4626_v11  ;;  %v4666_v6 = vadd.f32 %v13650_v39, %v4627_v58  ;;  %v4667_v43 = vadd.f32 %v13650_v39, %v4628_v0  ;;  %v4668_v60 = vadd.f32 %v13650_v39, %v4629_v21  ;;  %v15847_v11 = vld [vmem:[#allocation9_spill] sm:$0xff]  ;;  %v15848_v0 = vld [vmem:[#allocation10_spill] sm:$0xff] }
 0x3f1   : > { %v4669_v46 = vadd.f32 %v13650_v39, %v4630_v38  ;;  %v4670_v30 = vadd.f32 %v13650_v39, %v4631_v8  ;;  %v4671_v2 = vadd.f32 %v13650_v39, %v4632_v13  ;;  %v4673_v50 = vadd.f32 %v13650_v39, %v4634_v10  ;;  %v15849_v38 = vld [vmem:[#allocation11_spill] sm:$0xff]  ;;  %v15850_v13 = vld [vmem:[#allocation12_spill] sm:$0xff] }
 0x3f2   : > { %v4677_v61 = vsel %vm4676_vm1, %v4642_v1, %v13205_v36  ;;  %v13757_v3 = vsel %vm4676_vm1, %v4643_v26, %v13202_v48  ;;  %v13762_v23 = vsel %vm4676_vm1, %v4644_v47, %v13210_v28  ;;  %v13767_v18 = vsel %vm4676_vm1, %v4645_v33, %v13213_v24  ;;  %v15851_v1 = vld [vmem:[#allocation13_spill] sm:$0xff]  ;;  %v15852_v47 = vld [vmem:[#allocation14_spill] sm:$0xff] }
 0x3f3   : > { %v13772_v39 = vsel %vm4676_vm1, %v4646_v62, %v13217_v44  ;;  %v13777_v36 = vsel %vm4676_vm1, %v4647_v59, %v13221_v45  ;;  %v13782_v48 = vsel %vm4676_vm1, %v4648_v15, %v13225_v12  ;;  %v13787_v24 = vsel %vm4676_vm1, %v4649_v54, %v13229_v63  ;;  %v15853_v62 = vld [vmem:[#allocation15_spill] sm:$0xff]  ;;  %v15854_v15 = vld [vmem:[#allocation16_spill] sm:$0xff] }
 0x3f4   : > { %v13792_v28 = vsel %vm4676_vm1, %v4650_v37, %v13233_v19  ;;  %v13797_v45 = vsel %vm4676_vm1, %v4651_v57, %v13237_v22  ;;  %v13802_v12 = vsel %vm4676_vm1, %v4652_v49, %v13241_v35  ;;  %v13807_v44 = vsel %vm4676_vm1, %v4653_v27, %v13245_v40  ;;  %v15843_v35 = vld [vmem:[#allocation5_spill] sm:$0xff]  ;;  %v15855_v37 = vld [vmem:[#allocation59_spill] sm:$0xff]  ;;  %v15856_v49 = vld [vmem:[#allocation60_spill] sm:$0xff] }
 0x3f5   : > { %v13812_v63 = vsel %vm4676_vm1, %v4654_v42, %v13249_v29  ;;  %v13817_v19 = vsel %vm4676_vm1, %v4655_v14, %v13253_v51  ;;  %v13822_v22 = vsel %vm4676_vm1, %v4656_v31, %v13257_v16  ;;  %v13827_v40 = vsel %vm4676_vm1, %v4657_v41, %v15843_v35  ;;  %v15857_v42 = vld [vmem:[#allocation63_spill] sm:$0xff] }
 0x3f6   : > { %v13832_v29 = vsel %vm4676_vm1, %v4658_v34, %v15844_v32  ;;  %v13837_v51 = vsel %vm4676_vm1, %v4659_v25, %v15845_v4  ;;  %v13842_v16 = vsel %vm4676_vm1, %v4660_v52, %v15846_v56  ;;  %v13847_v58 = vsel %vm4676_vm1, %v4661_v9, %v15847_v11  ;;  %v15858_v34 = vld [vmem:[#allocation67_spill] sm:$0xff] }
 0x3f7   : > { %v13852_v21 = vsel %vm4676_vm1, %v4662_v53, %v15848_v0  ;;  %v13857_v8 = vsel %vm4676_vm1, %v4663_v7, %v15849_v38  ;;  %v13862_v10 = vsel %vm4676_vm1, %v4664_v20, %v15850_v13  ;;  %v13867_v26 = vsel %vm4676_vm1, %v4665_v55, %v15851_v1 }
 0x3f8   : > { %v13872_v33 = vsel %vm4676_vm1, %v4666_v6, %v15852_v47  ;;  %v13877_v59 = vsel %vm4676_vm1, %v4667_v43, %v15853_v62  ;;  %v13882_v54 = vsel %vm4676_vm1, %v4668_v60, %v15854_v15  ;;  %v13887_v57 = vsel %vm4676_vm1, %v4669_v46, %v15855_v37 }
 0x3f9   : > { %v13892_v27 = vsel %vm4676_vm1, %v4670_v30, %v15856_v49  ;;  %v13897_v14 = vsel %vm4676_vm1, %v4671_v2, %v15857_v42  ;;  %vm4709_vm3 = vcmp.ge.f32.partialorder %v4677_v61, 0.0  ;;  %vm4710_vm4 = vcmp.ge.f32.partialorder %v13757_v3, 0.0 }
 0x3fa   : > { %vm4711_vm5 = vcmp.ge.f32.partialorder %v13762_v23, 0.0  ;;  %vm4712_vm6 = vcmp.ge.f32.partialorder %v13767_v18, 0.0  ;;  %vm4713_vm7 = vcmp.ge.f32.partialorder %v13772_v39, 0.0  ;;  %vm4714_vm8 = vcmp.ge.f32.partialorder %v13777_v36, 0.0 }
 0x3fb   : > { %vm4715_vm9 = vcmp.ge.f32.partialorder %v13782_v48, 0.0  ;;  %vm4716_vm10 = vcmp.ge.f32.partialorder %v13787_v24, 0.0  ;;  %vm4717_vm11 = vcmp.ge.f32.partialorder %v13792_v28, 0.0  ;;  %v4741_v31 = vmul.f32 0.2, %v4677_v61 }
 0x3fc   : > { %v4742_v41 = vmul.f32 0.2, %v13757_v3  ;;  %v13916_v25 = vsel %vm4676_vm1, %v4673_v50, %v15858_v34  ;;  %vm4724_vm12 = vcmp.ge.f32.partialorder %v13827_v40, 0.0  ;;  %v4743_v52 = vmul.f32 0.2, %v13762_v23 }
 0x3fd   : > { %v4744_v9 = vmul.f32 0.2, %v13767_v18  ;;  %v4745_v53 = vmul.f32 0.2, %v13772_v39  ;;  %vm4729_vm1 = vcmp.ge.f32.partialorder %v13852_v21, 0.0  ;;  %vm4730_vm0 = vcmp.ge.f32.partialorder %v13857_v8, 0.0 }
 0x3fe   : > { %v4746_v17 = vmul.f32 0.2, %v13777_v36  ;;  %v4747_v7 = vmul.f32 0.2, %v13782_v48  ;;  %v4748_v20 = vmul.f32 0.2, %v13787_v24  ;;  %v4773_v55 = vsel %vm4709_vm3, %v4677_v61, %v4741_v31 }
 0x3ff   : > { %vm4731_vm14 = vcmp.ge.f32.partialorder %v13862_v10, 0.0  ;;  %v4749_v6 = vmul.f32 0.2, %v13792_v28  ;;  %v4750_v43 = vmul.f32 0.2, %v13797_v45  ;;  %v4774_v46 = vsel %vm4710_vm4, %v13757_v3, %v4742_v41  ;;  %4843 = vst [vmem:[#allocation2 + $0x18] sm:$0xff] %v4773_v55  ;;  %10090 = vmatprep.mubr.f32.mxu1 %v4773_v55 }
 0x400   : > { %v4751_v60 = vmul.f32 0.2, %v13802_v12  ;;  %vm4735_vm3 = vcmp.ge.f32.partialorder %v13882_v54, 0.0  ;;  %vm4736_vm13 = vcmp.ge.f32.partialorder %v13887_v57, 0.0  ;;  %vm4737_vm2 = vcmp.ge.f32.partialorder %v13892_v27, 0.0  ;;  %4844 = vst [vmem:[#allocation2 + $0x20] sm:$0xff] %v4774_v46  ;;  %10091 = vmatmul.mubr.f32.gmra.mrb[18].mxu1 %v4774_v46 }
 0x401   : > { %vm4738_vm15 = vcmp.ge.f32.partialorder %v13897_v14, 0.0  ;;  %v4752_v30 = vmul.f32 0.2, %v13807_v44  ;;  %v4753_v2 = vmul.f32 0.2, %v13812_v63  ;;  %v4775_v61 = vsel %vm4711_vm5, %v13762_v23, %v4743_v52  ;;  %v8698_v46 = vld [vmem:[%s15235_s7 + $0x120] sm:$0xff] }
 0x402   : > { %v4754_v50 = vmul.f32 0.2, %v13817_v19  ;;  %vm4740_vm4 = vcmp.ge.f32.partialorder %v13916_v25, 0.0  ;;  %v4755_v3 = vmul.f32 0.2, %v13822_v22  ;;  %v4776_v4 = vsel %vm4712_vm6, %v13767_v18, %v4744_v9  ;;  %4845 = vst [vmem:[#allocation2 + $0x28] sm:$0xff] %v4775_v61  ;;  %10093 = vmatprep.mubr.f32.mxu1 %v4775_v61 }
 0x403   : > { %v4756_v35 = vmul.f32 0.2, %v13827_v40  ;;  %v4757_v32 = vmul.f32 0.2, %v13832_v29  ;;  %v4758_v56 = vmul.f32 0.2, %v13837_v51  ;;  %v4777_v0 = vsel %vm4713_vm7, %v13772_v39, %v4745_v53 }
 0x404   : > { %v4759_v23 = vmul.f32 0.2, %v13842_v16  ;;  %v4760_v11 = vmul.f32 0.2, %v13847_v58  ;;  %4846 = vst [vmem:[#allocation2 + $0x30] sm:$0xff] %v4776_v4  ;;  %v4778_v18 = vsel %vm4714_vm8, %v13777_v36, %v4746_v17  ;;  %4847 = vst [vmem:[#allocation2 + $0x38] sm:$0xff] %v4777_v0  ;;  %v4779_v39 = vsel %vm4715_vm9, %v13782_v48, %v4747_v7  ;;  %10094 = vmatmul.mubr.f32.gmra.mrb[20].mxu1 %v4776_v4 }
 0x405   : > { %v4761_v38 = vmul.f32 0.2, %v13852_v21  ;;  %v4762_v13 = vmul.f32 0.2, %v13857_v8  ;;  %v4763_v1 = vmul.f32 0.2, %v13862_v10  ;;  %v4780_v36 = vsel %vm4716_vm10, %v13787_v24, %v4748_v20  ;;  %10096 = vmatprep.mubr.f32.mxu1 %v4777_v0 }
 0x406   : > { %v4764_v47 = vmul.f32 0.2, %v13867_v26  ;;  %v4765_v62 = vmul.f32 0.2, %v13872_v33  ;;  %v4766_v15 = vmul.f32 0.2, %v13877_v59  ;;  %v4781_v48 = vsel %vm4717_vm11, %v13792_v28, %v4749_v6 }
 0x407   : > { %4848 = vst [vmem:[#allocation2 + $0x40] sm:$0xff] %v4778_v18  ;;  %v4767_v37 = vmul.f32 0.2, %v13882_v54  ;;  %v4768_v49 = vmul.f32 0.2, %v13887_v57  ;;  %4849 = vst [vmem:[#allocation2 + $0x48] sm:$0xff] %v4779_v39 }
 0x408   : > { %v4769_v42 = vmul.f32 0.2, %v13892_v27  ;;  %v4770_v31 = vmul.f32 0.2, %v13897_v14  ;;  %v4772_v41 = vmul.f32 0.2, %v13916_v25  ;;  %10097 = vmatmul.mubr.f32.gmra.mrb[22].mxu1 %v4778_v18 }
 0x409   : > { %vm15859_vm5 = vcmp.ge.f32.partialorder %v13797_v45, 0.0  ;;  %4850 = vst [vmem:[#allocation2 + $0x50] sm:$0xff] %v4780_v36  ;;  %vm15860_vm6 = vcmp.ge.f32.partialorder %v13802_v12, 0.0  ;;  %vm15861_vm7 = vcmp.ge.f32.partialorder %v13807_v44, 0.0  ;;  %vm15862_vm8 = vcmp.ge.f32.partialorder %v13812_v63, 0.0  ;;  %4851 = vst [vmem:[#allocation2 + $0x58] sm:$0xff] %v4781_v48  ;;  %10099 = vmatprep.mubr.f32.mxu1 %v4779_v39 }
 0x40a   : > { %v4782_v34 = vsel %vm15859_vm5, %v13797_v45, %v4750_v43  ;;  %v4783_v52 = vsel %vm15860_vm6, %v13802_v12, %v4751_v60  ;;  %v4784_v24 = vsel %vm15861_vm7, %v13807_v44, %v4752_v30  ;;  %v4785_v9 = vsel %vm15862_vm8, %v13812_v63, %v4753_v2  ;;  %v8697_v53 = vld [vmem:[%s15235_s7 + $0x118] sm:$0xff]  ;;  %v15874_v6 = vld [vmem:[#allocation17_spill] sm:$0xff]  ;;  %v8699_v30 = vld [vmem:[%s15235_s7 + $0x128] sm:$0xff] }
 0x40b   : > { %vm15863_vm9 = vcmp.ge.f32.partialorder %v13817_v19, 0.0  ;;  %4852 = vst [vmem:[#allocation2 + $0x60] sm:$0xff] %v4782_v34  ;;  %vm15864_vm10 = vcmp.ge.f32.partialorder %v13822_v22, 0.0  ;;  %v4788_v12 = vsel %vm4724_vm12, %v13827_v40, %v4756_v35  ;;  %vm15865_vm11 = vcmp.ge.f32.partialorder %v13832_v29, 0.0  ;;  %4853 = vst [vmem:[#allocation2 + $0x68] sm:$0xff] %v4783_v52  ;;  %v14062_v17 = vld [vmem:[#allocation2 + $0x17] sm:$0xff] }
 0x40c   : > { %v4786_v28 = vsel %vm15863_vm9, %v13817_v19, %v4754_v50  ;;  %v4787_v45 = vsel %vm15864_vm10, %v13822_v22, %v4755_v3  ;;  %v4789_v44 = vsel %vm15865_vm11, %v13832_v29, %v4757_v32  ;;  %vm15866_vm5 = vcmp.ge.f32.partialorder %v13837_v51, 0.0  ;;  %4854 = vst [vmem:[#allocation2 + $0x70] sm:$0xff] %v4784_v24  ;;  %4855 = vst [vmem:[#allocation2 + $0x78] sm:$0xff] %v4785_v9  ;;  %v15873_v7 = vld [vmem:[#allocation20_spill] sm:$0xff]  ;;  %v14075_v2 = vld [vmem:[#allocation2 + $0x27] sm:$0xff] }
 0x40d   : > { %v4790_v63 = vsel %vm15866_vm5, %v13837_v51, %v4758_v56  ;;  %4856 = vst [vmem:[#allocation2 + $0x80] sm:$0xff] %v4786_v28  ;;  %vm15867_vm6 = vcmp.ge.f32.partialorder %v13842_v16, 0.0  ;;  %vm15868_vm12 = vcmp.ge.f32.partialorder %v13847_v58, 0.0  ;;  %v4793_v40 = vsel %vm4729_vm1, %v13852_v21, %v4761_v38  ;;  %4857 = vst [vmem:[#allocation2 + $0x88] sm:$0xff] %v4787_v45  ;;  %10100 = vmatmul.mubr.f32.gmra.mrb[24].mxu1 %v4780_v36  ;;  %v14067_v60 = vld [vmem:[#allocation2 + $0x1f] sm:$0xff]  ;;  %v15875_v50 = vld [vmem:[#allocation19_spill] sm:$0xff] }
 0x40e   : > { %v4791_v19 = vsel %vm15867_vm6, %v13842_v16, %v4759_v23  ;;  %v4792_v22 = vsel %vm15868_vm12, %v13847_v58, %v4760_v11  ;;  %v4794_v29 = vsel %vm4730_vm0, %v13857_v8, %v4762_v13  ;;  %4858 = vst [vmem:[#allocation2 + $0x90] sm:$0xff] %v4788_v12  ;;  %4859 = vst [vmem:[#allocation2 + $0x98] sm:$0xff] %v4789_v44  ;;  %vm15869_vm7 = vcmp.ge.f32.partialorder %v13867_v26, 0.0  ;;  %v15876_v35 = vld [vmem:[#allocation22_spill] sm:$0xff]  ;;  %v8700_v56 = vld [vmem:[%s15235_s7 + $0x130] sm:$0xff] }
 0x40f   : > { %4860 = vst [vmem:[#allocation2 + $0xa0] sm:$0xff] %v4790_v63  ;;  %v4795_v51 = vsel %vm4731_vm14, %v13862_v10, %v4763_v1  ;;  %v4796_v16 = vsel %vm15869_vm7, %v13867_v26, %v4764_v47  ;;  %vm15870_vm1 = vcmp.ge.f32.partialorder %v13872_v33, 0.0  ;;  %vm15871_vm0 = vcmp.ge.f32.partialorder %v13877_v59, 0.0  ;;  %4861 = vst [vmem:[#allocation2 + $0xa8] sm:$0xff] %v4791_v19  ;;  %10102 = vmatprep.mubr.f32.mxu1 %v4781_v48  ;;  %v14082_v4 = vld [vmem:[#allocation2 + $0x2f] sm:$0xff]  ;;  %v8701_v23 = vld [vmem:[%s15235_s7 + $0x138] sm:$0xff] }
 0x410   : > { %v4797_v58 = vsel %vm15870_vm1, %v13872_v33, %v4765_v62  ;;  %v4798_v21 = vsel %vm15871_vm0, %v13877_v59, %v4766_v15  ;;  %4862 = vst [vmem:[#allocation2 + $0xb0] sm:$0xff] %v4792_v22  ;;  %4863 = vst [vmem:[#allocation2 + $0xb8] sm:$0xff] %v4793_v40  ;;  %v4799_v8 = vsel %vm4735_vm3, %v13882_v54, %v4767_v37  ;;  %v4875_v54 = vld [vmem:[#allocation2 + $0x7] sm:$0xff]  ;;  %v15878_v13 = vld [vmem:[#allocation24_spill] sm:$0xff] }
 0x411   : > { %4864 = vst [vmem:[#allocation2 + $0xc0] sm:$0xff] %v4794_v29  ;;  %v4800_v10 = vsel %vm4736_vm13, %v13887_v57, %v4768_v49  ;;  %v4801_v26 = vsel %vm4737_vm2, %v13892_v27, %v4769_v42  ;;  %v4802_v33 = vsel %vm4738_vm15, %v13897_v14, %v4770_v31  ;;  %4865 = vst [vmem:[#allocation2 + $0xc8] sm:$0xff] %v4795_v51  ;;  %10103 = vmatmul.mubr.f32.gmra.mrb[26].mxu1 %v4782_v34  ;;  %v4876_v57 = vld [vmem:[#allocation2 + $0xf] sm:$0xff]  ;;  %v15877_v11 = vld [vmem:[#allocation21_spill] sm:$0xff]  ;;  %vm16061_vm13 = vcmask 64512  }
 0x412   : > { %4866 = vst [vmem:[#allocation2 + $0xd0] sm:$0xff] %v4796_v16  ;;  %4867 = vst [vmem:[#allocation2 + $0xd8] sm:$0xff] %v4797_v58  ;;  %v4804_v59 = vsel %vm4740_vm4, %v13916_v25, %v4772_v41  ;;  %10105 = vmatprep.mubr.f32.mxu1 %v4783_v52  ;;  %v15872_v27 = vld [vmem:[#allocation18_spill] sm:$0xff]  ;;  %v8696_v25 = vld [vmem:[%s15235_s7 + $0x110] sm:$0xff]  ;;  %v4908_v20 = vmul.f32 %v4876_v57, %v15873_v7  ;;  %v4909_v43 = vmul.f32 %v14062_v17, %v15874_v6 }
 0x413   : > { %4868 = vst [vmem:[#allocation2 + $0xe0] sm:$0xff] %v4798_v21  ;;  %4869 = vst [vmem:[#allocation2 + $0xe8] sm:$0xff] %v4799_v8  ;;  %v4907_v14 = vmul.f32 %v4875_v54, %v15872_v27  ;;  %v10893_v55 = vpack.c.bf16 %v8697_v53, %v8696_v25  ;;  %v4910_v61 = vmul.f32 %v14067_v60, %v15875_v50  ;;  %v14096_v18 = vld [vmem:[#allocation2 + $0x3f] sm:$0xff]  ;;  %v8703_v62 = vld [vmem:[%s15235_s7 + $0x148] sm:$0xff] }
 0x414   : > { %4870 = vst [vmem:[#allocation2 + $0xf0] sm:$0xff] %v4800_v10  ;;  %4871 = vst [vmem:[#allocation2 + $0xf8] sm:$0xff] %v4801_v26  ;;  %v10897_v3 = vpack.c.bf16 %v8699_v30, %v8698_v46  ;;  %v4911_v32 = vmul.f32 %v14075_v2, %v15876_v35  ;;  %v4912_v0 = vmul.f32 %v14082_v4, %v15877_v11  ;;  %v8702_v47 = vld [vmem:[%s15235_s7 + $0x140] sm:$0xff]  ;;  %v15879_v39 = vld [vmem:[#allocation23_spill] sm:$0xff] }
 0x415   : > { %4872 = vst [vmem:[#allocation2 + $0x100] sm:$0xff] %v4802_v33  ;;  %4874 = vst [vmem:[#allocation2 + $0x110] sm:$0xff] %v4804_v59  ;;  %10106 = vmatmul.mubr.f32.gmra.mrb[28].mxu1 %v4784_v24  ;;  %v10901_v38 = vpack.c.bf16 %v8701_v23, %v8700_v56  ;;  %v14104_v15 = vld [vmem:[#allocation2 + $0x47] sm:$0xff]  ;;  %v4914_v37 = vmul.f32 %v14096_v18, %v15879_v39  ;;  %v10905_v49 = vpack.c.bf16 %v8703_v62, %v8702_v47  ;;  %v14110_v31 = vld [vmem:[#allocation2 + $0x4f] sm:$0xff] }
 0x416   : > { %10108 = vmatprep.mubr.f32.mxu1 %v4785_v9  ;;  %v15880_v42 = vld [vmem:[#allocation26_spill] sm:$0xff]  ;;  %v8704_v41 = vld [vmem:[%s15235_s7 + $0x150] sm:$0xff]  ;;  %v8705_v48 = vld [vmem:[%s15235_s7 + $0x158] sm:$0xff] }
 0x417   : > { %v4915_v36 = vmul.f32 %v14104_v15, %v15880_v42  ;;  %v14118_v34 = vld [vmem:[#allocation2 + $0x57] sm:$0xff]  ;;  %v15881_v52 = vld [vmem:[#allocation25_spill] sm:$0xff]  ;;  %v10909_v9 = vpack.c.bf16 %v8705_v48, %v8704_v41  ;;  %v8711_v53 = vld [vmem:[%s15235_s7 + $0x188] sm:$0xff] }
 0x418   : > { %v4916_v24 = vmul.f32 %v14110_v31, %v15881_v52  ;;  %v15886_v54 = vld [vmem:[#allocation32_spill] sm:$0xff]  ;;  %v8710_v25 = vld [vmem:[%s15235_s7 + $0x180] sm:$0xff]  ;;  %v15888_v30 = vld [vmem:[#allocation34_spill] sm:$0xff] }
 0x419   : > { %10109 = vmatmul.mubr.f32.gmra.mrb[30].mxu1 %v4786_v28  ;;  %v15882_v28 = vld [vmem:[#allocation28_spill] sm:$0xff]  ;;  %v14164_v46 = vpack.c.bf16 %v8711_v53, %v8710_v25  ;;  %v15889_v56 = vld [vmem:[#allocation33_spill] sm:$0xff]  ;;  %v15891_v62 = vld [vmem:[#allocation35_spill] sm:$0xff] }
 0x41a   : > { %10111 = vmatprep.mubr.f32.mxu1 %v4787_v45  ;;  %v4917_v45 = vmul.f32 %v14118_v34, %v15882_v28  ;;  %v14179_v47 = vld [vmem:[#allocation2 + $0xa7] sm:$0xff]  ;;  %v14185_v41 = vld [vmem:[#allocation2 + $0xaf] sm:$0xff]  ;;  %v14187_v48 = vld [vmem:[#allocation2 + $0xb7] sm:$0xff] }
 0x41b   : > { %v15899_v53 = vld [vmem:[#allocation44_spill] sm:$0xff]  ;;  %vm16062_vm14 = vmmov %vm16061_vm13 }
 0x41c   : > { %vm16063_vm15 = vmmov %vm16061_vm13 }
 0x41d   : > { %10112 = vmatmul.mubr.f32.gmra.mrb[32].mxu1 %v4788_v12  ;;  %v14124_v12 = vld [vmem:[#allocation2 + $0x5f] sm:$0xff]  ;;  %vm16064_vm2 = vmmov %vm16061_vm13 }
 0x41e   : > { %10114 = vmatprep.mubr.f32.mxu1 %v4789_v44  ;;  %v8706_v44 = vld [vmem:[%s15235_s7 + $0x160] sm:$0xff]  ;;  %vm16065_vm3 = vmmov %vm16064_vm2 }
 0x41f   : > { %vm16066_vm4 = vmmov %vm16064_vm2 }
 0x420   : > { %vm16067_vm8 = vmmov %vm16064_vm2 }
 0x421   : > { %10115 = vmatmul.mubr.f32.gmra.mrb[34].mxu1 %v4790_v63  ;;  %v8707_v63 = vld [vmem:[%s15235_s7 + $0x168] sm:$0xff]  ;;  %vm16068_vm9 = vmmov %vm16064_vm2 }
 0x422   : > { %10117 = vmatprep.mubr.f32.mxu1 %v4791_v19  ;;  %v14132_v19 = vld [vmem:[#allocation2 + $0x67] sm:$0xff]  ;;  %vm16069_vm10 = vmmov %vm16064_vm2 }
 0x423   : > { %vm16070_vm11 = vmmov %vm16064_vm2 }
 0x424   : > { %vm16071_vm5 = vmmov %vm16064_vm2 }
 0x425   : > { %10118 = vmatmul.mubr.f32.gmra.mrb[36].mxu1 %v4792_v22  ;;  %v15883_v22 = vld [vmem:[#allocation27_spill] sm:$0xff]  ;;  %vm16072_vm6 = vmmov %vm16064_vm2 }
 0x426   : > { %10120 = vmatprep.mubr.f32.mxu1 %v4793_v40  ;;  %v4918_v40 = vmul.f32 %v14124_v12, %v15883_v22  ;;  %vm16073_vm12 = vmmov %vm16064_vm2 }
 0x427   : > { %vm16074_vm7 = vmmov %vm16064_vm2 }
 0x428   : > { %vm16075_vm1 = vmmov %vm16064_vm2 }
 0x429   : > { %10121 = vmatmul.mubr.f32.gmra.mrb[38].mxu1 %v4794_v29  ;;  %v10913_v29 = vpack.c.bf16 %v8707_v63, %v8706_v44  ;;  %v14193_v63 = vld [vmem:[#allocation2 + $0xbf] sm:$0xff]  ;;  %vm16076_vm0 = vmmov %vm16075_vm1 }
 0x42a   : > { %10123 = vmatprep.mubr.f32.mxu1 %v4795_v51  ;;  %v15884_v51 = vld [vmem:[#allocation30_spill] sm:$0xff] }
 0x42d   : > { %10124 = vmatmul.mubr.f32.gmra.mrb[40].mxu1 %v4796_v16  ;;  %v4919_v16 = vmul.f32 %v14132_v19, %v15884_v51 }
 0x42e   : > { %10126 = vmatprep.mubr.f32.mxu1 %v4797_v58  ;;  %v14138_v58 = vld [vmem:[#allocation2 + $0x6f] sm:$0xff] }
 0x431   : > { %10127 = vmatmul.mubr.f32.gmra.mrb[42].mxu1 %v4798_v21  ;;  %v8708_v21 = vld [vmem:[%s15235_s7 + $0x170] sm:$0xff] }
 0x432   : > { %10129 = vmatprep.mubr.f32.mxu1 %v4799_v8  ;;  %v8709_v8 = vld [vmem:[%s15235_s7 + $0x178] sm:$0xff] }
 0x433   : > { %v10917_v59 = vpack.c.bf16 %v8709_v8, %v8708_v21  ;;  %v15896_v21 = vld [vmem:[#allocation42_spill] sm:$0xff] }
 0x435   : > { %10130 = vmatmul.mubr.f32.gmra.mrb[44].mxu1 %v4800_v10  ;;  %v14146_v10 = vld [vmem:[#allocation2 + $0x77] sm:$0xff] }
 0x436   : > { %10132 = vmatprep.mubr.f32.mxu1 %v4801_v26  ;;  %v15885_v26 = vld [vmem:[#allocation29_spill] sm:$0xff]  ;;  %v4921_v57 = vmul.f32 %v14146_v10, %v15886_v54 }
 0x439   : > { %10133 = vmatmul.mubr.f32.gmra.mrb[46].mxu1 %v4802_v33  ;;  %v4920_v33 = vmul.f32 %v14138_v58, %v15885_v26 }
 0x43a   : > { %10167 = vmatprep.mubr.f32.mxu1 %v4907_v14  ;;  %v14152_v14 = vld [vmem:[#allocation2 + $0x7f] sm:$0xff] }
 0x43d   : > { %10168 = vmatmul.mubr.f32.vlgmr.msra.gmra.mrb[16].mxu1 %v4908_v20  ;;  %v14160_v20 = vld [vmem:[#allocation2 + $0x87] sm:$0xff] }
 0x43e   : > { %10892 = vmatpush3.bf16.msra.mxu1 %v13637_v5  ;;  %10170 = vmatprep.mubr.f32.mxu1 %v4909_v43  ;;  %v14090_v5 = vld [vmem:[#allocation2 + $0x37] sm:$0xff] }
 0x43f   : > { %10894 = vmatprep.subr.bf16.mxu1 %v10893_v55  ;;  %v4913_v1 = vmul.f32 %v14090_v5, %v15878_v13 }
 0x441   : > { %10171 = vmatmul.mubr.f32.gmra.mrb[18].mxu1 %v4910_v61  ;;  %v4923_v61 = vmul.f32 %v14160_v20, %v15888_v30 }
 0x442   : > { %10173 = vmatprep.mubr.f32.mxu1 %v4911_v32  ;;  %10896 = vmatpush3.bf16.msra.mxu1 %v10893_v55  ;;  %v15887_v55 = vld [vmem:[#allocation31_spill] sm:$0xff] }
 0x443   : > { %10898 = vmatprep.subr.bf16.mxu1 %v10897_v3  ;;  %v4922_v43 = vmul.f32 %v14152_v14, %v15887_v55  ;;  %v14170_v32 = vld [vmem:[#allocation2 + $0x97] sm:$0xff] }
 0x445   : > { %10174 = vmatmul.mubr.f32.gmra.mrb[20].mxu1 %v4912_v0  ;;  %v15890_v0 = vld [vmem:[#allocation36_spill] sm:$0xff] }
 0x446   : > { %10176 = vmatprep.mubr.f32.mxu1 %v4913_v1  ;;  %10900 = vmatpush3.bf16.msra.mxu1 %v10897_v3  ;;  %v14168_v3 = vld [vmem:[#allocation2 + $0x8f] sm:$0xff]  ;;  %v14177_v1 = vld [vmem:[#allocation2 + $0x9f] sm:$0xff] }
 0x447   : > { %10902 = vmatprep.subr.bf16.mxu1 %v10901_v38  ;;  %v4924_v23 = vmul.f32 %v14168_v3, %v15889_v56 }
 0x449   : > { %10177 = vmatmul.mubr.f32.gmra.mrb[22].mxu1 %v4914_v37  ;;  %v4926_v37 = vmul.f32 %v14177_v1, %v15891_v62 }
 0x44a   : > { %10179 = vmatprep.mubr.f32.mxu1 %v4915_v36  ;;  %10904 = vmatpush3.bf16.msra.mxu1 %v10901_v38  ;;  %v4925_v38 = vmul.f32 %v14170_v32, %v15890_v0 }
 0x44b   : > { %10906 = vmatprep.subr.bf16.mxu1 %v10905_v49 }
 0x44d   : > { %10180 = vmatmul.mubr.f32.gmra.mrb[24].mxu1 %v4916_v24  ;;  %v15893_v24 = vld [vmem:[#allocation37_spill] sm:$0xff] }
 0x44e   : > { %10182 = vmatprep.mubr.f32.mxu1 %v4917_v45  ;;  %10908 = vmatpush3.bf16.msra.mxu1 %v10905_v49  ;;  %v15892_v49 = vld [vmem:[#allocation38_spill] sm:$0xff]  ;;  %v15894_v45 = vld [vmem:[#allocation40_spill] sm:$0xff] }
 0x44f   : > { %10910 = vmatprep.subr.bf16.mxu1 %v10909_v9  ;;  %v4927_v36 = vmul.f32 %v14179_v47, %v15892_v49  ;;  %v4929_v44 = vmul.f32 %v14187_v48, %v15894_v45 }
 0x451   : > { %10183 = vmatmul.mubr.f32.gmra.mrb[26].mxu1 %v4918_v40  ;;  %v14195_v40 = vld [vmem:[#allocation2 + $0xc7] sm:$0xff] }
 0x452   : > { %10185 = vmatprep.mubr.f32.mxu1 %v4919_v16  ;;  %10912 = vmatpush3.bf16.msra.mxu1 %v10909_v9  ;;  %v4928_v9 = vmul.f32 %v14185_v41, %v15893_v24  ;;  %v4931_v8 = vmul.f32 %v14195_v40, %v15896_v21 }
 0x453   : > { %10914 = vmatprep.subr.bf16.mxu1 %v10913_v29 }
 0x455   : > { %10186 = vmatmul.mubr.f32.gmra.mrb[28].mxu1 %v4920_v33  ;;  %v14201_v33 = vld [vmem:[#allocation2 + $0xcf] sm:$0xff] }
 0x456   : > { %10188 = vmatprep.mubr.f32.mxu1 %v4921_v57  ;;  %10916 = vmatpush3.bf16.msra.mxu1 %v10913_v29  ;;  %v15895_v29 = vld [vmem:[#allocation39_spill] sm:$0xff]  ;;  %v15898_v57 = vld [vmem:[#allocation41_spill] sm:$0xff] }
 0x457   : > { %10918 = vmatprep.subr.bf16.mxu1 %v10917_v59  ;;  %v4930_v16 = vmul.f32 %v14193_v63, %v15895_v29  ;;  %v4932_v25 = vmul.f32 %v14201_v33, %v15898_v57  ;;  %v15907_v57 = vld [vmem:[#allocation51_spill] sm:$0xff] }
 0x459   : > { %10189 = vmatmul.mubr.f32.gmra.mrb[30].mxu1 %v4922_v43 }
 0x45a   : > { %10191 = vmatprep.mubr.f32.mxu1 %v4923_v61  ;;  %10920 = vmatpush3.bf16.msra.mxu1 %v10917_v59  ;;  %v14203_v59 = vld [vmem:[#allocation2 + $0xd7] sm:$0xff]  ;;  %v14209_v61 = vld [vmem:[#allocation2 + $0xdf] sm:$0xff] }
 0x45b   : > { %10922 = vmatprep.subr.bf16.mxu1 %v14164_v46  ;;  %15897 = vst [vmem:[#allocation70_spill] sm:$0xff] %v14203_v59  ;;  %v4933_v43 = vmul.f32 %v14203_v59, %v15899_v53  ;;  %15900 = vst [vmem:[#allocation71_spill] sm:$0xff] %v14209_v61  ;;  %v14225_v59 = vld [vmem:[#allocation2 + $0xff] sm:$0xff] }
 0x45c   : > { %15908 = vst [vmem:[#allocation79_spill] sm:$0xff] %v14225_v59 }
 0x45d   : > { %10192 = vmatmul.mubr.f32.gmra.mrb[32].mxu1 %v4924_v23  ;;  %v14211_v23 = vld [vmem:[#allocation2 + $0xe7] sm:$0xff] }
 0x45e   : > { %10194 = vmatprep.mubr.f32.mxu1 %v4925_v38  ;;  %15901 = vst [vmem:[#allocation74_spill] sm:$0xff] %v14211_v23  ;;  %v15902_v38 = vld [vmem:[#allocation43_spill] sm:$0xff] }
 0x461   : > { %10195 = vmatmul.mubr.f32.gmra.mrb[34].mxu1 %v4926_v37  ;;  %v4934_v37 = vmul.f32 %v14209_v61, %v15902_v38  ;;  %v15909_v38 = vld [vmem:[#allocation50_spill] sm:$0xff] }
 0x462   : > { %10197 = vmatprep.mubr.f32.mxu1 %v4927_v36  ;;  %v15903_v36 = vld [vmem:[#allocation47_spill] sm:$0xff] }
 0x465   : > { %10198 = vmatmul.mubr.f32.gmra.mrb[36].mxu1 %v4928_v9  ;;  %v4935_v9 = vmul.f32 %v14211_v23, %v15903_v36  ;;  %v4938_v36 = vmul.f32 %v14225_v59, %v15909_v38  ;;  %v15910_v23 = vld [vmem:[#allocation55_spill] sm:$0xff]  ;;  %v8715_v59 = vld [vmem:[%s15235_s7 + $0x1a8] sm:$0xff] }
 0x466   : > { %10200 = vmatprep.mubr.f32.mxu1 %v4929_v44  ;;  %v14217_v44 = vld [vmem:[#allocation2 + $0xef] sm:$0xff] }
 0x467   : > { %15904 = vst [vmem:[#allocation75_spill] sm:$0xff] %v14217_v44 }
 0x469   : > { %10201 = vmatmul.mubr.f32.gmra.mrb[38].mxu1 %v4930_v16  ;;  %v14219_v16 = vld [vmem:[#allocation2 + $0xf7] sm:$0xff] }
 0x46a   : > { %10203 = vmatprep.mubr.f32.mxu1 %v4931_v8  ;;  %15905 = vst [vmem:[#allocation78_spill] sm:$0xff] %v14219_v16  ;;  %v15906_v8 = vld [vmem:[#allocation46_spill] sm:$0xff] }
 0x46b   : > { %v4936_v53 = vmul.f32 %v14217_v44, %v15906_v8  ;;  %v8713_v8 = vld [vmem:[%s15235_s7 + $0x198] sm:$0xff]  ;;  %v15913_v44 = vld [vmem:[#allocation58_spill] sm:$0xff] }
 0x46d   : > { %10204 = vmatmul.mubr.f32.gmra.mrb[40].mxu1 %v4932_v25  ;;  %v4937_v25 = vmul.f32 %v14219_v16, %v15907_v57  ;;  %v14236_v57 = vld [vmem:[#allocation2 + $0x19] sm:$0xff] }
 0x46e   : > { %10206 = vmatprep.mubr.f32.mxu1 %v4933_v43  ;;  %v5454_v43 = vld [vmem:[#allocation2 + $0x9] sm:$0xff]  ;;  %15911 = vst [vmem:[#allocation82_spill] sm:$0xff] %v14236_v57  ;;  %v5488_v38 = vmul.f32 %v14236_v57, %v15913_v44 }
 0x46f   : > { %v5486_v61 = vmul.f32 %v5454_v43, %v15910_v23  ;;  %v14241_v43 = vld [vmem:[#allocation2 + $0x21] sm:$0xff]  ;;  %v8716_v57 = vld [vmem:[%s15235_s7 + $0x1b0] sm:$0xff] }
 0x470   : > { %15914 = vst [vmem:[#allocation83_spill] sm:$0xff] %v14241_v43  ;;  %v8714_v23 = vld [vmem:[%s15235_s7 + $0x1a0] sm:$0xff] }
 0x471   : > { %10207 = vmatmul.mubr.f32.gmra.mrb[42].mxu1 %v4934_v37  ;;  %v5455_v37 = vld [vmem:[#allocation2 + $0x11] sm:$0xff] }
 0x472   : > { %10209 = vmatprep.mubr.f32.mxu1 %v4935_v9  ;;  %v8712_v9 = vld [vmem:[%s15235_s7 + $0x190] sm:$0xff] }
 0x473   : > { %v10925_v16 = vpack.c.bf16 %v8713_v8, %v8712_v9  ;;  %v15917_v9 = vld [vmem:[#allocation62_spill] sm:$0xff] }
 0x475   : > { %10210 = vmatmul.mubr.f32.gmra.mrb[44].mxu1 %v4936_v53  ;;  %v15912_v53 = vld [vmem:[#allocation54_spill] sm:$0xff] }
 0x476   : > { %10212 = vmatprep.mubr.f32.mxu1 %v4937_v25  ;;  %v5487_v25 = vmul.f32 %v5455_v37, %v15912_v53  ;;  %v10929_v37 = vpack.c.bf16 %v8715_v59, %v8714_v23  ;;  %v14256_v53 = vld [vmem:[#allocation2 + $0x31] sm:$0xff] }
 0x477   : > { %15918 = vst [vmem:[#allocation88_spill] sm:$0xff] %v14256_v53 }
 0x479   : > { %10213 = vmatmul.mubr.f32.gmra.mrb[46].mxu1 %v4938_v36  ;;  %v14249_v36 = vld [vmem:[#allocation2 + $0x29] sm:$0xff] }
 0x47a   : > { %10247 = vmatprep.mubr.f32.mxu1 %v5486_v61  ;;  %15915 = vst [vmem:[#allocation87_spill] sm:$0xff] %v14249_v36  ;;  %v15916_v61 = vld [vmem:[#allocation57_spill] sm:$0xff]  ;;  %v5490_v44 = vmul.f32 %v14249_v36, %v15917_v9  ;;  %v15921_v9 = vld [vmem:[#allocation66_spill] sm:$0xff] }
 0x47b   : > { %v5489_v8 = vmul.f32 %v14241_v43, %v15916_v61  ;;  %v14270_v36 = vld [vmem:[#allocation2 + $0x41] sm:$0xff] }
 0x47c   : > { %15922 = vst [vmem:[#allocation94_spill] sm:$0xff] %v14270_v36  ;;  %v8718_v43 = vld [vmem:[%s15235_s7 + $0x1c0] sm:$0xff] }
 0x47d   : > { %10248 = vmatmul.mubr.f32.vlgmr.msra.gmra.mrb[16].mxu1 %v5487_v25  ;;  %v8717_v25 = vld [vmem:[%s15235_s7 + $0x1b8] sm:$0xff] }
 0x47e   : > { %10924 = vmatpush3.bf16.msra.mxu1 %v14164_v46  ;;  %10250 = vmatprep.mubr.f32.mxu1 %v5488_v38  ;;  %v14264_v46 = vld [vmem:[#allocation2 + $0x39] sm:$0xff]  ;;  %v10933_v23 = vpack.c.bf16 %v8717_v25, %v8716_v57 }
 0x47f   : > { %10926 = vmatprep.subr.bf16.mxu1 %v10925_v16  ;;  %15919 = vst [vmem:[#allocation93_spill] sm:$0xff] %v14264_v46  ;;  %v15920_v38 = vld [vmem:[#allocation61_spill] sm:$0xff]  ;;  %v5492_v61 = vmul.f32 %v14264_v46, %v15921_v9  ;;  %v14284_v46 = vld [vmem:[#allocation2 + $0x51] sm:$0xff] }
 0x480   : > { %v5491_v59 = vmul.f32 %v14256_v53, %v15920_v38  ;;  %v15925_v9 = vld [vmem:[#allocation69_spill] sm:$0xff]  ;;  %15926 = vst [vmem:[#allocation100_spill] sm:$0xff] %v14284_v46  ;;  %v8720_v53 = vld [vmem:[%s15235_s7 + $0x1d0] sm:$0xff] }
 0x481   : > { %10251 = vmatmul.mubr.f32.gmra.mrb[18].mxu1 %v5489_v8  ;;  %v8719_v8 = vld [vmem:[%s15235_s7 + $0x1c8] sm:$0xff] }
 0x482   : > { %10253 = vmatprep.mubr.f32.mxu1 %v5490_v44  ;;  %10928 = vmatpush3.bf16.msra.mxu1 %v10925_v16  ;;  %v14278_v44 = vld [vmem:[#allocation2 + $0x49] sm:$0xff]  ;;  %v15924_v16 = vld [vmem:[#allocation65_spill] sm:$0xff]  ;;  %v10937_v25 = vpack.c.bf16 %v8719_v8, %v8718_v43 }
 0x483   : > { %10930 = vmatprep.subr.bf16.mxu1 %v10929_v37  ;;  %15923 = vst [vmem:[#allocation99_spill] sm:$0xff] %v14278_v44  ;;  %v5493_v57 = vmul.f32 %v14270_v36, %v15924_v16  ;;  %v5494_v38 = vmul.f32 %v14278_v44, %v15925_v9  ;;  %v15929_v9 = vld [vmem:[#allocation73_spill] sm:$0xff] }
 0x484   : > { %v14298_v44 = vld [vmem:[#allocation2 + $0x61] sm:$0xff] }
 0x485   : > { %10254 = vmatmul.mubr.f32.gmra.mrb[20].mxu1 %v5491_v59  ;;  %v8721_v59 = vld [vmem:[%s15235_s7 + $0x1d8] sm:$0xff]  ;;  %15930 = vst [vmem:[#allocation106_spill] sm:$0xff] %v14298_v44  ;;  %v8722_v36 = vld [vmem:[%s15235_s7 + $0x1e0] sm:$0xff] }
 0x486   : > { %10256 = vmatprep.mubr.f32.mxu1 %v5492_v61  ;;  %10932 = vmatpush3.bf16.msra.mxu1 %v10929_v37  ;;  %v14292_v61 = vld [vmem:[#allocation2 + $0x59] sm:$0xff]  ;;  %v10941_v8 = vpack.c.bf16 %v8721_v59, %v8720_v53 }
 0x487   : > { %10934 = vmatprep.subr.bf16.mxu1 %v10933_v23  ;;  %15927 = vst [vmem:[#allocation105_spill] sm:$0xff] %v14292_v61  ;;  %v15928_v37 = vld [vmem:[#allocation68_spill] sm:$0xff]  ;;  %v5496_v16 = vmul.f32 %v14292_v61, %v15929_v9  ;;  %v15933_v9 = vld [vmem:[#allocation77_spill] sm:$0xff] }
 0x488   : > { %v5495_v43 = vmul.f32 %v14284_v46, %v15928_v37  ;;  %v14312_v61 = vld [vmem:[#allocation2 + $0x71] sm:$0xff] }
 0x489   : > { %10257 = vmatmul.mubr.f32.gmra.mrb[22].mxu1 %v5493_v57  ;;  %v8723_v57 = vld [vmem:[%s15235_s7 + $0x1e8] sm:$0xff]  ;;  %15934 = vst [vmem:[#allocation112_spill] sm:$0xff] %v14312_v61  ;;  %v8724_v46 = vld [vmem:[%s15235_s7 + $0x1f0] sm:$0xff] }
 0x48a   : > { %10259 = vmatprep.mubr.f32.mxu1 %v5494_v38  ;;  %10936 = vmatpush3.bf16.msra.mxu1 %v10933_v23  ;;  %v14306_v38 = vld [vmem:[#allocation2 + $0x69] sm:$0xff]  ;;  %v15932_v23 = vld [vmem:[#allocation72_spill] sm:$0xff]  ;;  %v10945_v59 = vpack.c.bf16 %v8723_v57, %v8722_v36 }
 0x48b   : > { %10938 = vmatprep.subr.bf16.mxu1 %v10937_v25  ;;  %15931 = vst [vmem:[#allocation111_spill] sm:$0xff] %v14306_v38  ;;  %v5497_v53 = vmul.f32 %v14298_v44, %v15932_v23  ;;  %v5498_v37 = vmul.f32 %v14306_v38, %v15933_v9  ;;  %v15937_v9 = vld [vmem:[#allocation81_spill] sm:$0xff] }
 0x48c   : > { %v14326_v38 = vld [vmem:[#allocation2 + $0x81] sm:$0xff] }
 0x48d   : > { %10260 = vmatmul.mubr.f32.gmra.mrb[24].mxu1 %v5495_v43  ;;  %v8725_v43 = vld [vmem:[%s15235_s7 + $0x1f8] sm:$0xff]  ;;  %v8726_v44 = vld [vmem:[%s15235_s7 + $0x200] sm:$0xff] }
 0x48e   : > { %10262 = vmatprep.mubr.f32.mxu1 %v5496_v16  ;;  %10940 = vmatpush3.bf16.msra.mxu1 %v10937_v25  ;;  %v14320_v16 = vld [vmem:[#allocation2 + $0x79] sm:$0xff]  ;;  %v10949_v57 = vpack.c.bf16 %v8725_v43, %v8724_v46 }
 0x48f   : > { %10942 = vmatprep.subr.bf16.mxu1 %v10941_v8  ;;  %15935 = vst [vmem:[#allocation117_spill] sm:$0xff] %v14320_v16  ;;  %v15936_v25 = vld [vmem:[#allocation76_spill] sm:$0xff]  ;;  %v5500_v23 = vmul.f32 %v14320_v16, %v15937_v9  ;;  %v15940_v9 = vld [vmem:[#allocation86_spill] sm:$0xff] }
 0x490   : > { %v5499_v36 = vmul.f32 %v14312_v61, %v15936_v25  ;;  %v14340_v16 = vld [vmem:[#allocation2 + $0x91] sm:$0xff]  ;;  %v14342_v61 = vld [vmem:[#allocation2 + $0x99] sm:$0xff] }
 0x491   : > { %10263 = vmatmul.mubr.f32.gmra.mrb[26].mxu1 %v5497_v53  ;;  %v8727_v53 = vld [vmem:[%s15235_s7 + $0x208] sm:$0xff]  ;;  %15941 = vst [vmem:[#allocation123_spill] sm:$0xff] %v14340_v16  ;;  %15942 = vst [vmem:[#allocation124_spill] sm:$0xff] %v14342_v61 }
 0x492   : > { %10265 = vmatprep.mubr.f32.mxu1 %v5498_v37  ;;  %10944 = vmatpush3.bf16.msra.mxu1 %v10941_v8  ;;  %v14334_v37 = vld [vmem:[#allocation2 + $0x89] sm:$0xff]  ;;  %v15939_v8 = vld [vmem:[#allocation80_spill] sm:$0xff]  ;;  %v10953_v43 = vpack.c.bf16 %v8727_v53, %v8726_v44 }
 0x493   : > { %10946 = vmatprep.subr.bf16.mxu1 %v10945_v59  ;;  %15938 = vst [vmem:[#allocation118_spill] sm:$0xff] %v14334_v37  ;;  %v5501_v46 = vmul.f32 %v14326_v38, %v15939_v8  ;;  %v5502_v25 = vmul.f32 %v14334_v37, %v15940_v9  ;;  %v14348_v8 = vld [vmem:[#allocation2 + $0xa1] sm:$0xff]  ;;  %v14350_v44 = vld [vmem:[#allocation2 + $0xa9] sm:$0xff] }
 0x494   : > { %15945 = vst [vmem:[#allocation45_spill] sm:$0xff] %v14348_v8  ;;  %15946 = vst [vmem:[#allocation48_spill] sm:$0xff] %v14350_v44  ;;  %v15947_v53 = vld [vmem:[#allocation91_spill] sm:$0xff]  ;;  %v15948_v9 = vld [vmem:[#allocation98_spill] sm:$0xff] }
 0x495   : > { %10266 = vmatmul.mubr.f32.gmra.mrb[28].mxu1 %v5499_v36  ;;  %v15943_v36 = vld [vmem:[#allocation85_spill] sm:$0xff] }
 0x496   : > { %10268 = vmatprep.mubr.f32.mxu1 %v5500_v23  ;;  %10948 = vmatpush3.bf16.msra.mxu1 %v10945_v59  ;;  %v5503_v21 = vmul.f32 %v14340_v16, %v15943_v36  ;;  %v15944_v23 = vld [vmem:[#allocation92_spill] sm:$0xff]  ;;  %v15951_v16 = vld [vmem:[#allocation97_spill] sm:$0xff] }
 0x497   : > { %10950 = vmatprep.subr.bf16.mxu1 %v10949_v57  ;;  %v5504_v59 = vmul.f32 %v14342_v61, %v15944_v23  ;;  %v14358_v36 = vld [vmem:[#allocation2 + $0xb9] sm:$0xff]  ;;  %v14364_v37 = vld [vmem:[#allocation2 + $0xc1] sm:$0xff] }
 0x498   : > { %15950 = vst [vmem:[#allocation53_spill] sm:$0xff] %v14358_v36  ;;  %v15952_v61 = vld [vmem:[#allocation104_spill] sm:$0xff]  ;;  %15953 = vst [vmem:[#allocation56_spill] sm:$0xff] %v14364_v37 }
 0x499   : > { %10269 = vmatmul.mubr.f32.gmra.mrb[30].mxu1 %v5501_v46  ;;  %v5505_v46 = vmul.f32 %v14348_v8, %v15947_v53  ;;  %v15955_v53 = vld [vmem:[#allocation103_spill] sm:$0xff] }
 0x49a   : > { %10271 = vmatprep.mubr.f32.mxu1 %v5502_v25  ;;  %10952 = vmatpush3.bf16.msra.mxu1 %v10949_v57  ;;  %v5506_v25 = vmul.f32 %v14350_v44, %v15948_v9  ;;  %v14356_v57 = vld [vmem:[#allocation2 + $0xb1] sm:$0xff]  ;;  %v5509_v9 = vmul.f32 %v14364_v37, %v15955_v53  ;;  %v15956_v44 = vld [vmem:[#allocation110_spill] sm:$0xff] }
 0x49b   : > { %10954 = vmatprep.subr.bf16.mxu1 %v10953_v43  ;;  %15949 = vst [vmem:[#allocation52_spill] sm:$0xff] %v14356_v57  ;;  %v5507_v23 = vmul.f32 %v14356_v57, %v15951_v16  ;;  %v14372_v8 = vld [vmem:[#allocation2 + $0xd1] sm:$0xff]  ;;  %v15959_v16 = vld [vmem:[#allocation109_spill] sm:$0xff] }
 0x49c   : > { %15957 = vst [vmem:[#allocation130_spill] sm:$0xff] %v14372_v8  ;;  %v14380_v57 = vld [vmem:[#allocation2 + $0xe1] sm:$0xff]  ;;  %v15961_v53 = vld [vmem:[#allocation115_spill] sm:$0xff] }
 0x49d   : > { %10272 = vmatmul.mubr.f32.gmra.mrb[32].mxu1 %v5503_v21  ;;  %v5508_v21 = vmul.f32 %v14358_v36, %v15952_v61  ;;  %v5511_v61 = vmul.f32 %v14372_v8, %v15959_v16  ;;  %v15960_v36 = vld [vmem:[#allocation116_spill] sm:$0xff]  ;;  %v15963_v16 = vld [vmem:[#allocation121_spill] sm:$0xff] }
 0x49e   : > { %10274 = vmatprep.mubr.f32.mxu1 %v5504_v59  ;;  %v14366_v59 = vld [vmem:[#allocation2 + $0xc9] sm:$0xff]  ;;  %v14388_v37 = vld [vmem:[#allocation2 + $0xf1] sm:$0xff]  ;;  %v14396_v8 = vld [vmem:[#allocation2 + $0x101] sm:$0xff] }
 0x49f   : > { %15954 = vst [vmem:[#allocation49_spill] sm:$0xff] %v14366_v59 }
 0x4a1   : > { %10275 = vmatmul.mubr.f32.gmra.mrb[34].mxu1 %v5505_v46  ;;  %v5510_v46 = vmul.f32 %v14366_v59, %v15956_v44  ;;  %v5513_v44 = vmul.f32 %v14380_v57, %v15961_v53  ;;  %v15962_v59 = vld [vmem:[#allocation122_spill] sm:$0xff] }
 0x4a2   : > { %10277 = vmatprep.mubr.f32.mxu1 %v5506_v25  ;;  %v14374_v25 = vld [vmem:[#allocation2 + $0xd9] sm:$0xff] }
 0x4a3   : > { %15958 = vst [vmem:[#allocation84_spill] sm:$0xff] %v14374_v25 }
 0x4a5   : > { %10278 = vmatmul.mubr.f32.gmra.mrb[36].mxu1 %v5507_v23  ;;  %v5512_v23 = vmul.f32 %v14374_v25, %v15960_v36  ;;  %v5515_v36 = vmul.f32 %v14388_v37, %v15963_v16  ;;  %v15964_v25 = vld [vmem:[#allocation127_spill] sm:$0xff] }
 0x4a6   : > { %10280 = vmatprep.mubr.f32.mxu1 %v5508_v21  ;;  %v14382_v21 = vld [vmem:[#allocation2 + $0xe9] sm:$0xff] }
 0x4a9   : > { %10281 = vmatmul.mubr.f32.gmra.mrb[38].mxu1 %v5509_v9  ;;  %v5514_v9 = vmul.f32 %v14382_v21, %v15962_v59  ;;  %v5824_v59 = vmul.f32 %v14062_v17, %v15872_v27  ;;  %v8730_v17 = vld [vmem:[%s15235_s7 + $0x220] sm:$0xff]  ;;  %v8731_v27 = vld [vmem:[%s15235_s7 + $0x228] sm:$0xff] }
 0x4aa   : > { %10283 = vmatprep.mubr.f32.mxu1 %v5510_v46  ;;  %v14390_v46 = vld [vmem:[#allocation2 + $0xf9] sm:$0xff] }
 0x4ad   : > { %10284 = vmatmul.mubr.f32.gmra.mrb[40].mxu1 %v5511_v61  ;;  %v5516_v61 = vmul.f32 %v14390_v46, %v15964_v25 }
 0x4ae   : > { %10286 = vmatprep.mubr.f32.mxu1 %v5512_v23  ;;  %v15965_v23 = vld [vmem:[#allocation129_spill] sm:$0xff] }
 0x4af   : > { %v5517_v53 = vmul.f32 %v14396_v8, %v15965_v23  ;;  %v5826_v23 = vmul.f32 %v14075_v2, %v15874_v6  ;;  %v8732_v2 = vld [vmem:[%s15235_s7 + $0x230] sm:$0xff] }
 0x4b1   : > { %10287 = vmatmul.mubr.f32.gmra.mrb[42].mxu1 %v5513_v44  ;;  %v8728_v44 = vld [vmem:[%s15235_s7 + $0x210] sm:$0xff] }
 0x4b2   : > { %10289 = vmatprep.mubr.f32.mxu1 %v5514_v9  ;;  %v8729_v9 = vld [vmem:[%s15235_s7 + $0x218] sm:$0xff] }
 0x4b5   : > { %10290 = vmatmul.mubr.f32.gmra.mrb[44].mxu1 %v5515_v36  ;;  %v5825_v36 = vmul.f32 %v14067_v60, %v15873_v7  ;;  %v10961_v60 = vpack.c.bf16 %v8731_v27, %v8730_v17  ;;  %v5830_v27 = vmul.f32 %v14104_v15, %v15878_v13  ;;  %v8736_v15 = vld [vmem:[%s15235_s7 + $0x250] sm:$0xff]  ;;  %v5833_v17 = vmul.f32 %v14124_v12, %v15881_v52 }
 0x4b6   : > { %10292 = vmatprep.mubr.f32.mxu1 %v5516_v61  ;;  %v10957_v61 = vpack.c.bf16 %v8729_v9, %v8728_v44  ;;  %v8733_v44 = vld [vmem:[%s15235_s7 + $0x238] sm:$0xff]  ;;  %v5831_v9 = vmul.f32 %v14110_v31, %v15879_v39 }
 0x4b9   : > { %10293 = vmatmul.mubr.f32.gmra.mrb[46].mxu1 %v5517_v53  ;;  %v5827_v53 = vmul.f32 %v14082_v4, %v15875_v50  ;;  %v10965_v4 = vpack.c.bf16 %v8733_v44, %v8732_v2  ;;  %v5836_v2 = vmul.f32 %v14146_v10, %v15884_v51  ;;  %v8741_v44 = vld [vmem:[%s15235_s7 + $0x278] sm:$0xff]  ;;  %v8742_v10 = vld [vmem:[%s15235_s7 + $0x280] sm:$0xff] }
 0x4ba   : > { %10327 = vmatprep.mubr.f32.mxu1 %v5824_v59  ;;  %v5828_v59 = vmul.f32 %v14090_v5, %v15876_v35  ;;  %v8734_v5 = vld [vmem:[%s15235_s7 + $0x240] sm:$0xff] }
 0x4bd   : > { %10328 = vmatmul.mubr.f32.vlgmr.msra.gmra.mrb[16].mxu1 %v5825_v36  ;;  %v5832_v36 = vmul.f32 %v14118_v34, %v15880_v42  ;;  %v8738_v34 = vld [vmem:[%s15235_s7 + $0x260] sm:$0xff] }
 0x4be   : > { %10956 = vmatpush3.bf16.msra.mxu1 %v10953_v43  ;;  %10330 = vmatprep.mubr.f32.mxu1 %v5826_v23  ;;  %v5829_v43 = vmul.f32 %v14096_v18, %v15877_v11  ;;  %v8735_v23 = vld [vmem:[%s15235_s7 + $0x248] sm:$0xff] }
 0x4bf   : > { %10958 = vmatprep.subr.bf16.mxu1 %v10957_v61  ;;  %v10969_v18 = vpack.c.bf16 %v8735_v23, %v8734_v5  ;;  %v5839_v5 = vmul.f32 %v14168_v3, %v15887_v55  ;;  %v5840_v23 = vmul.f32 %v14170_v32, %v15888_v30  ;;  %v5843_v3 = vmul.f32 %v14185_v41, %v15891_v62  ;;  %v15968_v41 = vld [vmem:[#allocation41_spill] sm:$0xff] }
 0x4c0   : > { %v5845_v32 = vmul.f32 %v14193_v63, %v15893_v24  ;;  %v15972_v63 = vld [vmem:[#allocation43_spill] sm:$0xff] }
 0x4c1   : > { %10331 = vmatmul.mubr.f32.gmra.mrb[18].mxu1 %v5827_v53  ;;  %v5834_v53 = vmul.f32 %v14132_v19, %v15882_v28  ;;  %v8740_v19 = vld [vmem:[%s15235_s7 + $0x270] sm:$0xff] }
 0x4c2   : > { %10333 = vmatprep.mubr.f32.mxu1 %v5828_v59  ;;  %10960 = vmatpush3.bf16.msra.mxu1 %v10957_v61  ;;  %v8737_v61 = vld [vmem:[%s15235_s7 + $0x258] sm:$0xff]  ;;  %v5835_v59 = vmul.f32 %v14138_v58, %v15883_v22  ;;  %v10981_v58 = vpack.c.bf16 %v8741_v44, %v8740_v19  ;;  %v15976_v19 = vld [vmem:[#allocation46_spill] sm:$0xff]  ;;  %v15977_v44 = vld [vmem:[#allocation79_spill] sm:$0xff] }
 0x4c3   : > { %10962 = vmatprep.subr.bf16.mxu1 %v10961_v60  ;;  %v10973_v31 = vpack.c.bf16 %v8737_v61, %v8736_v15  ;;  %v15967_v15 = vld [vmem:[#allocation70_spill] sm:$0xff] }
 0x4c5   : > { %10334 = vmatmul.mubr.f32.gmra.mrb[20].mxu1 %v5829_v43  ;;  %v5837_v43 = vmul.f32 %v14152_v14, %v15885_v26 }
 0x4c6   : > { %10336 = vmatprep.mubr.f32.mxu1 %v5830_v27  ;;  %10964 = vmatpush3.bf16.msra.mxu1 %v10961_v60  ;;  %v8739_v60 = vld [vmem:[%s15235_s7 + $0x268] sm:$0xff] }
 0x4c7   : > { %10966 = vmatprep.subr.bf16.mxu1 %v10965_v4  ;;  %v10977_v12 = vpack.c.bf16 %v8739_v60, %v8738_v34  ;;  %v8743_v27 = vld [vmem:[%s15235_s7 + $0x288] sm:$0xff] }
 0x4c8   : > { %v10985_v14 = vpack.c.bf16 %v8743_v27, %v8742_v10  ;;  %v14512_v10 = vld [vmem:[#allocation2 + $0x10f] sm:$0xff] }
 0x4c9   : > { %10337 = vmatmul.mubr.f32.gmra.mrb[22].mxu1 %v5831_v9  ;;  %v5842_v9 = vmul.f32 %v14179_v47, %v15890_v0  ;;  %v5847_v47 = vmul.f32 %v14201_v33, %v15895_v29  ;;  %v14506_v33 = vld [vmem:[#allocation2 + $0x107] sm:$0xff] }
 0x4ca   : > { %10339 = vmatprep.mubr.f32.mxu1 %v5832_v36  ;;  %10968 = vmatpush3.bf16.msra.mxu1 %v10965_v4  ;;  %v5838_v4 = vmul.f32 %v14160_v20, %v15886_v54  ;;  %v5841_v20 = vmul.f32 %v14177_v1, %v15889_v56  ;;  %v5846_v1 = vmul.f32 %v14195_v40, %v15894_v45  ;;  %v15966_v36 = vld [vmem:[#allocation42_spill] sm:$0xff]  ;;  %v15973_v40 = vld [vmem:[#allocation75_spill] sm:$0xff] }
 0x4cb   : > { %10970 = vmatprep.subr.bf16.mxu1 %v10969_v18  ;;  %v5848_v61 = vmul.f32 %v15967_v15, %v15966_v36  ;;  %v5851_v60 = vmul.f32 %v15973_v40, %v15972_v63  ;;  %v15979_v27 = vld [vmem:[#allocation50_spill] sm:$0xff]  ;;  %v8750_v40 = vld [vmem:[%s15235_s7 + $0x2c0] sm:$0xff] }
 0x4cd   : > { %10340 = vmatmul.mubr.f32.gmra.mrb[24].mxu1 %v5833_v17 }
 0x4ce   : > { %10342 = vmatprep.mubr.f32.mxu1 %v5834_v53  ;;  %10972 = vmatpush3.bf16.msra.mxu1 %v10969_v18  ;;  %v5844_v18 = vmul.f32 %v14187_v48, %v15892_v49  ;;  %v15969_v48 = vld [vmem:[#allocation71_spill] sm:$0xff]  ;;  %v15971_v53 = vld [vmem:[#allocation74_spill] sm:$0xff] }
 0x4cf   : > { %10974 = vmatprep.subr.bf16.mxu1 %v10973_v31  ;;  %v5849_v17 = vmul.f32 %v15969_v48, %v15968_v41  ;;  %v8748_v48 = vld [vmem:[%s15235_s7 + $0x2b0] sm:$0xff] }
 0x4d1   : > { %10343 = vmatmul.mubr.f32.gmra.mrb[26].mxu1 %v5835_v59  ;;  %v15974_v59 = vld [vmem:[#allocation47_spill] sm:$0xff] }
 0x4d2   : > { %10345 = vmatprep.mubr.f32.mxu1 %v5836_v2  ;;  %10976 = vmatpush3.bf16.msra.mxu1 %v10973_v31  ;;  %v15970_v31 = vld [vmem:[#allocation44_spill] sm:$0xff] }
 0x4d3   : > { %10978 = vmatprep.subr.bf16.mxu1 %v10977_v12  ;;  %v5850_v34 = vmul.f32 %v15971_v53, %v15970_v31  ;;  %v14540_v53 = vld [vmem:[#allocation2 + $0x38] sm:$0xff] }
 0x4d5   : > { %10346 = vmatmul.mubr.f32.gmra.mrb[28].mxu1 %v5837_v43  ;;  %v5853_v43 = vmul.f32 %v15977_v44, %v15976_v19  ;;  %v14555_v44 = vld [vmem:[#allocation2 + $0x50] sm:$0xff] }
 0x4d6   : > { %10348 = vmatprep.mubr.f32.mxu1 %v5838_v4  ;;  %10980 = vmatpush3.bf16.msra.mxu1 %v10977_v12  ;;  %v15975_v12 = vld [vmem:[#allocation78_spill] sm:$0xff]  ;;  %15980 = vst [vmem:[#allocation89_spill] sm:$0xff] %v14555_v44 }
 0x4d7   : > { %10982 = vmatprep.subr.bf16.mxu1 %v10981_v58  ;;  %v5852_v2 = vmul.f32 %v15975_v12, %v15974_v59  ;;  %v14552_v12 = vld [vmem:[#allocation2 + $0x48] sm:$0xff] }
 0x4d9   : > { %10349 = vmatmul.mubr.f32.gmra.mrb[30].mxu1 %v5839_v5  ;;  %v5855_v5 = vmul.f32 %v14512_v10, %v15979_v27 }
 0x4da   : > { %10351 = vmatprep.mubr.f32.mxu1 %v5840_v23  ;;  %10984 = vmatpush3.bf16.msra.mxu1 %v10981_v58  ;;  %v15978_v58 = vld [vmem:[#allocation51_spill] sm:$0xff] }
 0x4db   : > { %10986 = vmatprep.subr.bf16.mxu1 %v10985_v14  ;;  %v5854_v4 = vmul.f32 %v14506_v33, %v15978_v58  ;;  %v8744_v23 = vld [vmem:[%s15235_s7 + $0x290] sm:$0xff] }
 0x4dd   : > { %10352 = vmatmul.mubr.f32.gmra.mrb[32].mxu1 %v5841_v20  ;;  %v8745_v20 = vld [vmem:[%s15235_s7 + $0x298] sm:$0xff] }
 0x4de   : > { %10354 = vmatprep.mubr.f32.mxu1 %v5842_v9  ;;  %v6130_v9 = vld [vmem:[#allocation2 + $0x18] sm:$0xff] }
 0x4e1   : > { %10355 = vmatmul.mubr.f32.gmra.mrb[34].mxu1 %v5843_v3  ;;  %v10989_v3 = vpack.c.bf16 %v8745_v20, %v8744_v23  ;;  %v14567_v20 = vld [vmem:[#allocation2 + $0x60] sm:$0xff] }
 0x4e2   : > { %10357 = vmatprep.mubr.f32.mxu1 %v5844_v18  ;;  %v6131_v18 = vld [vmem:[#allocation2 + $0x20] sm:$0xff]  ;;  %15982 = vst [vmem:[#allocation95_spill] sm:$0xff] %v14567_v20 }
 0x4e5   : > { %10358 = vmatmul.mubr.f32.gmra.mrb[36].mxu1 %v5845_v32  ;;  %v8746_v32 = vld [vmem:[%s15235_s7 + $0x2a0] sm:$0xff] }
 0x4e6   : > { %10360 = vmatprep.mubr.f32.mxu1 %v5846_v1  ;;  %v8747_v1 = vld [vmem:[%s15235_s7 + $0x2a8] sm:$0xff] }
 0x4e7   : > { %v10993_v15 = vpack.c.bf16 %v8747_v1, %v8746_v32  ;;  %v14579_v1 = vld [vmem:[#allocation2 + $0x70] sm:$0xff] }
 0x4e8   : > { %15984 = vst [vmem:[#allocation101_spill] sm:$0xff] %v14579_v1 }
 0x4e9   : > { %10361 = vmatmul.mubr.f32.gmra.mrb[38].mxu1 %v5847_v47  ;;  %v14528_v47 = vld [vmem:[#allocation2 + $0x28] sm:$0xff] }
 0x4ea   : > { %10363 = vmatprep.mubr.f32.mxu1 %v5848_v61  ;;  %v14531_v61 = vld [vmem:[#allocation2 + $0x30] sm:$0xff] }
 0x4ed   : > { %10364 = vmatmul.mubr.f32.gmra.mrb[40].mxu1 %v5849_v17  ;;  %v8749_v17 = vld [vmem:[%s15235_s7 + $0x2b8] sm:$0xff] }
 0x4ee   : > { %10366 = vmatprep.mubr.f32.mxu1 %v5850_v34  ;;  %v14543_v34 = vld [vmem:[#allocation2 + $0x40] sm:$0xff] }
 0x4f1   : > { %10367 = vmatmul.mubr.f32.gmra.mrb[42].mxu1 %v5851_v60  ;;  %v8751_v60 = vld [vmem:[%s15235_s7 + $0x2c8] sm:$0xff] }
 0x4f2   : > { %10369 = vmatprep.mubr.f32.mxu1 %v5852_v2  ;;  %v11001_v2 = vpack.c.bf16 %v8751_v60, %v8750_v40  ;;  %v14591_v40 = vld [vmem:[#allocation2 + $0x80] sm:$0xff] }
 0x4f3   : > { %15986 = vst [vmem:[#allocation107_spill] sm:$0xff] %v14591_v40  ;;  %v8758_v60 = vld [vmem:[%s15235_s7 + $0x300] sm:$0xff] }
 0x4f5   : > { %10370 = vmatmul.mubr.f32.gmra.mrb[44].mxu1 %v5853_v43  ;;  %v8752_v43 = vld [vmem:[%s15235_s7 + $0x2d0] sm:$0xff] }
 0x4f6   : > { %10372 = vmatprep.mubr.f32.mxu1 %v5854_v4  ;;  %v8753_v4 = vld [vmem:[%s15235_s7 + $0x2d8] sm:$0xff] }
 0x4f7   : > { %v11005_v23 = vpack.c.bf16 %v8753_v4, %v8752_v43  ;;  %v14600_v43 = vld [vmem:[#allocation2 + $0x88] sm:$0xff] }
 0x4f8   : > { %15987 = vst [vmem:[#allocation108_spill] sm:$0xff] %v14600_v43 }
 0x4f9   : > { %10373 = vmatmul.mubr.f32.gmra.mrb[46].mxu1 %v5855_v5  ;;  %v14564_v5 = vld [vmem:[#allocation2 + $0x58] sm:$0xff] }
 0x4fa   : > { %10407 = vmatprep.mubr.f32.mxu1 %v6130_v9  ;;  %15981 = vst [vmem:[#allocation90_spill] sm:$0xff] %v14564_v5  ;;  %v8754_v9 = vld [vmem:[%s15235_s7 + $0x2e0] sm:$0xff] }
 0x4fd   : > { %10408 = vmatmul.mubr.f32.vlgmr.msra.gmra.mrb[16].mxu1 %v6131_v18  ;;  %v14576_v18 = vld [vmem:[#allocation2 + $0x68] sm:$0xff] }
 0x4fe   : > { %10988 = vmatpush3.bf16.msra.mxu1 %v10985_v14  ;;  %10410 = vmatprep.mubr.f32.mxu1 %v14528_v47  ;;  %v10997_v14 = vpack.c.bf16 %v8749_v17, %v8748_v48  ;;  %15983 = vst [vmem:[#allocation96_spill] sm:$0xff] %v14576_v18  ;;  %v8757_v48 = vld [vmem:[%s15235_s7 + $0x2f8] sm:$0xff] }
 0x4ff   : > { %10990 = vmatprep.subr.bf16.mxu1 %v10989_v3  ;;  %v14588_v17 = vld [vmem:[#allocation2 + $0x78] sm:$0xff] }
 0x500   : > { %15985 = vst [vmem:[#allocation102_spill] sm:$0xff] %v14588_v17 }
 0x501   : > { %10411 = vmatmul.mubr.f32.gmra.mrb[18].mxu1 %v14531_v61 }
 0x502   : > { %10413 = vmatprep.mubr.f32.mxu1 %v14540_v53  ;;  %10992 = vmatpush3.bf16.msra.mxu1 %v10989_v3  ;;  %v8755_v3 = vld [vmem:[%s15235_s7 + $0x2e8] sm:$0xff] }
 0x503   : > { %10994 = vmatprep.subr.bf16.mxu1 %v10993_v15  ;;  %v11009_v32 = vpack.c.bf16 %v8755_v3, %v8754_v9  ;;  %v14606_v9 = vld [vmem:[#allocation2 + $0x98] sm:$0xff]  ;;  %v14609_v3 = vld [vmem:[#allocation2 + $0xa0] sm:$0xff] }
 0x504   : > { %15989 = vst [vmem:[#allocation114_spill] sm:$0xff] %v14606_v9  ;;  %15990 = vst [vmem:[#allocation119_spill] sm:$0xff] %v14609_v3 }
 0x505   : > { %10414 = vmatmul.mubr.f32.gmra.mrb[20].mxu1 %v14543_v34 }
 0x506   : > { %10416 = vmatprep.mubr.f32.mxu1 %v14552_v12  ;;  %10996 = vmatpush3.bf16.msra.mxu1 %v10993_v15  ;;  %v8756_v15 = vld [vmem:[%s15235_s7 + $0x2f0] sm:$0xff] }
 0x507   : > { %10998 = vmatprep.subr.bf16.mxu1 %v10997_v14 }
 0x509   : > { %10417 = vmatmul.mubr.f32.gmra.mrb[22].mxu1 %v14555_v44 }
 0x50a   : > { %10419 = vmatprep.mubr.f32.mxu1 %v14564_v5  ;;  %11000 = vmatpush3.bf16.msra.mxu1 %v10997_v14  ;;  %v11013_v14 = vpack.c.bf16 %v8757_v48, %v8756_v15  ;;  %v14612_v15 = vld [vmem:[#allocation2 + $0xa8] sm:$0xff]  ;;  %v14618_v48 = vld [vmem:[#allocation2 + $0xb8] sm:$0xff] }
 0x50b   : > { %11002 = vmatprep.subr.bf16.mxu1 %v11001_v2  ;;  %15991 = vst [vmem:[#allocation120_spill] sm:$0xff] %v14612_v15  ;;  %15993 = vst [vmem:[#allocation126_spill] sm:$0xff] %v14618_v48  ;;  %v16041_v5 = vld [vmem:[#allocation48_spill] sm:$0xff] }
 0x50d   : > { %10420 = vmatmul.mubr.f32.gmra.mrb[24].mxu1 %v14567_v20  ;;  %v8767_v20 = vld [vmem:[%s15235_s7 + $0x348] sm:$0xff] }
 0x50e   : > { %10422 = vmatprep.mubr.f32.mxu1 %v14576_v18  ;;  %11004 = vmatpush3.bf16.msra.mxu1 %v11001_v2  ;;  %v8759_v2 = vld [vmem:[%s15235_s7 + $0x308] sm:$0xff]  ;;  %v8764_v18 = vld [vmem:[%s15235_s7 + $0x330] sm:$0xff] }
 0x50f   : > { %11006 = vmatprep.subr.bf16.mxu1 %v11005_v23  ;;  %v11017_v4 = vpack.c.bf16 %v8759_v2, %v8758_v60  ;;  %v14621_v60 = vld [vmem:[#allocation2 + $0xc0] sm:$0xff]  ;;  %v14627_v2 = vld [vmem:[#allocation2 + $0xd0] sm:$0xff] }
 0x510   : > { %15994 = vst [vmem:[#allocation128_spill] sm:$0xff] %v14621_v60  ;;  %15996 = vst [vmem:[#allocation4_spill] sm:$0xff] %v14627_v2 }
 0x511   : > { %10423 = vmatmul.mubr.f32.gmra.mrb[26].mxu1 %v14579_v1 }
 0x512   : > { %10425 = vmatprep.mubr.f32.mxu1 %v14588_v17  ;;  %11008 = vmatpush3.bf16.msra.mxu1 %v11005_v23  ;;  %v14603_v23 = vld [vmem:[#allocation2 + $0x90] sm:$0xff] }
 0x513   : > { %11010 = vmatprep.subr.bf16.mxu1 %v11009_v32  ;;  %15988 = vst [vmem:[#allocation113_spill] sm:$0xff] %v14603_v23  ;;  %v16010_v17 = vld [vmem:[#allocation87_spill] sm:$0xff] }
 0x515   : > { %10426 = vmatmul.mubr.f32.gmra.mrb[28].mxu1 %v14591_v40  ;;  %v16009_v40 = vld [vmem:[#allocation58_spill] sm:$0xff] }
 0x516   : > { %10428 = vmatprep.mubr.f32.mxu1 %v14600_v43  ;;  %11012 = vmatpush3.bf16.msra.mxu1 %v11009_v32  ;;  %v14615_v32 = vld [vmem:[#allocation2 + $0xb0] sm:$0xff]  ;;  %v6470_v1 = vmul.f32 %v16010_v17, %v16009_v40  ;;  %v16013_v40 = vld [vmem:[#allocation62_spill] sm:$0xff] }
 0x517   : > { %11014 = vmatprep.subr.bf16.mxu1 %v11013_v14  ;;  %15992 = vst [vmem:[#allocation125_spill] sm:$0xff] %v14615_v32 }
 0x519   : > { %10429 = vmatmul.mubr.f32.gmra.mrb[30].mxu1 %v14603_v23  ;;  %v16008_v23 = vld [vmem:[#allocation83_spill] sm:$0xff] }
 0x51a   : > { %10431 = vmatprep.mubr.f32.mxu1 %v14606_v9  ;;  %11016 = vmatpush3.bf16.msra.mxu1 %v11013_v14  ;;  %v14624_v14 = vld [vmem:[#allocation2 + $0xc8] sm:$0xff] }
 0x51b   : > { %11018 = vmatprep.subr.bf16.mxu1 %v11017_v4  ;;  %15995 = vst [vmem:[#allocation3_spill] sm:$0xff] %v14624_v14 }
 0x51d   : > { %10432 = vmatmul.mubr.f32.gmra.mrb[32].mxu1 %v14609_v3  ;;  %v16005_v3 = vld [vmem:[#allocation55_spill] sm:$0xff] }
 0x51e   : > { %10434 = vmatprep.mubr.f32.mxu1 %v14612_v15  ;;  %v14630_v15 = vld [vmem:[#allocation2 + $0xd8] sm:$0xff] }
 0x51f   : > { %15997 = vst [vmem:[#allocation64_spill] sm:$0xff] %v14630_v15 }
 0x521   : > { %10435 = vmatmul.mubr.f32.gmra.mrb[34].mxu1 %v14615_v32  ;;  %v14633_v32 = vld [vmem:[#allocation2 + $0xe0] sm:$0xff] }
 0x522   : > { %10437 = vmatprep.mubr.f32.mxu1 %v14618_v48  ;;  %15998 = vst [vmem:[#allocation5_spill] sm:$0xff] %v14633_v32  ;;  %v14636_v48 = vld [vmem:[#allocation2 + $0xe8] sm:$0xff] }
 0x523   : > { %15999 = vst [vmem:[#allocation6_spill] sm:$0xff] %v14636_v48 }
 0x525   : > { %10438 = vmatmul.mubr.f32.gmra.mrb[36].mxu1 %v14621_v60  ;;  %v14639_v60 = vld [vmem:[#allocation2 + $0xf0] sm:$0xff] }
 0x526   : > { %10440 = vmatprep.mubr.f32.mxu1 %v14624_v14  ;;  %16000 = vst [vmem:[#allocation7_spill] sm:$0xff] %v14639_v60  ;;  %v14642_v14 = vld [vmem:[#allocation2 + $0xf8] sm:$0xff] }
 0x527   : > { %16001 = vst [vmem:[#allocation8_spill] sm:$0xff] %v14642_v14 }
 0x529   : > { %10441 = vmatmul.mubr.f32.gmra.mrb[38].mxu1 %v14627_v2  ;;  %v14645_v2 = vld [vmem:[#allocation2 + $0x100] sm:$0xff] }
 0x52a   : > { %10443 = vmatprep.mubr.f32.mxu1 %v14630_v15  ;;  %16002 = vst [vmem:[#allocation9_spill] sm:$0xff] %v14645_v2  ;;  %v14648_v15 = vld [vmem:[#allocation2 + $0x108] sm:$0xff] }
 0x52b   : > { %16003 = vst [vmem:[#allocation10_spill] sm:$0xff] %v14648_v15 }
 0x52d   : > { %10444 = vmatmul.mubr.f32.gmra.mrb[40].mxu1 %v14633_v32  ;;  %v14651_v32 = vld [vmem:[#allocation2 + $0x110] sm:$0xff] }
 0x52e   : > { %10446 = vmatprep.mubr.f32.mxu1 %v14636_v48  ;;  %16004 = vst [vmem:[#allocation11_spill] sm:$0xff] %v14651_v32  ;;  %v16006_v48 = vld [vmem:[#allocation82_spill] sm:$0xff] }
 0x52f   : > { %v6468_v9 = vmul.f32 %v16006_v48, %v16005_v3  ;;  %v8762_v48 = vld [vmem:[%s15235_s7 + $0x320] sm:$0xff]  ;;  %v8763_v3 = vld [vmem:[%s15235_s7 + $0x328] sm:$0xff] }
 0x530   : > { %v11025_v17 = vpack.c.bf16 %v8763_v3, %v8762_v48  ;;  %v16017_v48 = vld [vmem:[#allocation66_spill] sm:$0xff] }
 0x531   : > { %10447 = vmatmul.mubr.f32.gmra.mrb[42].mxu1 %v14639_v60  ;;  %v8760_v60 = vld [vmem:[%s15235_s7 + $0x310] sm:$0xff] }
 0x532   : > { %10449 = vmatprep.mubr.f32.mxu1 %v14642_v14  ;;  %v8761_v14 = vld [vmem:[%s15235_s7 + $0x318] sm:$0xff] }
 0x535   : > { %10450 = vmatmul.mubr.f32.gmra.mrb[44].mxu1 %v14645_v2  ;;  %v16007_v2 = vld [vmem:[#allocation54_spill] sm:$0xff] }
 0x536   : > { %10452 = vmatprep.mubr.f32.mxu1 %v14648_v15  ;;  %v6469_v43 = vmul.f32 %v16008_v23, %v16007_v2  ;;  %v11021_v15 = vpack.c.bf16 %v8761_v14, %v8760_v60  ;;  %v16011_v23 = vld [vmem:[#allocation57_spill] sm:$0xff]  ;;  %v16012_v60 = vld [vmem:[#allocation88_spill] sm:$0xff] }
 0x537   : > { %v6471_v14 = vmul.f32 %v16012_v60, %v16011_v23  ;;  %v16014_v2 = vld [vmem:[#allocation93_spill] sm:$0xff]  ;;  %v16018_v23 = vld [vmem:[#allocation99_spill] sm:$0xff] }
 0x539   : > { %10453 = vmatmul.mubr.f32.gmra.mrb[46].mxu1 %v14651_v32  ;;  %v6472_v32 = vmul.f32 %v16014_v2, %v16013_v40  ;;  %v6474_v2 = vmul.f32 %v16018_v23, %v16017_v48  ;;  %v8766_v40 = vld [vmem:[%s15235_s7 + $0x340] sm:$0xff]  ;;  %v8768_v23 = vld [vmem:[%s15235_s7 + $0x350] sm:$0xff]  ;;  %v8769_v48 = vld [vmem:[%s15235_s7 + $0x358] sm:$0xff] }
 0x53a   : > { %10487 = vmatprep.mubr.f32.mxu1 %v6468_v9  ;;  %v7923_v9 = vld [vmem:[%s15237_s9] sm:$0xff] }
 0x53b   : > { %10775 = vmatprep.subr.mxu0 %v7923_v9 }
 0x53c   : > { %10776 = vmatpush3.msra.mxu0 %v7923_v9 }
 0x53d   : > { %10488 = vmatmul.mubr.f32.vlgmr.msra.gmra.mrb[16].mxu1 %v6469_v43  ;;  %v16015_v43 = vld [vmem:[#allocation61_spill] sm:$0xff] }
 0x53e   : > { %11020 = vmatpush3.bf16.msra.mxu1 %v11017_v4  ;;  %10490 = vmatprep.mubr.f32.mxu1 %v6470_v1  ;;  %v8765_v1 = vld [vmem:[%s15235_s7 + $0x338] sm:$0xff]  ;;  %v16016_v4 = vld [vmem:[#allocation94_spill] sm:$0xff] }
 0x53f   : > { %11022 = vmatprep.subr.bf16.mxu1 %v11021_v15  ;;  %v6473_v60 = vmul.f32 %v16016_v4, %v16015_v43  ;;  %v11029_v3 = vpack.c.bf16 %v8765_v1, %v8764_v18  ;;  %v16021_v18 = vld [vmem:[#allocation69_spill] sm:$0xff]  ;;  %v16040_v43 = vld [vmem:[#allocation92_spill] sm:$0xff] }
 0x540   : > { %v16022_v1 = vld [vmem:[#allocation105_spill] sm:$0xff] }
 0x541   : > { %10491 = vmatmul.mubr.f32.gmra.mrb[18].mxu1 %v6471_v14  ;;  %v11033_v14 = vpack.c.bf16 %v8767_v20, %v8766_v40  ;;  %v6476_v4 = vmul.f32 %v16022_v1, %v16021_v18  ;;  %v16025_v20 = vld [vmem:[#allocation73_spill] sm:$0xff]  ;;  %v16026_v40 = vld [vmem:[#allocation111_spill] sm:$0xff]  ;;  %v8771_v18 = vld [vmem:[%s15235_s7 + $0x368] sm:$0xff] }
 0x542   : > { %10493 = vmatprep.mubr.f32.mxu1 %v6472_v32  ;;  %11024 = vmatpush3.bf16.msra.mxu1 %v11021_v15  ;;  %v16019_v15 = vld [vmem:[#allocation65_spill] sm:$0xff]  ;;  %v16020_v32 = vld [vmem:[#allocation100_spill] sm:$0xff] }
 0x543   : > { %11026 = vmatprep.subr.bf16.mxu1 %v11025_v17  ;;  %v6475_v9 = vmul.f32 %v16020_v32, %v16019_v15  ;;  %v11037_v32 = vpack.c.bf16 %v8769_v48, %v8768_v23  ;;  %v6478_v15 = vmul.f32 %v16026_v40, %v16025_v20  ;;  %v8770_v1 = vld [vmem:[%s15235_s7 + $0x360] sm:$0xff]  ;;  %v8772_v40 = vld [vmem:[%s15235_s7 + $0x370] sm:$0xff]  ;;  %v8773_v20 = vld [vmem:[%s15235_s7 + $0x378] sm:$0xff] }
 0x544   : > { %v16029_v48 = vld [vmem:[#allocation77_spill] sm:$0xff] }
 0x545   : > { %10494 = vmatmul.mubr.f32.gmra.mrb[20].mxu1 %v6473_v60  ;;  %v16024_v60 = vld [vmem:[#allocation106_spill] sm:$0xff]  ;;  %v16030_v23 = vld [vmem:[#allocation117_spill] sm:$0xff] }
 0x546   : > { %10496 = vmatprep.mubr.f32.mxu1 %v6474_v2  ;;  %11028 = vmatpush3.bf16.msra.mxu1 %v11025_v17  ;;  %v16023_v17 = vld [vmem:[#allocation68_spill] sm:$0xff] }
 0x547   : > { %11030 = vmatprep.subr.bf16.mxu1 %v11029_v3  ;;  %v6477_v2 = vmul.f32 %v16024_v60, %v16023_v17  ;;  %v11041_v60 = vpack.c.bf16 %v8771_v18, %v8770_v1  ;;  %v6480_v17 = vmul.f32 %v16030_v23, %v16029_v48  ;;  %v16032_v18 = vld [vmem:[#allocation81_spill] sm:$0xff]  ;;  %v16033_v1 = vld [vmem:[#allocation118_spill] sm:$0xff] }
 0x548   : > { %v8774_v23 = vld [vmem:[%s15235_s7 + $0x380] sm:$0xff]  ;;  %v8775_v48 = vld [vmem:[%s15235_s7 + $0x388] sm:$0xff] }
 0x549   : > { %10497 = vmatmul.mubr.f32.gmra.mrb[22].mxu1 %v6475_v9  ;;  %v16028_v9 = vld [vmem:[#allocation112_spill] sm:$0xff] }
 0x54a   : > { %10499 = vmatprep.mubr.f32.mxu1 %v6476_v4  ;;  %11032 = vmatpush3.bf16.msra.mxu1 %v11029_v3  ;;  %v16027_v3 = vld [vmem:[#allocation72_spill] sm:$0xff] }
 0x54b   : > { %11034 = vmatprep.subr.bf16.mxu1 %v11033_v14  ;;  %v6479_v4 = vmul.f32 %v16028_v9, %v16027_v3  ;;  %v6482_v9 = vmul.f32 %v16033_v1, %v16032_v18  ;;  %v16038_v1 = vld [vmem:[#allocation85_spill] sm:$0xff] }
 0x54c   : > { %v16039_v18 = vld [vmem:[#allocation45_spill] sm:$0xff] }
 0x54d   : > { %10500 = vmatmul.mubr.f32.gmra.mrb[24].mxu1 %v6477_v2  ;;  %v11045_v2 = vpack.c.bf16 %v8773_v20, %v8772_v40  ;;  %v16036_v20 = vld [vmem:[#allocation86_spill] sm:$0xff]  ;;  %v16037_v40 = vld [vmem:[#allocation124_spill] sm:$0xff]  ;;  %v6485_v3 = vmul.f32 %v16039_v18, %v16038_v1  ;;  %v16050_v1 = vld [vmem:[#allocation103_spill] sm:$0xff] }
 0x54e   : > { %10502 = vmatprep.mubr.f32.mxu1 %v6478_v15  ;;  %11036 = vmatpush3.bf16.msra.mxu1 %v11033_v14  ;;  %v16031_v15 = vld [vmem:[#allocation76_spill] sm:$0xff] }
 0x54f   : > { %11038 = vmatprep.subr.bf16.mxu1 %v11037_v32  ;;  %v6481_v14 = vmul.f32 %v14326_v38, %v16031_v15  ;;  %v11049_v38 = vpack.c.bf16 %v8775_v48, %v8774_v23  ;;  %v6484_v15 = vmul.f32 %v16037_v40, %v16036_v20  ;;  %v16045_v48 = vld [vmem:[#allocation53_spill] sm:$0xff]  ;;  %v16048_v40 = vld [vmem:[#allocation104_spill] sm:$0xff] }
 0x550   : > { %v16049_v20 = vld [vmem:[#allocation49_spill] sm:$0xff] }
 0x551   : > { %10503 = vmatmul.mubr.f32.gmra.mrb[26].mxu1 %v6479_v4  ;;  %v6490_v18 = vmul.f32 %v16049_v20, %v16048_v40 }
 0x552   : > { %10505 = vmatprep.mubr.f32.mxu1 %v6480_v17  ;;  %11040 = vmatpush3.bf16.msra.mxu1 %v11037_v32  ;;  %v16034_v17 = vld [vmem:[#allocation80_spill] sm:$0xff]  ;;  %v16035_v32 = vld [vmem:[#allocation123_spill] sm:$0xff] }
 0x553   : > { %11042 = vmatprep.subr.bf16.mxu1 %v11041_v60  ;;  %v6483_v4 = vmul.f32 %v16035_v32, %v16034_v17  ;;  %v16044_v17 = vld [vmem:[#allocation98_spill] sm:$0xff] }
 0x554   : > { %v6488_v23 = vmul.f32 %v16045_v48, %v16044_v17  ;;  %v16055_v48 = vld [vmem:[#allocation116_spill] sm:$0xff] }
 0x555   : > { %10506 = vmatmul.mubr.f32.gmra.mrb[28].mxu1 %v6481_v14  ;;  %v6486_v14 = vmul.f32 %v16041_v5, %v16040_v43  ;;  %v16051_v5 = vld [vmem:[#allocation130_spill] sm:$0xff]  ;;  %v16053_v43 = vld [vmem:[#allocation84_spill] sm:$0xff] }
 0x556   : > { %10508 = vmatprep.mubr.f32.mxu1 %v6482_v9  ;;  %11044 = vmatpush3.bf16.msra.mxu1 %v11041_v60  ;;  %v16042_v60 = vld [vmem:[#allocation91_spill] sm:$0xff]  ;;  %v16043_v9 = vld [vmem:[#allocation52_spill] sm:$0xff] }
 0x557   : > { %11046 = vmatprep.subr.bf16.mxu1 %v11045_v2  ;;  %v6487_v32 = vmul.f32 %v16043_v9, %v16042_v60  ;;  %v16054_v9 = vld [vmem:[#allocation109_spill] sm:$0xff] }
 0x559   : > { %10509 = vmatmul.mubr.f32.gmra.mrb[30].mxu1 %v6483_v4  ;;  %v16046_v4 = vld [vmem:[#allocation97_spill] sm:$0xff] }
 0x55a   : > { %10511 = vmatprep.mubr.f32.mxu1 %v6484_v15  ;;  %11048 = vmatpush3.bf16.msra.mxu1 %v11045_v2  ;;  %v16047_v15 = vld [vmem:[#allocation56_spill] sm:$0xff] }
 0x55b   : > { %11050 = vmatprep.subr.bf16.mxu1 %v11049_v38  ;;  %v6489_v2 = vmul.f32 %v16047_v15, %v16046_v4  ;;  %v16056_v15 = vld [vmem:[#allocation115_spill] sm:$0xff] }
 0x55c   : > { %v6495_v20 = vmul.f32 %v14388_v37, %v16056_v15 }
 0x55d   : > { %10512 = vmatmul.mubr.f32.gmra.mrb[32].mxu1 %v6485_v3  ;;  %v6491_v3 = vmul.f32 %v16051_v5, %v16050_v1  ;;  %v14763_v5 = vld [vmem:[#allocation2 + $0x109] sm:$0xff] }
 0x55e   : > { %10514 = vmatprep.mubr.f32.mxu1 %v6486_v14  ;;  %v16052_v14 = vld [vmem:[#allocation110_spill] sm:$0xff] }
 0x55f   : > { %v6492_v44 = vmul.f32 %v16053_v43, %v16052_v14  ;;  %v14769_v43 = vld [vmem:[#allocation2 + $0x111] sm:$0xff] }
 0x560   : > { %16058 = vst [vmem:[#allocation12_spill] sm:$0xff] %v14769_v43 }
 0x561   : > { %10515 = vmatmul.mubr.f32.gmra.mrb[34].mxu1 %v6487_v32  ;;  %v6493_v32 = vmul.f32 %v14380_v57, %v16054_v9  ;;  %v6498_v57 = vmul.f32 %v14763_v5, %v15964_v25  ;;  %v8779_v25 = vld [vmem:[%s15235_s7 + $0x3a8] sm:$0xff] }
 0x562   : > { %10517 = vmatprep.mubr.f32.mxu1 %v6488_v23  ;;  %v6494_v23 = vmul.f32 %v14382_v21, %v16055_v48  ;;  %v6774_v21 = vld [vmem:[#allocation2 + $0x27] sm:$0xff] }
 0x565   : > { %10518 = vmatmul.mubr.f32.gmra.mrb[36].mxu1 %v6489_v2  ;;  %v16057_v2 = vld [vmem:[#allocation122_spill] sm:$0xff] }
 0x566   : > { %10520 = vmatprep.mubr.f32.mxu1 %v6490_v18  ;;  %v6496_v18 = vmul.f32 %v14390_v46, %v16057_v2 }
 0x569   : > { %10521 = vmatmul.mubr.f32.gmra.mrb[38].mxu1 %v6491_v3  ;;  %v16059_v3 = vld [vmem:[#allocation129_spill] sm:$0xff] }
 0x56a   : > { %10523 = vmatprep.mubr.f32.mxu1 %v6492_v44  ;;  %v6497_v44 = vmul.f32 %v14396_v8, %v15963_v16  ;;  %v6499_v37 = vmul.f32 %v14769_v43, %v16059_v3  ;;  %v8777_v8 = vld [vmem:[%s15235_s7 + $0x398] sm:$0xff]  ;;  %v6778_v43 = vld [vmem:[#allocation2 + $0x47] sm:$0xff] }
 0x56d   : > { %10524 = vmatmul.mubr.f32.gmra.mrb[40].mxu1 %v6493_v32  ;;  %v16060_v32 = vld [vmem:[#allocation18_spill] sm:$0xff] }
 0x56e   : > { %10526 = vmatprep.mubr.f32.mxu1 %v6494_v23  ;;  %v6806_v46 = vmul.f32 %v6774_v21, %v16060_v32  ;;  %v6775_v23 = vld [vmem:[#allocation2 + $0x2f] sm:$0xff]  ;;  %v6777_v21 = vld [vmem:[#allocation2 + $0x3f] sm:$0xff] }
 0x56f   : > { %v8778_v32 = vld [vmem:[%s15235_s7 + $0x3a0] sm:$0xff] }
 0x571   : > { %10527 = vmatmul.mubr.f32.gmra.mrb[42].mxu1 %v6495_v20  ;;  %v8776_v20 = vld [vmem:[%s15235_s7 + $0x390] sm:$0xff] }
 0x572   : > { %10529 = vmatprep.mubr.f32.mxu1 %v6496_v18  ;;  %v6776_v18 = vld [vmem:[#allocation2 + $0x37] sm:$0xff] }
 0x573   : > { %v6808_v3 = vmul.f32 %v6776_v18, %v15874_v6  ;;  %v11057_v6 = vpack.c.bf16 %v8779_v25, %v8778_v32  ;;  %v7894_v25 = vld [vmem:[%s11758_s21 + $0x30] sm:$0xff]  ;;  %v6782_v32 = vld [vmem:[#allocation2 + $0x67] sm:$0xff] }
 0x575   : > { %10530 = vmatmul.mubr.f32.gmra.mrb[44].mxu1 %v6497_v44  ;;  %v6807_v44 = vmul.f32 %v6775_v23, %v15873_v7  ;;  %v7892_v7 = vld [vmem:[%s11758_s21 + $0x20] sm:$0xff]  ;;  %v6810_v23 = vmul.f32 %v6778_v43, %v15876_v35 }
 0x576   : > { %10532 = vmatprep.mubr.f32.mxu1 %v6498_v57  ;;  %v11053_v57 = vpack.c.bf16 %v8777_v8, %v8776_v20  ;;  %v6779_v20 = vld [vmem:[#allocation2 + $0x4f] sm:$0xff] }
 0x577   : > { %v8780_v8 = vld [vmem:[%s15235_s7 + $0x3b0] sm:$0xff]  ;;  %v6811_v35 = vmul.f32 %v6779_v20, %v15877_v11  ;;  %v7895_v11 = vld [vmem:[%s11758_s21 + $0x38] sm:$0xff] }
 0x578   : > { %v8784_v20 = vld [vmem:[%s15235_s7 + $0x3d0] sm:$0xff] }
 0x579   : > { %10533 = vmatmul.mubr.f32.gmra.mrb[46].mxu1 %v6499_v37  ;;  %v7891_v37 = vld [vmem:[%s11758_s21 + $0x18] sm:$0xff] }
 0x57a   : > { %10567 = vmatprep.mubr.f32.mxu1 %v6806_v46  ;;  %v6809_v46 = vmul.f32 %v6777_v21, %v15875_v50  ;;  %10777 = vmatprep.mubr.msk.f32.mxu0 %vm16061_vm13, %v7891_v37  ;;  %v7893_v50 = vld [vmem:[%s11758_s21 + $0x28] sm:$0xff]  ;;  %v8782_v21 = vld [vmem:[%s15235_s7 + $0x3c0] sm:$0xff]  ;;  %vm16077_vm13 = vmmov %vm16076_vm0 }
 0x57b   : > { %10778 = vmatmul.mubr.msk.f32.vlgmr.msra.gmra.mrb[32].mxu0 %vm16062_vm14, %v7892_v7  ;;  %v7896_v37 = vld [vmem:[%s11758_s21 + $0x40] sm:$0xff]  ;;  %vm16078_vm14 = vmmov %vm16076_vm0 }
 0x57c   : > { %10780 = vmatprep.mubr.msk.f32.mxu0 %vm16063_vm15, %v7893_v50  ;;  %vm16079_vm15 = vmmov %vm16076_vm0 }
 0x57d   : > { %10568 = vmatmul.mubr.f32.vlgmr.msra.gmra.mrb[16].mxu1 %v6807_v44  ;;  %v6781_v44 = vld [vmem:[#allocation2 + $0x5f] sm:$0xff] }
 0x57e   : > { %11052 = vmatpush3.bf16.msra.mxu1 %v11049_v38  ;;  %10570 = vmatprep.mubr.f32.mxu1 %v6808_v3  ;;  %v8781_v38 = vld [vmem:[%s15235_s7 + $0x3b8] sm:$0xff] }
 0x57f   : > { %11054 = vmatprep.subr.bf16.mxu1 %v11053_v57  ;;  %v6780_v3 = vld [vmem:[#allocation2 + $0x57] sm:$0xff]  ;;  %v11061_v43 = vpack.c.bf16 %v8781_v38, %v8780_v8  ;;  %10781 = vmatmul.mubr.msk.f32.gmra.mrb[34].mxu0 %vm16064_vm2, %v7894_v25  ;;  %v6785_v25 = vld [vmem:[#allocation2 + $0x7f] sm:$0xff]  ;;  %vm16080_vm2 = vmmov %vm16076_vm0 }
 0x580   : > { %v6812_v18 = vmul.f32 %v6780_v3, %v15878_v13  ;;  %v6813_v13 = vmul.f32 %v6781_v44, %v15879_v39  ;;  %10783 = vmatprep.mubr.msk.f32.mxu0 %vm16065_vm3, %v7895_v11  ;;  %v6784_v8 = vld [vmem:[#allocation2 + $0x77] sm:$0xff]  ;;  %v7897_v39 = vld [vmem:[%s11758_s21 + $0x48] sm:$0xff]  ;;  %v7900_v44 = vld [vmem:[%s11758_s21 + $0x60] sm:$0xff] }
 0x581   : > { %10571 = vmatmul.mubr.f32.gmra.mrb[18].mxu1 %v6809_v46  ;;  %v6814_v46 = vmul.f32 %v6782_v32, %v15880_v42  ;;  %v7898_v38 = vld [vmem:[%s11758_s21 + $0x50] sm:$0xff]  ;;  %v6816_v50 = vmul.f32 %v6784_v8, %v15882_v28  ;;  %v6817_v28 = vmul.f32 %v6785_v25, %v15883_v22  ;;  %v7901_v22 = vld [vmem:[%s11758_s21 + $0x68] sm:$0xff]  ;;  %vm16081_vm3 = vmmov %vm16076_vm0 }
 0x582   : > { %10573 = vmatprep.mubr.f32.mxu1 %v6810_v23  ;;  %11056 = vmatpush3.bf16.msra.mxu1 %v11053_v57  ;;  %v8783_v57 = vld [vmem:[%s15235_s7 + $0x3c8] sm:$0xff]  ;;  %v8788_v11 = vld [vmem:[%s15235_s7 + $0x3f0] sm:$0xff] }
 0x583   : > { %11058 = vmatprep.subr.bf16.mxu1 %v11057_v6  ;;  %v11065_v7 = vpack.c.bf16 %v8783_v57, %v8782_v21  ;;  %v6783_v23 = vld [vmem:[#allocation2 + $0x6f] sm:$0xff]  ;;  %10784 = vmatmul.mubr.msk.f32.gmra.mrb[36].mxu0 %vm16066_vm4, %v7896_v37  ;;  %v8789_v37 = vld [vmem:[%s15235_s7 + $0x3f8] sm:$0xff]  ;;  %vm16082_vm4 = vmmov %vm16076_vm0 }
 0x584   : > { %v6815_v42 = vmul.f32 %v6783_v23, %v15881_v52  ;;  %10786 = vmatprep.mubr.msk.f32.mxu0 %vm16067_vm8, %v7897_v39  ;;  %v7899_v52 = vld [vmem:[%s11758_s21 + $0x58] sm:$0xff]  ;;  %v6787_v32 = vld [vmem:[#allocation2 + $0x8f] sm:$0xff]  ;;  %v6790_v39 = vld [vmem:[#allocation2 + $0xa7] sm:$0xff] }
 0x585   : > { %10574 = vmatmul.mubr.f32.gmra.mrb[20].mxu1 %v6811_v35  ;;  %v8786_v35 = vld [vmem:[%s15235_s7 + $0x3e0] sm:$0xff]  ;;  %v8791_v8 = vld [vmem:[%s15235_s7 + $0x408] sm:$0xff]  ;;  %v6792_v25 = vld [vmem:[#allocation2 + $0xb7] sm:$0xff] }
 0x586   : > { %10576 = vmatprep.mubr.f32.mxu1 %v6812_v18  ;;  %11060 = vmatpush3.bf16.msra.mxu1 %v11057_v6  ;;  %v8785_v6 = vld [vmem:[%s15235_s7 + $0x3d8] sm:$0xff]  ;;  %v6786_v18 = vld [vmem:[#allocation2 + $0x87] sm:$0xff]  ;;  %vm16083_vm8 = vmmov %vm16076_vm0 }
 0x587   : > { %11062 = vmatprep.subr.bf16.mxu1 %v11061_v43  ;;  %v11069_v3 = vpack.c.bf16 %v8785_v6, %v8784_v20  ;;  %10787 = vmatmul.mubr.msk.f32.gmra.mrb[38].mxu0 %vm16068_vm9, %v7898_v38  ;;  %v6818_v57 = vmul.f32 %v6786_v18, %v15884_v51  ;;  %v6819_v51 = vmul.f32 %v6787_v32, %v15885_v26  ;;  %v6789_v20 = vld [vmem:[#allocation2 + $0x9f] sm:$0xff]  ;;  %v7909_v32 = vld [vmem:[%s11758_s21 + $0xa8] sm:$0xff]  ;;  %vm16084_vm9 = vmmov %vm16076_vm0 }
 0x588   : > { %10789 = vmatprep.mubr.msk.f32.mxu0 %vm16069_vm10, %v7899_v52  ;;  %v8790_v6 = vld [vmem:[%s15235_s7 + $0x400] sm:$0xff]  ;;  %v7903_v26 = vld [vmem:[%s11758_s21 + $0x78] sm:$0xff]  ;;  %v6824_v18 = vmul.f32 %v6792_v25, %v15890_v0  ;;  %vm16085_vm10 = vmmov %vm16076_vm0 }
 0x589   : > { %10577 = vmatmul.mubr.f32.gmra.mrb[22].mxu1 %v6813_v13  ;;  %v6788_v13 = vld [vmem:[#allocation2 + $0x97] sm:$0xff]  ;;  %v7904_v38 = vld [vmem:[%s11758_s21 + $0x80] sm:$0xff] }
 0x58a   : > { %10579 = vmatprep.mubr.f32.mxu1 %v6814_v46  ;;  %11064 = vmatpush3.bf16.msra.mxu1 %v11061_v43  ;;  %v8787_v43 = vld [vmem:[%s15235_s7 + $0x3e8] sm:$0xff]  ;;  %v11077_v46 = vpack.c.bf16 %v8789_v37, %v8788_v11  ;;  %v6820_v23 = vmul.f32 %v6788_v13, %v15886_v54  ;;  %v6821_v54 = vmul.f32 %v6789_v20, %v15887_v55  ;;  %v6796_v0 = vld [vmem:[#allocation2 + $0xd7] sm:$0xff]  ;;  %v6797_v13 = vld [vmem:[#allocation2 + $0xdf] sm:$0xff] }
 0x58b   : > { %11066 = vmatprep.subr.bf16.mxu1 %v11065_v7  ;;  %v11073_v21 = vpack.c.bf16 %v8787_v43, %v8786_v35  ;;  %10790 = vmatmul.mubr.msk.f32.gmra.mrb[40].mxu0 %vm16070_vm11, %v7900_v44  ;;  %v7905_v35 = vld [vmem:[%s11758_s21 + $0x88] sm:$0xff]  ;;  %v7906_v43 = vld [vmem:[%s11758_s21 + $0x90] sm:$0xff]  ;;  %v7907_v44 = vld [vmem:[%s11758_s21 + $0x98] sm:$0xff] }
 0x58c   : > { %10792 = vmatprep.mubr.msk.f32.mxu0 %vm16071_vm5, %v7901_v22  ;;  %v6794_v52 = vld [vmem:[#allocation2 + $0xc7] sm:$0xff]  ;;  %v7910_v11 = vld [vmem:[%s11758_s21 + $0xb0] sm:$0xff]  ;;  %v7911_v22 = vld [vmem:[%s11758_s21 + $0xb8] sm:$0xff] }
 0x58d   : > { %10580 = vmatmul.mubr.f32.gmra.mrb[24].mxu1 %v6815_v42  ;;  %v14863_v42 = vpack.c.bf16 %v8791_v8, %v8790_v6  ;;  %v7914_v20 = vld [vmem:[%s11758_s21 + $0xd0] sm:$0xff]  ;;  %v6801_v8 = vld [vmem:[#allocation2 + $0xff] sm:$0xff]  ;;  %vm16086_vm11 = vmmov %vm16076_vm0 }
 0x58e   : > { %10582 = vmatprep.mubr.f32.mxu1 %v6816_v50  ;;  %11068 = vmatpush3.bf16.msra.mxu1 %v11065_v7  ;;  %v7902_v7 = vld [vmem:[%s11758_s21 + $0x70] sm:$0xff]  ;;  %vm16087_vm5 = vmmov %vm16076_vm0 }
 0x58f   : > { %11070 = vmatprep.subr.bf16.mxu1 %v11069_v3  ;;  %10793 = vmatmul.mubr.msk.f32.gmra.mrb[42].mxu0 %vm16072_vm6, %v7902_v7  ;;  %v6791_v50 = vld [vmem:[#allocation2 + $0xaf] sm:$0xff]  ;;  %v7912_v7 = vld [vmem:[%s11758_s21 + $0xc0] sm:$0xff]  ;;  %vm16088_vm6 = vmmov %vm16076_vm0 }
 0x590   : > { %10795 = vmatprep.mubr.msk.f32.mxu0 %vm16073_vm12, %v7903_v26  ;;  %v6823_v55 = vmul.f32 %v6791_v50, %v15889_v56  ;;  %v6826_v56 = vmul.f32 %v6794_v52, %v15892_v49  ;;  %v6798_v49 = vld [vmem:[#allocation2 + $0xe7] sm:$0xff]  ;;  %v6833_v26 = vmul.f32 %v6801_v8, %v15972_v63  ;;  %v6805_v50 = vld [vmem:[#allocation2 + $0x11f] sm:$0xff]  ;;  %vm16089_vm12 = vmmov %vm16076_vm0 }
 0x591   : > { %10583 = vmatmul.mubr.f32.gmra.mrb[26].mxu1 %v6817_v28  ;;  %v7908_v28 = vld [vmem:[%s11758_s21 + $0xa0] sm:$0xff]  ;;  %v6837_v25 = vmul.f32 %v6805_v50, %v15979_v27  ;;  %v16107_v8 = vld [vmem:[#allocation3_spill] sm:$0xff] }
 0x592   : > { %10585 = vmatprep.mubr.f32.mxu1 %v6818_v57  ;;  %11072 = vmatpush3.bf16.msra.mxu1 %v11069_v3  ;;  %v6822_v3 = vmul.f32 %v6790_v39, %v15888_v30  ;;  %v6793_v30 = vld [vmem:[#allocation2 + $0xbf] sm:$0xff]  ;;  %v6795_v57 = vld [vmem:[#allocation2 + $0xcf] sm:$0xff] }
 0x593   : > { %11074 = vmatprep.subr.bf16.mxu1 %v11073_v21  ;;  %10796 = vmatmul.mubr.msk.f32.gmra.mrb[44].mxu0 %vm16074_vm7, %v7904_v38  ;;  %v6827_v37 = vmul.f32 %v6795_v57, %v15893_v24  ;;  %v6830_v24 = vmul.f32 %v6798_v49, %v15966_v36  ;;  %v7915_v36 = vld [vmem:[%s11758_s21 + $0xd8] sm:$0xff]  ;;  %v7916_v39 = vld [vmem:[%s11758_s21 + $0xe0] sm:$0xff]  ;;  %v7917_v38 = vld [vmem:[%s11758_s21 + $0xe8] sm:$0xff] }
 0x594   : > { %10798 = vmatprep.mubr.msk.f32.mxu0 %vm16075_vm1, %v7905_v35  ;;  %vm16090_vm7 = vmmov %vm16076_vm0  ;;  %v7922_v35 = vld [vmem:[%s11758_s21 + $0x110] sm:$0xff]  ;;  %v16092_v52 = vld [vmem:[#allocation89_spill] sm:$0xff] }
 0x595   : > { %10586 = vmatmul.mubr.f32.gmra.mrb[28].mxu1 %v6819_v51  ;;  %v6829_v51 = vmul.f32 %v6797_v13, %v15895_v29  ;;  %vm16091_vm1 = vmmov %vm16076_vm0  ;;  %v8804_v13 = vld [vmem:[%s15235_s7 + $0x470] sm:$0xff]  ;;  %v8805_v49 = vld [vmem:[%s15235_s7 + $0x478] sm:$0xff] }
 0x596   : > { %10588 = vmatprep.mubr.f32.mxu1 %v6820_v23  ;;  %11076 = vmatpush3.bf16.msra.mxu1 %v11073_v21  ;;  %v6825_v21 = vmul.f32 %v6793_v30, %v15891_v62  ;;  %v6828_v62 = vmul.f32 %v6796_v0, %v15894_v45  ;;  %v6800_v45 = vld [vmem:[#allocation2 + $0xf7] sm:$0xff]  ;;  %v7913_v23 = vld [vmem:[%s11758_s21 + $0xc8] sm:$0xff]  ;;  %v8802_v0 = vld [vmem:[%s15235_s7 + $0x460] sm:$0xff] }
 0x597   : > { %11078 = vmatprep.subr.bf16.mxu1 %v11077_v46  ;;  %10799 = vmatmul.mubr.msk.f32.gmra.mrb[46].mxu0 %vm16076_vm0, %v7906_v43  ;;  %v6832_v29 = vmul.f32 %v6800_v45, %v15970_v31  ;;  %v6804_v31 = vld [vmem:[#allocation2 + $0x117] sm:$0xff]  ;;  %v8794_v43 = vld [vmem:[%s15235_s7 + $0x420] sm:$0xff]  ;;  %v7418_v50 = vld [vmem:[#allocation2 + $0x29] sm:$0xff] }
 0x598   : > { %10801 = vmatprep.mubr.msk.f32.mxu0 %vm16077_vm13, %v7907_v44  ;;  %v6836_v63 = vmul.f32 %v6804_v31, %v15978_v58  ;;  %v7921_v58 = vld [vmem:[%s11758_s21 + $0x108] sm:$0xff]  ;;  %v8797_v30 = vld [vmem:[%s15235_s7 + $0x438] sm:$0xff]  ;;  %v16102_v45 = vld [vmem:[#allocation119_spill] sm:$0xff] }
 0x599   : > { %10589 = vmatmul.mubr.f32.gmra.mrb[30].mxu1 %v6821_v54  ;;  %v7918_v54 = vld [vmem:[%s11758_s21 + $0xf0] sm:$0xff]  ;;  %v16093_v44 = vld [vmem:[#allocation90_spill] sm:$0xff] }
 0x59a   : > { %10591 = vmatprep.mubr.f32.mxu1 %v6822_v3  ;;  %11080 = vmatpush3.bf16.msra.mxu1 %v11077_v46  ;;  %v6799_v46 = vld [vmem:[#allocation2 + $0xef] sm:$0xff]  ;;  %v6835_v3 = vmul.f32 %v14512_v10, %v15976_v19  ;;  %v8793_v10 = vld [vmem:[%s15235_s7 + $0x418] sm:$0xff] }
 0x59b   : > { %11082 = vmatprep.subr.bf16.mxu1 %v14863_v42  ;;  %10802 = vmatmul.mubr.msk.f32.gmra.mrb[48].mxu0 %vm16078_vm14, %v7908_v28  ;;  %v6831_v6 = vmul.f32 %v6799_v46, %v15968_v41  ;;  %v6834_v41 = vmul.f32 %v14506_v33, %v15974_v59  ;;  %v7919_v59 = vld [vmem:[%s11758_s21 + $0xf8] sm:$0xff]  ;;  %v7920_v33 = vld [vmem:[%s11758_s21 + $0x100] sm:$0xff]  ;;  %v8792_v19 = vld [vmem:[%s15235_s7 + $0x410] sm:$0xff] }
 0x59c   : > { %10804 = vmatprep.mubr.msk.f32.mxu0 %vm16079_vm15, %v7909_v32  ;;  %v11085_v27 = vpack.c.bf16 %v8793_v10, %v8792_v19  ;;  %v8801_v28 = vld [vmem:[%s15235_s7 + $0x458] sm:$0xff]  ;;  %v8803_v32 = vld [vmem:[%s15235_s7 + $0x468] sm:$0xff]  ;;  %v16112_v31 = vld [vmem:[#allocation7_spill] sm:$0xff] }
 0x59d   : > { %10592 = vmatmul.mubr.f32.gmra.mrb[32].mxu1 %v6823_v55  ;;  %v8795_v55 = vld [vmem:[%s15235_s7 + $0x428] sm:$0xff]  ;;  %v7419_v19 = vld [vmem:[#allocation2 + $0x31] sm:$0xff]  ;;  %v7420_v10 = vld [vmem:[#allocation2 + $0x39] sm:$0xff] }
 0x59e   : > { %10594 = vmatprep.mubr.f32.mxu1 %v6824_v18  ;;  %v8796_v18 = vld [vmem:[%s15235_s7 + $0x430] sm:$0xff]  ;;  %v16101_v46 = vld [vmem:[#allocation114_spill] sm:$0xff] }
 0x59f   : > { %10805 = vmatmul.mubr.msk.f32.gmra.mrb[50].mxu0 %vm16080_vm2, %v7910_v11  ;;  %v16096_v11 = vld [vmem:[#allocation101_spill] sm:$0xff] }
 0x5a0   : > { %10807 = vmatprep.mubr.msk.f32.mxu0 %vm16081_vm3, %v7911_v22  ;;  %v16098_v22 = vld [vmem:[#allocation107_spill] sm:$0xff] }
 0x5a1   : > { %10595 = vmatmul.mubr.f32.gmra.mrb[34].mxu1 %v6825_v21  ;;  %v16094_v21 = vld [vmem:[#allocation95_spill] sm:$0xff] }
 0x5a2   : > { %10597 = vmatprep.mubr.f32.mxu1 %v6826_v56  ;;  %v16095_v56 = vld [vmem:[#allocation96_spill] sm:$0xff] }
 0x5a3   : > { %10808 = vmatmul.mubr.msk.f32.gmra.mrb[52].mxu0 %vm16082_vm4, %v7912_v7  ;;  %v16099_v7 = vld [vmem:[#allocation108_spill] sm:$0xff] }
 0x5a4   : > { %10810 = vmatprep.mubr.msk.f32.mxu0 %vm16083_vm8, %v7913_v23  ;;  %v16103_v23 = vld [vmem:[#allocation120_spill] sm:$0xff] }
 0x5a5   : > { %10598 = vmatmul.mubr.f32.gmra.mrb[36].mxu1 %v6827_v37  ;;  %v16097_v37 = vld [vmem:[#allocation102_spill] sm:$0xff] }
 0x5a6   : > { %10600 = vmatprep.mubr.f32.mxu1 %v6828_v62  ;;  %v11105_v62 = vpack.c.bf16 %v8803_v32, %v8802_v0  ;;  %v16125_v32 = vld [vmem:[#allocation69_spill] sm:$0xff] }
 0x5a7   : > { %10811 = vmatmul.mubr.msk.f32.gmra.mrb[54].mxu0 %vm16084_vm9, %v7914_v20  ;;  %v16104_v20 = vld [vmem:[#allocation125_spill] sm:$0xff] }
 0x5a8   : > { %10813 = vmatprep.mubr.msk.f32.mxu0 %vm16085_vm10, %v7915_v36  ;;  %v16108_v36 = vld [vmem:[#allocation4_spill] sm:$0xff] }
 0x5a9   : > { %10601 = vmatmul.mubr.f32.gmra.mrb[38].mxu1 %v6829_v51  ;;  %v11109_v51 = vpack.c.bf16 %v8805_v49, %v8804_v13  ;;  %v16126_v13 = vld [vmem:[#allocation68_spill] sm:$0xff] }
 0x5aa   : > { %10603 = vmatprep.mubr.f32.mxu1 %v6830_v24  ;;  %v16100_v24 = vld [vmem:[#allocation113_spill] sm:$0xff] }
 0x5ab   : > { %10814 = vmatmul.mubr.msk.f32.gmra.mrb[56].mxu0 %vm16086_vm11, %v7916_v39  ;;  %v16109_v39 = vld [vmem:[#allocation64_spill] sm:$0xff] }
 0x5ac   : > { %10816 = vmatprep.mubr.msk.f32.mxu0 %vm16087_vm5, %v7917_v38  ;;  %v16113_v38 = vld [vmem:[#allocation8_spill] sm:$0xff] }
 0x5ad   : > { %10604 = vmatmul.mubr.f32.gmra.mrb[40].mxu1 %v6831_v6  ;;  %v16105_v6 = vld [vmem:[#allocation126_spill] sm:$0xff] }
 0x5ae   : > { %10606 = vmatprep.mubr.f32.mxu1 %v6832_v29  ;;  %v16106_v29 = vld [vmem:[#allocation128_spill] sm:$0xff] }
 0x5af   : > { %10817 = vmatmul.mubr.msk.f32.gmra.mrb[58].mxu0 %vm16088_vm6, %v7918_v54  ;;  %v16114_v54 = vld [vmem:[#allocation9_spill] sm:$0xff] }
 0x5b0   : > { %10819 = vmatprep.mubr.msk.f32.mxu0 %vm16089_vm12, %v7919_v59  ;;  %v11643_v59 = vld [vmem:[#allocation2 + $0x8] sm:$0xff] }
 0x5b1   : > { %10607 = vmatmul.mubr.f32.gmra.mrb[42].mxu1 %v6833_v26  ;;  %v16110_v26 = vld [vmem:[#allocation5_spill] sm:$0xff] }
 0x5b2   : > { %10609 = vmatprep.mubr.f32.mxu1 %v6834_v41  ;;  %v16111_v41 = vld [vmem:[#allocation6_spill] sm:$0xff] }
 0x5b3   : > { %10820 = vmatmul.mubr.msk.f32.gmra.mrb[60].mxu0 %vm16090_vm7, %v7920_v33  ;;  %v16117_v33 = vld [vmem:[#allocation55_spill] sm:$0xff] }
 0x5b4   : > { %10822 = vmatprep.mubr.msk.f32.mxu0 %vm16091_vm1, %v7921_v58  ;;  %v16118_v58 = vld [vmem:[#allocation54_spill] sm:$0xff] }
 0x5b5   : > { %10610 = vmatmul.mubr.f32.gmra.mrb[44].mxu1 %v6835_v3  ;;  %v16115_v3 = vld [vmem:[#allocation10_spill] sm:$0xff] }
 0x5b6   : > { %10612 = vmatprep.mubr.f32.mxu1 %v6836_v63  ;;  %v16116_v63 = vld [vmem:[#allocation11_spill] sm:$0xff] }
 0x5b7   : > { %10823 = vmatmul.mubr.msk.f32.gmra.mrb[62].mxu0 %vm16076_vm0, %v7922_v35  ;;  %v7451_v35 = vmul.f32 %v7419_v19, %v16118_v58  ;;  %v16135_v19 = vld [vmem:[#allocation92_spill] sm:$0xff]  ;;  %v7437_v58 = vld [vmem:[#allocation2 + $0xc1] sm:$0xff] }
 0x5b9   : > { %10613 = vmatmul.mubr.f32.gmra.mrb[46].mxu1 %v6837_v25  ;;  %v7450_v25 = vmul.f32 %v7418_v50, %v16117_v33  ;;  %v7435_v50 = vld [vmem:[#allocation2 + $0xb1] sm:$0xff]  ;;  %v16134_v33 = vld [vmem:[#allocation85_spill] sm:$0xff] }
 0x5ba   : > { %10647 = vmatprep.mubr.f32.mxu1 %v14528_v47  ;;  %v11089_v47 = vpack.c.bf16 %v8795_v55, %v8794_v43  ;;  %v7421_v55 = vld [vmem:[#allocation2 + $0x41] sm:$0xff] }
 0x5bd   : > { %10648 = vmatmul.mubr.f32.vlgmr.msra.gmra.mrb[16].mxu1 %v14531_v61  ;;  %v11093_v61 = vpack.c.bf16 %v8797_v30, %v8796_v18  ;;  %v16120_v18 = vld [vmem:[#allocation57_spill] sm:$0xff] }
 0x5be   : > { %11084 = vmatpush3.bf16.msra.mxu1 %v14863_v42  ;;  %10650 = vmatprep.mubr.f32.mxu1 %v14540_v53  ;;  %v8798_v53 = vld [vmem:[%s15235_s7 + $0x440] sm:$0xff]  ;;  %v8799_v42 = vld [vmem:[%s15235_s7 + $0x448] sm:$0xff]  ;;  %v7453_v30 = vmul.f32 %v7421_v55, %v16120_v18  ;;  %v7439_v55 = vld [vmem:[#allocation2 + $0xd1] sm:$0xff] }
 0x5bf   : > { %11086 = vmatprep.subr.bf16.mxu1 %v11085_v27  ;;  %v7471_v18 = vmul.f32 %v7439_v55, %v16046_v4 }
 0x5c1   : > { %10651 = vmatmul.mubr.f32.gmra.mrb[18].mxu1 %v14543_v34  ;;  %v11097_v34 = vpack.c.bf16 %v8799_v42, %v8798_v53  ;;  %v7423_v42 = vld [vmem:[#allocation2 + $0x51] sm:$0xff] }
 0x5c2   : > { %10653 = vmatprep.mubr.f32.mxu1 %v14552_v12  ;;  %11088 = vmatpush3.bf16.msra.mxu1 %v11085_v27  ;;  %v8800_v12 = vld [vmem:[%s15235_s7 + $0x450] sm:$0xff]  ;;  %v16119_v27 = vld [vmem:[#allocation58_spill] sm:$0xff] }
 0x5c3   : > { %11090 = vmatprep.subr.bf16.mxu1 %v11089_v47  ;;  %v11101_v57 = vpack.c.bf16 %v8801_v28, %v8800_v12  ;;  %v7452_v43 = vmul.f32 %v7420_v10, %v16119_v27  ;;  %v16123_v12 = vld [vmem:[#allocation66_spill] sm:$0xff]  ;;  %v7469_v27 = vmul.f32 %v7437_v58, %v16042_v60  ;;  %v7444_v60 = vld [vmem:[#allocation2 + $0xf9] sm:$0xff] }
 0x5c5   : > { %10654 = vmatmul.mubr.f32.gmra.mrb[20].mxu1 %v16092_v52  ;;  %v7424_v52 = vld [vmem:[#allocation2 + $0x59] sm:$0xff] }
 0x5c6   : > { %10656 = vmatprep.mubr.f32.mxu1 %v16093_v44  ;;  %11092 = vmatpush3.bf16.msra.mxu1 %v11089_v47  ;;  %v7422_v47 = vld [vmem:[#allocation2 + $0x49] sm:$0xff]  ;;  %v16122_v44 = vld [vmem:[#allocation61_spill] sm:$0xff]  ;;  %v7456_v28 = vmul.f32 %v7424_v52, %v16123_v12 }
 0x5c7   : > { %11094 = vmatprep.subr.bf16.mxu1 %v11093_v61  ;;  %v7445_v12 = vld [vmem:[#allocation2 + $0x101] sm:$0xff] }
 0x5c8   : > { %v7477_v4 = vmul.f32 %v7445_v12, %v16056_v15 }
 0x5c9   : > { %10657 = vmatmul.mubr.f32.gmra.mrb[22].mxu1 %v16094_v21  ;;  %v7425_v21 = vld [vmem:[#allocation2 + $0x61] sm:$0xff] }
 0x5ca   : > { %10659 = vmatprep.mubr.f32.mxu1 %v16095_v56  ;;  %11096 = vmatpush3.bf16.msra.mxu1 %v11093_v61  ;;  %v16121_v61 = vld [vmem:[#allocation62_spill] sm:$0xff] }
 0x5cb   : > { %11098 = vmatprep.subr.bf16.mxu1 %v11097_v34  ;;  %v7454_v53 = vmul.f32 %v7422_v47, %v16121_v61  ;;  %v7426_v56 = vld [vmem:[#allocation2 + $0x69] sm:$0xff]  ;;  %v7440_v47 = vld [vmem:[#allocation2 + $0xd9] sm:$0xff]  ;;  %v7441_v61 = vld [vmem:[#allocation2 + $0xe1] sm:$0xff] }
 0x5cd   : > { %10660 = vmatmul.mubr.f32.gmra.mrb[24].mxu1 %v16096_v11  ;;  %v7458_v11 = vmul.f32 %v7426_v56, %v16125_v32 }
 0x5ce   : > { %10662 = vmatprep.mubr.f32.mxu1 %v16097_v37  ;;  %11100 = vmatpush3.bf16.msra.mxu1 %v11097_v34  ;;  %v7455_v34 = vmul.f32 %v7423_v42, %v16122_v44  ;;  %v7427_v37 = vld [vmem:[#allocation2 + $0x71] sm:$0xff]  ;;  %v7473_v42 = vmul.f32 %v7441_v61, %v16050_v1  ;;  %v7448_v1 = vld [vmem:[#allocation2 + $0x119] sm:$0xff] }
 0x5cf   : > { %11102 = vmatprep.subr.bf16.mxu1 %v11101_v57  ;;  %v7459_v49 = vmul.f32 %v7427_v37, %v16126_v13  ;;  %v7443_v44 = vld [vmem:[#allocation2 + $0xf1] sm:$0xff] }
 0x5d1   : > { %10663 = vmatmul.mubr.f32.gmra.mrb[26].mxu1 %v16098_v22  ;;  %v16127_v22 = vld [vmem:[#allocation73_spill] sm:$0xff] }
 0x5d2   : > { %10665 = vmatprep.mubr.f32.mxu1 %v16099_v7  ;;  %11104 = vmatpush3.bf16.msra.mxu1 %v11101_v57  ;;  %v16124_v57 = vld [vmem:[#allocation65_spill] sm:$0xff] }
 0x5d3   : > { %11106 = vmatprep.subr.bf16.mxu1 %v11105_v62  ;;  %v7457_v0 = vmul.f32 %v7425_v21, %v16124_v57  ;;  %v16137_v21 = vld [vmem:[#allocation127_spill] sm:$0xff]  ;;  %v7449_v57 = vld [vmem:[#allocation2 + $0x121] sm:$0xff] }
 0x5d4   : > { %v7480_v56 = vmul.f32 %v7448_v1, %v16137_v21 }
 0x5d5   : > { %10666 = vmatmul.mubr.f32.gmra.mrb[28].mxu1 %v16100_v24  ;;  %v7430_v24 = vld [vmem:[#allocation2 + $0x89] sm:$0xff] }
 0x5d6   : > { %10668 = vmatprep.mubr.f32.mxu1 %v16101_v46  ;;  %11108 = vmatpush3.bf16.msra.mxu1 %v11105_v62  ;;  %v7428_v62 = vld [vmem:[#allocation2 + $0x79] sm:$0xff] }
 0x5d7   : > { %11110 = vmatprep.subr.bf16.mxu1 %v11109_v51  ;;  %v7460_v7 = vmul.f32 %v7428_v62, %v16127_v22  ;;  %v16128_v46 = vld [vmem:[#allocation72_spill] sm:$0xff] }
 0x5d9   : > { %10669 = vmatmul.mubr.f32.gmra.mrb[30].mxu1 %v16102_v45 }
 0x5da   : > { %10671 = vmatprep.mubr.f32.mxu1 %v16103_v23  ;;  %11112 = vmatpush3.bf16.msra.mxu1 %v11109_v51  ;;  %v7429_v51 = vld [vmem:[#allocation2 + $0x81] sm:$0xff] }
 0x5db   : > { %v7461_v45 = vmul.f32 %v7429_v51, %v16128_v46  ;;  %v16129_v23 = vld [vmem:[#allocation77_spill] sm:$0xff] }
 0x5dd   : > { %10672 = vmatmul.mubr.f32.gmra.mrb[32].mxu1 %v16104_v20  ;;  %v7462_v20 = vmul.f32 %v7430_v24, %v16129_v23 }
 0x5de   : > { %10674 = vmatprep.mubr.f32.mxu1 %v16105_v6  ;;  %v7431_v6 = vld [vmem:[#allocation2 + $0x91] sm:$0xff] }
 0x5e1   : > { %10675 = vmatmul.mubr.f32.gmra.mrb[34].mxu1 %v16106_v29  ;;  %v7432_v29 = vld [vmem:[#allocation2 + $0x99] sm:$0xff] }
 0x5e2   : > { %10677 = vmatprep.mubr.f32.mxu1 %v16107_v8  ;;  %v16130_v8 = vld [vmem:[#allocation76_spill] sm:$0xff] }
 0x5e5   : > { %10678 = vmatmul.mubr.f32.gmra.mrb[36].mxu1 %v16108_v36  ;;  %v7463_v36 = vmul.f32 %v7431_v6, %v16130_v8 }
 0x5e6   : > { %10680 = vmatprep.mubr.f32.mxu1 %v16109_v39  ;;  %v16131_v39 = vld [vmem:[#allocation81_spill] sm:$0xff] }
 0x5e9   : > { %10681 = vmatmul.mubr.f32.gmra.mrb[38].mxu1 %v16110_v26  ;;  %v7464_v26 = vmul.f32 %v7432_v29, %v16131_v39 }
 0x5ea   : > { %10683 = vmatprep.mubr.f32.mxu1 %v16111_v41  ;;  %v7433_v41 = vld [vmem:[#allocation2 + $0xa1] sm:$0xff] }
 0x5ed   : > { %10684 = vmatmul.mubr.f32.gmra.mrb[40].mxu1 %v16112_v31  ;;  %v7434_v31 = vld [vmem:[#allocation2 + $0xa9] sm:$0xff] }
 0x5ee   : > { %10686 = vmatprep.mubr.f32.mxu1 %v16113_v38  ;;  %v16132_v38 = vld [vmem:[#allocation80_spill] sm:$0xff] }
 0x5f1   : > { %10687 = vmatmul.mubr.f32.gmra.mrb[42].mxu1 %v16114_v54  ;;  %v7465_v54 = vmul.f32 %v7433_v41, %v16132_v38 }
 0x5f2   : > { %10689 = vmatprep.mubr.f32.mxu1 %v16115_v3  ;;  %v16133_v3 = vld [vmem:[#allocation86_spill] sm:$0xff] }
 0x5f5   : > { %10690 = vmatmul.mubr.f32.gmra.mrb[44].mxu1 %v16116_v63  ;;  %v7466_v63 = vmul.f32 %v7434_v31, %v16133_v3 }
 0x5f6   : > { %10692 = vmatprep.mubr.f32.mxu1 %v11643_v59 }
 0x5f9   : > { %10693 = vmatmul.mubr.f32.gmra.mrb[46].mxu1 %v11643_v59  ;;  %v7436_v59 = vld [vmem:[#allocation2 + $0xb9] sm:$0xff] }
 0x5fa   : > { %10727 = vmatprep.mubr.f32.mxu1 %v7450_v25  ;;  %v7467_v25 = vmul.f32 %v7435_v50, %v16134_v33  ;;  %v7468_v10 = vmul.f32 %v7436_v59, %v16135_v19  ;;  %v15088_v59 = vld [vmem:[%s15236_s8] ss:$0 sm:$0xff] }
 0x5fb   : > { %v15093_v33 = vld [vmem:[%s15238_s10] ss:$0 sm:$0xff] }
 0x5fd   : > { %10728 = vmatmul.mubr.f32.vlgmr.msra.gmra.mrb[16].mxu1 %v7451_v35  ;;  %v7438_v35 = vld [vmem:[#allocation2 + $0xc9] sm:$0xff] }
 0x5fe   : > { %10730 = vmatprep.mubr.f32.mxu1 %v7452_v43  ;;  %v7470_v43 = vmul.f32 %v7438_v35, %v16044_v17  ;;  %v7475_v17 = vmul.f32 %v7443_v44, %v16054_v9  ;;  %v16138_v9 = vld [vmem:[#allocation129_spill] sm:$0xff] }
 0x601   : > { %10731 = vmatmul.mubr.f32.gmra.mrb[18].mxu1 %v7453_v30  ;;  %v7472_v30 = vmul.f32 %v7440_v47, %v16048_v40  ;;  %v7478_v40 = vmul.f32 %v14763_v5, %v16057_v2 }
 0x602   : > { %10733 = vmatprep.mubr.f32.mxu1 %v7454_v53  ;;  %v7442_v53 = vld [vmem:[#allocation2 + $0xe9] sm:$0xff] }
 0x603   : > { %v7474_v52 = vmul.f32 %v7442_v53, %v16052_v14  ;;  %v16136_v14 = vld [vmem:[#allocation12_spill] sm:$0xff] }
 0x605   : > { %10734 = vmatmul.mubr.f32.gmra.mrb[20].mxu1 %v7455_v34  ;;  %v7476_v34 = vmul.f32 %v7444_v60, %v16055_v48  ;;  %v7481_v48 = vmul.f32 %v7449_v57, %v16138_v9 }
 0x606   : > { %10736 = vmatprep.mubr.f32.mxu1 %v7456_v28  ;;  %v7479_v28 = vmul.f32 %v16136_v14, %v15963_v16 }
 0x609   : > { %10737 = vmatmul.mubr.f32.gmra.mrb[22].mxu1 %v7457_v0 }
 0x60a   : > { %10739 = vmatprep.mubr.f32.mxu1 %v7458_v11 }
 0x60d   : > { %10740 = vmatmul.mubr.f32.gmra.mrb[24].mxu1 %v7459_v49 }
 0x60e   : > { %10742 = vmatprep.mubr.f32.mxu1 %v7460_v7 }
 0x611   : > { %10743 = vmatmul.mubr.f32.gmra.mrb[26].mxu1 %v7461_v45 }
 0x612   : > { %10745 = vmatprep.mubr.f32.mxu1 %v7462_v20 }
 0x615   : > { %10746 = vmatmul.mubr.f32.gmra.mrb[28].mxu1 %v7463_v36 }
 0x616   : > { %10748 = vmatprep.mubr.f32.mxu1 %v7464_v26 }
 0x619   : > { %10749 = vmatmul.mubr.f32.gmra.mrb[30].mxu1 %v7465_v54 }
 0x61a   : > { %10751 = vmatprep.mubr.f32.mxu1 %v7466_v63 }
 0x61d   : > { %10752 = vmatmul.mubr.f32.gmra.mrb[32].mxu1 %v7467_v25 }
 0x61e   : > { %10754 = vmatprep.mubr.f32.mxu1 %v7468_v10 }
 0x621   : > { %10755 = vmatmul.mubr.f32.gmra.mrb[34].mxu1 %v7469_v27 }
 0x622   : > { %10757 = vmatprep.mubr.f32.mxu1 %v7470_v43 }
 0x625   : > { %10758 = vmatmul.mubr.f32.gmra.mrb[36].mxu1 %v7471_v18 }
 0x626   : > { %10760 = vmatprep.mubr.f32.mxu1 %v7472_v30 }
 0x629   : > { %10761 = vmatmul.mubr.f32.gmra.mrb[38].mxu1 %v7473_v42 }
 0x62a   : > { %10763 = vmatprep.mubr.f32.mxu1 %v7474_v52 }
 0x62d   : > { %10764 = vmatmul.mubr.f32.gmra.mrb[40].mxu1 %v7475_v17 }
 0x62e   : > { %10766 = vmatprep.mubr.f32.mxu1 %v7476_v34 }
 0x631   : > { %10767 = vmatmul.mubr.f32.gmra.mrb[42].mxu1 %v7477_v4 }
 0x632   : > { %10769 = vmatprep.mubr.f32.mxu1 %v7478_v40 }
 0x635   : > { %10770 = vmatmul.mubr.f32.gmra.mrb[44].mxu1 %v7479_v28 }
 0x636   : > { %10772 = vmatprep.mubr.f32.mxu1 %v7480_v56 }
 0x639   : > { %10773 = vmatmul.mubr.f32.gmra.mrb[46].mxu1 %v7481_v48 }
 0x64e   : > { %v10779_v0 = vpop.f32.mrb[32].mxu0 }
 0x64f   : > { %v8093_v32 = vpop.f32.mrb[33].mxu0  ;;  %v8099_v35 = vadd.f32 %v10779_v0, %v15093_v33 }
 0x650   : > { %v8094_v43 = vadd.f32 %v15093_v33, %v8093_v32 }
 0x652   : > { %v10782_v15 = vpop.f32.mrb[34].mxu0 }
 0x653   : > { %v8103_v11 = vpop.f32.mrb[35].mxu0  ;;  %v8109_v44 = vadd.f32 %v10782_v15, %v15093_v33 }
 0x654   : > { %v8104_v34 = vadd.f32 %v15093_v33, %v8103_v11 }
 0x656   : > { %v15029_v37 = vpop.f32.mrb[36].mxu0 }
 0x657   : > { %v15031_v2 = vpop.f32.mrb[37].mxu0  ;;  %v8119_v57 = vadd.f32 %v15029_v37, %v15093_v33 }
 0x658   : > { %v8114_v0 = vadd.f32 %v15093_v33, %v15031_v2 }
 0x65a   : > { %v15033_v5 = vpop.f32.mrb[38].mxu0 }
 0x65b   : > { %v15035_v62 = vpop.f32.mrb[39].mxu0 }
 0x65e   : > { %v15037_v16 = vpop.f32.mrb[40].mxu0 }
 0x65f   : > { %v15039_v13 = vpop.f32.mrb[41].mxu0 }
 0x662   : > { %v15041_v49 = vpop.f32.mrb[42].mxu0 }
 0x663   : > { %v15043_v22 = vpop.f32.mrb[43].mxu0 }
 0x666   : > { %v15045_v7 = vpop.f32.mrb[44].mxu0 }
 0x667   : > { %v15047_v51 = vpop.f32.mrb[45].mxu0 }
 0x66a   : > { %v15049_v24 = vpop.f32.mrb[46].mxu0 }
 0x66b   : > { %v15051_v46 = vpop.f32.mrb[47].mxu0 }
 0x66e   : > { %v15053_v45 = vpop.f32.mrb[48].mxu0 }
 0x66f   : > { %v15055_v23 = vpop.f32.mrb[49].mxu0 }
 0x672   : > { %v15057_v20 = vpop.f32.mrb[50].mxu0 }
 0x673   : > { %v15059_v6 = vpop.f32.mrb[51].mxu0 }
 0x676   : > { %v15061_v29 = vpop.f32.mrb[52].mxu0 }
 0x677   : > { %v15063_v8 = vpop.f32.mrb[53].mxu0 }
 0x67a   : > { %v15065_v36 = vpop.f32.mrb[54].mxu0 }
 0x67b   : > { %v15067_v39 = vpop.f32.mrb[55].mxu0 }
 0x67e   : > { %v15069_v26 = vpop.f32.mrb[56].mxu0 }
 0x67f   : > { %v15071_v41 = vpop.f32.mrb[57].mxu0 }
 0x682   : > { %v15073_v31 = vpop.f32.mrb[58].mxu0 }
 0x683   : > { %v15075_v38 = vpop.f32.mrb[59].mxu0 }
 0x686   : > { %v15077_v54 = vpop.f32.mrb[60].mxu0 }
 0x687   : > { %v15079_v3 = vpop.f32.mrb[61].mxu0 }
 0x68a   : > { %v15081_v63 = vpop.f32.mrb[62].mxu0 }
 0x68b   : > { %v15083_v50 = vpop.f32.mrb[63].mxu0 }
 0x6d0   : > { %v10729_v25 = vpop.f32.mrb[16].mxu1 }
 0x6d1   : > { %v7764_v19 = vadd.f32 %v10729_v25, %v15088_v59  ;;  %v7565_v10 = vpop.f32.mrb[17].mxu1 }
 0x6d2   : > { %v7763_v58 = vadd.f32 %v15088_v59, %v7565_v10 }
 0x6d3   : > { %vm7796_vm13 = vcmp.ge.f32.partialorder %v7764_v19, 0.0  ;;  %v7828_v27 = vmul.f32 0.2, %v7764_v19 }
 0x6d4   : > { %vm7795_vm14 = vcmp.ge.f32.partialorder %v7763_v58, 0.0  ;;  %v7827_v55 = vmul.f32 0.2, %v7763_v58  ;;  %v10732_v47 = vpop.f32.mrb[18].mxu1 }
 0x6d5   : > { %v7860_v18 = vsel %vm7796_vm13, %v7764_v19, %v7828_v27  ;;  %v7766_v30 = vadd.f32 %v10732_v47, %v15088_v59  ;;  %v7575_v61 = vpop.f32.mrb[19].mxu1 }
 0x6d6   : > { %v8253_v53 = vadd.f32 %v8099_v35, %v7860_v18  ;;  %v7859_v42 = vsel %vm7795_vm14, %v7763_v58, %v7827_v55  ;;  %v7765_v52 = vadd.f32 %v15088_v59, %v7575_v61  ;;  %v8129_v35 = vadd.f32 %v15033_v5, %v15093_v33 }
 0x6d7   : > { %v8252_v60 = vadd.f32 %v8094_v43, %v7859_v42  ;;  %vm7798_vm15 = vcmp.ge.f32.partialorder %v7766_v30, 0.0  ;;  %v7830_v17 = vmul.f32 0.2, %v7766_v30  ;;  %v8124_v43 = vadd.f32 %v15093_v33, %v15035_v62 }
 0x6d8   : > { %8285 = vst [vmem:[%s15103_s20 + $0x8] sm:$0xff] %v8253_v53  ;;  %vm7797_vm2 = vcmp.ge.f32.partialorder %v7765_v52, 0.0  ;;  %v7829_v12 = vmul.f32 0.2, %v7765_v52  ;;  %v10735_v4 = vpop.f32.mrb[20].mxu1 }
 0x6d9   : > { %8284 = vst [vmem:[%s15103_s20] sm:$0xff] %v8252_v60  ;;  %v7862_v40 = vsel %vm7798_vm15, %v7766_v30, %v7830_v17  ;;  %v7768_v1 = vadd.f32 %v10735_v4, %v15088_v59  ;;  %v7585_v14 = vpop.f32.mrb[21].mxu1  ;;  %v8134_v60 = vadd.f32 %v15093_v33, %v15039_v13 }
 0x6da   : > { %v8255_v28 = vadd.f32 %v8109_v44, %v7862_v40  ;;  %v7861_v21 = vsel %vm7797_vm2, %v7765_v52, %v7829_v12  ;;  %v7767_v56 = vadd.f32 %v15088_v59, %v7585_v14  ;;  %v8139_v52 = vadd.f32 %v15037_v16, %v15093_v33 }
 0x6db   : > { %v8254_v9 = vadd.f32 %v8104_v34, %v7861_v21  ;;  %vm7800_vm3 = vcmp.ge.f32.partialorder %v7768_v1, 0.0  ;;  %v7832_v48 = vmul.f32 0.2, %v7768_v1 }
 0x6dc   : > { %8287 = vst [vmem:[%s15103_s20 + $0x18] sm:$0xff] %v8255_v28  ;;  %vm7799_vm4 = vcmp.ge.f32.partialorder %v7767_v56, 0.0  ;;  %v7831_v32 = vmul.f32 0.2, %v7767_v56  ;;  %v10738_v15 = vpop.f32.mrb[22].mxu1  ;;  %v8149_v28 = vadd.f32 %v15041_v49, %v15093_v33 }
 0x6dd   : > { %8286 = vst [vmem:[%s15103_s20 + $0x10] sm:$0xff] %v8254_v9  ;;  %v7864_v11 = vsel %vm7800_vm3, %v7768_v1, %v7832_v48  ;;  %v7770_v25 = vadd.f32 %v10738_v15, %v15088_v59  ;;  %v7595_v19 = vpop.f32.mrb[23].mxu1 }
 0x6de   : > { %v8257_v10 = vadd.f32 %v8119_v57, %v7864_v11  ;;  %v7863_v58 = vsel %vm7799_vm4, %v7767_v56, %v7831_v32  ;;  %v7769_v37 = vadd.f32 %v15088_v59, %v7595_v19  ;;  %v8144_v56 = vadd.f32 %v15093_v33, %v15043_v22 }
 0x6df   : > { %v8256_v27 = vadd.f32 %v8114_v0, %v7863_v58  ;;  %vm7802_vm8 = vcmp.ge.f32.partialorder %v7770_v25, 0.0  ;;  %v7834_v2 = vmul.f32 0.2, %v7770_v25 }
 0x6e0   : > { %8289 = vst [vmem:[%s15103_s20 + $0x28] sm:$0xff] %v8257_v10  ;;  %vm7801_vm9 = vcmp.ge.f32.partialorder %v7769_v37, 0.0  ;;  %v7833_v55 = vmul.f32 0.2, %v7769_v37  ;;  %v10741_v47 = vpop.f32.mrb[24].mxu1  ;;  %v8154_v10 = vadd.f32 %v15093_v33, %v15047_v51 }
 0x6e1   : > { %8288 = vst [vmem:[%s15103_s20 + $0x20] sm:$0xff] %v8256_v27  ;;  %v7866_v18 = vsel %vm7802_vm8, %v7770_v25, %v7834_v2  ;;  %v7772_v30 = vadd.f32 %v10741_v47, %v15088_v59  ;;  %v7605_v61 = vpop.f32.mrb[25].mxu1  ;;  %v8159_v25 = vadd.f32 %v15045_v7, %v15093_v33  ;;  %v8169_v47 = vadd.f32 %v15049_v24, %v15093_v33 }
 0x6e2   : > { %v8259_v53 = vadd.f32 %v8129_v35, %v7866_v18  ;;  %v7865_v42 = vsel %vm7801_vm9, %v7769_v37, %v7833_v55  ;;  %v7771_v5 = vadd.f32 %v15088_v59, %v7605_v61 }
 0x6e3   : > { %v8258_v44 = vadd.f32 %v8124_v43, %v7865_v42  ;;  %vm7804_vm10 = vcmp.ge.f32.partialorder %v7772_v30, 0.0  ;;  %v7836_v62 = vmul.f32 0.2, %v7772_v30 }
 0x6e4   : > { %8291 = vst [vmem:[%s15103_s20 + $0x38] sm:$0xff] %v8259_v53  ;;  %vm7803_vm11 = vcmp.ge.f32.partialorder %v7771_v5, 0.0  ;;  %v7835_v17 = vmul.f32 0.2, %v7771_v5  ;;  %v10744_v34 = vpop.f32.mrb[26].mxu1 }
 0x6e5   : > { %8290 = vst [vmem:[%s15103_s20 + $0x30] sm:$0xff] %v8258_v44  ;;  %v7868_v12 = vsel %vm7804_vm10, %v7772_v30, %v7836_v62  ;;  %v7774_v4 = vadd.f32 %v10744_v34, %v15088_v59  ;;  %v7615_v40 = vpop.f32.mrb[27].mxu1  ;;  %v8164_v30 = vadd.f32 %v15093_v33, %v15051_v46  ;;  %v8174_v34 = vadd.f32 %v15093_v33, %v15055_v23 }
 0x6e6   : > { %v8261_v1 = vadd.f32 %v8139_v52, %v7868_v12  ;;  %v7867_v14 = vsel %vm7803_vm11, %v7771_v5, %v7835_v17  ;;  %v7773_v16 = vadd.f32 %v15088_v59, %v7615_v40 }
 0x6e7   : > { %v8260_v21 = vadd.f32 %v8134_v60, %v7867_v14  ;;  %vm7806_vm5 = vcmp.ge.f32.partialorder %v7774_v4, 0.0  ;;  %v7838_v13 = vmul.f32 0.2, %v7774_v4  ;;  %v8179_v60 = vadd.f32 %v15053_v45, %v15093_v33 }
 0x6e8   : > { %8293 = vst [vmem:[%s15103_s20 + $0x48] sm:$0xff] %v8261_v1  ;;  %vm7805_vm6 = vcmp.ge.f32.partialorder %v7773_v16, 0.0  ;;  %v7837_v57 = vmul.f32 0.2, %v7773_v16  ;;  %v10747_v9 = vpop.f32.mrb[28].mxu1 }
 0x6e9   : > { %8292 = vst [vmem:[%s15103_s20 + $0x40] sm:$0xff] %v8260_v21  ;;  %v7870_v48 = vsel %vm7806_vm5, %v7774_v4, %v7838_v13  ;;  %v7776_v0 = vadd.f32 %v10747_v9, %v15088_v59  ;;  %v7625_v32 = vpop.f32.mrb[29].mxu1  ;;  %v8189_v21 = vadd.f32 %v15057_v20, %v15093_v33 }
 0x6ea   : > { %v8263_v15 = vadd.f32 %v8149_v28, %v7870_v48  ;;  %v7869_v11 = vsel %vm7805_vm6, %v7773_v16, %v7837_v57  ;;  %v7775_v49 = vadd.f32 %v15088_v59, %v7625_v32 }
 0x6eb   : > { %v8262_v19 = vadd.f32 %v8144_v56, %v7869_v11  ;;  %vm7808_vm12 = vcmp.ge.f32.partialorder %v7776_v0, 0.0  ;;  %v7840_v22 = vmul.f32 0.2, %v7776_v0  ;;  %v8184_v56 = vadd.f32 %v15093_v33, %v15059_v6 }
 0x6ec   : > { %8295 = vst [vmem:[%s15103_s20 + $0x58] sm:$0xff] %v8263_v15  ;;  %vm7807_vm7 = vcmp.ge.f32.partialorder %v7775_v49, 0.0  ;;  %v7839_v58 = vmul.f32 0.2, %v7775_v49  ;;  %v10750_v37 = vpop.f32.mrb[30].mxu1 }
 0x6ed   : > { %8294 = vst [vmem:[%s15103_s20 + $0x50] sm:$0xff] %v8262_v19  ;;  %v7872_v35 = vsel %vm7808_vm12, %v7776_v0, %v7840_v22  ;;  %v7778_v27 = vadd.f32 %v10750_v37, %v15088_v59  ;;  %v7635_v2 = vpop.f32.mrb[31].mxu1  ;;  %v8194_v19 = vadd.f32 %v15093_v33, %v15063_v8 }
 0x6ee   : > { %v8265_v43 = vadd.f32 %v8159_v25, %v7872_v35  ;;  %v7871_v55 = vsel %vm7807_vm7, %v7775_v49, %v7839_v58  ;;  %v7777_v7 = vadd.f32 %v15088_v59, %v7635_v2  ;;  %v8199_v49 = vadd.f32 %v15061_v29, %v15093_v33 }
 0x6ef   : > { %v8264_v18 = vadd.f32 %v8154_v10, %v7871_v55  ;;  %vm7810_vm1 = vcmp.ge.f32.partialorder %v7778_v27, 0.0  ;;  %v7842_v51 = vmul.f32 0.2, %v7778_v27 }
 0x6f0   : > { %8297 = vst [vmem:[%s15103_s20 + $0x68] sm:$0xff] %v8265_v43  ;;  %vm7809_vm0 = vcmp.ge.f32.partialorder %v7777_v7, 0.0  ;;  %v7841_v61 = vmul.f32 0.2, %v7777_v7  ;;  %v10753_v53 = vpop.f32.mrb[32].mxu1  ;;  %v8209_v43 = vadd.f32 %v15065_v36, %v15093_v33 }
 0x6f1   : > { %8296 = vst [vmem:[%s15103_s20 + $0x60] sm:$0xff] %v8264_v18  ;;  %v7874_v42 = vsel %vm7810_vm1, %v7778_v27, %v7842_v51  ;;  %v7780_v5 = vadd.f32 %v10753_v53, %v15088_v59  ;;  %v7645_v52 = vpop.f32.mrb[33].mxu1 }
 0x6f2   : > { %v8267_v44 = vadd.f32 %v8169_v47, %v7874_v42  ;;  %v7873_v62 = vsel %vm7809_vm0, %v7777_v7, %v7841_v61  ;;  %v7779_v24 = vadd.f32 %v15088_v59, %v7645_v52  ;;  %v8204_v7 = vadd.f32 %v15093_v33, %v15067_v39 }
 0x6f3   : > { %v8266_v17 = vadd.f32 %v8164_v30, %v7873_v62  ;;  %vm7812_vm13 = vcmp.ge.f32.partialorder %v7780_v5, 0.0  ;;  %v7844_v46 = vmul.f32 0.2, %v7780_v5 }
 0x6f4   : > { %8299 = vst [vmem:[%s15103_s20 + $0x78] sm:$0xff] %v8267_v44  ;;  %vm7811_vm14 = vcmp.ge.f32.partialorder %v7779_v24, 0.0  ;;  %v7843_v12 = vmul.f32 0.2, %v7779_v24  ;;  %v10756_v4 = vpop.f32.mrb[34].mxu1  ;;  %v8214_v44 = vadd.f32 %v15093_v33, %v15071_v41 }
 0x6f5   : > { %8298 = vst [vmem:[%s15103_s20 + $0x70] sm:$0xff] %v8266_v17  ;;  %v7876_v40 = vsel %vm7812_vm13, %v7780_v5, %v7844_v46  ;;  %v7782_v1 = vadd.f32 %v10756_v4, %v15088_v59  ;;  %v7655_v14 = vpop.f32.mrb[35].mxu1  ;;  %v8219_v5 = vadd.f32 %v15069_v26, %v15093_v33  ;;  %v8229_v4 = vadd.f32 %v15073_v31, %v15093_v33 }
 0x6f6   : > { %v8269_v16 = vadd.f32 %v8179_v60, %v7876_v40  ;;  %v7875_v28 = vsel %vm7811_vm14, %v7779_v24, %v7843_v12  ;;  %v7781_v45 = vadd.f32 %v15088_v59, %v7655_v14 }
 0x6f7   : > { %v8268_v13 = vadd.f32 %v8174_v34, %v7875_v28  ;;  %vm7814_vm15 = vcmp.ge.f32.partialorder %v7782_v1, 0.0  ;;  %v7846_v23 = vmul.f32 0.2, %v7782_v1 }
 0x6f8   : > { %8301 = vst [vmem:[%s15103_s20 + $0x88] sm:$0xff] %v8269_v16  ;;  %vm7813_vm2 = vcmp.ge.f32.partialorder %v7781_v45, 0.0  ;;  %v7845_v57 = vmul.f32 0.2, %v7781_v45  ;;  %v10759_v9 = vpop.f32.mrb[36].mxu1 }
 0x6f9   : > { %8300 = vst [vmem:[%s15103_s20 + $0x80] sm:$0xff] %v8268_v13  ;;  %v7878_v48 = vsel %vm7814_vm15, %v7782_v1, %v7846_v23  ;;  %v7784_v0 = vadd.f32 %v10759_v9, %v15088_v59  ;;  %v7665_v32 = vpop.f32.mrb[37].mxu1  ;;  %v8224_v1 = vadd.f32 %v15093_v33, %v15075_v38  ;;  %v8234_v9 = vadd.f32 %v15093_v33, %v15079_v3 }
 0x6fa   : > { %v8271_v15 = vadd.f32 %v8189_v21, %v7878_v48  ;;  %v7877_v11 = vsel %vm7813_vm2, %v7781_v45, %v7845_v57  ;;  %v7783_v20 = vadd.f32 %v15088_v59, %v7665_v32  ;;  %v8249_v3 = vadd.f32 %v15081_v63, %v15093_v33 }
 0x6fb   : > { %v8270_v25 = vadd.f32 %v8184_v56, %v7877_v11  ;;  %vm7816_vm3 = vcmp.ge.f32.partialorder %v7784_v0, 0.0  ;;  %v7848_v6 = vmul.f32 0.2, %v7784_v0  ;;  %v8239_v56 = vadd.f32 %v15077_v54, %v15093_v33 }
 0x6fc   : > { %8303 = vst [vmem:[%s15103_s20 + $0x98] sm:$0xff] %v8271_v15  ;;  %vm7815_vm4 = vcmp.ge.f32.partialorder %v7783_v20, 0.0  ;;  %v7847_v22 = vmul.f32 0.2, %v7783_v20  ;;  %v10762_v10 = vpop.f32.mrb[38].mxu1 }
 0x6fd   : > { %8302 = vst [vmem:[%s15103_s20 + $0x90] sm:$0xff] %v8270_v25  ;;  %v7880_v58 = vsel %vm7816_vm3, %v7784_v0, %v7848_v6  ;;  %v7786_v37 = vadd.f32 %v10762_v10, %v15088_v59  ;;  %v7675_v35 = vpop.f32.mrb[39].mxu1 }
 0x6fe   : > { %v8273_v27 = vadd.f32 %v8199_v49, %v7880_v58  ;;  %v7879_v2 = vsel %vm7815_vm4, %v7783_v20, %v7847_v22  ;;  %v7785_v29 = vadd.f32 %v15088_v59, %v7675_v35 }
 0x6ff   : > { %v8272_v55 = vadd.f32 %v8194_v19, %v7879_v2  ;;  %vm7818_vm8 = vcmp.ge.f32.partialorder %v7786_v37, 0.0  ;;  %v7850_v8 = vmul.f32 0.2, %v7786_v37  ;;  %v8244_v19 = vadd.f32 %v15093_v33, %v15083_v50 }
 0x700   : > { %8305 = vst [vmem:[%s15103_s20 + $0xa8] sm:$0xff] %v8273_v27  ;;  %vm7817_vm9 = vcmp.ge.f32.partialorder %v7785_v29, 0.0  ;;  %v7849_v47 = vmul.f32 0.2, %v7785_v29  ;;  %v10765_v18 = vpop.f32.mrb[40].mxu1 }
 0x701   : > { %8304 = vst [vmem:[%s15103_s20 + $0xa0] sm:$0xff] %v8272_v55  ;;  %v7882_v51 = vsel %vm7818_vm8, %v7786_v37, %v7850_v8  ;;  %v7788_v30 = vadd.f32 %v10765_v18, %v15088_v59  ;;  %v7685_v61 = vpop.f32.mrb[41].mxu1 }
 0x702   : > { %v8275_v53 = vadd.f32 %v8209_v43, %v7882_v51  ;;  %v7881_v42 = vsel %vm7817_vm9, %v7785_v29, %v7849_v47  ;;  %v7787_v36 = vadd.f32 %v15088_v59, %v7685_v61 }
 0x703   : > { %v8274_v52 = vadd.f32 %v8204_v7, %v7881_v42  ;;  %vm7820_vm10 = vcmp.ge.f32.partialorder %v7788_v30, 0.0  ;;  %v7852_v39 = vmul.f32 0.2, %v7788_v30 }
 0x704   : > { %8307 = vst [vmem:[%s15103_s20 + $0xb8] sm:$0xff] %v8275_v53  ;;  %vm7819_vm11 = vcmp.ge.f32.partialorder %v7787_v36, 0.0  ;;  %v7851_v62 = vmul.f32 0.2, %v7787_v36  ;;  %v10768_v24 = vpop.f32.mrb[42].mxu1 }
 0x705   : > { %8306 = vst [vmem:[%s15103_s20 + $0xb0] sm:$0xff] %v8274_v52  ;;  %v7884_v60 = vsel %vm7820_vm10, %v7788_v30, %v7852_v39  ;;  %v7790_v17 = vadd.f32 %v10768_v24, %v15088_v59  ;;  %v7695_v46 = vpop.f32.mrb[43].mxu1 }
 0x706   : > { %v8277_v34 = vadd.f32 %v8219_v5, %v7884_v60  ;;  %v7883_v12 = vsel %vm7819_vm11, %v7787_v36, %v7851_v62  ;;  %v7789_v26 = vadd.f32 %v15088_v59, %v7695_v46 }
 0x707   : > { %v8276_v40 = vadd.f32 %v8214_v44, %v7883_v12  ;;  %vm7822_vm5 = vcmp.ge.f32.partialorder %v7790_v17, 0.0  ;;  %v7854_v41 = vmul.f32 0.2, %v7790_v17 }
 0x708   : > { %8309 = vst [vmem:[%s15103_s20 + $0xc8] sm:$0xff] %v8277_v34  ;;  %vm7821_vm6 = vcmp.ge.f32.partialorder %v7789_v26, 0.0  ;;  %v7853_v14 = vmul.f32 0.2, %v7789_v26  ;;  %v10771_v16 = vpop.f32.mrb[44].mxu1 }
 0x709   : > { %8308 = vst [vmem:[%s15103_s20 + $0xc0] sm:$0xff] %v8276_v40  ;;  %v7886_v28 = vsel %vm7822_vm5, %v7790_v17, %v7854_v41  ;;  %v7792_v45 = vadd.f32 %v10771_v16, %v15088_v59  ;;  %v7705_v21 = vpop.f32.mrb[45].mxu1 }
 0x70a   : > { %v8279_v13 = vadd.f32 %v8229_v4, %v7886_v28  ;;  %v7885_v23 = vsel %vm7821_vm6, %v7789_v26, %v7853_v14  ;;  %v7791_v31 = vadd.f32 %v15088_v59, %v7705_v21 }
 0x70b   : > { %v8278_v57 = vadd.f32 %v8224_v1, %v7885_v23  ;;  %vm7824_vm12 = vcmp.ge.f32.partialorder %v7792_v45, 0.0  ;;  %v7856_v38 = vmul.f32 0.2, %v7792_v45 }
 0x70c   : > { %8311 = vst [vmem:[%s15103_s20 + $0xd8] sm:$0xff] %v8279_v13  ;;  %vm7823_vm7 = vcmp.ge.f32.partialorder %v7791_v31, 0.0  ;;  %v7855_v48 = vmul.f32 0.2, %v7791_v31  ;;  %v10774_v0 = vpop.f32.mrb[46].mxu1 }
 0x70d   : > { %8310 = vst [vmem:[%s15103_s20 + $0xd0] sm:$0xff] %v8278_v57  ;;  %v7888_v32 = vsel %vm7824_vm12, %v7792_v45, %v7856_v38  ;;  %v7794_v15 = vadd.f32 %v10774_v0, %v15088_v59  ;;  %v7715_v11 = vpop.f32.mrb[47].mxu1 }
 0x70e   : > { %v8281_v20 = vadd.f32 %v8239_v56, %v7888_v32  ;;  %v7887_v54 = vsel %vm7823_vm7, %v7791_v31, %v7855_v48  ;;  %v7793_v49 = vadd.f32 %v15088_v59, %v7715_v11 }
 0x70f   : > { %v8280_v25 = vadd.f32 %v8234_v9, %v7887_v54  ;;  %vm7826_vm1 = vcmp.ge.f32.partialorder %v7794_v15, 0.0  ;;  %v7858_v6 = vmul.f32 0.2, %v7794_v15 }
 0x710   : > { %8313 = vst [vmem:[%s15103_s20 + $0xe8] sm:$0xff] %v8281_v20  ;;  %vm7825_vm0 = vcmp.ge.f32.partialorder %v7793_v49, 0.0  ;;  %v7857_v22 = vmul.f32 0.2, %v7793_v49 }
 0x711   : > { %8312 = vst [vmem:[%s15103_s20 + $0xe0] sm:$0xff] %v8280_v25  ;;  %v7890_v10 = vsel %vm7826_vm1, %v7794_v15, %v7858_v6 }
 0x712   : > { %v8283_v58 = vadd.f32 %v8249_v3, %v7890_v10  ;;  %v7889_v37 = vsel %vm7825_vm0, %v7793_v49, %v7857_v22 }
 0x713   : > { %v8282_v35 = vadd.f32 %v8244_v19, %v7889_v37 }
 0x714   : > { %8315 = vst [vmem:[%s15103_s20 + $0xf8] sm:$0xff] %v8283_v58 }
 0x715   : > { %8314 = vst [vmem:[%s15103_s20 + $0xf0] sm:$0xff] %v8282_v35 }
 0x716 PF: > { %s21_s17 = sadd.s32 1, %s11650_s17  }
 0x717   : > { %p18_p4 = scmp.ge.s32.totalorder %s21_s17, 4  }
 0x719   :  { %20 = sbr.rel (!%p18_p4) target bundleno = 1 (0x1), region = 110 }

</bundles_post_ra>
